<compile_context>
chip_gen: v6e
topology: v6e:2x2x1
jax: 0.10.0
libtpu: 0.0.40
codegen_flags: <defaults>
</compile_context>

<pallas_src>
import functools

import jax
import jax.numpy as jnp
import numpy as np
from jax.experimental import pallas as pl
from jax.experimental.pallas import tpu as pltpu


# Geometry: 28x28x1 input, four stride-2 convs -> 13, 7, 4, 2 spatial.
IN_HW = 28
OW1, OW2, OW3, OW4 = 13, 7, 4, 2
C1, C2, C3, C4 = 16, 32, 64, 64
K1 = 5 * 5 * 1                    # conv1 im2col depth (Cin == 1)
FEAT = OW4 * OW4 * C4             # 256


def _swish(v):
    # swish(x) = x * sigmoid(x); exp + approx reciprocal both go to the EUP slot.
    return v * pl.reciprocal(1.0 + jnp.exp(-v), approx=True)


# ---------------------------------------------------------------------------
# Fused forward kernel (BT examples per grid step)
# ---------------------------------------------------------------------------
def _make_kernel(bt):
    def kernel(pat_ref, w1_ref, b1_ref, w2_ref, b2_ref, w3_ref, b3_ref,
               w4_ref, b4_ref, wd_ref, bd_ref, wd2_ref, bd2_ref,
               out_ref, act1, imc2, act2, imc3, act3, imc4, feat):
        f32, bf16 = jnp.float32, jnp.bfloat16

        # Zero the im2col staging buffers: entries whose tap falls in the conv
        # zero-padding are never written below and must read as 0.  Buffers are
        # small, so clearing every step is cheap and stays correct even when the
        # "parallel" grid axis is split across TensorCores.
        imc2[...] = jnp.zeros_like(imc2)
        imc3[...] = jnp.zeros_like(imc3)
        imc4[...] = jnp.zeros_like(imc4)

        def gather_3x3_s2(src_ref, ow_in, ow_out, cin, dst_ref):
            """Full-layer im2col for a 3x3 / stride-2 / pad-1 conv.

            src_ref: (bt*ow_in^2, cin)  activations, (b, y, x)-major.
            dst_ref: (bt*ow_out^2, 9*cin) staging; out-of-range taps are skipped
            (their entries stay zero from the clear above).
            """
            for b in range(bt):
                sbase = b * ow_in * ow_in
                dbase = b * ow_out * ow_out
                for i in range(3):
                    for j in range(3):
                        col0 = (i * 3 + j) * cin
                        x_lo = max(0, (2 - j) // 2)                 # ceil((1-j)/2)
                        x_hi = min(ow_out - 1, (ow_in - j) // 2)
                        n = x_hi - x_lo + 1
                        if n <= 0:
                            continue
                        c0 = 2 * x_lo + j - 1                       # first input col
                        for y in range(ow_out):
                            r = 2 * y + i - 1                       # input row
                            if r < 0 or r >= ow_in:
                                continue
                            v = src_ref[pl.ds(sbase + r * ow_in + c0, n, stride=2), :]
                            dst_ref[pl.ds(dbase + y * ow_out + x_lo, n),
                                    col0:col0 + cin] = v

        def conv(lhs_bf16, w_ref, b_ref):
            acc = jnp.dot(lhs_bf16, w_ref[...], preferred_element_type=f32)
            return _swish(acc + b_ref[...])

        # conv1: one (bt*169, 25) @ (25, 16) matmul from pre-computed patches.
        act1[...] = conv(pat_ref[0], w1_ref, b1_ref)

        # conv2: 13x13x16 -> 7x7x32, one (bt*49, 144) @ (144, 32) matmul.
        gather_3x3_s2(act1, OW1, OW2, C1, imc2)
        act2[...] = conv(imc2[...].astype(bf16), w2_ref, b2_ref)

        # conv3: 7x7x32 -> 4x4x64, one (bt*16, 288) @ (288, 64) matmul.
        gather_3x3_s2(act2, OW2, OW3, C2, imc3)
        act3[...] = conv(imc3[...].astype(bf16), w3_ref, b3_ref)

        # conv4: 4x4x64 -> 2x2x64, one (bt*4, 576) @ (576, 64) matmul.
        gather_3x3_s2(act3, OW3, OW4, C3, imc4)
        v4 = conv(imc4[...].astype(bf16), w4_ref, b4_ref)          # (bt*4, 64) f32

        # Scatter conv4 rows (b, h*2+w) into the (bt, 256) dense lhs: row p of
        # example b -> columns [p*64, (p+1)*64).  Matches torch's (C,H,W) flatten
        # via the permuted dense weight prepared at init.
        for b in range(bt):
            for p in range(OW4 * OW4):
                row = b * OW4 * OW4 + p
                feat[pl.ds(b, 1), pl.ds(p * C4, C4)] = v4[row:row + 1, :]

        # dense (256 -> 64, swish) + dense2 (64 -> 1, lane-dense 128-wide store).
        h = conv(feat[...].astype(bf16), wd_ref, bd_ref)            # (bt, 64) f32
        e = jnp.dot(h.astype(bf16), wd2_ref[...],
                    preferred_element_type=f32) + bd2_ref[...]      # (bt, 128)
        out_ref[0] = e

    return kernel


# ---------------------------------------------------------------------------
# Parameters: torch-layout init + one-time preprocessing (hoisted out of forward)
# ---------------------------------------------------------------------------
def init_params(key):
    def conv_init(k, cout, cin, kh, kw):
        k1, k2 = jax.random.split(k)
        bound = 1.0 / np.sqrt(cin * kh * kw)
        w = jax.random.uniform(k1, (cout, cin, kh, kw), jnp.float32, -bound, bound)
        b = jax.random.uniform(k2, (cout,), jnp.float32, -bound, bound)
        return w, b

    def lin_init(k, cout, cin):
        k1, k2 = jax.random.split(k)
        bound = 1.0 / np.sqrt(cin)
        w = jax.random.uniform(k1, (cout, cin), jnp.float32, -bound, bound)
        b = jax.random.uniform(k2, (cout,), jnp.float32, -bound, bound)
        return w, b

    ks = jax.random.split(key, 6)
    return {
        "conv1": conv_init(ks[0], C1, 1, 5, 5),
        "conv2": conv_init(ks[1], C2, C1, 3, 3),
        "conv3": conv_init(ks[2], C3, C2, 3, 3),
        "conv4": conv_init(ks[3], C4, C3, 3, 3),
        "dense": lin_init(ks[4], 64, FEAT),
        "dense2": lin_init(ks[5], 1, 64),
    }


def prepare_params(params):
    """One-time preprocessing of torch-layout params into kernel matmul layout."""
    w1, b1 = params["conv1"]
    w2, b2 = params["conv2"]
    w3, b3 = params["conv3"]
    w4, b4 = params["conv4"]
    wd, bd = params["dense"]
    wd2, bd2 = params["dense2"]

    def conv_taps(w):   # OIHW -> (KH*KW*Cin, Cout), tap-major then Cin
        co, ci, kh, kw = w.shape
        return jnp.transpose(w, (2, 3, 1, 0)).reshape(kh * kw * ci, co)

    bf16 = jnp.bfloat16
    return {
        # conv1 as im2col matmul.  NOTE: relies on Cin == 1, so the patch feature
        # order (kh, kw) matches torch's (Cin, kh, kw) flatten.
        "w1": w1.reshape(C1, K1).T.astype(bf16),
        "b1": b1.reshape(1, C1),
        "w2": conv_taps(w2).astype(bf16), "b2": b2.reshape(1, C2),
        "w3": conv_taps(w3).astype(bf16), "b3": b3.reshape(1, C3),
        "w4": conv_taps(w4).astype(bf16), "b4": b4.reshape(1, C4),
        # torch flattens (C, H, W); kernel features are ((h*2+w)*64 + c).
        "wd": jnp.transpose(wd.reshape(64, C4, OW4, OW4), (2, 3, 1, 0))
                 .reshape(FEAT, 64).astype(bf16),
        "bd": bd.reshape(1, 64),
        # dense2 stored lane-dense: real weights in column 0 of (64, 128); the
        # other 127 output lanes carry only the broadcast bias (sliced off below).
        "wd2": jnp.zeros((64, 128), jnp.float32).at[:, 0].set(wd2[0]).astype(bf16),
        "bd2": jnp.full((1, 128), bd2[0], jnp.float32),
    }


# ---------------------------------------------------------------------------
# Forward pass: one XLA im2col for conv1, then a single fused pallas_call
# ---------------------------------------------------------------------------
@functools.partial(jax.jit, static_argnames=("bt",))
def _energy_forward_impl(prepared, x, *, bt):
    B = x.shape[0]
    assert x.shape[1:] == (1, IN_HW, IN_HW) and B % bt == 0
    G = B // bt

    # im2col of the raw input for conv1 (Cin == 1): (B,25,13,13) -> (G, bt*169, 25).
    patches = jax.lax.conv_general_dilated_patches(
        x, filter_shape=(5, 5), window_strides=(2, 2), padding=((1, 1), (1, 1)))
    patches = jnp.transpose(patches, (0, 2, 3, 1)).reshape(G, bt * OW1 * OW1, K1)
    patches = patches.astype(jnp.bfloat16)

    weight_keys = ("w1", "b1", "w2", "b2", "w3", "b3", "w4", "b4",
                   "wd", "bd", "wd2", "bd2")
    weights = [prepared[k] for k in weight_keys]

    def full2d(a):  # weights stay fully resident in VMEM across the grid
        return pl.BlockSpec(a.shape, lambda g: (0, 0))

    in_specs = ([pl.BlockSpec((1, bt * OW1 * OW1, K1), lambda g: (g, 0, 0))]
                + [full2d(a) for a in weights])

    out = pl.pallas_call(
        _make_kernel(bt),
        out_shape=jax.ShapeDtypeStruct((G, bt, 128), jnp.float32),
        grid_spec=pltpu.PrefetchScalarGridSpec(
            num_scalar_prefetch=0,
            grid=(G,),
            in_specs=in_specs,
            out_specs=pl.BlockSpec((1, bt, 128), lambda g: (g, 0, 0)),
            scratch_shapes=[
                pltpu.VMEM((bt * OW1 * OW1, C1), jnp.float32),       # act1
                pltpu.VMEM((bt * OW2 * OW2, 9 * C1), jnp.float32),   # imc2
                pltpu.VMEM((bt * OW2 * OW2, C2), jnp.float32),       # act2
                pltpu.VMEM((bt * OW3 * OW3, 9 * C2), jnp.float32),   # imc3
                pltpu.VMEM((bt * OW3 * OW3, C3), jnp.float32),       # act3
                pltpu.VMEM((bt * OW4 * OW4, 9 * C3), jnp.float32),   # imc4
                pltpu.VMEM((bt, FEAT), jnp.float32),                 # dense lhs
            ]),
        compiler_params=pltpu.CompilerParams(
            dimension_semantics=("parallel",)),
    )(patches, *weights)
    return out.reshape(B, 128)[:, :1]                                # (B, 1)


def energy_forward(prepared, x, bt=None):
    B = x.shape[0]
    if bt is None:
        bt = next(d for d in (8, 4, 2, 1) if B % d == 0)
    return _energy_forward_impl(prepared, x, bt=bt)


# ---------------------------------------------------------------------------
# Pure-JAX f32 reference (torch-layout params) for correctness check
# ---------------------------------------------------------------------------
def energy_forward_ref(params, x):
    def swish(v):
        return v * jax.nn.sigmoid(v)

    def conv(v, wb):
        w, b = wb
        y = jax.lax.conv_general_dilated(
            v, w, window_strides=(2, 2), padding=[(1, 1), (1, 1)],
            dimension_numbers=("NCHW", "OIHW", "NCHW"),
            precision=jax.lax.Precision.HIGHEST)
        return swish(y + b.reshape(1, -1, 1, 1))

    v = conv(x, params["conv1"])
    v = conv(v, params["conv2"])
    v = conv(v, params["conv3"])
    v = conv(v, params["conv4"])
    v = v.reshape(v.shape[0], -1)
    wd, bd = params["dense"]
    v = swish(v @ wd.T + bd)
    wd2, bd2 = params["dense2"]
    return v @ wd2.T + bd2


if __name__ == "__main__":
    key = jax.random.PRNGKey(0)
    kx, kp = jax.random.split(key)
    # (B, C, H, W) = (2, 1, 28, 28): 4 stride-2 convs -> 2x2x64 = 256 features,
    # consistent with EnergyFunction(out_size=2, out_channels=64).
    x = jax.random.normal(kx, (2, 1, 28, 28), dtype=jnp.float32)
    params = init_params(kp)
    prepared = prepare_params(params)          # hoisted weight preprocessing

    out = energy_forward(prepared, x)          # bt = 2, grid = (1,)
    out = jax.block_until_ready(out)

    ref = energy_forward_ref(params, x)
    # bf16 MXU operands + approx-reciprocal swish vs. f32 HIGHEST reference.
    np.testing.assert_allclose(np.asarray(out), np.asarray(ref),
                               rtol=2e-2, atol=2e-2)
    assert out.shape == (2, 1) and out.dtype == jnp.float32
    print("KERNEL_OK")
</pallas_src>

<mosaic_0001>
module attributes {stable_mosaic.version = 11 : i64} {
  func.func @kernel(%arg0: i32, %arg1: memref<1x338x25xbf16, #tpu.memory_space<vmem>>, %arg2: memref<25x16xbf16, #tpu.memory_space<vmem>>, %arg3: memref<1x16xf32, #tpu.memory_space<vmem>>, %arg4: memref<144x32xbf16, #tpu.memory_space<vmem>>, %arg5: memref<1x32xf32, #tpu.memory_space<vmem>>, %arg6: memref<288x64xbf16, #tpu.memory_space<vmem>>, %arg7: memref<1x64xf32, #tpu.memory_space<vmem>>, %arg8: memref<576x64xbf16, #tpu.memory_space<vmem>>, %arg9: memref<1x64xf32, #tpu.memory_space<vmem>>, %arg10: memref<256x64xbf16, #tpu.memory_space<vmem>>, %arg11: memref<1x64xf32, #tpu.memory_space<vmem>>, %arg12: memref<64x128xbf16, #tpu.memory_space<vmem>>, %arg13: memref<1x128xf32, #tpu.memory_space<vmem>>, %arg14: memref<1x2x128xf32, #tpu.memory_space<vmem>>, %arg15: memref<338x16xf32, #tpu.memory_space<vmem>>, %arg16: memref<98x144xf32, #tpu.memory_space<vmem>>, %arg17: memref<98x32xf32, #tpu.memory_space<vmem>>, %arg18: memref<32x288xf32, #tpu.memory_space<vmem>>, %arg19: memref<32x64xf32, #tpu.memory_space<vmem>>, %arg20: memref<8x576xf32, #tpu.memory_space<vmem>>, %arg21: memref<2x256xf32, #tpu.memory_space<vmem>>) attributes {dimension_semantics = [#tpu.dimension_semantics<parallel>], iteration_bounds = array<i64: 1>, scalar_prefetch = 0 : i64, scratch_operands = 7 : i64, tpu.core_type = #tpu.core_type<tc>, window_params = [{transform_indices = @transform_0, window_bounds = array<i64: 1, 338, 25>}, {pipeline_mode = #tpu.pipeline_mode<synchronous>, transform_indices = @transform_1, window_bounds = array<i64: 25, 16>}, {pipeline_mode = #tpu.pipeline_mode<synchronous>, transform_indices = @transform_2, window_bounds = array<i64: 1, 16>}, {pipeline_mode = #tpu.pipeline_mode<synchronous>, transform_indices = @transform_3, window_bounds = array<i64: 144, 32>}, {pipeline_mode = #tpu.pipeline_mode<synchronous>, transform_indices = @transform_4, window_bounds = array<i64: 1, 32>}, {pipeline_mode = #tpu.pipeline_mode<synchronous>, transform_indices = @transform_5, window_bounds = array<i64: 288, 64>}, {pipeline_mode = #tpu.pipeline_mode<synchronous>, transform_indices = @transform_6, window_bounds = array<i64: 1, 64>}, {pipeline_mode = #tpu.pipeline_mode<synchronous>, transform_indices = @transform_7, window_bounds = array<i64: 576, 64>}, {pipeline_mode = #tpu.pipeline_mode<synchronous>, transform_indices = @transform_8, window_bounds = array<i64: 1, 64>}, {pipeline_mode = #tpu.pipeline_mode<synchronous>, transform_indices = @transform_9, window_bounds = array<i64: 256, 64>}, {pipeline_mode = #tpu.pipeline_mode<synchronous>, transform_indices = @transform_10, window_bounds = array<i64: 1, 64>}, {pipeline_mode = #tpu.pipeline_mode<synchronous>, transform_indices = @transform_11, window_bounds = array<i64: 64, 128>}, {pipeline_mode = #tpu.pipeline_mode<synchronous>, transform_indices = @transform_12, window_bounds = array<i64: 1, 128>}, {transform_indices = @transform_13, window_bounds = array<i64: 1, 2, 128>}]} {
    %cst = arith.constant 0.000000e+00 : f32
    %0 = vector.broadcast %cst : f32 to vector<98x144xf32>
    %c0 = arith.constant 0 : index
    %c0_0 = arith.constant 0 : index
    %1 = vector.load %arg16[%c0, %c0_0] : memref<98x144xf32, #tpu.memory_space<vmem>>, vector<98x144xf32>
    tpu.vector_store %arg16[%c0, %c0_0], %0 {strides = array<i32>} : memref<98x144xf32, #tpu.memory_space<vmem>>, vector<98x144xf32>,
    %cst_1 = arith.constant 0.000000e+00 : f32
    %2 = vector.broadcast %cst_1 : f32 to vector<32x288xf32>
    %c0_2 = arith.constant 0 : index
    %c0_3 = arith.constant 0 : index
    %3 = vector.load %arg18[%c0_2, %c0_3] : memref<32x288xf32, #tpu.memory_space<vmem>>, vector<32x288xf32>
    tpu.vector_store %arg18[%c0_2, %c0_3], %2 {strides = array<i32>} : memref<32x288xf32, #tpu.memory_space<vmem>>, vector<32x288xf32>,
    %cst_4 = arith.constant 0.000000e+00 : f32
    %4 = vector.broadcast %cst_4 : f32 to vector<8x576xf32>
    %c0_5 = arith.constant 0 : index
    %c0_6 = arith.constant 0 : index
    %5 = vector.load %arg20[%c0_5, %c0_6] : memref<8x576xf32, #tpu.memory_space<vmem>>, vector<8x576xf32>
    tpu.vector_store %arg20[%c0_5, %c0_6], %4 {strides = array<i32>} : memref<8x576xf32, #tpu.memory_space<vmem>>, vector<8x576xf32>,
    %c0_7 = arith.constant 0 : index
    %c0_8 = arith.constant 0 : index
    %c0_9 = arith.constant 0 : index
    %6 = vector.load %arg1[%c0_7, %c0_8, %c0_9] : memref<1x338x25xbf16, #tpu.memory_space<vmem>>, vector<1x338x25xbf16>
    %7 = vector.shape_cast %6 : vector<1x338x25xbf16> to vector<338x25xbf16>
    %c0_10 = arith.constant 0 : index
    %c0_11 = arith.constant 0 : index
    %8 = vector.load %arg2[%c0_10, %c0_11] : memref<25x16xbf16, #tpu.memory_space<vmem>>, vector<25x16xbf16>
    %cst_12 = arith.constant dense<0.000000e+00> : vector<338x16xf32>
    %9 = tpu.matmul %7, %8, %cst_12 {dimension_numbers = #tpu.dot_dimension_numbers<[1], [0], [0], [1], [0, 0, 1, 1], [], []>} : vector<338x25xbf16>, vector<25x16xbf16>, vector<338x16xf32> -> vector<338x16xf32>
    %c0_13 = arith.constant 0 : index
    %c0_14 = arith.constant 0 : index
    %10 = vector.load %arg3[%c0_13, %c0_14] : memref<1x16xf32, #tpu.memory_space<vmem>>, vector<1x16xf32>
    %11 = vector.broadcast %10 : vector<1x16xf32> to vector<338x16xf32>
    %12 = arith.addf %9, %11 : vector<338x16xf32>
    %cst_15 = arith.constant 0.000000e+00 : f32
    %13 = vector.broadcast %cst_15 : f32 to vector<338x16xf32>
    %14 = arith.subf %13, %12 : vector<338x16xf32>
    %15 = math.exp %14 : vector<338x16xf32>
    %cst_16 = arith.constant 1.000000e+00 : f32
    %16 = vector.broadcast %cst_16 : f32 to vector<338x16xf32>
    %17 = arith.addf %16, %15 : vector<338x16xf32>
    %18 = tpu.reciprocal %17 {approx = true} : vector<338x16xf32> -> vector<338x16xf32>
    %19 = arith.mulf %12, %18 : vector<338x16xf32>
    %c0_17 = arith.constant 0 : index
    %c0_18 = arith.constant 0 : index
    %20 = vector.load %arg15[%c0_17, %c0_18] : memref<338x16xf32, #tpu.memory_space<vmem>>, vector<338x16xf32>
    tpu.vector_store %arg15[%c0_17, %c0_18], %19 {strides = array<i32>} : memref<338x16xf32, #tpu.memory_space<vmem>>, vector<338x16xf32>,
    %c14 = arith.constant 14 : index
    %c0_19 = arith.constant 0 : index
    %21 = tpu.strided_load %arg15[%c14, %c0_19] {strides = array<i32: 2, 1>} : memref<338x16xf32, #tpu.memory_space<vmem>>, vector<6x16xf32>
    %c8 = arith.constant 8 : index
    %c0_20 = arith.constant 0 : index
    %22 = vector.load %arg16[%c8, %c0_20] : memref<98x144xf32, #tpu.memory_space<vmem>>, vector<6x16xf32>
    tpu.vector_store %arg16[%c8, %c0_20], %21 {strides = array<i32>} : memref<98x144xf32, #tpu.memory_space<vmem>>, vector<6x16xf32>,
    %c40 = arith.constant 40 : index
    %c0_21 = arith.constant 0 : index
    %23 = tpu.strided_load %arg15[%c40, %c0_21] {strides = array<i32: 2, 1>} : memref<338x16xf32, #tpu.memory_space<vmem>>, vector<6x16xf32>
    %c15 = arith.constant 15 : index
    %c0_22 = arith.constant 0 : index
    %24 = vector.load %arg16[%c15, %c0_22] : memref<98x144xf32, #tpu.memory_space<vmem>>, vector<6x16xf32>
    tpu.vector_store %arg16[%c15, %c0_22], %23 {strides = array<i32>} : memref<98x144xf32, #tpu.memory_space<vmem>>, vector<6x16xf32>,
    %c66 = arith.constant 66 : index
    %c0_23 = arith.constant 0 : index
    %25 = tpu.strided_load %arg15[%c66, %c0_23] {strides = array<i32: 2, 1>} : memref<338x16xf32, #tpu.memory_space<vmem>>, vector<6x16xf32>
    %c22 = arith.constant 22 : index
    %c0_24 = arith.constant 0 : index
    %26 = vector.load %arg16[%c22, %c0_24] : memref<98x144xf32, #tpu.memory_space<vmem>>, vector<6x16xf32>
    tpu.vector_store %arg16[%c22, %c0_24], %25 {strides = array<i32>} : memref<98x144xf32, #tpu.memory_space<vmem>>, vector<6x16xf32>,
    %c92 = arith.constant 92 : index
    %c0_25 = arith.constant 0 : index
    %27 = tpu.strided_load %arg15[%c92, %c0_25] {strides = array<i32: 2, 1>} : memref<338x16xf32, #tpu.memory_space<vmem>>, vector<6x16xf32>
    %c29 = arith.constant 29 : index
    %c0_26 = arith.constant 0 : index
    %28 = vector.load %arg16[%c29, %c0_26] : memref<98x144xf32, #tpu.memory_space<vmem>>, vector<6x16xf32>
    tpu.vector_store %arg16[%c29, %c0_26], %27 {strides = array<i32>} : memref<98x144xf32, #tpu.memory_space<vmem>>, vector<6x16xf32>,
    %c118 = arith.constant 118 : index
    %c0_27 = arith.constant 0 : index
    %29 = tpu.strided_load %arg15[%c118, %c0_27] {strides = array<i32: 2, 1>} : memref<338x16xf32, #tpu.memory_space<vmem>>, vector<6x16xf32>
    %c36 = arith.constant 36 : index
    %c0_28 = arith.constant 0 : index
    %30 = vector.load %arg16[%c36, %c0_28] : memref<98x144xf32, #tpu.memory_space<vmem>>, vector<6x16xf32>
    tpu.vector_store %arg16[%c36, %c0_28], %29 {strides = array<i32>} : memref<98x144xf32, #tpu.memory_space<vmem>>, vector<6x16xf32>,
    %c144 = arith.constant 144 : index
    %c0_29 = arith.constant 0 : index
    %31 = tpu.strided_load %arg15[%c144, %c0_29] {strides = array<i32: 2, 1>} : memref<338x16xf32, #tpu.memory_space<vmem>>, vector<6x16xf32>
    %c43 = arith.constant 43 : index
    %c0_30 = arith.constant 0 : index
    %32 = vector.load %arg16[%c43, %c0_30] : memref<98x144xf32, #tpu.memory_space<vmem>>, vector<6x16xf32>
    tpu.vector_store %arg16[%c43, %c0_30], %31 {strides = array<i32>} : memref<98x144xf32, #tpu.memory_space<vmem>>, vector<6x16xf32>,
    %c13 = arith.constant 13 : index
    %c0_31 = arith.constant 0 : index
    %33 = tpu.strided_load %arg15[%c13, %c0_31] {strides = array<i32: 2, 1>} : memref<338x16xf32, #tpu.memory_space<vmem>>, vector<7x16xf32>
    %c7 = arith.constant 7 : index
    %c16 = arith.constant 16 : index
    %34 = vector.load %arg16[%c7, %c16] : memref<98x144xf32, #tpu.memory_space<vmem>>, vector<7x16xf32>
    tpu.vector_store %arg16[%c7, %c16], %33 {strides = array<i32>} : memref<98x144xf32, #tpu.memory_space<vmem>>, vector<7x16xf32>,
    %c39 = arith.constant 39 : index
    %c0_32 = arith.constant 0 : index
    %35 = tpu.strided_load %arg15[%c39, %c0_32] {strides = array<i32: 2, 1>} : memref<338x16xf32, #tpu.memory_space<vmem>>, vector<7x16xf32>
    %c14_33 = arith.constant 14 : index
    %c16_34 = arith.constant 16 : index
    %36 = vector.load %arg16[%c14_33, %c16_34] : memref<98x144xf32, #tpu.memory_space<vmem>>, vector<7x16xf32>
    tpu.vector_store %arg16[%c14_33, %c16_34], %35 {strides = array<i32>} : memref<98x144xf32, #tpu.memory_space<vmem>>, vector<7x16xf32>,
    %c65 = arith.constant 65 : index
    %c0_35 = arith.constant 0 : index
    %37 = tpu.strided_load %arg15[%c65, %c0_35] {strides = array<i32: 2, 1>} : memref<338x16xf32, #tpu.memory_space<vmem>>, vector<7x16xf32>
    %c21 = arith.constant 21 : index
    %c16_36 = arith.constant 16 : index
    %38 = vector.load %arg16[%c21, %c16_36] : memref<98x144xf32, #tpu.memory_space<vmem>>, vector<7x16xf32>
    tpu.vector_store %arg16[%c21, %c16_36], %37 {strides = array<i32>} : memref<98x144xf32, #tpu.memory_space<vmem>>, vector<7x16xf32>,
    %c91 = arith.constant 91 : index
    %c0_37 = arith.constant 0 : index
    %39 = tpu.strided_load %arg15[%c91, %c0_37] {strides = array<i32: 2, 1>} : memref<338x16xf32, #tpu.memory_space<vmem>>, vector<7x16xf32>
    %c28 = arith.constant 28 : index
    %c16_38 = arith.constant 16 : index
    %40 = vector.load %arg16[%c28, %c16_38] : memref<98x144xf32, #tpu.memory_space<vmem>>, vector<7x16xf32>
    tpu.vector_store %arg16[%c28, %c16_38], %39 {strides = array<i32>} : memref<98x144xf32, #tpu.memory_space<vmem>>, vector<7x16xf32>,
    %c117 = arith.constant 117 : index
    %c0_39 = arith.constant 0 : index
    %41 = tpu.strided_load %arg15[%c117, %c0_39] {strides = array<i32: 2, 1>} : memref<338x16xf32, #tpu.memory_space<vmem>>, vector<7x16xf32>
    %c35 = arith.constant 35 : index
    %c16_40 = arith.constant 16 : index
    %42 = vector.load %arg16[%c35, %c16_40] : memref<98x144xf32, #tpu.memory_space<vmem>>, vector<7x16xf32>
    tpu.vector_store %arg16[%c35, %c16_40], %41 {strides = array<i32>} : memref<98x144xf32, #tpu.memory_space<vmem>>, vector<7x16xf32>,
    %c143 = arith.constant 143 : index
    %c0_41 = arith.constant 0 : index
    %43 = tpu.strided_load %arg15[%c143, %c0_41] {strides = array<i32: 2, 1>} : memref<338x16xf32, #tpu.memory_space<vmem>>, vector<7x16xf32>
    %c42 = arith.constant 42 : index
    %c16_42 = arith.constant 16 : index
    %44 = vector.load %arg16[%c42, %c16_42] : memref<98x144xf32, #tpu.memory_space<vmem>>, vector<7x16xf32>
    tpu.vector_store %arg16[%c42, %c16_42], %43 {strides = array<i32>} : memref<98x144xf32, #tpu.memory_space<vmem>>, vector<7x16xf32>,
    %c14_43 = arith.constant 14 : index
    %c0_44 = arith.constant 0 : index
    %45 = tpu.strided_load %arg15[%c14_43, %c0_44] {strides = array<i32: 2, 1>} : memref<338x16xf32, #tpu.memory_space<vmem>>, vector<6x16xf32>
    %c7_45 = arith.constant 7 : index
    %c32 = arith.constant 32 : index
    %46 = vector.load %arg16[%c7_45, %c32] : memref<98x144xf32, #tpu.memory_space<vmem>>, vector<6x16xf32>
    tpu.vector_store %arg16[%c7_45, %c32], %45 {strides = array<i32>} : memref<98x144xf32, #tpu.memory_space<vmem>>, vector<6x16xf32>,
    %c40_46 = arith.constant 40 : index
    %c0_47 = arith.constant 0 : index
    %47 = tpu.strided_load %arg15[%c40_46, %c0_47] {strides = array<i32: 2, 1>} : memref<338x16xf32, #tpu.memory_space<vmem>>, vector<6x16xf32>
    %c14_48 = arith.constant 14 : index
    %c32_49 = arith.constant 32 : index
    %48 = vector.load %arg16[%c14_48, %c32_49] : memref<98x144xf32, #tpu.memory_space<vmem>>, vector<6x16xf32>
    tpu.vector_store %arg16[%c14_48, %c32_49], %47 {strides = array<i32>} : memref<98x144xf32, #tpu.memory_space<vmem>>, vector<6x16xf32>,
    %c66_50 = arith.constant 66 : index
    %c0_51 = arith.constant 0 : index
    %49 = tpu.strided_load %arg15[%c66_50, %c0_51] {strides = array<i32: 2, 1>} : memref<338x16xf32, #tpu.memory_space<vmem>>, vector<6x16xf32>
    %c21_52 = arith.constant 21 : index
    %c32_53 = arith.constant 32 : index
    %50 = vector.load %arg16[%c21_52, %c32_53] : memref<98x144xf32, #tpu.memory_space<vmem>>, vector<6x16xf32>
    tpu.vector_store %arg16[%c21_52, %c32_53], %49 {strides = array<i32>} : memref<98x144xf32, #tpu.memory_space<vmem>>, vector<6x16xf32>,
    %c92_54 = arith.constant 92 : index
    %c0_55 = arith.constant 0 : index
    %51 = tpu.strided_load %arg15[%c92_54, %c0_55] {strides = array<i32: 2, 1>} : memref<338x16xf32, #tpu.memory_space<vmem>>, vector<6x16xf32>
    %c28_56 = arith.constant 28 : index
    %c32_57 = arith.constant 32 : index
    %52 = vector.load %arg16[%c28_56, %c32_57] : memref<98x144xf32, #tpu.memory_space<vmem>>, vector<6x16xf32>
    tpu.vector_store %arg16[%c28_56, %c32_57], %51 {strides = array<i32>} : memref<98x144xf32, #tpu.memory_space<vmem>>, vector<6x16xf32>,
    %c118_58 = arith.constant 118 : index
    %c0_59 = arith.constant 0 : index
    %53 = tpu.strided_load %arg15[%c118_58, %c0_59] {strides = array<i32: 2, 1>} : memref<338x16xf32, #tpu.memory_space<vmem>>, vector<6x16xf32>
    %c35_60 = arith.constant 35 : index
    %c32_61 = arith.constant 32 : index
    %54 = vector.load %arg16[%c35_60, %c32_61] : memref<98x144xf32, #tpu.memory_space<vmem>>, vector<6x16xf32>
    tpu.vector_store %arg16[%c35_60, %c32_61], %53 {strides = array<i32>} : memref<98x144xf32, #tpu.memory_space<vmem>>, vector<6x16xf32>,
    %c144_62 = arith.constant 144 : index
    %c0_63 = arith.constant 0 : index
    %55 = tpu.strided_load %arg15[%c144_62, %c0_63] {strides = array<i32: 2, 1>} : memref<338x16xf32, #tpu.memory_space<vmem>>, vector<6x16xf32>
    %c42_64 = arith.constant 42 : index
    %c32_65 = arith.constant 32 : index
    %56 = vector.load %arg16[%c42_64, %c32_65] : memref<98x144xf32, #tpu.memory_space<vmem>>, vector<6x16xf32>
    tpu.vector_store %arg16[%c42_64, %c32_65], %55 {strides = array<i32>} : memref<98x144xf32, #tpu.memory_space<vmem>>, vector<6x16xf32>,
    %c1 = arith.constant 1 : index
    %c0_66 = arith.constant 0 : index
    %57 = tpu.strided_load %arg15[%c1, %c0_66] {strides = array<i32: 2, 1>} : memref<338x16xf32, #tpu.memory_space<vmem>>, vector<6x16xf32>
    %c1_67 = arith.constant 1 : index
    %c48 = arith.constant 48 : index
    %58 = vector.load %arg16[%c1_67, %c48] : memref<98x144xf32, #tpu.memory_space<vmem>>, vector<6x16xf32>
    tpu.vector_store %arg16[%c1_67, %c48], %57 {strides = array<i32>} : memref<98x144xf32, #tpu.memory_space<vmem>>, vector<6x16xf32>,
    %c27 = arith.constant 27 : index
    %c0_68 = arith.constant 0 : index
    %59 = tpu.strided_load %arg15[%c27, %c0_68] {strides = array<i32: 2, 1>} : memref<338x16xf32, #tpu.memory_space<vmem>>, vector<6x16xf32>
    %c8_69 = arith.constant 8 : index
    %c48_70 = arith.constant 48 : index
    %60 = vector.load %arg16[%c8_69, %c48_70] : memref<98x144xf32, #tpu.memory_space<vmem>>, vector<6x16xf32>
    tpu.vector_store %arg16[%c8_69, %c48_70], %59 {strides = array<i32>} : memref<98x144xf32, #tpu.memory_space<vmem>>, vector<6x16xf32>,
    %c53 = arith.constant 53 : index
    %c0_71 = arith.constant 0 : index
    %61 = tpu.strided_load %arg15[%c53, %c0_71] {strides = array<i32: 2, 1>} : memref<338x16xf32, #tpu.memory_space<vmem>>, vector<6x16xf32>
    %c15_72 = arith.constant 15 : index
    %c48_73 = arith.constant 48 : index
    %62 = vector.load %arg16[%c15_72, %c48_73] : memref<98x144xf32, #tpu.memory_space<vmem>>, vector<6x16xf32>
    tpu.vector_store %arg16[%c15_72, %c48_73], %61 {strides = array<i32>} : memref<98x144xf32, #tpu.memory_space<vmem>>, vector<6x16xf32>,
    %c79 = arith.constant 79 : index
    %c0_74 = arith.constant 0 : index
    %63 = tpu.strided_load %arg15[%c79, %c0_74] {strides = array<i32: 2, 1>} : memref<338x16xf32, #tpu.memory_space<vmem>>, vector<6x16xf32>
    %c22_75 = arith.constant 22 : index
    %c48_76 = arith.constant 48 : index
    %64 = vector.load %arg16[%c22_75, %c48_76] : memref<98x144xf32, #tpu.memory_space<vmem>>, vector<6x16xf32>
    tpu.vector_store %arg16[%c22_75, %c48_76], %63 {strides = array<i32>} : memref<98x144xf32, #tpu.memory_space<vmem>>, vector<6x16xf32>,
    %c105 = arith.constant 105 : index
    %c0_77 = arith.constant 0 : index
    %65 = tpu.strided_load %arg15[%c105, %c0_77] {strides = array<i32: 2, 1>} : memref<338x16xf32, #tpu.memory_space<vmem>>, vector<6x16xf32>
    %c29_78 = arith.constant 29 : index
    %c48_79 = arith.constant 48 : index
    %66 = vector.load %arg16[%c29_78, %c48_79] : memref<98x144xf32, #tpu.memory_space<vmem>>, vector<6x16xf32>
    tpu.vector_store %arg16[%c29_78, %c48_79], %65 {strides = array<i32>} : memref<98x144xf32, #tpu.memory_space<vmem>>, vector<6x16xf32>,
    %c131 = arith.constant 131 : index
    %c0_80 = arith.constant 0 : index
    %67 = tpu.strided_load %arg15[%c131, %c0_80] {strides = array<i32: 2, 1>} : memref<338x16xf32, #tpu.memory_space<vmem>>, vector<6x16xf32>
    %c36_81 = arith.constant 36 : index
    %c48_82 = arith.constant 48 : index
    %68 = vector.load %arg16[%c36_81, %c48_82] : memref<98x144xf32, #tpu.memory_space<vmem>>, vector<6x16xf32>
    tpu.vector_store %arg16[%c36_81, %c48_82], %67 {strides = array<i32>} : memref<98x144xf32, #tpu.memory_space<vmem>>, vector<6x16xf32>,
    %c157 = arith.constant 157 : index
    %c0_83 = arith.constant 0 : index
    %69 = tpu.strided_load %arg15[%c157, %c0_83] {strides = array<i32: 2, 1>} : memref<338x16xf32, #tpu.memory_space<vmem>>, vector<6x16xf32>
    %c43_84 = arith.constant 43 : index
    %c48_85 = arith.constant 48 : index
    %70 = vector.load %arg16[%c43_84, %c48_85] : memref<98x144xf32, #tpu.memory_space<vmem>>, vector<6x16xf32>
    tpu.vector_store %arg16[%c43_84, %c48_85], %69 {strides = array<i32>} : memref<98x144xf32, #tpu.memory_space<vmem>>, vector<6x16xf32>,
    %c0_86 = arith.constant 0 : index
    %c0_87 = arith.constant 0 : index
    %71 = tpu.strided_load %arg15[%c0_86, %c0_87] {strides = array<i32: 2, 1>} : memref<338x16xf32, #tpu.memory_space<vmem>>, vector<7x16xf32>
    %c0_88 = arith.constant 0 : index
    %c64 = arith.constant 64 : index
    %72 = vector.load %arg16[%c0_88, %c64] : memref<98x144xf32, #tpu.memory_space<vmem>>, vector<7x16xf32>
    tpu.vector_store %arg16[%c0_88, %c64], %71 {strides = array<i32>} : memref<98x144xf32, #tpu.memory_space<vmem>>, vector<7x16xf32>,
    %c26 = arith.constant 26 : index
    %c0_89 = arith.constant 0 : index
    %73 = tpu.strided_load %arg15[%c26, %c0_89] {strides = array<i32: 2, 1>} : memref<338x16xf32, #tpu.memory_space<vmem>>, vector<7x16xf32>
    %c7_90 = arith.constant 7 : index
    %c64_91 = arith.constant 64 : index
    %74 = vector.load %arg16[%c7_90, %c64_91] : memref<98x144xf32, #tpu.memory_space<vmem>>, vector<7x16xf32>
    tpu.vector_store %arg16[%c7_90, %c64_91], %73 {strides = array<i32>} : memref<98x144xf32, #tpu.memory_space<vmem>>, vector<7x16xf32>,
    %c52 = arith.constant 52 : index
    %c0_92 = arith.constant 0 : index
    %75 = tpu.strided_load %arg15[%c52, %c0_92] {strides = array<i32: 2, 1>} : memref<338x16xf32, #tpu.memory_space<vmem>>, vector<7x16xf32>
    %c14_93 = arith.constant 14 : index
    %c64_94 = arith.constant 64 : index
    %76 = vector.load %arg16[%c14_93, %c64_94] : memref<98x144xf32, #tpu.memory_space<vmem>>, vector<7x16xf32>
    tpu.vector_store %arg16[%c14_93, %c64_94], %75 {strides = array<i32>} : memref<98x144xf32, #tpu.memory_space<vmem>>, vector<7x16xf32>,
    %c78 = arith.constant 78 : index
    %c0_95 = arith.constant 0 : index
    %77 = tpu.strided_load %arg15[%c78, %c0_95] {strides = array<i32: 2, 1>} : memref<338x16xf32, #tpu.memory_space<vmem>>, vector<7x16xf32>
    %c21_96 = arith.constant 21 : index
    %c64_97 = arith.constant 64 : index
    %78 = vector.load %arg16[%c21_96, %c64_97] : memref<98x144xf32, #tpu.memory_space<vmem>>, vector<7x16xf32>
    tpu.vector_store %arg16[%c21_96, %c64_97], %77 {strides = array<i32>} : memref<98x144xf32, #tpu.memory_space<vmem>>, vector<7x16xf32>,
    %c104 = arith.constant 104 : index
    %c0_98 = arith.constant 0 : index
    %79 = tpu.strided_load %arg15[%c104, %c0_98] {strides = array<i32: 2, 1>} : memref<338x16xf32, #tpu.memory_space<vmem>>, vector<7x16xf32>
    %c28_99 = arith.constant 28 : index
    %c64_100 = arith.constant 64 : index
    %80 = vector.load %arg16[%c28_99, %c64_100] : memref<98x144xf32, #tpu.memory_space<vmem>>, vector<7x16xf32>
    tpu.vector_store %arg16[%c28_99, %c64_100], %79 {strides = array<i32>} : memref<98x144xf32, #tpu.memory_space<vmem>>, vector<7x16xf32>,
    %c130 = arith.constant 130 : index
    %c0_101 = arith.constant 0 : index
    %81 = tpu.strided_load %arg15[%c130, %c0_101] {strides = array<i32: 2, 1>} : memref<338x16xf32, #tpu.memory_space<vmem>>, vector<7x16xf32>
    %c35_102 = arith.constant 35 : index
    %c64_103 = arith.constant 64 : index
    %82 = vector.load %arg16[%c35_102, %c64_103] : memref<98x144xf32, #tpu.memory_space<vmem>>, vector<7x16xf32>
    tpu.vector_store %arg16[%c35_102, %c64_103], %81 {strides = array<i32>} : memref<98x144xf32, #tpu.memory_space<vmem>>, vector<7x16xf32>,
    %c156 = arith.constant 156 : index
    %c0_104 = arith.constant 0 : index
    %83 = tpu.strided_load %arg15[%c156, %c0_104] {strides = array<i32: 2, 1>} : memref<338x16xf32, #tpu.memory_space<vmem>>, vector<7x16xf32>
    %c42_105 = arith.constant 42 : index
    %c64_106 = arith.constant 64 : index
    %84 = vector.load %arg16[%c42_105, %c64_106] : memref<98x144xf32, #tpu.memory_space<vmem>>, vector<7x16xf32>
    tpu.vector_store %arg16[%c42_105, %c64_106], %83 {strides = array<i32>} : memref<98x144xf32, #tpu.memory_space<vmem>>, vector<7x16xf32>,
    %c1_107 = arith.constant 1 : index
    %c0_108 = arith.constant 0 : index
    %85 = tpu.strided_load %arg15[%c1_107, %c0_108] {strides = array<i32: 2, 1>} : memref<338x16xf32, #tpu.memory_space<vmem>>, vector<6x16xf32>
    %c0_109 = arith.constant 0 : index
    %c80 = arith.constant 80 : index
    %86 = vector.load %arg16[%c0_109, %c80] : memref<98x144xf32, #tpu.memory_space<vmem>>, vector<6x16xf32>
    tpu.vector_store %arg16[%c0_109, %c80], %85 {strides = array<i32>} : memref<98x144xf32, #tpu.memory_space<vmem>>, vector<6x16xf32>,
    %c27_110 = arith.constant 27 : index
    %c0_111 = arith.constant 0 : index
    %87 = tpu.strided_load %arg15[%c27_110, %c0_111] {strides = array<i32: 2, 1>} : memref<338x16xf32, #tpu.memory_space<vmem>>, vector<6x16xf32>
    %c7_112 = arith.constant 7 : index
    %c80_113 = arith.constant 80 : index
    %88 = vector.load %arg16[%c7_112, %c80_113] : memref<98x144xf32, #tpu.memory_space<vmem>>, vector<6x16xf32>
    tpu.vector_store %arg16[%c7_112, %c80_113], %87 {strides = array<i32>} : memref<98x144xf32, #tpu.memory_space<vmem>>, vector<6x16xf32>,
    %c53_114 = arith.constant 53 : index
    %c0_115 = arith.constant 0 : index
    %89 = tpu.strided_load %arg15[%c53_114, %c0_115] {strides = array<i32: 2, 1>} : memref<338x16xf32, #tpu.memory_space<vmem>>, vector<6x16xf32>
    %c14_116 = arith.constant 14 : index
    %c80_117 = arith.constant 80 : index
    %90 = vector.load %arg16[%c14_116, %c80_117] : memref<98x144xf32, #tpu.memory_space<vmem>>, vector<6x16xf32>
    tpu.vector_store %arg16[%c14_116, %c80_117], %89 {strides = array<i32>} : memref<98x144xf32, #tpu.memory_space<vmem>>, vector<6x16xf32>,
    %c79_118 = arith.constant 79 : index
    %c0_119 = arith.constant 0 : index
    %91 = tpu.strided_load %arg15[%c79_118, %c0_119] {strides = array<i32: 2, 1>} : memref<338x16xf32, #tpu.memory_space<vmem>>, vector<6x16xf32>
    %c21_120 = arith.constant 21 : index
    %c80_121 = arith.constant 80 : index
    %92 = vector.load %arg16[%c21_120, %c80_121] : memref<98x144xf32, #tpu.memory_space<vmem>>, vector<6x16xf32>
    tpu.vector_store %arg16[%c21_120, %c80_121], %91 {strides = array<i32>} : memref<98x144xf32, #tpu.memory_space<vmem>>, vector<6x16xf32>,
    %c105_122 = arith.constant 105 : index
    %c0_123 = arith.constant 0 : index
    %93 = tpu.strided_load %arg15[%c105_122, %c0_123] {strides = array<i32: 2, 1>} : memref<338x16xf32, #tpu.memory_space<vmem>>, vector<6x16xf32>
    %c28_124 = arith.constant 28 : index
    %c80_125 = arith.constant 80 : index
    %94 = vector.load %arg16[%c28_124, %c80_125] : memref<98x144xf32, #tpu.memory_space<vmem>>, vector<6x16xf32>
    tpu.vector_store %arg16[%c28_124, %c80_125], %93 {strides = array<i32>} : memref<98x144xf32, #tpu.memory_space<vmem>>, vector<6x16xf32>,
    %c131_126 = arith.constant 131 : index
    %c0_127 = arith.constant 0 : index
    %95 = tpu.strided_load %arg15[%c131_126, %c0_127] {strides = array<i32: 2, 1>} : memref<338x16xf32, #tpu.memory_space<vmem>>, vector<6x16xf32>
    %c35_128 = arith.constant 35 : index
    %c80_129 = arith.constant 80 : index
    %96 = vector.load %arg16[%c35_128, %c80_129] : memref<98x144xf32, #tpu.memory_space<vmem>>, vector<6x16xf32>
    tpu.vector_store %arg16[%c35_128, %c80_129], %95 {strides = array<i32>} : memref<98x144xf32, #tpu.memory_space<vmem>>, vector<6x16xf32>,
    %c157_130 = arith.constant 157 : index
    %c0_131 = arith.constant 0 : index
    %97 = tpu.strided_load %arg15[%c157_130, %c0_131] {strides = array<i32: 2, 1>} : memref<338x16xf32, #tpu.memory_space<vmem>>, vector<6x16xf32>
    %c42_132 = arith.constant 42 : index
    %c80_133 = arith.constant 80 : index
    %98 = vector.load %arg16[%c42_132, %c80_133] : memref<98x144xf32, #tpu.memory_space<vmem>>, vector<6x16xf32>
    tpu.vector_store %arg16[%c42_132, %c80_133], %97 {strides = array<i32>} : memref<98x144xf32, #tpu.memory_space<vmem>>, vector<6x16xf32>,
    %c14_134 = arith.constant 14 : index
    %c0_135 = arith.constant 0 : index
    %99 = tpu.strided_load %arg15[%c14_134, %c0_135] {strides = array<i32: 2, 1>} : memref<338x16xf32, #tpu.memory_space<vmem>>, vector<6x16xf32>
    %c1_136 = arith.constant 1 : index
    %c96 = arith.constant 96 : index
    %100 = vector.load %arg16[%c1_136, %c96] : memref<98x144xf32, #tpu.memory_space<vmem>>, vector<6x16xf32>
    tpu.vector_store %arg16[%c1_136, %c96], %99 {strides = array<i32>} : memref<98x144xf32, #tpu.memory_space<vmem>>, vector<6x16xf32>,
    %c40_137 = arith.constant 40 : index
    %c0_138 = arith.constant 0 : index
    %101 = tpu.strided_load %arg15[%c40_137, %c0_138] {strides = array<i32: 2, 1>} : memref<338x16xf32, #tpu.memory_space<vmem>>, vector<6x16xf32>
    %c8_139 = arith.constant 8 : index
    %c96_140 = arith.constant 96 : index
    %102 = vector.load %arg16[%c8_139, %c96_140] : memref<98x144xf32, #tpu.memory_space<vmem>>, vector<6x16xf32>
    tpu.vector_store %arg16[%c8_139, %c96_140], %101 {strides = array<i32>} : memref<98x144xf32, #tpu.memory_space<vmem>>, vector<6x16xf32>,
    %c66_141 = arith.constant 66 : index
    %c0_142 = arith.constant 0 : index
    %103 = tpu.strided_load %arg15[%c66_141, %c0_142] {strides = array<i32: 2, 1>} : memref<338x16xf32, #tpu.memory_space<vmem>>, vector<6x16xf32>
    %c15_143 = arith.constant 15 : index
    %c96_144 = arith.constant 96 : index
    %104 = vector.load %arg16[%c15_143, %c96_144] : memref<98x144xf32, #tpu.memory_space<vmem>>, vector<6x16xf32>
    tpu.vector_store %arg16[%c15_143, %c96_144], %103 {strides = array<i32>} : memref<98x144xf32, #tpu.memory_space<vmem>>, vector<6x16xf32>,
    %c92_145 = arith.constant 92 : index
    %c0_146 = arith.constant 0 : index
    %105 = tpu.strided_load %arg15[%c92_145, %c0_146] {strides = array<i32: 2, 1>} : memref<338x16xf32, #tpu.memory_space<vmem>>, vector<6x16xf32>
    %c22_147 = arith.constant 22 : index
    %c96_148 = arith.constant 96 : index
    %106 = vector.load %arg16[%c22_147, %c96_148] : memref<98x144xf32, #tpu.memory_space<vmem>>, vector<6x16xf32>
    tpu.vector_store %arg16[%c22_147, %c96_148], %105 {strides = array<i32>} : memref<98x144xf32, #tpu.memory_space<vmem>>, vector<6x16xf32>,
    %c118_149 = arith.constant 118 : index
    %c0_150 = arith.constant 0 : index
    %107 = tpu.strided_load %arg15[%c118_149, %c0_150] {strides = array<i32: 2, 1>} : memref<338x16xf32, #tpu.memory_space<vmem>>, vector<6x16xf32>
    %c29_151 = arith.constant 29 : index
    %c96_152 = arith.constant 96 : index
    %108 = vector.load %arg16[%c29_151, %c96_152] : memref<98x144xf32, #tpu.memory_space<vmem>>, vector<6x16xf32>
    tpu.vector_store %arg16[%c29_151, %c96_152], %107 {strides = array<i32>} : memref<98x144xf32, #tpu.memory_space<vmem>>, vector<6x16xf32>,
    %c144_153 = arith.constant 144 : index
    %c0_154 = arith.constant 0 : index
    %109 = tpu.strided_load %arg15[%c144_153, %c0_154] {strides = array<i32: 2, 1>} : memref<338x16xf32, #tpu.memory_space<vmem>>, vector<6x16xf32>
    %c36_155 = arith.constant 36 : index
    %c96_156 = arith.constant 96 : index
    %110 = vector.load %arg16[%c36_155, %c96_156] : memref<98x144xf32, #tpu.memory_space<vmem>>, vector<6x16xf32>
    tpu.vector_store %arg16[%c36_155, %c96_156], %109 {strides = array<i32>} : memref<98x144xf32, #tpu.memory_space<vmem>>, vector<6x16xf32>,
    %c13_157 = arith.constant 13 : index
    %c0_158 = arith.constant 0 : index
    %111 = tpu.strided_load %arg15[%c13_157, %c0_158] {strides = array<i32: 2, 1>} : memref<338x16xf32, #tpu.memory_space<vmem>>, vector<7x16xf32>
    %c0_159 = arith.constant 0 : index
    %c112 = arith.constant 112 : index
    %112 = vector.load %arg16[%c0_159, %c112] : memref<98x144xf32, #tpu.memory_space<vmem>>, vector<7x16xf32>
    tpu.vector_store %arg16[%c0_159, %c112], %111 {strides = array<i32>} : memref<98x144xf32, #tpu.memory_space<vmem>>, vector<7x16xf32>,
    %c39_160 = arith.constant 39 : index
    %c0_161 = arith.constant 0 : index
    %113 = tpu.strided_load %arg15[%c39_160, %c0_161] {strides = array<i32: 2, 1>} : memref<338x16xf32, #tpu.memory_space<vmem>>, vector<7x16xf32>
    %c7_162 = arith.constant 7 : index
    %c112_163 = arith.constant 112 : index
    %114 = vector.load %arg16[%c7_162, %c112_163] : memref<98x144xf32, #tpu.memory_space<vmem>>, vector<7x16xf32>
    tpu.vector_store %arg16[%c7_162, %c112_163], %113 {strides = array<i32>} : memref<98x144xf32, #tpu.memory_space<vmem>>, vector<7x16xf32>,
    %c65_164 = arith.constant 65 : index
    %c0_165 = arith.constant 0 : index
    %115 = tpu.strided_load %arg15[%c65_164, %c0_165] {strides = array<i32: 2, 1>} : memref<338x16xf32, #tpu.memory_space<vmem>>, vector<7x16xf32>
    %c14_166 = arith.constant 14 : index
    %c112_167 = arith.constant 112 : index
    %116 = vector.load %arg16[%c14_166, %c112_167] : memref<98x144xf32, #tpu.memory_space<vmem>>, vector<7x16xf32>
    tpu.vector_store %arg16[%c14_166, %c112_167], %115 {strides = array<i32>} : memref<98x144xf32, #tpu.memory_space<vmem>>, vector<7x16xf32>,
    %c91_168 = arith.constant 91 : index
    %c0_169 = arith.constant 0 : index
    %117 = tpu.strided_load %arg15[%c91_168, %c0_169] {strides = array<i32: 2, 1>} : memref<338x16xf32, #tpu.memory_space<vmem>>, vector<7x16xf32>
    %c21_170 = arith.constant 21 : index
    %c112_171 = arith.constant 112 : index
    %118 = vector.load %arg16[%c21_170, %c112_171] : memref<98x144xf32, #tpu.memory_space<vmem>>, vector<7x16xf32>
    tpu.vector_store %arg16[%c21_170, %c112_171], %117 {strides = array<i32>} : memref<98x144xf32, #tpu.memory_space<vmem>>, vector<7x16xf32>,
    %c117_172 = arith.constant 117 : index
    %c0_173 = arith.constant 0 : index
    %119 = tpu.strided_load %arg15[%c117_172, %c0_173] {strides = array<i32: 2, 1>} : memref<338x16xf32, #tpu.memory_space<vmem>>, vector<7x16xf32>
    %c28_174 = arith.constant 28 : index
    %c112_175 = arith.constant 112 : index
    %120 = vector.load %arg16[%c28_174, %c112_175] : memref<98x144xf32, #tpu.memory_space<vmem>>, vector<7x16xf32>
    tpu.vector_store %arg16[%c28_174, %c112_175], %119 {strides = array<i32>} : memref<98x144xf32, #tpu.memory_space<vmem>>, vector<7x16xf32>,
    %c143_176 = arith.constant 143 : index
    %c0_177 = arith.constant 0 : index
    %121 = tpu.strided_load %arg15[%c143_176, %c0_177] {strides = array<i32: 2, 1>} : memref<338x16xf32, #tpu.memory_space<vmem>>, vector<7x16xf32>
    %c35_178 = arith.constant 35 : index
    %c112_179 = arith.constant 112 : index
    %122 = vector.load %arg16[%c35_178, %c112_179] : memref<98x144xf32, #tpu.memory_space<vmem>>, vector<7x16xf32>
    tpu.vector_store %arg16[%c35_178, %c112_179], %121 {strides = array<i32>} : memref<98x144xf32, #tpu.memory_space<vmem>>, vector<7x16xf32>,
    %c14_180 = arith.constant 14 : index
    %c0_181 = arith.constant 0 : index
    %123 = tpu.strided_load %arg15[%c14_180, %c0_181] {strides = array<i32: 2, 1>} : memref<338x16xf32, #tpu.memory_space<vmem>>, vector<6x16xf32>
    %c0_182 = arith.constant 0 : index
    %c128 = arith.constant 128 : index
    %124 = vector.load %arg16[%c0_182, %c128] : memref<98x144xf32, #tpu.memory_space<vmem>>, vector<6x16xf32>
    tpu.vector_store %arg16[%c0_182, %c128], %123 {strides = array<i32>} : memref<98x144xf32, #tpu.memory_space<vmem>>, vector<6x16xf32>,
    %c40_183 = arith.constant 40 : index
    %c0_184 = arith.constant 0 : index
    %125 = tpu.strided_load %arg15[%c40_183, %c0_184] {strides = array<i32: 2, 1>} : memref<338x16xf32, #tpu.memory_space<vmem>>, vector<6x16xf32>
    %c7_185 = arith.constant 7 : index
    %c128_186 = arith.constant 128 : index
    %126 = vector.load %arg16[%c7_185, %c128_186] : memref<98x144xf32, #tpu.memory_space<vmem>>, vector<6x16xf32>
    tpu.vector_store %arg16[%c7_185, %c128_186], %125 {strides = array<i32>} : memref<98x144xf32, #tpu.memory_space<vmem>>, vector<6x16xf32>,
    %c66_187 = arith.constant 66 : index
    %c0_188 = arith.constant 0 : index
    %127 = tpu.strided_load %arg15[%c66_187, %c0_188] {strides = array<i32: 2, 1>} : memref<338x16xf32, #tpu.memory_space<vmem>>, vector<6x16xf32>
    %c14_189 = arith.constant 14 : index
    %c128_190 = arith.constant 128 : index
    %128 = vector.load %arg16[%c14_189, %c128_190] : memref<98x144xf32, #tpu.memory_space<vmem>>, vector<6x16xf32>
    tpu.vector_store %arg16[%c14_189, %c128_190], %127 {strides = array<i32>} : memref<98x144xf32, #tpu.memory_space<vmem>>, vector<6x16xf32>,
    %c92_191 = arith.constant 92 : index
    %c0_192 = arith.constant 0 : index
    %129 = tpu.strided_load %arg15[%c92_191, %c0_192] {strides = array<i32: 2, 1>} : memref<338x16xf32, #tpu.memory_space<vmem>>, vector<6x16xf32>
    %c21_193 = arith.constant 21 : index
    %c128_194 = arith.constant 128 : index
    %130 = vector.load %arg16[%c21_193, %c128_194] : memref<98x144xf32, #tpu.memory_space<vmem>>, vector<6x16xf32>
    tpu.vector_store %arg16[%c21_193, %c128_194], %129 {strides = array<i32>} : memref<98x144xf32, #tpu.memory_space<vmem>>, vector<6x16xf32>,
    %c118_195 = arith.constant 118 : index
    %c0_196 = arith.constant 0 : index
    %131 = tpu.strided_load %arg15[%c118_195, %c0_196] {strides = array<i32: 2, 1>} : memref<338x16xf32, #tpu.memory_space<vmem>>, vector<6x16xf32>
    %c28_197 = arith.constant 28 : index
    %c128_198 = arith.constant 128 : index
    %132 = vector.load %arg16[%c28_197, %c128_198] : memref<98x144xf32, #tpu.memory_space<vmem>>, vector<6x16xf32>
    tpu.vector_store %arg16[%c28_197, %c128_198], %131 {strides = array<i32>} : memref<98x144xf32, #tpu.memory_space<vmem>>, vector<6x16xf32>,
    %c144_199 = arith.constant 144 : index
    %c0_200 = arith.constant 0 : index
    %133 = tpu.strided_load %arg15[%c144_199, %c0_200] {strides = array<i32: 2, 1>} : memref<338x16xf32, #tpu.memory_space<vmem>>, vector<6x16xf32>
    %c35_201 = arith.constant 35 : index
    %c128_202 = arith.constant 128 : index
    %134 = vector.load %arg16[%c35_201, %c128_202] : memref<98x144xf32, #tpu.memory_space<vmem>>, vector<6x16xf32>
    tpu.vector_store %arg16[%c35_201, %c128_202], %133 {strides = array<i32>} : memref<98x144xf32, #tpu.memory_space<vmem>>, vector<6x16xf32>,
    %c183 = arith.constant 183 : index
    %c0_203 = arith.constant 0 : index
    %135 = tpu.strided_load %arg15[%c183, %c0_203] {strides = array<i32: 2, 1>} : memref<338x16xf32, #tpu.memory_space<vmem>>, vector<6x16xf32>
    %c57 = arith.constant 57 : index
    %c0_204 = arith.constant 0 : index
    %136 = vector.load %arg16[%c57, %c0_204] : memref<98x144xf32, #tpu.memory_space<vmem>>, vector<6x16xf32>
    tpu.vector_store %arg16[%c57, %c0_204], %135 {strides = array<i32>} : memref<98x144xf32, #tpu.memory_space<vmem>>, vector<6x16xf32>,
    %c209 = arith.constant 209 : index
    %c0_205 = arith.constant 0 : index
    %137 = tpu.strided_load %arg15[%c209, %c0_205] {strides = array<i32: 2, 1>} : memref<338x16xf32, #tpu.memory_space<vmem>>, vector<6x16xf32>
    %c64_206 = arith.constant 64 : index
    %c0_207 = arith.constant 0 : index
    %138 = vector.load %arg16[%c64_206, %c0_207] : memref<98x144xf32, #tpu.memory_space<vmem>>, vector<6x16xf32>
    tpu.vector_store %arg16[%c64_206, %c0_207], %137 {strides = array<i32>} : memref<98x144xf32, #tpu.memory_space<vmem>>, vector<6x16xf32>,
    %c235 = arith.constant 235 : index
    %c0_208 = arith.constant 0 : index
    %139 = tpu.strided_load %arg15[%c235, %c0_208] {strides = array<i32: 2, 1>} : memref<338x16xf32, #tpu.memory_space<vmem>>, vector<6x16xf32>
    %c71 = arith.constant 71 : index
    %c0_209 = arith.constant 0 : index
    %140 = vector.load %arg16[%c71, %c0_209] : memref<98x144xf32, #tpu.memory_space<vmem>>, vector<6x16xf32>
    tpu.vector_store %arg16[%c71, %c0_209], %139 {strides = array<i32>} : memref<98x144xf32, #tpu.memory_space<vmem>>, vector<6x16xf32>,
    %c261 = arith.constant 261 : index
    %c0_210 = arith.constant 0 : index
    %141 = tpu.strided_load %arg15[%c261, %c0_210] {strides = array<i32: 2, 1>} : memref<338x16xf32, #tpu.memory_space<vmem>>, vector<6x16xf32>
    %c78_211 = arith.constant 78 : index
    %c0_212 = arith.constant 0 : index
    %142 = vector.load %arg16[%c78_211, %c0_212] : memref<98x144xf32, #tpu.memory_space<vmem>>, vector<6x16xf32>
    tpu.vector_store %arg16[%c78_211, %c0_212], %141 {strides = array<i32>} : memref<98x144xf32, #tpu.memory_space<vmem>>, vector<6x16xf32>,
    %c287 = arith.constant 287 : index
    %c0_213 = arith.constant 0 : index
    %143 = tpu.strided_load %arg15[%c287, %c0_213] {strides = array<i32: 2, 1>} : memref<338x16xf32, #tpu.memory_space<vmem>>, vector<6x16xf32>
    %c85 = arith.constant 85 : index
    %c0_214 = arith.constant 0 : index
    %144 = vector.load %arg16[%c85, %c0_214] : memref<98x144xf32, #tpu.memory_space<vmem>>, vector<6x16xf32>
    tpu.vector_store %arg16[%c85, %c0_214], %143 {strides = array<i32>} : memref<98x144xf32, #tpu.memory_space<vmem>>, vector<6x16xf32>,
    %c313 = arith.constant 313 : index
    %c0_215 = arith.constant 0 : index
    %145 = tpu.strided_load %arg15[%c313, %c0_215] {strides = array<i32: 2, 1>} : memref<338x16xf32, #tpu.memory_space<vmem>>, vector<6x16xf32>
    %c92_216 = arith.constant 92 : index
    %c0_217 = arith.constant 0 : index
    %146 = vector.load %arg16[%c92_216, %c0_217] : memref<98x144xf32, #tpu.memory_space<vmem>>, vector<6x16xf32>
    tpu.vector_store %arg16[%c92_216, %c0_217], %145 {strides = array<i32>} : memref<98x144xf32, #tpu.memory_space<vmem>>, vector<6x16xf32>,
    %c182 = arith.constant 182 : index
    %c0_218 = arith.constant 0 : index
    %147 = tpu.strided_load %arg15[%c182, %c0_218] {strides = array<i32: 2, 1>} : memref<338x16xf32, #tpu.memory_space<vmem>>, vector<7x16xf32>
    %c56 = arith.constant 56 : index
    %c16_219 = arith.constant 16 : index
    %148 = vector.load %arg16[%c56, %c16_219] : memref<98x144xf32, #tpu.memory_space<vmem>>, vector<7x16xf32>
    tpu.vector_store %arg16[%c56, %c16_219], %147 {strides = array<i32>} : memref<98x144xf32, #tpu.memory_space<vmem>>, vector<7x16xf32>,
    %c208 = arith.constant 208 : index
    %c0_220 = arith.constant 0 : index
    %149 = tpu.strided_load %arg15[%c208, %c0_220] {strides = array<i32: 2, 1>} : memref<338x16xf32, #tpu.memory_space<vmem>>, vector<7x16xf32>
    %c63 = arith.constant 63 : index
    %c16_221 = arith.constant 16 : index
    %150 = vector.load %arg16[%c63, %c16_221] : memref<98x144xf32, #tpu.memory_space<vmem>>, vector<7x16xf32>
    tpu.vector_store %arg16[%c63, %c16_221], %149 {strides = array<i32>} : memref<98x144xf32, #tpu.memory_space<vmem>>, vector<7x16xf32>,
    %c234 = arith.constant 234 : index
    %c0_222 = arith.constant 0 : index
    %151 = tpu.strided_load %arg15[%c234, %c0_222] {strides = array<i32: 2, 1>} : memref<338x16xf32, #tpu.memory_space<vmem>>, vector<7x16xf32>
    %c70 = arith.constant 70 : index
    %c16_223 = arith.constant 16 : index
    %152 = vector.load %arg16[%c70, %c16_223] : memref<98x144xf32, #tpu.memory_space<vmem>>, vector<7x16xf32>
    tpu.vector_store %arg16[%c70, %c16_223], %151 {strides = array<i32>} : memref<98x144xf32, #tpu.memory_space<vmem>>, vector<7x16xf32>,
    %c260 = arith.constant 260 : index
    %c0_224 = arith.constant 0 : index
    %153 = tpu.strided_load %arg15[%c260, %c0_224] {strides = array<i32: 2, 1>} : memref<338x16xf32, #tpu.memory_space<vmem>>, vector<7x16xf32>
    %c77 = arith.constant 77 : index
    %c16_225 = arith.constant 16 : index
    %154 = vector.load %arg16[%c77, %c16_225] : memref<98x144xf32, #tpu.memory_space<vmem>>, vector<7x16xf32>
    tpu.vector_store %arg16[%c77, %c16_225], %153 {strides = array<i32>} : memref<98x144xf32, #tpu.memory_space<vmem>>, vector<7x16xf32>,
    %c286 = arith.constant 286 : index
    %c0_226 = arith.constant 0 : index
    %155 = tpu.strided_load %arg15[%c286, %c0_226] {strides = array<i32: 2, 1>} : memref<338x16xf32, #tpu.memory_space<vmem>>, vector<7x16xf32>
    %c84 = arith.constant 84 : index
    %c16_227 = arith.constant 16 : index
    %156 = vector.load %arg16[%c84, %c16_227] : memref<98x144xf32, #tpu.memory_space<vmem>>, vector<7x16xf32>
    tpu.vector_store %arg16[%c84, %c16_227], %155 {strides = array<i32>} : memref<98x144xf32, #tpu.memory_space<vmem>>, vector<7x16xf32>,
    %c312 = arith.constant 312 : index
    %c0_228 = arith.constant 0 : index
    %157 = tpu.strided_load %arg15[%c312, %c0_228] {strides = array<i32: 2, 1>} : memref<338x16xf32, #tpu.memory_space<vmem>>, vector<7x16xf32>
    %c91_229 = arith.constant 91 : index
    %c16_230 = arith.constant 16 : index
    %158 = vector.load %arg16[%c91_229, %c16_230] : memref<98x144xf32, #tpu.memory_space<vmem>>, vector<7x16xf32>
    tpu.vector_store %arg16[%c91_229, %c16_230], %157 {strides = array<i32>} : memref<98x144xf32, #tpu.memory_space<vmem>>, vector<7x16xf32>,
    %c183_231 = arith.constant 183 : index
    %c0_232 = arith.constant 0 : index
    %159 = tpu.strided_load %arg15[%c183_231, %c0_232] {strides = array<i32: 2, 1>} : memref<338x16xf32, #tpu.memory_space<vmem>>, vector<6x16xf32>
    %c56_233 = arith.constant 56 : index
    %c32_234 = arith.constant 32 : index
    %160 = vector.load %arg16[%c56_233, %c32_234] : memref<98x144xf32, #tpu.memory_space<vmem>>, vector<6x16xf32>
    tpu.vector_store %arg16[%c56_233, %c32_234], %159 {strides = array<i32>} : memref<98x144xf32, #tpu.memory_space<vmem>>, vector<6x16xf32>,
    %c209_235 = arith.constant 209 : index
    %c0_236 = arith.constant 0 : index
    %161 = tpu.strided_load %arg15[%c209_235, %c0_236] {strides = array<i32: 2, 1>} : memref<338x16xf32, #tpu.memory_space<vmem>>, vector<6x16xf32>
    %c63_237 = arith.constant 63 : index
    %c32_238 = arith.constant 32 : index
    %162 = vector.load %arg16[%c63_237, %c32_238] : memref<98x144xf32, #tpu.memory_space<vmem>>, vector<6x16xf32>
    tpu.vector_store %arg16[%c63_237, %c32_238], %161 {strides = array<i32>} : memref<98x144xf32, #tpu.memory_space<vmem>>, vector<6x16xf32>,
    %c235_239 = arith.constant 235 : index
    %c0_240 = arith.constant 0 : index
    %163 = tpu.strided_load %arg15[%c235_239, %c0_240] {strides = array<i32: 2, 1>} : memref<338x16xf32, #tpu.memory_space<vmem>>, vector<6x16xf32>
    %c70_241 = arith.constant 70 : index
    %c32_242 = arith.constant 32 : index
    %164 = vector.load %arg16[%c70_241, %c32_242] : memref<98x144xf32, #tpu.memory_space<vmem>>, vector<6x16xf32>
    tpu.vector_store %arg16[%c70_241, %c32_242], %163 {strides = array<i32>} : memref<98x144xf32, #tpu.memory_space<vmem>>, vector<6x16xf32>,
    %c261_243 = arith.constant 261 : index
    %c0_244 = arith.constant 0 : index
    %165 = tpu.strided_load %arg15[%c261_243, %c0_244] {strides = array<i32: 2, 1>} : memref<338x16xf32, #tpu.memory_space<vmem>>, vector<6x16xf32>
    %c77_245 = arith.constant 77 : index
    %c32_246 = arith.constant 32 : index
    %166 = vector.load %arg16[%c77_245, %c32_246] : memref<98x144xf32, #tpu.memory_space<vmem>>, vector<6x16xf32>
    tpu.vector_store %arg16[%c77_245, %c32_246], %165 {strides = array<i32>} : memref<98x144xf32, #tpu.memory_space<vmem>>, vector<6x16xf32>,
    %c287_247 = arith.constant 287 : index
    %c0_248 = arith.constant 0 : index
    %167 = tpu.strided_load %arg15[%c287_247, %c0_248] {strides = array<i32: 2, 1>} : memref<338x16xf32, #tpu.memory_space<vmem>>, vector<6x16xf32>
    %c84_249 = arith.constant 84 : index
    %c32_250 = arith.constant 32 : index
    %168 = vector.load %arg16[%c84_249, %c32_250] : memref<98x144xf32, #tpu.memory_space<vmem>>, vector<6x16xf32>
    tpu.vector_store %arg16[%c84_249, %c32_250], %167 {strides = array<i32>} : memref<98x144xf32, #tpu.memory_space<vmem>>, vector<6x16xf32>,
    %c313_251 = arith.constant 313 : index
    %c0_252 = arith.constant 0 : index
    %169 = tpu.strided_load %arg15[%c313_251, %c0_252] {strides = array<i32: 2, 1>} : memref<338x16xf32, #tpu.memory_space<vmem>>, vector<6x16xf32>
    %c91_253 = arith.constant 91 : index
    %c32_254 = arith.constant 32 : index
    %170 = vector.load %arg16[%c91_253, %c32_254] : memref<98x144xf32, #tpu.memory_space<vmem>>, vector<6x16xf32>
    tpu.vector_store %arg16[%c91_253, %c32_254], %169 {strides = array<i32>} : memref<98x144xf32, #tpu.memory_space<vmem>>, vector<6x16xf32>,
    %c170 = arith.constant 170 : index
    %c0_255 = arith.constant 0 : index
    %171 = tpu.strided_load %arg15[%c170, %c0_255] {strides = array<i32: 2, 1>} : memref<338x16xf32, #tpu.memory_space<vmem>>, vector<6x16xf32>
    %c50 = arith.constant 50 : index
    %c48_256 = arith.constant 48 : index
    %172 = vector.load %arg16[%c50, %c48_256] : memref<98x144xf32, #tpu.memory_space<vmem>>, vector<6x16xf32>
    tpu.vector_store %arg16[%c50, %c48_256], %171 {strides = array<i32>} : memref<98x144xf32, #tpu.memory_space<vmem>>, vector<6x16xf32>,
    %c196 = arith.constant 196 : index
    %c0_257 = arith.constant 0 : index
    %173 = tpu.strided_load %arg15[%c196, %c0_257] {strides = array<i32: 2, 1>} : memref<338x16xf32, #tpu.memory_space<vmem>>, vector<6x16xf32>
    %c57_258 = arith.constant 57 : index
    %c48_259 = arith.constant 48 : index
    %174 = vector.load %arg16[%c57_258, %c48_259] : memref<98x144xf32, #tpu.memory_space<vmem>>, vector<6x16xf32>
    tpu.vector_store %arg16[%c57_258, %c48_259], %173 {strides = array<i32>} : memref<98x144xf32, #tpu.memory_space<vmem>>, vector<6x16xf32>,
    %c222 = arith.constant 222 : index
    %c0_260 = arith.constant 0 : index
    %175 = tpu.strided_load %arg15[%c222, %c0_260] {strides = array<i32: 2, 1>} : memref<338x16xf32, #tpu.memory_space<vmem>>, vector<6x16xf32>
    %c64_261 = arith.constant 64 : index
    %c48_262 = arith.constant 48 : index
    %176 = vector.load %arg16[%c64_261, %c48_262] : memref<98x144xf32, #tpu.memory_space<vmem>>, vector<6x16xf32>
    tpu.vector_store %arg16[%c64_261, %c48_262], %175 {strides = array<i32>} : memref<98x144xf32, #tpu.memory_space<vmem>>, vector<6x16xf32>,
    %c248 = arith.constant 248 : index
    %c0_263 = arith.constant 0 : index
    %177 = tpu.strided_load %arg15[%c248, %c0_263] {strides = array<i32: 2, 1>} : memref<338x16xf32, #tpu.memory_space<vmem>>, vector<6x16xf32>
    %c71_264 = arith.constant 71 : index
    %c48_265 = arith.constant 48 : index
    %178 = vector.load %arg16[%c71_264, %c48_265] : memref<98x144xf32, #tpu.memory_space<vmem>>, vector<6x16xf32>
    tpu.vector_store %arg16[%c71_264, %c48_265], %177 {strides = array<i32>} : memref<98x144xf32, #tpu.memory_space<vmem>>, vector<6x16xf32>,
    %c274 = arith.constant 274 : index
    %c0_266 = arith.constant 0 : index
    %179 = tpu.strided_load %arg15[%c274, %c0_266] {strides = array<i32: 2, 1>} : memref<338x16xf32, #tpu.memory_space<vmem>>, vector<6x16xf32>
    %c78_267 = arith.constant 78 : index
    %c48_268 = arith.constant 48 : index
    %180 = vector.load %arg16[%c78_267, %c48_268] : memref<98x144xf32, #tpu.memory_space<vmem>>, vector<6x16xf32>
    tpu.vector_store %arg16[%c78_267, %c48_268], %179 {strides = array<i32>} : memref<98x144xf32, #tpu.memory_space<vmem>>, vector<6x16xf32>,
    %c300 = arith.constant 300 : index
    %c0_269 = arith.constant 0 : index
    %181 = tpu.strided_load %arg15[%c300, %c0_269] {strides = array<i32: 2, 1>} : memref<338x16xf32, #tpu.memory_space<vmem>>, vector<6x16xf32>
    %c85_270 = arith.constant 85 : index
    %c48_271 = arith.constant 48 : index
    %182 = vector.load %arg16[%c85_270, %c48_271] : memref<98x144xf32, #tpu.memory_space<vmem>>, vector<6x16xf32>
    tpu.vector_store %arg16[%c85_270, %c48_271], %181 {strides = array<i32>} : memref<98x144xf32, #tpu.memory_space<vmem>>, vector<6x16xf32>,
    %c326 = arith.constant 326 : index
    %c0_272 = arith.constant 0 : index
    %183 = tpu.strided_load %arg15[%c326, %c0_272] {strides = array<i32: 2, 1>} : memref<338x16xf32, #tpu.memory_space<vmem>>, vector<6x16xf32>
    %c92_273 = arith.constant 92 : index
    %c48_274 = arith.constant 48 : index
    %184 = vector.load %arg16[%c92_273, %c48_274] : memref<98x144xf32, #tpu.memory_space<vmem>>, vector<6x16xf32>
    tpu.vector_store %arg16[%c92_273, %c48_274], %183 {strides = array<i32>} : memref<98x144xf32, #tpu.memory_space<vmem>>, vector<6x16xf32>,
    %c169 = arith.constant 169 : index
    %c0_275 = arith.constant 0 : index
    %185 = tpu.strided_load %arg15[%c169, %c0_275] {strides = array<i32: 2, 1>} : memref<338x16xf32, #tpu.memory_space<vmem>>, vector<7x16xf32>
    %c49 = arith.constant 49 : index
    %c64_276 = arith.constant 64 : index
    %186 = vector.load %arg16[%c49, %c64_276] : memref<98x144xf32, #tpu.memory_space<vmem>>, vector<7x16xf32>
    tpu.vector_store %arg16[%c49, %c64_276], %185 {strides = array<i32>} : memref<98x144xf32, #tpu.memory_space<vmem>>, vector<7x16xf32>,
    %c195 = arith.constant 195 : index
    %c0_277 = arith.constant 0 : index
    %187 = tpu.strided_load %arg15[%c195, %c0_277] {strides = array<i32: 2, 1>} : memref<338x16xf32, #tpu.memory_space<vmem>>, vector<7x16xf32>
    %c56_278 = arith.constant 56 : index
    %c64_279 = arith.constant 64 : index
    %188 = vector.load %arg16[%c56_278, %c64_279] : memref<98x144xf32, #tpu.memory_space<vmem>>, vector<7x16xf32>
    tpu.vector_store %arg16[%c56_278, %c64_279], %187 {strides = array<i32>} : memref<98x144xf32, #tpu.memory_space<vmem>>, vector<7x16xf32>,
    %c221 = arith.constant 221 : index
    %c0_280 = arith.constant 0 : index
    %189 = tpu.strided_load %arg15[%c221, %c0_280] {strides = array<i32: 2, 1>} : memref<338x16xf32, #tpu.memory_space<vmem>>, vector<7x16xf32>
    %c63_281 = arith.constant 63 : index
    %c64_282 = arith.constant 64 : index
    %190 = vector.load %arg16[%c63_281, %c64_282] : memref<98x144xf32, #tpu.memory_space<vmem>>, vector<7x16xf32>
    tpu.vector_store %arg16[%c63_281, %c64_282], %189 {strides = array<i32>} : memref<98x144xf32, #tpu.memory_space<vmem>>, vector<7x16xf32>,
    %c247 = arith.constant 247 : index
    %c0_283 = arith.constant 0 : index
    %191 = tpu.strided_load %arg15[%c247, %c0_283] {strides = array<i32: 2, 1>} : memref<338x16xf32, #tpu.memory_space<vmem>>, vector<7x16xf32>
    %c70_284 = arith.constant 70 : index
    %c64_285 = arith.constant 64 : index
    %192 = vector.load %arg16[%c70_284, %c64_285] : memref<98x144xf32, #tpu.memory_space<vmem>>, vector<7x16xf32>
    tpu.vector_store %arg16[%c70_284, %c64_285], %191 {strides = array<i32>} : memref<98x144xf32, #tpu.memory_space<vmem>>, vector<7x16xf32>,
    %c273 = arith.constant 273 : index
    %c0_286 = arith.constant 0 : index
    %193 = tpu.strided_load %arg15[%c273, %c0_286] {strides = array<i32: 2, 1>} : memref<338x16xf32, #tpu.memory_space<vmem>>, vector<7x16xf32>
    %c77_287 = arith.constant 77 : index
    %c64_288 = arith.constant 64 : index
    %194 = vector.load %arg16[%c77_287, %c64_288] : memref<98x144xf32, #tpu.memory_space<vmem>>, vector<7x16xf32>
    tpu.vector_store %arg16[%c77_287, %c64_288], %193 {strides = array<i32>} : memref<98x144xf32, #tpu.memory_space<vmem>>, vector<7x16xf32>,
    %c299 = arith.constant 299 : index
    %c0_289 = arith.constant 0 : index
    %195 = tpu.strided_load %arg15[%c299, %c0_289] {strides = array<i32: 2, 1>} : memref<338x16xf32, #tpu.memory_space<vmem>>, vector<7x16xf32>
    %c84_290 = arith.constant 84 : index
    %c64_291 = arith.constant 64 : index
    %196 = vector.load %arg16[%c84_290, %c64_291] : memref<98x144xf32, #tpu.memory_space<vmem>>, vector<7x16xf32>
    tpu.vector_store %arg16[%c84_290, %c64_291], %195 {strides = array<i32>} : memref<98x144xf32, #tpu.memory_space<vmem>>, vector<7x16xf32>,
    %c325 = arith.constant 325 : index
    %c0_292 = arith.constant 0 : index
    %197 = tpu.strided_load %arg15[%c325, %c0_292] {strides = array<i32: 2, 1>} : memref<338x16xf32, #tpu.memory_space<vmem>>, vector<7x16xf32>
    %c91_293 = arith.constant 91 : index
    %c64_294 = arith.constant 64 : index
    %198 = vector.load %arg16[%c91_293, %c64_294] : memref<98x144xf32, #tpu.memory_space<vmem>>, vector<7x16xf32>
    tpu.vector_store %arg16[%c91_293, %c64_294], %197 {strides = array<i32>} : memref<98x144xf32, #tpu.memory_space<vmem>>, vector<7x16xf32>,
    %c170_295 = arith.constant 170 : index
    %c0_296 = arith.constant 0 : index
    %199 = tpu.strided_load %arg15[%c170_295, %c0_296] {strides = array<i32: 2, 1>} : memref<338x16xf32, #tpu.memory_space<vmem>>, vector<6x16xf32>
    %c49_297 = arith.constant 49 : index
    %c80_298 = arith.constant 80 : index
    %200 = vector.load %arg16[%c49_297, %c80_298] : memref<98x144xf32, #tpu.memory_space<vmem>>, vector<6x16xf32>
    tpu.vector_store %arg16[%c49_297, %c80_298], %199 {strides = array<i32>} : memref<98x144xf32, #tpu.memory_space<vmem>>, vector<6x16xf32>,
    %c196_299 = arith.constant 196 : index
    %c0_300 = arith.constant 0 : index
    %201 = tpu.strided_load %arg15[%c196_299, %c0_300] {strides = array<i32: 2, 1>} : memref<338x16xf32, #tpu.memory_space<vmem>>, vector<6x16xf32>
    %c56_301 = arith.constant 56 : index
    %c80_302 = arith.constant 80 : index
    %202 = vector.load %arg16[%c56_301, %c80_302] : memref<98x144xf32, #tpu.memory_space<vmem>>, vector<6x16xf32>
    tpu.vector_store %arg16[%c56_301, %c80_302], %201 {strides = array<i32>} : memref<98x144xf32, #tpu.memory_space<vmem>>, vector<6x16xf32>,
    %c222_303 = arith.constant 222 : index
    %c0_304 = arith.constant 0 : index
    %203 = tpu.strided_load %arg15[%c222_303, %c0_304] {strides = array<i32: 2, 1>} : memref<338x16xf32, #tpu.memory_space<vmem>>, vector<6x16xf32>
    %c63_305 = arith.constant 63 : index
    %c80_306 = arith.constant 80 : index
    %204 = vector.load %arg16[%c63_305, %c80_306] : memref<98x144xf32, #tpu.memory_space<vmem>>, vector<6x16xf32>
    tpu.vector_store %arg16[%c63_305, %c80_306], %203 {strides = array<i32>} : memref<98x144xf32, #tpu.memory_space<vmem>>, vector<6x16xf32>,
    %c248_307 = arith.constant 248 : index
    %c0_308 = arith.constant 0 : index
    %205 = tpu.strided_load %arg15[%c248_307, %c0_308] {strides = array<i32: 2, 1>} : memref<338x16xf32, #tpu.memory_space<vmem>>, vector<6x16xf32>
    %c70_309 = arith.constant 70 : index
    %c80_310 = arith.constant 80 : index
    %206 = vector.load %arg16[%c70_309, %c80_310] : memref<98x144xf32, #tpu.memory_space<vmem>>, vector<6x16xf32>
    tpu.vector_store %arg16[%c70_309, %c80_310], %205 {strides = array<i32>} : memref<98x144xf32, #tpu.memory_space<vmem>>, vector<6x16xf32>,
    %c274_311 = arith.constant 274 : index
    %c0_312 = arith.constant 0 : index
    %207 = tpu.strided_load %arg15[%c274_311, %c0_312] {strides = array<i32: 2, 1>} : memref<338x16xf32, #tpu.memory_space<vmem>>, vector<6x16xf32>
    %c77_313 = arith.constant 77 : index
    %c80_314 = arith.constant 80 : index
    %208 = vector.load %arg16[%c77_313, %c80_314] : memref<98x144xf32, #tpu.memory_space<vmem>>, vector<6x16xf32>
    tpu.vector_store %arg16[%c77_313, %c80_314], %207 {strides = array<i32>} : memref<98x144xf32, #tpu.memory_space<vmem>>, vector<6x16xf32>,
    %c300_315 = arith.constant 300 : index
    %c0_316 = arith.constant 0 : index
    %209 = tpu.strided_load %arg15[%c300_315, %c0_316] {strides = array<i32: 2, 1>} : memref<338x16xf32, #tpu.memory_space<vmem>>, vector<6x16xf32>
    %c84_317 = arith.constant 84 : index
    %c80_318 = arith.constant 80 : index
    %210 = vector.load %arg16[%c84_317, %c80_318] : memref<98x144xf32, #tpu.memory_space<vmem>>, vector<6x16xf32>
    tpu.vector_store %arg16[%c84_317, %c80_318], %209 {strides = array<i32>} : memref<98x144xf32, #tpu.memory_space<vmem>>, vector<6x16xf32>,
    %c326_319 = arith.constant 326 : index
    %c0_320 = arith.constant 0 : index
    %211 = tpu.strided_load %arg15[%c326_319, %c0_320] {strides = array<i32: 2, 1>} : memref<338x16xf32, #tpu.memory_space<vmem>>, vector<6x16xf32>
    %c91_321 = arith.constant 91 : index
    %c80_322 = arith.constant 80 : index
    %212 = vector.load %arg16[%c91_321, %c80_322] : memref<98x144xf32, #tpu.memory_space<vmem>>, vector<6x16xf32>
    tpu.vector_store %arg16[%c91_321, %c80_322], %211 {strides = array<i32>} : memref<98x144xf32, #tpu.memory_space<vmem>>, vector<6x16xf32>,
    %c183_323 = arith.constant 183 : index
    %c0_324 = arith.constant 0 : index
    %213 = tpu.strided_load %arg15[%c183_323, %c0_324] {strides = array<i32: 2, 1>} : memref<338x16xf32, #tpu.memory_space<vmem>>, vector<6x16xf32>
    %c50_325 = arith.constant 50 : index
    %c96_326 = arith.constant 96 : index
    %214 = vector.load %arg16[%c50_325, %c96_326] : memref<98x144xf32, #tpu.memory_space<vmem>>, vector<6x16xf32>
    tpu.vector_store %arg16[%c50_325, %c96_326], %213 {strides = array<i32>} : memref<98x144xf32, #tpu.memory_space<vmem>>, vector<6x16xf32>,
    %c209_327 = arith.constant 209 : index
    %c0_328 = arith.constant 0 : index
    %215 = tpu.strided_load %arg15[%c209_327, %c0_328] {strides = array<i32: 2, 1>} : memref<338x16xf32, #tpu.memory_space<vmem>>, vector<6x16xf32>
    %c57_329 = arith.constant 57 : index
    %c96_330 = arith.constant 96 : index
    %216 = vector.load %arg16[%c57_329, %c96_330] : memref<98x144xf32, #tpu.memory_space<vmem>>, vector<6x16xf32>
    tpu.vector_store %arg16[%c57_329, %c96_330], %215 {strides = array<i32>} : memref<98x144xf32, #tpu.memory_space<vmem>>, vector<6x16xf32>,
    %c235_331 = arith.constant 235 : index
    %c0_332 = arith.constant 0 : index
    %217 = tpu.strided_load %arg15[%c235_331, %c0_332] {strides = array<i32: 2, 1>} : memref<338x16xf32, #tpu.memory_space<vmem>>, vector<6x16xf32>
    %c64_333 = arith.constant 64 : index
    %c96_334 = arith.constant 96 : index
    %218 = vector.load %arg16[%c64_333, %c96_334] : memref<98x144xf32, #tpu.memory_space<vmem>>, vector<6x16xf32>
    tpu.vector_store %arg16[%c64_333, %c96_334], %217 {strides = array<i32>} : memref<98x144xf32, #tpu.memory_space<vmem>>, vector<6x16xf32>,
    %c261_335 = arith.constant 261 : index
    %c0_336 = arith.constant 0 : index
    %219 = tpu.strided_load %arg15[%c261_335, %c0_336] {strides = array<i32: 2, 1>} : memref<338x16xf32, #tpu.memory_space<vmem>>, vector<6x16xf32>
    %c71_337 = arith.constant 71 : index
    %c96_338 = arith.constant 96 : index
    %220 = vector.load %arg16[%c71_337, %c96_338] : memref<98x144xf32, #tpu.memory_space<vmem>>, vector<6x16xf32>
    tpu.vector_store %arg16[%c71_337, %c96_338], %219 {strides = array<i32>} : memref<98x144xf32, #tpu.memory_space<vmem>>, vector<6x16xf32>,
    %c287_339 = arith.constant 287 : index
    %c0_340 = arith.constant 0 : index
    %221 = tpu.strided_load %arg15[%c287_339, %c0_340] {strides = array<i32: 2, 1>} : memref<338x16xf32, #tpu.memory_space<vmem>>, vector<6x16xf32>
    %c78_341 = arith.constant 78 : index
    %c96_342 = arith.constant 96 : index
    %222 = vector.load %arg16[%c78_341, %c96_342] : memref<98x144xf32, #tpu.memory_space<vmem>>, vector<6x16xf32>
    tpu.vector_store %arg16[%c78_341, %c96_342], %221 {strides = array<i32>} : memref<98x144xf32, #tpu.memory_space<vmem>>, vector<6x16xf32>,
    %c313_343 = arith.constant 313 : index
    %c0_344 = arith.constant 0 : index
    %223 = tpu.strided_load %arg15[%c313_343, %c0_344] {strides = array<i32: 2, 1>} : memref<338x16xf32, #tpu.memory_space<vmem>>, vector<6x16xf32>
    %c85_345 = arith.constant 85 : index
    %c96_346 = arith.constant 96 : index
    %224 = vector.load %arg16[%c85_345, %c96_346] : memref<98x144xf32, #tpu.memory_space<vmem>>, vector<6x16xf32>
    tpu.vector_store %arg16[%c85_345, %c96_346], %223 {strides = array<i32>} : memref<98x144xf32, #tpu.memory_space<vmem>>, vector<6x16xf32>,
    %c182_347 = arith.constant 182 : index
    %c0_348 = arith.constant 0 : index
    %225 = tpu.strided_load %arg15[%c182_347, %c0_348] {strides = array<i32: 2, 1>} : memref<338x16xf32, #tpu.memory_space<vmem>>, vector<7x16xf32>
    %c49_349 = arith.constant 49 : index
    %c112_350 = arith.constant 112 : index
    %226 = vector.load %arg16[%c49_349, %c112_350] : memref<98x144xf32, #tpu.memory_space<vmem>>, vector<7x16xf32>
    tpu.vector_store %arg16[%c49_349, %c112_350], %225 {strides = array<i32>} : memref<98x144xf32, #tpu.memory_space<vmem>>, vector<7x16xf32>,
    %c208_351 = arith.constant 208 : index
    %c0_352 = arith.constant 0 : index
    %227 = tpu.strided_load %arg15[%c208_351, %c0_352] {strides = array<i32: 2, 1>} : memref<338x16xf32, #tpu.memory_space<vmem>>, vector<7x16xf32>
    %c56_353 = arith.constant 56 : index
    %c112_354 = arith.constant 112 : index
    %228 = vector.load %arg16[%c56_353, %c112_354] : memref<98x144xf32, #tpu.memory_space<vmem>>, vector<7x16xf32>
    tpu.vector_store %arg16[%c56_353, %c112_354], %227 {strides = array<i32>} : memref<98x144xf32, #tpu.memory_space<vmem>>, vector<7x16xf32>,
    %c234_355 = arith.constant 234 : index
    %c0_356 = arith.constant 0 : index
    %229 = tpu.strided_load %arg15[%c234_355, %c0_356] {strides = array<i32: 2, 1>} : memref<338x16xf32, #tpu.memory_space<vmem>>, vector<7x16xf32>
    %c63_357 = arith.constant 63 : index
    %c112_358 = arith.constant 112 : index
    %230 = vector.load %arg16[%c63_357, %c112_358] : memref<98x144xf32, #tpu.memory_space<vmem>>, vector<7x16xf32>
    tpu.vector_store %arg16[%c63_357, %c112_358], %229 {strides = array<i32>} : memref<98x144xf32, #tpu.memory_space<vmem>>, vector<7x16xf32>,
    %c260_359 = arith.constant 260 : index
    %c0_360 = arith.constant 0 : index
    %231 = tpu.strided_load %arg15[%c260_359, %c0_360] {strides = array<i32: 2, 1>} : memref<338x16xf32, #tpu.memory_space<vmem>>, vector<7x16xf32>
    %c70_361 = arith.constant 70 : index
    %c112_362 = arith.constant 112 : index
    %232 = vector.load %arg16[%c70_361, %c112_362] : memref<98x144xf32, #tpu.memory_space<vmem>>, vector<7x16xf32>
    tpu.vector_store %arg16[%c70_361, %c112_362], %231 {strides = array<i32>} : memref<98x144xf32, #tpu.memory_space<vmem>>, vector<7x16xf32>,
    %c286_363 = arith.constant 286 : index
    %c0_364 = arith.constant 0 : index
    %233 = tpu.strided_load %arg15[%c286_363, %c0_364] {strides = array<i32: 2, 1>} : memref<338x16xf32, #tpu.memory_space<vmem>>, vector<7x16xf32>
    %c77_365 = arith.constant 77 : index
    %c112_366 = arith.constant 112 : index
    %234 = vector.load %arg16[%c77_365, %c112_366] : memref<98x144xf32, #tpu.memory_space<vmem>>, vector<7x16xf32>
    tpu.vector_store %arg16[%c77_365, %c112_366], %233 {strides = array<i32>} : memref<98x144xf32, #tpu.memory_space<vmem>>, vector<7x16xf32>,
    %c312_367 = arith.constant 312 : index
    %c0_368 = arith.constant 0 : index
    %235 = tpu.strided_load %arg15[%c312_367, %c0_368] {strides = array<i32: 2, 1>} : memref<338x16xf32, #tpu.memory_space<vmem>>, vector<7x16xf32>
    %c84_369 = arith.constant 84 : index
    %c112_370 = arith.constant 112 : index
    %236 = vector.load %arg16[%c84_369, %c112_370] : memref<98x144xf32, #tpu.memory_space<vmem>>, vector<7x16xf32>
    tpu.vector_store %arg16[%c84_369, %c112_370], %235 {strides = array<i32>} : memref<98x144xf32, #tpu.memory_space<vmem>>, vector<7x16xf32>,
    %c183_371 = arith.constant 183 : index
    %c0_372 = arith.constant 0 : index
    %237 = tpu.strided_load %arg15[%c183_371, %c0_372] {strides = array<i32: 2, 1>} : memref<338x16xf32, #tpu.memory_space<vmem>>, vector<6x16xf32>
    %c49_373 = arith.constant 49 : index
    %c128_374 = arith.constant 128 : index
    %238 = vector.load %arg16[%c49_373, %c128_374] : memref<98x144xf32, #tpu.memory_space<vmem>>, vector<6x16xf32>
    tpu.vector_store %arg16[%c49_373, %c128_374], %237 {strides = array<i32>} : memref<98x144xf32, #tpu.memory_space<vmem>>, vector<6x16xf32>,
    %c209_375 = arith.constant 209 : index
    %c0_376 = arith.constant 0 : index
    %239 = tpu.strided_load %arg15[%c209_375, %c0_376] {strides = array<i32: 2, 1>} : memref<338x16xf32, #tpu.memory_space<vmem>>, vector<6x16xf32>
    %c56_377 = arith.constant 56 : index
    %c128_378 = arith.constant 128 : index
    %240 = vector.load %arg16[%c56_377, %c128_378] : memref<98x144xf32, #tpu.memory_space<vmem>>, vector<6x16xf32>
    tpu.vector_store %arg16[%c56_377, %c128_378], %239 {strides = array<i32>} : memref<98x144xf32, #tpu.memory_space<vmem>>, vector<6x16xf32>,
    %c235_379 = arith.constant 235 : index
    %c0_380 = arith.constant 0 : index
    %241 = tpu.strided_load %arg15[%c235_379, %c0_380] {strides = array<i32: 2, 1>} : memref<338x16xf32, #tpu.memory_space<vmem>>, vector<6x16xf32>
    %c63_381 = arith.constant 63 : index
    %c128_382 = arith.constant 128 : index
    %242 = vector.load %arg16[%c63_381, %c128_382] : memref<98x144xf32, #tpu.memory_space<vmem>>, vector<6x16xf32>
    tpu.vector_store %arg16[%c63_381, %c128_382], %241 {strides = array<i32>} : memref<98x144xf32, #tpu.memory_space<vmem>>, vector<6x16xf32>,
    %c261_383 = arith.constant 261 : index
    %c0_384 = arith.constant 0 : index
    %243 = tpu.strided_load %arg15[%c261_383, %c0_384] {strides = array<i32: 2, 1>} : memref<338x16xf32, #tpu.memory_space<vmem>>, vector<6x16xf32>
    %c70_385 = arith.constant 70 : index
    %c128_386 = arith.constant 128 : index
    %244 = vector.load %arg16[%c70_385, %c128_386] : memref<98x144xf32, #tpu.memory_space<vmem>>, vector<6x16xf32>
    tpu.vector_store %arg16[%c70_385, %c128_386], %243 {strides = array<i32>} : memref<98x144xf32, #tpu.memory_space<vmem>>, vector<6x16xf32>,
    %c287_387 = arith.constant 287 : index
    %c0_388 = arith.constant 0 : index
    %245 = tpu.strided_load %arg15[%c287_387, %c0_388] {strides = array<i32: 2, 1>} : memref<338x16xf32, #tpu.memory_space<vmem>>, vector<6x16xf32>
    %c77_389 = arith.constant 77 : index
    %c128_390 = arith.constant 128 : index
    %246 = vector.load %arg16[%c77_389, %c128_390] : memref<98x144xf32, #tpu.memory_space<vmem>>, vector<6x16xf32>
    tpu.vector_store %arg16[%c77_389, %c128_390], %245 {strides = array<i32>} : memref<98x144xf32, #tpu.memory_space<vmem>>, vector<6x16xf32>,
    %c313_391 = arith.constant 313 : index
    %c0_392 = arith.constant 0 : index
    %247 = tpu.strided_load %arg15[%c313_391, %c0_392] {strides = array<i32: 2, 1>} : memref<338x16xf32, #tpu.memory_space<vmem>>, vector<6x16xf32>
    %c84_393 = arith.constant 84 : index
    %c128_394 = arith.constant 128 : index
    %248 = vector.load %arg16[%c84_393, %c128_394] : memref<98x144xf32, #tpu.memory_space<vmem>>, vector<6x16xf32>
    tpu.vector_store %arg16[%c84_393, %c128_394], %247 {strides = array<i32>} : memref<98x144xf32, #tpu.memory_space<vmem>>, vector<6x16xf32>,
    %c0_395 = arith.constant 0 : index
    %c0_396 = arith.constant 0 : index
    %249 = vector.load %arg16[%c0_395, %c0_396] : memref<98x144xf32, #tpu.memory_space<vmem>>, vector<98x144xf32>
    %250 = arith.truncf %249 : vector<98x144xf32> to vector<98x144xbf16>
    %c0_397 = arith.constant 0 : index
    %c0_398 = arith.constant 0 : index
    %251 = vector.load %arg4[%c0_397, %c0_398] : memref<144x32xbf16, #tpu.memory_space<vmem>>, vector<144x32xbf16>
    %cst_399 = arith.constant dense<0.000000e+00> : vector<98x32xf32>
    %252 = tpu.matmul %250, %251, %cst_399 {dimension_numbers = #tpu.dot_dimension_numbers<[1], [0], [0], [1], [0, 0, 1, 1], [], []>} : vector<98x144xbf16>, vector<144x32xbf16>, vector<98x32xf32> -> vector<98x32xf32>
    %c0_400 = arith.constant 0 : index
    %c0_401 = arith.constant 0 : index
    %253 = vector.load %arg5[%c0_400, %c0_401] : memref<1x32xf32, #tpu.memory_space<vmem>>, vector<1x32xf32>
    %254 = vector.broadcast %253 : vector<1x32xf32> to vector<98x32xf32>
    %255 = arith.addf %252, %254 : vector<98x32xf32>
    %cst_402 = arith.constant 0.000000e+00 : f32
    %256 = vector.broadcast %cst_402 : f32 to vector<98x32xf32>
    %257 = arith.subf %256, %255 : vector<98x32xf32>
    %258 = math.exp %257 : vector<98x32xf32>
    %cst_403 = arith.constant 1.000000e+00 : f32
    %259 = vector.broadcast %cst_403 : f32 to vector<98x32xf32>
    %260 = arith.addf %259, %258 : vector<98x32xf32>
    %261 = tpu.reciprocal %260 {approx = true} : vector<98x32xf32> -> vector<98x32xf32>
    %262 = arith.mulf %255, %261 : vector<98x32xf32>
    %c0_404 = arith.constant 0 : index
    %c0_405 = arith.constant 0 : index
    %263 = vector.load %arg17[%c0_404, %c0_405] : memref<98x32xf32, #tpu.memory_space<vmem>>, vector<98x32xf32>
    tpu.vector_store %arg17[%c0_404, %c0_405], %262 {strides = array<i32>} : memref<98x32xf32, #tpu.memory_space<vmem>>, vector<98x32xf32>,
    %c8_406 = arith.constant 8 : index
    %c0_407 = arith.constant 0 : index
    %264 = tpu.strided_load %arg17[%c8_406, %c0_407] {strides = array<i32: 2, 1>} : memref<98x32xf32, #tpu.memory_space<vmem>>, vector<3x32xf32>
    %c5 = arith.constant 5 : index
    %c0_408 = arith.constant 0 : index
    %265 = vector.load %arg18[%c5, %c0_408] : memref<32x288xf32, #tpu.memory_space<vmem>>, vector<3x32xf32>
    tpu.vector_store %arg18[%c5, %c0_408], %264 {strides = array<i32>} : memref<32x288xf32, #tpu.memory_space<vmem>>, vector<3x32xf32>,
    %c22_409 = arith.constant 22 : index
    %c0_410 = arith.constant 0 : index
    %266 = tpu.strided_load %arg17[%c22_409, %c0_410] {strides = array<i32: 2, 1>} : memref<98x32xf32, #tpu.memory_space<vmem>>, vector<3x32xf32>
    %c9 = arith.constant 9 : index
    %c0_411 = arith.constant 0 : index
    %267 = vector.load %arg18[%c9, %c0_411] : memref<32x288xf32, #tpu.memory_space<vmem>>, vector<3x32xf32>
    tpu.vector_store %arg18[%c9, %c0_411], %266 {strides = array<i32>} : memref<32x288xf32, #tpu.memory_space<vmem>>, vector<3x32xf32>,
    %c36_412 = arith.constant 36 : index
    %c0_413 = arith.constant 0 : index
    %268 = tpu.strided_load %arg17[%c36_412, %c0_413] {strides = array<i32: 2, 1>} : memref<98x32xf32, #tpu.memory_space<vmem>>, vector<3x32xf32>
    %c13_414 = arith.constant 13 : index
    %c0_415 = arith.constant 0 : index
    %269 = vector.load %arg18[%c13_414, %c0_415] : memref<32x288xf32, #tpu.memory_space<vmem>>, vector<3x32xf32>
    tpu.vector_store %arg18[%c13_414, %c0_415], %268 {strides = array<i32>} : memref<32x288xf32, #tpu.memory_space<vmem>>, vector<3x32xf32>,
    %c7_416 = arith.constant 7 : index
    %c0_417 = arith.constant 0 : index
    %270 = tpu.strided_load %arg17[%c7_416, %c0_417] {strides = array<i32: 2, 1>} : memref<98x32xf32, #tpu.memory_space<vmem>>, vector<4x32xf32>
    %c4 = arith.constant 4 : index
    %c32_418 = arith.constant 32 : index
    %271 = vector.load %arg18[%c4, %c32_418] : memref<32x288xf32, #tpu.memory_space<vmem>>, vector<4x32xf32>
    tpu.vector_store %arg18[%c4, %c32_418], %270 {strides = array<i32>} : memref<32x288xf32, #tpu.memory_space<vmem>>, vector<4x32xf32>,
    %c21_419 = arith.constant 21 : index
    %c0_420 = arith.constant 0 : index
    %272 = tpu.strided_load %arg17[%c21_419, %c0_420] {strides = array<i32: 2, 1>} : memref<98x32xf32, #tpu.memory_space<vmem>>, vector<4x32xf32>
    %c8_421 = arith.constant 8 : index
    %c32_422 = arith.constant 32 : index
    %273 = vector.load %arg18[%c8_421, %c32_422] : memref<32x288xf32, #tpu.memory_space<vmem>>, vector<4x32xf32>
    tpu.vector_store %arg18[%c8_421, %c32_422], %272 {strides = array<i32>} : memref<32x288xf32, #tpu.memory_space<vmem>>, vector<4x32xf32>,
    %c35_423 = arith.constant 35 : index
    %c0_424 = arith.constant 0 : index
    %274 = tpu.strided_load %arg17[%c35_423, %c0_424] {strides = array<i32: 2, 1>} : memref<98x32xf32, #tpu.memory_space<vmem>>, vector<4x32xf32>
    %c12 = arith.constant 12 : index
    %c32_425 = arith.constant 32 : index
    %275 = vector.load %arg18[%c12, %c32_425] : memref<32x288xf32, #tpu.memory_space<vmem>>, vector<4x32xf32>
    tpu.vector_store %arg18[%c12, %c32_425], %274 {strides = array<i32>} : memref<32x288xf32, #tpu.memory_space<vmem>>, vector<4x32xf32>,
    %c8_426 = arith.constant 8 : index
    %c0_427 = arith.constant 0 : index
    %276 = tpu.strided_load %arg17[%c8_426, %c0_427] {strides = array<i32: 2, 1>} : memref<98x32xf32, #tpu.memory_space<vmem>>, vector<3x32xf32>
    %c4_428 = arith.constant 4 : index
    %c64_429 = arith.constant 64 : index
    %277 = vector.load %arg18[%c4_428, %c64_429] : memref<32x288xf32, #tpu.memory_space<vmem>>, vector<3x32xf32>
    tpu.vector_store %arg18[%c4_428, %c64_429], %276 {strides = array<i32>} : memref<32x288xf32, #tpu.memory_space<vmem>>, vector<3x32xf32>,
    %c22_430 = arith.constant 22 : index
    %c0_431 = arith.constant 0 : index
    %278 = tpu.strided_load %arg17[%c22_430, %c0_431] {strides = array<i32: 2, 1>} : memref<98x32xf32, #tpu.memory_space<vmem>>, vector<3x32xf32>
    %c8_432 = arith.constant 8 : index
    %c64_433 = arith.constant 64 : index
    %279 = vector.load %arg18[%c8_432, %c64_433] : memref<32x288xf32, #tpu.memory_space<vmem>>, vector<3x32xf32>
    tpu.vector_store %arg18[%c8_432, %c64_433], %278 {strides = array<i32>} : memref<32x288xf32, #tpu.memory_space<vmem>>, vector<3x32xf32>,
    %c36_434 = arith.constant 36 : index
    %c0_435 = arith.constant 0 : index
    %280 = tpu.strided_load %arg17[%c36_434, %c0_435] {strides = array<i32: 2, 1>} : memref<98x32xf32, #tpu.memory_space<vmem>>, vector<3x32xf32>
    %c12_436 = arith.constant 12 : index
    %c64_437 = arith.constant 64 : index
    %281 = vector.load %arg18[%c12_436, %c64_437] : memref<32x288xf32, #tpu.memory_space<vmem>>, vector<3x32xf32>
    tpu.vector_store %arg18[%c12_436, %c64_437], %280 {strides = array<i32>} : memref<32x288xf32, #tpu.memory_space<vmem>>, vector<3x32xf32>,
    %c1_438 = arith.constant 1 : index
    %c0_439 = arith.constant 0 : index
    %282 = tpu.strided_load %arg17[%c1_438, %c0_439] {strides = array<i32: 2, 1>} : memref<98x32xf32, #tpu.memory_space<vmem>>, vector<3x32xf32>
    %c1_440 = arith.constant 1 : index
    %c96_441 = arith.constant 96 : index
    %283 = vector.load %arg18[%c1_440, %c96_441] : memref<32x288xf32, #tpu.memory_space<vmem>>, vector<3x32xf32>
    tpu.vector_store %arg18[%c1_440, %c96_441], %282 {strides = array<i32>} : memref<32x288xf32, #tpu.memory_space<vmem>>, vector<3x32xf32>,
    %c15_442 = arith.constant 15 : index
    %c0_443 = arith.constant 0 : index
    %284 = tpu.strided_load %arg17[%c15_442, %c0_443] {strides = array<i32: 2, 1>} : memref<98x32xf32, #tpu.memory_space<vmem>>, vector<3x32xf32>
    %c5_444 = arith.constant 5 : index
    %c96_445 = arith.constant 96 : index
    %285 = vector.load %arg18[%c5_444, %c96_445] : memref<32x288xf32, #tpu.memory_space<vmem>>, vector<3x32xf32>
    tpu.vector_store %arg18[%c5_444, %c96_445], %284 {strides = array<i32>} : memref<32x288xf32, #tpu.memory_space<vmem>>, vector<3x32xf32>,
    %c29_446 = arith.constant 29 : index
    %c0_447 = arith.constant 0 : index
    %286 = tpu.strided_load %arg17[%c29_446, %c0_447] {strides = array<i32: 2, 1>} : memref<98x32xf32, #tpu.memory_space<vmem>>, vector<3x32xf32>
    %c9_448 = arith.constant 9 : index
    %c96_449 = arith.constant 96 : index
    %287 = vector.load %arg18[%c9_448, %c96_449] : memref<32x288xf32, #tpu.memory_space<vmem>>, vector<3x32xf32>
    tpu.vector_store %arg18[%c9_448, %c96_449], %286 {strides = array<i32>} : memref<32x288xf32, #tpu.memory_space<vmem>>, vector<3x32xf32>,
    %c43_450 = arith.constant 43 : index
    %c0_451 = arith.constant 0 : index
    %288 = tpu.strided_load %arg17[%c43_450, %c0_451] {strides = array<i32: 2, 1>} : memref<98x32xf32, #tpu.memory_space<vmem>>, vector<3x32xf32>
    %c13_452 = arith.constant 13 : index
    %c96_453 = arith.constant 96 : index
    %289 = vector.load %arg18[%c13_452, %c96_453] : memref<32x288xf32, #tpu.memory_space<vmem>>, vector<3x32xf32>
    tpu.vector_store %arg18[%c13_452, %c96_453], %288 {strides = array<i32>} : memref<32x288xf32, #tpu.memory_space<vmem>>, vector<3x32xf32>,
    %c0_454 = arith.constant 0 : index
    %c0_455 = arith.constant 0 : index
    %290 = tpu.strided_load %arg17[%c0_454, %c0_455] {strides = array<i32: 2, 1>} : memref<98x32xf32, #tpu.memory_space<vmem>>, vector<4x32xf32>
    %c0_456 = arith.constant 0 : index
    %c128_457 = arith.constant 128 : index
    %291 = vector.load %arg18[%c0_456, %c128_457] : memref<32x288xf32, #tpu.memory_space<vmem>>, vector<4x32xf32>
    tpu.vector_store %arg18[%c0_456, %c128_457], %290 {strides = array<i32>} : memref<32x288xf32, #tpu.memory_space<vmem>>, vector<4x32xf32>,
    %c14_458 = arith.constant 14 : index
    %c0_459 = arith.constant 0 : index
    %292 = tpu.strided_load %arg17[%c14_458, %c0_459] {strides = array<i32: 2, 1>} : memref<98x32xf32, #tpu.memory_space<vmem>>, vector<4x32xf32>
    %c4_460 = arith.constant 4 : index
    %c128_461 = arith.constant 128 : index
    %293 = vector.load %arg18[%c4_460, %c128_461] : memref<32x288xf32, #tpu.memory_space<vmem>>, vector<4x32xf32>
    tpu.vector_store %arg18[%c4_460, %c128_461], %292 {strides = array<i32>} : memref<32x288xf32, #tpu.memory_space<vmem>>, vector<4x32xf32>,
    %c28_462 = arith.constant 28 : index
    %c0_463 = arith.constant 0 : index
    %294 = tpu.strided_load %arg17[%c28_462, %c0_463] {strides = array<i32: 2, 1>} : memref<98x32xf32, #tpu.memory_space<vmem>>, vector<4x32xf32>
    %c8_464 = arith.constant 8 : index
    %c128_465 = arith.constant 128 : index
    %295 = vector.load %arg18[%c8_464, %c128_465] : memref<32x288xf32, #tpu.memory_space<vmem>>, vector<4x32xf32>
    tpu.vector_store %arg18[%c8_464, %c128_465], %294 {strides = array<i32>} : memref<32x288xf32, #tpu.memory_space<vmem>>, vector<4x32xf32>,
    %c42_466 = arith.constant 42 : index
    %c0_467 = arith.constant 0 : index
    %296 = tpu.strided_load %arg17[%c42_466, %c0_467] {strides = array<i32: 2, 1>} : memref<98x32xf32, #tpu.memory_space<vmem>>, vector<4x32xf32>
    %c12_468 = arith.constant 12 : index
    %c128_469 = arith.constant 128 : index
    %297 = vector.load %arg18[%c12_468, %c128_469] : memref<32x288xf32, #tpu.memory_space<vmem>>, vector<4x32xf32>
    tpu.vector_store %arg18[%c12_468, %c128_469], %296 {strides = array<i32>} : memref<32x288xf32, #tpu.memory_space<vmem>>, vector<4x32xf32>,
    %c1_470 = arith.constant 1 : index
    %c0_471 = arith.constant 0 : index
    %298 = tpu.strided_load %arg17[%c1_470, %c0_471] {strides = array<i32: 2, 1>} : memref<98x32xf32, #tpu.memory_space<vmem>>, vector<3x32xf32>
    %c0_472 = arith.constant 0 : index
    %c160 = arith.constant 160 : index
    %299 = vector.load %arg18[%c0_472, %c160] : memref<32x288xf32, #tpu.memory_space<vmem>>, vector<3x32xf32>
    tpu.vector_store %arg18[%c0_472, %c160], %298 {strides = array<i32>} : memref<32x288xf32, #tpu.memory_space<vmem>>, vector<3x32xf32>,
    %c15_473 = arith.constant 15 : index
    %c0_474 = arith.constant 0 : index
    %300 = tpu.strided_load %arg17[%c15_473, %c0_474] {strides = array<i32: 2, 1>} : memref<98x32xf32, #tpu.memory_space<vmem>>, vector<3x32xf32>
    %c4_475 = arith.constant 4 : index
    %c160_476 = arith.constant 160 : index
    %301 = vector.load %arg18[%c4_475, %c160_476] : memref<32x288xf32, #tpu.memory_space<vmem>>, vector<3x32xf32>
    tpu.vector_store %arg18[%c4_475, %c160_476], %300 {strides = array<i32>} : memref<32x288xf32, #tpu.memory_space<vmem>>, vector<3x32xf32>,
    %c29_477 = arith.constant 29 : index
    %c0_478 = arith.constant 0 : index
    %302 = tpu.strided_load %arg17[%c29_477, %c0_478] {strides = array<i32: 2, 1>} : memref<98x32xf32, #tpu.memory_space<vmem>>, vector<3x32xf32>
    %c8_479 = arith.constant 8 : index
    %c160_480 = arith.constant 160 : index
    %303 = vector.load %arg18[%c8_479, %c160_480] : memref<32x288xf32, #tpu.memory_space<vmem>>, vector<3x32xf32>
    tpu.vector_store %arg18[%c8_479, %c160_480], %302 {strides = array<i32>} : memref<32x288xf32, #tpu.memory_space<vmem>>, vector<3x32xf32>,
    %c43_481 = arith.constant 43 : index
    %c0_482 = arith.constant 0 : index
    %304 = tpu.strided_load %arg17[%c43_481, %c0_482] {strides = array<i32: 2, 1>} : memref<98x32xf32, #tpu.memory_space<vmem>>, vector<3x32xf32>
    %c12_483 = arith.constant 12 : index
    %c160_484 = arith.constant 160 : index
    %305 = vector.load %arg18[%c12_483, %c160_484] : memref<32x288xf32, #tpu.memory_space<vmem>>, vector<3x32xf32>
    tpu.vector_store %arg18[%c12_483, %c160_484], %304 {strides = array<i32>} : memref<32x288xf32, #tpu.memory_space<vmem>>, vector<3x32xf32>,
    %c8_485 = arith.constant 8 : index
    %c0_486 = arith.constant 0 : index
    %306 = tpu.strided_load %arg17[%c8_485, %c0_486] {strides = array<i32: 2, 1>} : memref<98x32xf32, #tpu.memory_space<vmem>>, vector<3x32xf32>
    %c1_487 = arith.constant 1 : index
    %c192 = arith.constant 192 : index
    %307 = vector.load %arg18[%c1_487, %c192] : memref<32x288xf32, #tpu.memory_space<vmem>>, vector<3x32xf32>
    tpu.vector_store %arg18[%c1_487, %c192], %306 {strides = array<i32>} : memref<32x288xf32, #tpu.memory_space<vmem>>, vector<3x32xf32>,
    %c22_488 = arith.constant 22 : index
    %c0_489 = arith.constant 0 : index
    %308 = tpu.strided_load %arg17[%c22_488, %c0_489] {strides = array<i32: 2, 1>} : memref<98x32xf32, #tpu.memory_space<vmem>>, vector<3x32xf32>
    %c5_490 = arith.constant 5 : index
    %c192_491 = arith.constant 192 : index
    %309 = vector.load %arg18[%c5_490, %c192_491] : memref<32x288xf32, #tpu.memory_space<vmem>>, vector<3x32xf32>
    tpu.vector_store %arg18[%c5_490, %c192_491], %308 {strides = array<i32>} : memref<32x288xf32, #tpu.memory_space<vmem>>, vector<3x32xf32>,
    %c36_492 = arith.constant 36 : index
    %c0_493 = arith.constant 0 : index
    %310 = tpu.strided_load %arg17[%c36_492, %c0_493] {strides = array<i32: 2, 1>} : memref<98x32xf32, #tpu.memory_space<vmem>>, vector<3x32xf32>
    %c9_494 = arith.constant 9 : index
    %c192_495 = arith.constant 192 : index
    %311 = vector.load %arg18[%c9_494, %c192_495] : memref<32x288xf32, #tpu.memory_space<vmem>>, vector<3x32xf32>
    tpu.vector_store %arg18[%c9_494, %c192_495], %310 {strides = array<i32>} : memref<32x288xf32, #tpu.memory_space<vmem>>, vector<3x32xf32>,
    %c7_496 = arith.constant 7 : index
    %c0_497 = arith.constant 0 : index
    %312 = tpu.strided_load %arg17[%c7_496, %c0_497] {strides = array<i32: 2, 1>} : memref<98x32xf32, #tpu.memory_space<vmem>>, vector<4x32xf32>
    %c0_498 = arith.constant 0 : index
    %c224 = arith.constant 224 : index
    %313 = vector.load %arg18[%c0_498, %c224] : memref<32x288xf32, #tpu.memory_space<vmem>>, vector<4x32xf32>
    tpu.vector_store %arg18[%c0_498, %c224], %312 {strides = array<i32>} : memref<32x288xf32, #tpu.memory_space<vmem>>, vector<4x32xf32>,
    %c21_499 = arith.constant 21 : index
    %c0_500 = arith.constant 0 : index
    %314 = tpu.strided_load %arg17[%c21_499, %c0_500] {strides = array<i32: 2, 1>} : memref<98x32xf32, #tpu.memory_space<vmem>>, vector<4x32xf32>
    %c4_501 = arith.constant 4 : index
    %c224_502 = arith.constant 224 : index
    %315 = vector.load %arg18[%c4_501, %c224_502] : memref<32x288xf32, #tpu.memory_space<vmem>>, vector<4x32xf32>
    tpu.vector_store %arg18[%c4_501, %c224_502], %314 {strides = array<i32>} : memref<32x288xf32, #tpu.memory_space<vmem>>, vector<4x32xf32>,
    %c35_503 = arith.constant 35 : index
    %c0_504 = arith.constant 0 : index
    %316 = tpu.strided_load %arg17[%c35_503, %c0_504] {strides = array<i32: 2, 1>} : memref<98x32xf32, #tpu.memory_space<vmem>>, vector<4x32xf32>
    %c8_505 = arith.constant 8 : index
    %c224_506 = arith.constant 224 : index
    %317 = vector.load %arg18[%c8_505, %c224_506] : memref<32x288xf32, #tpu.memory_space<vmem>>, vector<4x32xf32>
    tpu.vector_store %arg18[%c8_505, %c224_506], %316 {strides = array<i32>} : memref<32x288xf32, #tpu.memory_space<vmem>>, vector<4x32xf32>,
    %c8_507 = arith.constant 8 : index
    %c0_508 = arith.constant 0 : index
    %318 = tpu.strided_load %arg17[%c8_507, %c0_508] {strides = array<i32: 2, 1>} : memref<98x32xf32, #tpu.memory_space<vmem>>, vector<3x32xf32>
    %c0_509 = arith.constant 0 : index
    %c256 = arith.constant 256 : index
    %319 = vector.load %arg18[%c0_509, %c256] : memref<32x288xf32, #tpu.memory_space<vmem>>, vector<3x32xf32>
    tpu.vector_store %arg18[%c0_509, %c256], %318 {strides = array<i32>} : memref<32x288xf32, #tpu.memory_space<vmem>>, vector<3x32xf32>,
    %c22_510 = arith.constant 22 : index
    %c0_511 = arith.constant 0 : index
    %320 = tpu.strided_load %arg17[%c22_510, %c0_511] {strides = array<i32: 2, 1>} : memref<98x32xf32, #tpu.memory_space<vmem>>, vector<3x32xf32>
    %c4_512 = arith.constant 4 : index
    %c256_513 = arith.constant 256 : index
    %321 = vector.load %arg18[%c4_512, %c256_513] : memref<32x288xf32, #tpu.memory_space<vmem>>, vector<3x32xf32>
    tpu.vector_store %arg18[%c4_512, %c256_513], %320 {strides = array<i32>} : memref<32x288xf32, #tpu.memory_space<vmem>>, vector<3x32xf32>,
    %c36_514 = arith.constant 36 : index
    %c0_515 = arith.constant 0 : index
    %322 = tpu.strided_load %arg17[%c36_514, %c0_515] {strides = array<i32: 2, 1>} : memref<98x32xf32, #tpu.memory_space<vmem>>, vector<3x32xf32>
    %c8_516 = arith.constant 8 : index
    %c256_517 = arith.constant 256 : index
    %323 = vector.load %arg18[%c8_516, %c256_517] : memref<32x288xf32, #tpu.memory_space<vmem>>, vector<3x32xf32>
    tpu.vector_store %arg18[%c8_516, %c256_517], %322 {strides = array<i32>} : memref<32x288xf32, #tpu.memory_space<vmem>>, vector<3x32xf32>,
    %c57_518 = arith.constant 57 : index
    %c0_519 = arith.constant 0 : index
    %324 = tpu.strided_load %arg17[%c57_518, %c0_519] {strides = array<i32: 2, 1>} : memref<98x32xf32, #tpu.memory_space<vmem>>, vector<3x32xf32>
    %c21_520 = arith.constant 21 : index
    %c0_521 = arith.constant 0 : index
    %325 = vector.load %arg18[%c21_520, %c0_521] : memref<32x288xf32, #tpu.memory_space<vmem>>, vector<3x32xf32>
    tpu.vector_store %arg18[%c21_520, %c0_521], %324 {strides = array<i32>} : memref<32x288xf32, #tpu.memory_space<vmem>>, vector<3x32xf32>,
    %c71_522 = arith.constant 71 : index
    %c0_523 = arith.constant 0 : index
    %326 = tpu.strided_load %arg17[%c71_522, %c0_523] {strides = array<i32: 2, 1>} : memref<98x32xf32, #tpu.memory_space<vmem>>, vector<3x32xf32>
    %c25 = arith.constant 25 : index
    %c0_524 = arith.constant 0 : index
    %327 = vector.load %arg18[%c25, %c0_524] : memref<32x288xf32, #tpu.memory_space<vmem>>, vector<3x32xf32>
    tpu.vector_store %arg18[%c25, %c0_524], %326 {strides = array<i32>} : memref<32x288xf32, #tpu.memory_space<vmem>>, vector<3x32xf32>,
    %c85_525 = arith.constant 85 : index
    %c0_526 = arith.constant 0 : index
    %328 = tpu.strided_load %arg17[%c85_525, %c0_526] {strides = array<i32: 2, 1>} : memref<98x32xf32, #tpu.memory_space<vmem>>, vector<3x32xf32>
    %c29_527 = arith.constant 29 : index
    %c0_528 = arith.constant 0 : index
    %329 = vector.load %arg18[%c29_527, %c0_528] : memref<32x288xf32, #tpu.memory_space<vmem>>, vector<3x32xf32>
    tpu.vector_store %arg18[%c29_527, %c0_528], %328 {strides = array<i32>} : memref<32x288xf32, #tpu.memory_space<vmem>>, vector<3x32xf32>,
    %c56_529 = arith.constant 56 : index
    %c0_530 = arith.constant 0 : index
    %330 = tpu.strided_load %arg17[%c56_529, %c0_530] {strides = array<i32: 2, 1>} : memref<98x32xf32, #tpu.memory_space<vmem>>, vector<4x32xf32>
    %c20 = arith.constant 20 : index
    %c32_531 = arith.constant 32 : index
    %331 = vector.load %arg18[%c20, %c32_531] : memref<32x288xf32, #tpu.memory_space<vmem>>, vector<4x32xf32>
    tpu.vector_store %arg18[%c20, %c32_531], %330 {strides = array<i32>} : memref<32x288xf32, #tpu.memory_space<vmem>>, vector<4x32xf32>,
    %c70_532 = arith.constant 70 : index
    %c0_533 = arith.constant 0 : index
    %332 = tpu.strided_load %arg17[%c70_532, %c0_533] {strides = array<i32: 2, 1>} : memref<98x32xf32, #tpu.memory_space<vmem>>, vector<4x32xf32>
    %c24 = arith.constant 24 : index
    %c32_534 = arith.constant 32 : index
    %333 = vector.load %arg18[%c24, %c32_534] : memref<32x288xf32, #tpu.memory_space<vmem>>, vector<4x32xf32>
    tpu.vector_store %arg18[%c24, %c32_534], %332 {strides = array<i32>} : memref<32x288xf32, #tpu.memory_space<vmem>>, vector<4x32xf32>,
    %c84_535 = arith.constant 84 : index
    %c0_536 = arith.constant 0 : index
    %334 = tpu.strided_load %arg17[%c84_535, %c0_536] {strides = array<i32: 2, 1>} : memref<98x32xf32, #tpu.memory_space<vmem>>, vector<4x32xf32>
    %c28_537 = arith.constant 28 : index
    %c32_538 = arith.constant 32 : index
    %335 = vector.load %arg18[%c28_537, %c32_538] : memref<32x288xf32, #tpu.memory_space<vmem>>, vector<4x32xf32>
    tpu.vector_store %arg18[%c28_537, %c32_538], %334 {strides = array<i32>} : memref<32x288xf32, #tpu.memory_space<vmem>>, vector<4x32xf32>,
    %c57_539 = arith.constant 57 : index
    %c0_540 = arith.constant 0 : index
    %336 = tpu.strided_load %arg17[%c57_539, %c0_540] {strides = array<i32: 2, 1>} : memref<98x32xf32, #tpu.memory_space<vmem>>, vector<3x32xf32>
    %c20_541 = arith.constant 20 : index
    %c64_542 = arith.constant 64 : index
    %337 = vector.load %arg18[%c20_541, %c64_542] : memref<32x288xf32, #tpu.memory_space<vmem>>, vector<3x32xf32>
    tpu.vector_store %arg18[%c20_541, %c64_542], %336 {strides = array<i32>} : memref<32x288xf32, #tpu.memory_space<vmem>>, vector<3x32xf32>,
    %c71_543 = arith.constant 71 : index
    %c0_544 = arith.constant 0 : index
    %338 = tpu.strided_load %arg17[%c71_543, %c0_544] {strides = array<i32: 2, 1>} : memref<98x32xf32, #tpu.memory_space<vmem>>, vector<3x32xf32>
    %c24_545 = arith.constant 24 : index
    %c64_546 = arith.constant 64 : index
    %339 = vector.load %arg18[%c24_545, %c64_546] : memref<32x288xf32, #tpu.memory_space<vmem>>, vector<3x32xf32>
    tpu.vector_store %arg18[%c24_545, %c64_546], %338 {strides = array<i32>} : memref<32x288xf32, #tpu.memory_space<vmem>>, vector<3x32xf32>,
    %c85_547 = arith.constant 85 : index
    %c0_548 = arith.constant 0 : index
    %340 = tpu.strided_load %arg17[%c85_547, %c0_548] {strides = array<i32: 2, 1>} : memref<98x32xf32, #tpu.memory_space<vmem>>, vector<3x32xf32>
    %c28_549 = arith.constant 28 : index
    %c64_550 = arith.constant 64 : index
    %341 = vector.load %arg18[%c28_549, %c64_550] : memref<32x288xf32, #tpu.memory_space<vmem>>, vector<3x32xf32>
    tpu.vector_store %arg18[%c28_549, %c64_550], %340 {strides = array<i32>} : memref<32x288xf32, #tpu.memory_space<vmem>>, vector<3x32xf32>,
    %c50_551 = arith.constant 50 : index
    %c0_552 = arith.constant 0 : index
    %342 = tpu.strided_load %arg17[%c50_551, %c0_552] {strides = array<i32: 2, 1>} : memref<98x32xf32, #tpu.memory_space<vmem>>, vector<3x32xf32>
    %c17 = arith.constant 17 : index
    %c96_553 = arith.constant 96 : index
    %343 = vector.load %arg18[%c17, %c96_553] : memref<32x288xf32, #tpu.memory_space<vmem>>, vector<3x32xf32>
    tpu.vector_store %arg18[%c17, %c96_553], %342 {strides = array<i32>} : memref<32x288xf32, #tpu.memory_space<vmem>>, vector<3x32xf32>,
    %c64_554 = arith.constant 64 : index
    %c0_555 = arith.constant 0 : index
    %344 = tpu.strided_load %arg17[%c64_554, %c0_555] {strides = array<i32: 2, 1>} : memref<98x32xf32, #tpu.memory_space<vmem>>, vector<3x32xf32>
    %c21_556 = arith.constant 21 : index
    %c96_557 = arith.constant 96 : index
    %345 = vector.load %arg18[%c21_556, %c96_557] : memref<32x288xf32, #tpu.memory_space<vmem>>, vector<3x32xf32>
    tpu.vector_store %arg18[%c21_556, %c96_557], %344 {strides = array<i32>} : memref<32x288xf32, #tpu.memory_space<vmem>>, vector<3x32xf32>,
    %c78_558 = arith.constant 78 : index
    %c0_559 = arith.constant 0 : index
    %346 = tpu.strided_load %arg17[%c78_558, %c0_559] {strides = array<i32: 2, 1>} : memref<98x32xf32, #tpu.memory_space<vmem>>, vector<3x32xf32>
    %c25_560 = arith.constant 25 : index
    %c96_561 = arith.constant 96 : index
    %347 = vector.load %arg18[%c25_560, %c96_561] : memref<32x288xf32, #tpu.memory_space<vmem>>, vector<3x32xf32>
    tpu.vector_store %arg18[%c25_560, %c96_561], %346 {strides = array<i32>} : memref<32x288xf32, #tpu.memory_space<vmem>>, vector<3x32xf32>,
    %c92_562 = arith.constant 92 : index
    %c0_563 = arith.constant 0 : index
    %348 = tpu.strided_load %arg17[%c92_562, %c0_563] {strides = array<i32: 2, 1>} : memref<98x32xf32, #tpu.memory_space<vmem>>, vector<3x32xf32>
    %c29_564 = arith.constant 29 : index
    %c96_565 = arith.constant 96 : index
    %349 = vector.load %arg18[%c29_564, %c96_565] : memref<32x288xf32, #tpu.memory_space<vmem>>, vector<3x32xf32>
    tpu.vector_store %arg18[%c29_564, %c96_565], %348 {strides = array<i32>} : memref<32x288xf32, #tpu.memory_space<vmem>>, vector<3x32xf32>,
    %c49_566 = arith.constant 49 : index
    %c0_567 = arith.constant 0 : index
    %350 = tpu.strided_load %arg17[%c49_566, %c0_567] {strides = array<i32: 2, 1>} : memref<98x32xf32, #tpu.memory_space<vmem>>, vector<4x32xf32>
    %c16_568 = arith.constant 16 : index
    %c128_569 = arith.constant 128 : index
    %351 = vector.load %arg18[%c16_568, %c128_569] : memref<32x288xf32, #tpu.memory_space<vmem>>, vector<4x32xf32>
    tpu.vector_store %arg18[%c16_568, %c128_569], %350 {strides = array<i32>} : memref<32x288xf32, #tpu.memory_space<vmem>>, vector<4x32xf32>,
    %c63_570 = arith.constant 63 : index
    %c0_571 = arith.constant 0 : index
    %352 = tpu.strided_load %arg17[%c63_570, %c0_571] {strides = array<i32: 2, 1>} : memref<98x32xf32, #tpu.memory_space<vmem>>, vector<4x32xf32>
    %c20_572 = arith.constant 20 : index
    %c128_573 = arith.constant 128 : index
    %353 = vector.load %arg18[%c20_572, %c128_573] : memref<32x288xf32, #tpu.memory_space<vmem>>, vector<4x32xf32>
    tpu.vector_store %arg18[%c20_572, %c128_573], %352 {strides = array<i32>} : memref<32x288xf32, #tpu.memory_space<vmem>>, vector<4x32xf32>,
    %c77_574 = arith.constant 77 : index
    %c0_575 = arith.constant 0 : index
    %354 = tpu.strided_load %arg17[%c77_574, %c0_575] {strides = array<i32: 2, 1>} : memref<98x32xf32, #tpu.memory_space<vmem>>, vector<4x32xf32>
    %c24_576 = arith.constant 24 : index
    %c128_577 = arith.constant 128 : index
    %355 = vector.load %arg18[%c24_576, %c128_577] : memref<32x288xf32, #tpu.memory_space<vmem>>, vector<4x32xf32>
    tpu.vector_store %arg18[%c24_576, %c128_577], %354 {strides = array<i32>} : memref<32x288xf32, #tpu.memory_space<vmem>>, vector<4x32xf32>,
    %c91_578 = arith.constant 91 : index
    %c0_579 = arith.constant 0 : index
    %356 = tpu.strided_load %arg17[%c91_578, %c0_579] {strides = array<i32: 2, 1>} : memref<98x32xf32, #tpu.memory_space<vmem>>, vector<4x32xf32>
    %c28_580 = arith.constant 28 : index
    %c128_581 = arith.constant 128 : index
    %357 = vector.load %arg18[%c28_580, %c128_581] : memref<32x288xf32, #tpu.memory_space<vmem>>, vector<4x32xf32>
    tpu.vector_store %arg18[%c28_580, %c128_581], %356 {strides = array<i32>} : memref<32x288xf32, #tpu.memory_space<vmem>>, vector<4x32xf32>,
    %c50_582 = arith.constant 50 : index
    %c0_583 = arith.constant 0 : index
    %358 = tpu.strided_load %arg17[%c50_582, %c0_583] {strides = array<i32: 2, 1>} : memref<98x32xf32, #tpu.memory_space<vmem>>, vector<3x32xf32>
    %c16_584 = arith.constant 16 : index
    %c160_585 = arith.constant 160 : index
    %359 = vector.load %arg18[%c16_584, %c160_585] : memref<32x288xf32, #tpu.memory_space<vmem>>, vector<3x32xf32>
    tpu.vector_store %arg18[%c16_584, %c160_585], %358 {strides = array<i32>} : memref<32x288xf32, #tpu.memory_space<vmem>>, vector<3x32xf32>,
    %c64_586 = arith.constant 64 : index
    %c0_587 = arith.constant 0 : index
    %360 = tpu.strided_load %arg17[%c64_586, %c0_587] {strides = array<i32: 2, 1>} : memref<98x32xf32, #tpu.memory_space<vmem>>, vector<3x32xf32>
    %c20_588 = arith.constant 20 : index
    %c160_589 = arith.constant 160 : index
    %361 = vector.load %arg18[%c20_588, %c160_589] : memref<32x288xf32, #tpu.memory_space<vmem>>, vector<3x32xf32>
    tpu.vector_store %arg18[%c20_588, %c160_589], %360 {strides = array<i32>} : memref<32x288xf32, #tpu.memory_space<vmem>>, vector<3x32xf32>,
    %c78_590 = arith.constant 78 : index
    %c0_591 = arith.constant 0 : index
    %362 = tpu.strided_load %arg17[%c78_590, %c0_591] {strides = array<i32: 2, 1>} : memref<98x32xf32, #tpu.memory_space<vmem>>, vector<3x32xf32>
    %c24_592 = arith.constant 24 : index
    %c160_593 = arith.constant 160 : index
    %363 = vector.load %arg18[%c24_592, %c160_593] : memref<32x288xf32, #tpu.memory_space<vmem>>, vector<3x32xf32>
    tpu.vector_store %arg18[%c24_592, %c160_593], %362 {strides = array<i32>} : memref<32x288xf32, #tpu.memory_space<vmem>>, vector<3x32xf32>,
    %c92_594 = arith.constant 92 : index
    %c0_595 = arith.constant 0 : index
    %364 = tpu.strided_load %arg17[%c92_594, %c0_595] {strides = array<i32: 2, 1>} : memref<98x32xf32, #tpu.memory_space<vmem>>, vector<3x32xf32>
    %c28_596 = arith.constant 28 : index
    %c160_597 = arith.constant 160 : index
    %365 = vector.load %arg18[%c28_596, %c160_597] : memref<32x288xf32, #tpu.memory_space<vmem>>, vector<3x32xf32>
    tpu.vector_store %arg18[%c28_596, %c160_597], %364 {strides = array<i32>} : memref<32x288xf32, #tpu.memory_space<vmem>>, vector<3x32xf32>,
    %c57_598 = arith.constant 57 : index
    %c0_599 = arith.constant 0 : index
    %366 = tpu.strided_load %arg17[%c57_598, %c0_599] {strides = array<i32: 2, 1>} : memref<98x32xf32, #tpu.memory_space<vmem>>, vector<3x32xf32>
    %c17_600 = arith.constant 17 : index
    %c192_601 = arith.constant 192 : index
    %367 = vector.load %arg18[%c17_600, %c192_601] : memref<32x288xf32, #tpu.memory_space<vmem>>, vector<3x32xf32>
    tpu.vector_store %arg18[%c17_600, %c192_601], %366 {strides = array<i32>} : memref<32x288xf32, #tpu.memory_space<vmem>>, vector<3x32xf32>,
    %c71_602 = arith.constant 71 : index
    %c0_603 = arith.constant 0 : index
    %368 = tpu.strided_load %arg17[%c71_602, %c0_603] {strides = array<i32: 2, 1>} : memref<98x32xf32, #tpu.memory_space<vmem>>, vector<3x32xf32>
    %c21_604 = arith.constant 21 : index
    %c192_605 = arith.constant 192 : index
    %369 = vector.load %arg18[%c21_604, %c192_605] : memref<32x288xf32, #tpu.memory_space<vmem>>, vector<3x32xf32>
    tpu.vector_store %arg18[%c21_604, %c192_605], %368 {strides = array<i32>} : memref<32x288xf32, #tpu.memory_space<vmem>>, vector<3x32xf32>,
    %c85_606 = arith.constant 85 : index
    %c0_607 = arith.constant 0 : index
    %370 = tpu.strided_load %arg17[%c85_606, %c0_607] {strides = array<i32: 2, 1>} : memref<98x32xf32, #tpu.memory_space<vmem>>, vector<3x32xf32>
    %c25_608 = arith.constant 25 : index
    %c192_609 = arith.constant 192 : index
    %371 = vector.load %arg18[%c25_608, %c192_609] : memref<32x288xf32, #tpu.memory_space<vmem>>, vector<3x32xf32>
    tpu.vector_store %arg18[%c25_608, %c192_609], %370 {strides = array<i32>} : memref<32x288xf32, #tpu.memory_space<vmem>>, vector<3x32xf32>,
    %c56_610 = arith.constant 56 : index
    %c0_611 = arith.constant 0 : index
    %372 = tpu.strided_load %arg17[%c56_610, %c0_611] {strides = array<i32: 2, 1>} : memref<98x32xf32, #tpu.memory_space<vmem>>, vector<4x32xf32>
    %c16_612 = arith.constant 16 : index
    %c224_613 = arith.constant 224 : index
    %373 = vector.load %arg18[%c16_612, %c224_613] : memref<32x288xf32, #tpu.memory_space<vmem>>, vector<4x32xf32>
    tpu.vector_store %arg18[%c16_612, %c224_613], %372 {strides = array<i32>} : memref<32x288xf32, #tpu.memory_space<vmem>>, vector<4x32xf32>,
    %c70_614 = arith.constant 70 : index
    %c0_615 = arith.constant 0 : index
    %374 = tpu.strided_load %arg17[%c70_614, %c0_615] {strides = array<i32: 2, 1>} : memref<98x32xf32, #tpu.memory_space<vmem>>, vector<4x32xf32>
    %c20_616 = arith.constant 20 : index
    %c224_617 = arith.constant 224 : index
    %375 = vector.load %arg18[%c20_616, %c224_617] : memref<32x288xf32, #tpu.memory_space<vmem>>, vector<4x32xf32>
    tpu.vector_store %arg18[%c20_616, %c224_617], %374 {strides = array<i32>} : memref<32x288xf32, #tpu.memory_space<vmem>>, vector<4x32xf32>,
    %c84_618 = arith.constant 84 : index
    %c0_619 = arith.constant 0 : index
    %376 = tpu.strided_load %arg17[%c84_618, %c0_619] {strides = array<i32: 2, 1>} : memref<98x32xf32, #tpu.memory_space<vmem>>, vector<4x32xf32>
    %c24_620 = arith.constant 24 : index
    %c224_621 = arith.constant 224 : index
    %377 = vector.load %arg18[%c24_620, %c224_621] : memref<32x288xf32, #tpu.memory_space<vmem>>, vector<4x32xf32>
    tpu.vector_store %arg18[%c24_620, %c224_621], %376 {strides = array<i32>} : memref<32x288xf32, #tpu.memory_space<vmem>>, vector<4x32xf32>,
    %c57_622 = arith.constant 57 : index
    %c0_623 = arith.constant 0 : index
    %378 = tpu.strided_load %arg17[%c57_622, %c0_623] {strides = array<i32: 2, 1>} : memref<98x32xf32, #tpu.memory_space<vmem>>, vector<3x32xf32>
    %c16_624 = arith.constant 16 : index
    %c256_625 = arith.constant 256 : index
    %379 = vector.load %arg18[%c16_624, %c256_625] : memref<32x288xf32, #tpu.memory_space<vmem>>, vector<3x32xf32>
    tpu.vector_store %arg18[%c16_624, %c256_625], %378 {strides = array<i32>} : memref<32x288xf32, #tpu.memory_space<vmem>>, vector<3x32xf32>,
    %c71_626 = arith.constant 71 : index
    %c0_627 = arith.constant 0 : index
    %380 = tpu.strided_load %arg17[%c71_626, %c0_627] {strides = array<i32: 2, 1>} : memref<98x32xf32, #tpu.memory_space<vmem>>, vector<3x32xf32>
    %c20_628 = arith.constant 20 : index
    %c256_629 = arith.constant 256 : index
    %381 = vector.load %arg18[%c20_628, %c256_629] : memref<32x288xf32, #tpu.memory_space<vmem>>, vector<3x32xf32>
    tpu.vector_store %arg18[%c20_628, %c256_629], %380 {strides = array<i32>} : memref<32x288xf32, #tpu.memory_space<vmem>>, vector<3x32xf32>,
    %c85_630 = arith.constant 85 : index
    %c0_631 = arith.constant 0 : index
    %382 = tpu.strided_load %arg17[%c85_630, %c0_631] {strides = array<i32: 2, 1>} : memref<98x32xf32, #tpu.memory_space<vmem>>, vector<3x32xf32>
    %c24_632 = arith.constant 24 : index
    %c256_633 = arith.constant 256 : index
    %383 = vector.load %arg18[%c24_632, %c256_633] : memref<32x288xf32, #tpu.memory_space<vmem>>, vector<3x32xf32>
    tpu.vector_store %arg18[%c24_632, %c256_633], %382 {strides = array<i32>} : memref<32x288xf32, #tpu.memory_space<vmem>>, vector<3x32xf32>,
    %c0_634 = arith.constant 0 : index
    %c0_635 = arith.constant 0 : index
    %384 = vector.load %arg18[%c0_634, %c0_635] : memref<32x288xf32, #tpu.memory_space<vmem>>, vector<32x288xf32>
    %385 = arith.truncf %384 : vector<32x288xf32> to vector<32x288xbf16>
    %c0_636 = arith.constant 0 : index
    %c0_637 = arith.constant 0 : index
    %386 = vector.load %arg6[%c0_636, %c0_637] : memref<288x64xbf16, #tpu.memory_space<vmem>>, vector<288x64xbf16>
    %cst_638 = arith.constant dense<0.000000e+00> : vector<32x64xf32>
    %387 = tpu.matmul %385, %386, %cst_638 {dimension_numbers = #tpu.dot_dimension_numbers<[1], [0], [0], [1], [0, 0, 1, 1], [], []>} : vector<32x288xbf16>, vector<288x64xbf16>, vector<32x64xf32> -> vector<32x64xf32>
    %c0_639 = arith.constant 0 : index
    %c0_640 = arith.constant 0 : index
    %388 = vector.load %arg7[%c0_639, %c0_640] : memref<1x64xf32, #tpu.memory_space<vmem>>, vector<1x64xf32>
    %389 = vector.broadcast %388 : vector<1x64xf32> to vector<32x64xf32>
    %390 = arith.addf %387, %389 : vector<32x64xf32>
    %cst_641 = arith.constant 0.000000e+00 : f32
    %391 = vector.broadcast %cst_641 : f32 to vector<32x64xf32>
    %392 = arith.subf %391, %390 : vector<32x64xf32>
    %393 = math.exp %392 : vector<32x64xf32>
    %cst_642 = arith.constant 1.000000e+00 : f32
    %394 = vector.broadcast %cst_642 : f32 to vector<32x64xf32>
    %395 = arith.addf %394, %393 : vector<32x64xf32>
    %396 = tpu.reciprocal %395 {approx = true} : vector<32x64xf32> -> vector<32x64xf32>
    %397 = arith.mulf %390, %396 : vector<32x64xf32>
    %c0_643 = arith.constant 0 : index
    %c0_644 = arith.constant 0 : index
    %398 = vector.load %arg19[%c0_643, %c0_644] : memref<32x64xf32, #tpu.memory_space<vmem>>, vector<32x64xf32>
    tpu.vector_store %arg19[%c0_643, %c0_644], %397 {strides = array<i32>} : memref<32x64xf32, #tpu.memory_space<vmem>>, vector<32x64xf32>,
    %c5_645 = arith.constant 5 : index
    %c0_646 = arith.constant 0 : index
    %399 = tpu.strided_load %arg19[%c5_645, %c0_646] {strides = array<i32: 2, 1>} : memref<32x64xf32, #tpu.memory_space<vmem>>, vector<1x64xf32>
    %c3 = arith.constant 3 : index
    %c0_647 = arith.constant 0 : index
    %400 = vector.load %arg20[%c3, %c0_647] : memref<8x576xf32, #tpu.memory_space<vmem>>, vector<1x64xf32>
    tpu.vector_store %arg20[%c3, %c0_647], %399 {strides = array<i32>} : memref<8x576xf32, #tpu.memory_space<vmem>>, vector<1x64xf32>,
    %c4_648 = arith.constant 4 : index
    %c0_649 = arith.constant 0 : index
    %401 = tpu.strided_load %arg19[%c4_648, %c0_649] {strides = array<i32: 2, 1>} : memref<32x64xf32, #tpu.memory_space<vmem>>, vector<2x64xf32>
    %c2 = arith.constant 2 : index
    %c64_650 = arith.constant 64 : index
    %402 = vector.load %arg20[%c2, %c64_650] : memref<8x576xf32, #tpu.memory_space<vmem>>, vector<2x64xf32>
    tpu.vector_store %arg20[%c2, %c64_650], %401 {strides = array<i32>} : memref<8x576xf32, #tpu.memory_space<vmem>>, vector<2x64xf32>,
    %c5_651 = arith.constant 5 : index
    %c0_652 = arith.constant 0 : index
    %403 = tpu.strided_load %arg19[%c5_651, %c0_652] {strides = array<i32: 2, 1>} : memref<32x64xf32, #tpu.memory_space<vmem>>, vector<2x64xf32>
    %c2_653 = arith.constant 2 : index
    %c128_654 = arith.constant 128 : index
    %404 = vector.load %arg20[%c2_653, %c128_654] : memref<8x576xf32, #tpu.memory_space<vmem>>, vector<2x64xf32>
    tpu.vector_store %arg20[%c2_653, %c128_654], %403 {strides = array<i32>} : memref<8x576xf32, #tpu.memory_space<vmem>>, vector<2x64xf32>,
    %c1_655 = arith.constant 1 : index
    %c0_656 = arith.constant 0 : index
    %405 = tpu.strided_load %arg19[%c1_655, %c0_656] {strides = array<i32: 2, 1>} : memref<32x64xf32, #tpu.memory_space<vmem>>, vector<1x64xf32>
    %c1_657 = arith.constant 1 : index
    %c192_658 = arith.constant 192 : index
    %406 = vector.load %arg20[%c1_657, %c192_658] : memref<8x576xf32, #tpu.memory_space<vmem>>, vector<1x64xf32>
    tpu.vector_store %arg20[%c1_657, %c192_658], %405 {strides = array<i32>} : memref<8x576xf32, #tpu.memory_space<vmem>>, vector<1x64xf32>,
    %c9_659 = arith.constant 9 : index
    %c0_660 = arith.constant 0 : index
    %407 = tpu.strided_load %arg19[%c9_659, %c0_660] {strides = array<i32: 2, 1>} : memref<32x64xf32, #tpu.memory_space<vmem>>, vector<1x64xf32>
    %c3_661 = arith.constant 3 : index
    %c192_662 = arith.constant 192 : index
    %408 = vector.load %arg20[%c3_661, %c192_662] : memref<8x576xf32, #tpu.memory_space<vmem>>, vector<1x64xf32>
    tpu.vector_store %arg20[%c3_661, %c192_662], %407 {strides = array<i32>} : memref<8x576xf32, #tpu.memory_space<vmem>>, vector<1x64xf32>,
    %c0_663 = arith.constant 0 : index
    %c0_664 = arith.constant 0 : index
    %409 = tpu.strided_load %arg19[%c0_663, %c0_664] {strides = array<i32: 2, 1>} : memref<32x64xf32, #tpu.memory_space<vmem>>, vector<2x64xf32>
    %c0_665 = arith.constant 0 : index
    %c256_666 = arith.constant 256 : index
    %410 = vector.load %arg20[%c0_665, %c256_666] : memref<8x576xf32, #tpu.memory_space<vmem>>, vector<2x64xf32>
    tpu.vector_store %arg20[%c0_665, %c256_666], %409 {strides = array<i32>} : memref<8x576xf32, #tpu.memory_space<vmem>>, vector<2x64xf32>,
    %c8_667 = arith.constant 8 : index
    %c0_668 = arith.constant 0 : index
    %411 = tpu.strided_load %arg19[%c8_667, %c0_668] {strides = array<i32: 2, 1>} : memref<32x64xf32, #tpu.memory_space<vmem>>, vector<2x64xf32>
    %c2_669 = arith.constant 2 : index
    %c256_670 = arith.constant 256 : index
    %412 = vector.load %arg20[%c2_669, %c256_670] : memref<8x576xf32, #tpu.memory_space<vmem>>, vector<2x64xf32>
    tpu.vector_store %arg20[%c2_669, %c256_670], %411 {strides = array<i32>} : memref<8x576xf32, #tpu.memory_space<vmem>>, vector<2x64xf32>,
    %c1_671 = arith.constant 1 : index
    %c0_672 = arith.constant 0 : index
    %413 = tpu.strided_load %arg19[%c1_671, %c0_672] {strides = array<i32: 2, 1>} : memref<32x64xf32, #tpu.memory_space<vmem>>, vector<2x64xf32>
    %c0_673 = arith.constant 0 : index
    %c320 = arith.constant 320 : index
    %414 = vector.load %arg20[%c0_673, %c320] : memref<8x576xf32, #tpu.memory_space<vmem>>, vector<2x64xf32>
    tpu.vector_store %arg20[%c0_673, %c320], %413 {strides = array<i32>} : memref<8x576xf32, #tpu.memory_space<vmem>>, vector<2x64xf32>,
    %c9_674 = arith.constant 9 : index
    %c0_675 = arith.constant 0 : index
    %415 = tpu.strided_load %arg19[%c9_674, %c0_675] {strides = array<i32: 2, 1>} : memref<32x64xf32, #tpu.memory_space<vmem>>, vector<2x64xf32>
    %c2_676 = arith.constant 2 : index
    %c320_677 = arith.constant 320 : index
    %416 = vector.load %arg20[%c2_676, %c320_677] : memref<8x576xf32, #tpu.memory_space<vmem>>, vector<2x64xf32>
    tpu.vector_store %arg20[%c2_676, %c320_677], %415 {strides = array<i32>} : memref<8x576xf32, #tpu.memory_space<vmem>>, vector<2x64xf32>,
    %c5_678 = arith.constant 5 : index
    %c0_679 = arith.constant 0 : index
    %417 = tpu.strided_load %arg19[%c5_678, %c0_679] {strides = array<i32: 2, 1>} : memref<32x64xf32, #tpu.memory_space<vmem>>, vector<1x64xf32>
    %c1_680 = arith.constant 1 : index
    %c384 = arith.constant 384 : index
    %418 = vector.load %arg20[%c1_680, %c384] : memref<8x576xf32, #tpu.memory_space<vmem>>, vector<1x64xf32>
    tpu.vector_store %arg20[%c1_680, %c384], %417 {strides = array<i32>} : memref<8x576xf32, #tpu.memory_space<vmem>>, vector<1x64xf32>,
    %c13_681 = arith.constant 13 : index
    %c0_682 = arith.constant 0 : index
    %419 = tpu.strided_load %arg19[%c13_681, %c0_682] {strides = array<i32: 2, 1>} : memref<32x64xf32, #tpu.memory_space<vmem>>, vector<1x64xf32>
    %c3_683 = arith.constant 3 : index
    %c384_684 = arith.constant 384 : index
    %420 = vector.load %arg20[%c3_683, %c384_684] : memref<8x576xf32, #tpu.memory_space<vmem>>, vector<1x64xf32>
    tpu.vector_store %arg20[%c3_683, %c384_684], %419 {strides = array<i32>} : memref<8x576xf32, #tpu.memory_space<vmem>>, vector<1x64xf32>,
    %c4_685 = arith.constant 4 : index
    %c0_686 = arith.constant 0 : index
    %421 = tpu.strided_load %arg19[%c4_685, %c0_686] {strides = array<i32: 2, 1>} : memref<32x64xf32, #tpu.memory_space<vmem>>, vector<2x64xf32>
    %c0_687 = arith.constant 0 : index
    %c448 = arith.constant 448 : index
    %422 = vector.load %arg20[%c0_687, %c448] : memref<8x576xf32, #tpu.memory_space<vmem>>, vector<2x64xf32>
    tpu.vector_store %arg20[%c0_687, %c448], %421 {strides = array<i32>} : memref<8x576xf32, #tpu.memory_space<vmem>>, vector<2x64xf32>,
    %c12_688 = arith.constant 12 : index
    %c0_689 = arith.constant 0 : index
    %423 = tpu.strided_load %arg19[%c12_688, %c0_689] {strides = array<i32: 2, 1>} : memref<32x64xf32, #tpu.memory_space<vmem>>, vector<2x64xf32>
    %c2_690 = arith.constant 2 : index
    %c448_691 = arith.constant 448 : index
    %424 = vector.load %arg20[%c2_690, %c448_691] : memref<8x576xf32, #tpu.memory_space<vmem>>, vector<2x64xf32>
    tpu.vector_store %arg20[%c2_690, %c448_691], %423 {strides = array<i32>} : memref<8x576xf32, #tpu.memory_space<vmem>>, vector<2x64xf32>,
    %c5_692 = arith.constant 5 : index
    %c0_693 = arith.constant 0 : index
    %425 = tpu.strided_load %arg19[%c5_692, %c0_693] {strides = array<i32: 2, 1>} : memref<32x64xf32, #tpu.memory_space<vmem>>, vector<2x64xf32>
    %c0_694 = arith.constant 0 : index
    %c512 = arith.constant 512 : index
    %426 = vector.load %arg20[%c0_694, %c512] : memref<8x576xf32, #tpu.memory_space<vmem>>, vector<2x64xf32>
    tpu.vector_store %arg20[%c0_694, %c512], %425 {strides = array<i32>} : memref<8x576xf32, #tpu.memory_space<vmem>>, vector<2x64xf32>,
    %c13_695 = arith.constant 13 : index
    %c0_696 = arith.constant 0 : index
    %427 = tpu.strided_load %arg19[%c13_695, %c0_696] {strides = array<i32: 2, 1>} : memref<32x64xf32, #tpu.memory_space<vmem>>, vector<2x64xf32>
    %c2_697 = arith.constant 2 : index
    %c512_698 = arith.constant 512 : index
    %428 = vector.load %arg20[%c2_697, %c512_698] : memref<8x576xf32, #tpu.memory_space<vmem>>, vector<2x64xf32>
    tpu.vector_store %arg20[%c2_697, %c512_698], %427 {strides = array<i32>} : memref<8x576xf32, #tpu.memory_space<vmem>>, vector<2x64xf32>,
    %c21_699 = arith.constant 21 : index
    %c0_700 = arith.constant 0 : index
    %429 = tpu.strided_load %arg19[%c21_699, %c0_700] {strides = array<i32: 2, 1>} : memref<32x64xf32, #tpu.memory_space<vmem>>, vector<1x64xf32>
    %c7_701 = arith.constant 7 : index
    %c0_702 = arith.constant 0 : index
    %430 = vector.load %arg20[%c7_701, %c0_702] : memref<8x576xf32, #tpu.memory_space<vmem>>, vector<1x64xf32>
    tpu.vector_store %arg20[%c7_701, %c0_702], %429 {strides = array<i32>} : memref<8x576xf32, #tpu.memory_space<vmem>>, vector<1x64xf32>,
    %c20_703 = arith.constant 20 : index
    %c0_704 = arith.constant 0 : index
    %431 = tpu.strided_load %arg19[%c20_703, %c0_704] {strides = array<i32: 2, 1>} : memref<32x64xf32, #tpu.memory_space<vmem>>, vector<2x64xf32>
    %c6 = arith.constant 6 : index
    %c64_705 = arith.constant 64 : index
    %432 = vector.load %arg20[%c6, %c64_705] : memref<8x576xf32, #tpu.memory_space<vmem>>, vector<2x64xf32>
    tpu.vector_store %arg20[%c6, %c64_705], %431 {strides = array<i32>} : memref<8x576xf32, #tpu.memory_space<vmem>>, vector<2x64xf32>,
    %c21_706 = arith.constant 21 : index
    %c0_707 = arith.constant 0 : index
    %433 = tpu.strided_load %arg19[%c21_706, %c0_707] {strides = array<i32: 2, 1>} : memref<32x64xf32, #tpu.memory_space<vmem>>, vector<2x64xf32>
    %c6_708 = arith.constant 6 : index
    %c128_709 = arith.constant 128 : index
    %434 = vector.load %arg20[%c6_708, %c128_709] : memref<8x576xf32, #tpu.memory_space<vmem>>, vector<2x64xf32>
    tpu.vector_store %arg20[%c6_708, %c128_709], %433 {strides = array<i32>} : memref<8x576xf32, #tpu.memory_space<vmem>>, vector<2x64xf32>,
    %c17_710 = arith.constant 17 : index
    %c0_711 = arith.constant 0 : index
    %435 = tpu.strided_load %arg19[%c17_710, %c0_711] {strides = array<i32: 2, 1>} : memref<32x64xf32, #tpu.memory_space<vmem>>, vector<1x64xf32>
    %c5_712 = arith.constant 5 : index
    %c192_713 = arith.constant 192 : index
    %436 = vector.load %arg20[%c5_712, %c192_713] : memref<8x576xf32, #tpu.memory_space<vmem>>, vector<1x64xf32>
    tpu.vector_store %arg20[%c5_712, %c192_713], %435 {strides = array<i32>} : memref<8x576xf32, #tpu.memory_space<vmem>>, vector<1x64xf32>,
    %c25_714 = arith.constant 25 : index
    %c0_715 = arith.constant 0 : index
    %437 = tpu.strided_load %arg19[%c25_714, %c0_715] {strides = array<i32: 2, 1>} : memref<32x64xf32, #tpu.memory_space<vmem>>, vector<1x64xf32>
    %c7_716 = arith.constant 7 : index
    %c192_717 = arith.constant 192 : index
    %438 = vector.load %arg20[%c7_716, %c192_717] : memref<8x576xf32, #tpu.memory_space<vmem>>, vector<1x64xf32>
    tpu.vector_store %arg20[%c7_716, %c192_717], %437 {strides = array<i32>} : memref<8x576xf32, #tpu.memory_space<vmem>>, vector<1x64xf32>,
    %c16_718 = arith.constant 16 : index
    %c0_719 = arith.constant 0 : index
    %439 = tpu.strided_load %arg19[%c16_718, %c0_719] {strides = array<i32: 2, 1>} : memref<32x64xf32, #tpu.memory_space<vmem>>, vector<2x64xf32>
    %c4_720 = arith.constant 4 : index
    %c256_721 = arith.constant 256 : index
    %440 = vector.load %arg20[%c4_720, %c256_721] : memref<8x576xf32, #tpu.memory_space<vmem>>, vector<2x64xf32>
    tpu.vector_store %arg20[%c4_720, %c256_721], %439 {strides = array<i32>} : memref<8x576xf32, #tpu.memory_space<vmem>>, vector<2x64xf32>,
    %c24_722 = arith.constant 24 : index
    %c0_723 = arith.constant 0 : index
    %441 = tpu.strided_load %arg19[%c24_722, %c0_723] {strides = array<i32: 2, 1>} : memref<32x64xf32, #tpu.memory_space<vmem>>, vector<2x64xf32>
    %c6_724 = arith.constant 6 : index
    %c256_725 = arith.constant 256 : index
    %442 = vector.load %arg20[%c6_724, %c256_725] : memref<8x576xf32, #tpu.memory_space<vmem>>, vector<2x64xf32>
    tpu.vector_store %arg20[%c6_724, %c256_725], %441 {strides = array<i32>} : memref<8x576xf32, #tpu.memory_space<vmem>>, vector<2x64xf32>,
    %c17_726 = arith.constant 17 : index
    %c0_727 = arith.constant 0 : index
    %443 = tpu.strided_load %arg19[%c17_726, %c0_727] {strides = array<i32: 2, 1>} : memref<32x64xf32, #tpu.memory_space<vmem>>, vector<2x64xf32>
    %c4_728 = arith.constant 4 : index
    %c320_729 = arith.constant 320 : index
    %444 = vector.load %arg20[%c4_728, %c320_729] : memref<8x576xf32, #tpu.memory_space<vmem>>, vector<2x64xf32>
    tpu.vector_store %arg20[%c4_728, %c320_729], %443 {strides = array<i32>} : memref<8x576xf32, #tpu.memory_space<vmem>>, vector<2x64xf32>,
    %c25_730 = arith.constant 25 : index
    %c0_731 = arith.constant 0 : index
    %445 = tpu.strided_load %arg19[%c25_730, %c0_731] {strides = array<i32: 2, 1>} : memref<32x64xf32, #tpu.memory_space<vmem>>, vector<2x64xf32>
    %c6_732 = arith.constant 6 : index
    %c320_733 = arith.constant 320 : index
    %446 = vector.load %arg20[%c6_732, %c320_733] : memref<8x576xf32, #tpu.memory_space<vmem>>, vector<2x64xf32>
    tpu.vector_store %arg20[%c6_732, %c320_733], %445 {strides = array<i32>} : memref<8x576xf32, #tpu.memory_space<vmem>>, vector<2x64xf32>,
    %c21_734 = arith.constant 21 : index
    %c0_735 = arith.constant 0 : index
    %447 = tpu.strided_load %arg19[%c21_734, %c0_735] {strides = array<i32: 2, 1>} : memref<32x64xf32, #tpu.memory_space<vmem>>, vector<1x64xf32>
    %c5_736 = arith.constant 5 : index
    %c384_737 = arith.constant 384 : index
    %448 = vector.load %arg20[%c5_736, %c384_737] : memref<8x576xf32, #tpu.memory_space<vmem>>, vector<1x64xf32>
    tpu.vector_store %arg20[%c5_736, %c384_737], %447 {strides = array<i32>} : memref<8x576xf32, #tpu.memory_space<vmem>>, vector<1x64xf32>,
    %c29_738 = arith.constant 29 : index
    %c0_739 = arith.constant 0 : index
    %449 = tpu.strided_load %arg19[%c29_738, %c0_739] {strides = array<i32: 2, 1>} : memref<32x64xf32, #tpu.memory_space<vmem>>, vector<1x64xf32>
    %c7_740 = arith.constant 7 : index
    %c384_741 = arith.constant 384 : index
    %450 = vector.load %arg20[%c7_740, %c384_741] : memref<8x576xf32, #tpu.memory_space<vmem>>, vector<1x64xf32>
    tpu.vector_store %arg20[%c7_740, %c384_741], %449 {strides = array<i32>} : memref<8x576xf32, #tpu.memory_space<vmem>>, vector<1x64xf32>,
    %c20_742 = arith.constant 20 : index
    %c0_743 = arith.constant 0 : index
    %451 = tpu.strided_load %arg19[%c20_742, %c0_743] {strides = array<i32: 2, 1>} : memref<32x64xf32, #tpu.memory_space<vmem>>, vector<2x64xf32>
    %c4_744 = arith.constant 4 : index
    %c448_745 = arith.constant 448 : index
    %452 = vector.load %arg20[%c4_744, %c448_745] : memref<8x576xf32, #tpu.memory_space<vmem>>, vector<2x64xf32>
    tpu.vector_store %arg20[%c4_744, %c448_745], %451 {strides = array<i32>} : memref<8x576xf32, #tpu.memory_space<vmem>>, vector<2x64xf32>,
    %c28_746 = arith.constant 28 : index
    %c0_747 = arith.constant 0 : index
    %453 = tpu.strided_load %arg19[%c28_746, %c0_747] {strides = array<i32: 2, 1>} : memref<32x64xf32, #tpu.memory_space<vmem>>, vector<2x64xf32>
    %c6_748 = arith.constant 6 : index
    %c448_749 = arith.constant 448 : index
    %454 = vector.load %arg20[%c6_748, %c448_749] : memref<8x576xf32, #tpu.memory_space<vmem>>, vector<2x64xf32>
    tpu.vector_store %arg20[%c6_748, %c448_749], %453 {strides = array<i32>} : memref<8x576xf32, #tpu.memory_space<vmem>>, vector<2x64xf32>,
    %c21_750 = arith.constant 21 : index
    %c0_751 = arith.constant 0 : index
    %455 = tpu.strided_load %arg19[%c21_750, %c0_751] {strides = array<i32: 2, 1>} : memref<32x64xf32, #tpu.memory_space<vmem>>, vector<2x64xf32>
    %c4_752 = arith.constant 4 : index
    %c512_753 = arith.constant 512 : index
    %456 = vector.load %arg20[%c4_752, %c512_753] : memref<8x576xf32, #tpu.memory_space<vmem>>, vector<2x64xf32>
    tpu.vector_store %arg20[%c4_752, %c512_753], %455 {strides = array<i32>} : memref<8x576xf32, #tpu.memory_space<vmem>>, vector<2x64xf32>,
    %c29_754 = arith.constant 29 : index
    %c0_755 = arith.constant 0 : index
    %457 = tpu.strided_load %arg19[%c29_754, %c0_755] {strides = array<i32: 2, 1>} : memref<32x64xf32, #tpu.memory_space<vmem>>, vector<2x64xf32>
    %c6_756 = arith.constant 6 : index
    %c512_757 = arith.constant 512 : index
    %458 = vector.load %arg20[%c6_756, %c512_757] : memref<8x576xf32, #tpu.memory_space<vmem>>, vector<2x64xf32>
    tpu.vector_store %arg20[%c6_756, %c512_757], %457 {strides = array<i32>} : memref<8x576xf32, #tpu.memory_space<vmem>>, vector<2x64xf32>,
    %c0_758 = arith.constant 0 : index
    %c0_759 = arith.constant 0 : index
    %459 = vector.load %arg20[%c0_758, %c0_759] : memref<8x576xf32, #tpu.memory_space<vmem>>, vector<8x576xf32>
    %460 = arith.truncf %459 : vector<8x576xf32> to vector<8x576xbf16>
    %c0_760 = arith.constant 0 : index
    %c0_761 = arith.constant 0 : index
    %461 = vector.load %arg8[%c0_760, %c0_761] : memref<576x64xbf16, #tpu.memory_space<vmem>>, vector<576x64xbf16>
    %cst_762 = arith.constant dense<0.000000e+00> : vector<8x64xf32>
    %462 = tpu.matmul %460, %461, %cst_762 {dimension_numbers = #tpu.dot_dimension_numbers<[1], [0], [0], [1], [0, 0, 1, 1], [], []>} : vector<8x576xbf16>, vector<576x64xbf16>, vector<8x64xf32> -> vector<8x64xf32>
    %c0_763 = arith.constant 0 : index
    %c0_764 = arith.constant 0 : index
    %463 = vector.load %arg9[%c0_763, %c0_764] : memref<1x64xf32, #tpu.memory_space<vmem>>, vector<1x64xf32>
    %464 = vector.broadcast %463 : vector<1x64xf32> to vector<8x64xf32>
    %465 = arith.addf %462, %464 : vector<8x64xf32>
    %cst_765 = arith.constant 0.000000e+00 : f32
    %466 = vector.broadcast %cst_765 : f32 to vector<8x64xf32>
    %467 = arith.subf %466, %465 : vector<8x64xf32>
    %468 = math.exp %467 : vector<8x64xf32>
    %cst_766 = arith.constant 1.000000e+00 : f32
    %469 = vector.broadcast %cst_766 : f32 to vector<8x64xf32>
    %470 = arith.addf %469, %468 : vector<8x64xf32>
    %471 = tpu.reciprocal %470 {approx = true} : vector<8x64xf32> -> vector<8x64xf32>
    %472 = arith.mulf %465, %471 : vector<8x64xf32>
    %473 = vector.extract_strided_slice %472 {offsets = [0, 0], sizes = [1, 64], strides = [1, 1]} : vector<8x64xf32> to vector<1x64xf32>
    %c0_767 = arith.constant 0 : index
    %c0_768 = arith.constant 0 : index
    %474 = vector.load %arg21[%c0_767, %c0_768] : memref<2x256xf32, #tpu.memory_space<vmem>>, vector<1x64xf32>
    tpu.vector_store %arg21[%c0_767, %c0_768], %473 {strides = array<i32>} : memref<2x256xf32, #tpu.memory_space<vmem>>, vector<1x64xf32>,
    %475 = vector.extract_strided_slice %472 {offsets = [1, 0], sizes = [1, 64], strides = [1, 1]} : vector<8x64xf32> to vector<1x64xf32>
    %c0_769 = arith.constant 0 : index
    %c64_770 = arith.constant 64 : index
    %476 = vector.load %arg21[%c0_769, %c64_770] : memref<2x256xf32, #tpu.memory_space<vmem>>, vector<1x64xf32>
    tpu.vector_store %arg21[%c0_769, %c64_770], %475 {strides = array<i32>} : memref<2x256xf32, #tpu.memory_space<vmem>>, vector<1x64xf32>,
    %477 = vector.extract_strided_slice %472 {offsets = [2, 0], sizes = [1, 64], strides = [1, 1]} : vector<8x64xf32> to vector<1x64xf32>
    %c0_771 = arith.constant 0 : index
    %c128_772 = arith.constant 128 : index
    %478 = vector.load %arg21[%c0_771, %c128_772] : memref<2x256xf32, #tpu.memory_space<vmem>>, vector<1x64xf32>
    tpu.vector_store %arg21[%c0_771, %c128_772], %477 {strides = array<i32>} : memref<2x256xf32, #tpu.memory_space<vmem>>, vector<1x64xf32>,
    %479 = vector.extract_strided_slice %472 {offsets = [3, 0], sizes = [1, 64], strides = [1, 1]} : vector<8x64xf32> to vector<1x64xf32>
    %c0_773 = arith.constant 0 : index
    %c192_774 = arith.constant 192 : index
    %480 = vector.load %arg21[%c0_773, %c192_774] : memref<2x256xf32, #tpu.memory_space<vmem>>, vector<1x64xf32>
    tpu.vector_store %arg21[%c0_773, %c192_774], %479 {strides = array<i32>} : memref<2x256xf32, #tpu.memory_space<vmem>>, vector<1x64xf32>,
    %481 = vector.extract_strided_slice %472 {offsets = [4, 0], sizes = [1, 64], strides = [1, 1]} : vector<8x64xf32> to vector<1x64xf32>
    %c1_775 = arith.constant 1 : index
    %c0_776 = arith.constant 0 : index
    %482 = vector.load %arg21[%c1_775, %c0_776] : memref<2x256xf32, #tpu.memory_space<vmem>>, vector<1x64xf32>
    tpu.vector_store %arg21[%c1_775, %c0_776], %481 {strides = array<i32>} : memref<2x256xf32, #tpu.memory_space<vmem>>, vector<1x64xf32>,
    %483 = vector.extract_strided_slice %472 {offsets = [5, 0], sizes = [1, 64], strides = [1, 1]} : vector<8x64xf32> to vector<1x64xf32>
    %c1_777 = arith.constant 1 : index
    %c64_778 = arith.constant 64 : index
    %484 = vector.load %arg21[%c1_777, %c64_778] : memref<2x256xf32, #tpu.memory_space<vmem>>, vector<1x64xf32>
    tpu.vector_store %arg21[%c1_777, %c64_778], %483 {strides = array<i32>} : memref<2x256xf32, #tpu.memory_space<vmem>>, vector<1x64xf32>,
    %485 = vector.extract_strided_slice %472 {offsets = [6, 0], sizes = [1, 64], strides = [1, 1]} : vector<8x64xf32> to vector<1x64xf32>
    %c1_779 = arith.constant 1 : index
    %c128_780 = arith.constant 128 : index
    %486 = vector.load %arg21[%c1_779, %c128_780] : memref<2x256xf32, #tpu.memory_space<vmem>>, vector<1x64xf32>
    tpu.vector_store %arg21[%c1_779, %c128_780], %485 {strides = array<i32>} : memref<2x256xf32, #tpu.memory_space<vmem>>, vector<1x64xf32>,
    %487 = vector.extract_strided_slice %472 {offsets = [7, 0], sizes = [1, 64], strides = [1, 1]} : vector<8x64xf32> to vector<1x64xf32>
    %c1_781 = arith.constant 1 : index
    %c192_782 = arith.constant 192 : index
    %488 = vector.load %arg21[%c1_781, %c192_782] : memref<2x256xf32, #tpu.memory_space<vmem>>, vector<1x64xf32>
    tpu.vector_store %arg21[%c1_781, %c192_782], %487 {strides = array<i32>} : memref<2x256xf32, #tpu.memory_space<vmem>>, vector<1x64xf32>,
    %c0_783 = arith.constant 0 : index
    %c0_784 = arith.constant 0 : index
    %489 = vector.load %arg21[%c0_783, %c0_784] : memref<2x256xf32, #tpu.memory_space<vmem>>, vector<2x256xf32>
    %490 = arith.truncf %489 : vector<2x256xf32> to vector<2x256xbf16>
    %c0_785 = arith.constant 0 : index
    %c0_786 = arith.constant 0 : index
    %491 = vector.load %arg10[%c0_785, %c0_786] : memref<256x64xbf16, #tpu.memory_space<vmem>>, vector<256x64xbf16>
    %cst_787 = arith.constant dense<0.000000e+00> : vector<2x64xf32>
    %492 = tpu.matmul %490, %491, %cst_787 {dimension_numbers = #tpu.dot_dimension_numbers<[1], [0], [0], [1], [0, 0, 1, 1], [], []>} : vector<2x256xbf16>, vector<256x64xbf16>, vector<2x64xf32> -> vector<2x64xf32>
    %c0_788 = arith.constant 0 : index
    %c0_789 = arith.constant 0 : index
    %493 = vector.load %arg11[%c0_788, %c0_789] : memref<1x64xf32, #tpu.memory_space<vmem>>, vector<1x64xf32>
    %494 = vector.broadcast %493 : vector<1x64xf32> to vector<2x64xf32>
    %495 = arith.addf %492, %494 : vector<2x64xf32>
    %cst_790 = arith.constant 0.000000e+00 : f32
    %496 = vector.broadcast %cst_790 : f32 to vector<2x64xf32>
    %497 = arith.subf %496, %495 : vector<2x64xf32>
    %498 = math.exp %497 : vector<2x64xf32>
    %cst_791 = arith.constant 1.000000e+00 : f32
    %499 = vector.broadcast %cst_791 : f32 to vector<2x64xf32>
    %500 = arith.addf %499, %498 : vector<2x64xf32>
    %501 = tpu.reciprocal %500 {approx = true} : vector<2x64xf32> -> vector<2x64xf32>
    %502 = arith.mulf %495, %501 : vector<2x64xf32>
    %503 = arith.truncf %502 : vector<2x64xf32> to vector<2x64xbf16>
    %c0_792 = arith.constant 0 : index
    %c0_793 = arith.constant 0 : index
    %504 = vector.load %arg12[%c0_792, %c0_793] : memref<64x128xbf16, #tpu.memory_space<vmem>>, vector<64x128xbf16>
    %cst_794 = arith.constant dense<0.000000e+00> : vector<2x128xf32>
    %505 = tpu.matmul %503, %504, %cst_794 {dimension_numbers = #tpu.dot_dimension_numbers<[1], [0], [0], [1], [0, 0, 1, 1], [], []>} : vector<2x64xbf16>, vector<64x128xbf16>, vector<2x128xf32> -> vector<2x128xf32>
    %c0_795 = arith.constant 0 : index
    %c0_796 = arith.constant 0 : index
    %506 = vector.load %arg13[%c0_795, %c0_796] : memref<1x128xf32, #tpu.memory_space<vmem>>, vector<1x128xf32>
    %507 = vector.broadcast %506 : vector<1x128xf32> to vector<2x128xf32>
    %508 = arith.addf %505, %507 : vector<2x128xf32>
    %c0_797 = arith.constant 0 : index
    %c0_798 = arith.constant 0 : index
    %c0_799 = arith.constant 0 : index
    %509 = vector.load %arg14[%c0_797, %c0_798, %c0_799] : memref<1x2x128xf32, #tpu.memory_space<vmem>>, vector<1x2x128xf32>
    %510 = vector.shape_cast %509 : vector<1x2x128xf32> to vector<2x128xf32>
    %511 = vector.shape_cast %508 : vector<2x128xf32> to vector<1x2x128xf32>
    tpu.vector_store %arg14[%c0_797, %c0_798, %c0_799], %511 {strides = array<i32>} : memref<1x2x128xf32, #tpu.memory_space<vmem>>, vector<1x2x128xf32>,
    return
  }
  func.func @transform_0(%arg0: i32) -> (i32, i32, i32) {
    %c0_i32 = arith.constant 0 : i32
    %c0_i32_0 = arith.constant 0 : i32
    %c0_i32_1 = arith.constant 0 : i32
    return %arg0, %c0_i32, %c0_i32_0 : i32, i32, i32
  }
  func.func @transform_1(%arg0: i32) -> (i32, i32) {
    %c0_i32 = arith.constant 0 : i32
    %c0_i32_0 = arith.constant 0 : i32
    %c0_i32_1 = arith.constant 0 : i32
    return %c0_i32, %c0_i32_0 : i32, i32
  }
  func.func @transform_2(%arg0: i32) -> (i32, i32) {
    %c0_i32 = arith.constant 0 : i32
    %c0_i32_0 = arith.constant 0 : i32
    %c0_i32_1 = arith.constant 0 : i32
    return %c0_i32, %c0_i32_0 : i32, i32
  }
  func.func @transform_3(%arg0: i32) -> (i32, i32) {
    %c0_i32 = arith.constant 0 : i32
    %c0_i32_0 = arith.constant 0 : i32
    %c0_i32_1 = arith.constant 0 : i32
    return %c0_i32, %c0_i32_0 : i32, i32
  }
  func.func @transform_4(%arg0: i32) -> (i32, i32) {
    %c0_i32 = arith.constant 0 : i32
    %c0_i32_0 = arith.constant 0 : i32
    %c0_i32_1 = arith.constant 0 : i32
    return %c0_i32, %c0_i32_0 : i32, i32
  }
  func.func @transform_5(%arg0: i32) -> (i32, i32) {
    %c0_i32 = arith.constant 0 : i32
    %c0_i32_0 = arith.constant 0 : i32
    %c0_i32_1 = arith.constant 0 : i32
    return %c0_i32, %c0_i32_0 : i32, i32
  }
  func.func @transform_6(%arg0: i32) -> (i32, i32) {
    %c0_i32 = arith.constant 0 : i32
    %c0_i32_0 = arith.constant 0 : i32
    %c0_i32_1 = arith.constant 0 : i32
    return %c0_i32, %c0_i32_0 : i32, i32
  }
  func.func @transform_7(%arg0: i32) -> (i32, i32) {
    %c0_i32 = arith.constant 0 : i32
    %c0_i32_0 = arith.constant 0 : i32
    %c0_i32_1 = arith.constant 0 : i32
    return %c0_i32, %c0_i32_0 : i32, i32
  }
  func.func @transform_8(%arg0: i32) -> (i32, i32) {
    %c0_i32 = arith.constant 0 : i32
    %c0_i32_0 = arith.constant 0 : i32
    %c0_i32_1 = arith.constant 0 : i32
    return %c0_i32, %c0_i32_0 : i32, i32
  }
  func.func @transform_9(%arg0: i32) -> (i32, i32) {
    %c0_i32 = arith.constant 0 : i32
    %c0_i32_0 = arith.constant 0 : i32
    %c0_i32_1 = arith.constant 0 : i32
    return %c0_i32, %c0_i32_0 : i32, i32
  }
  func.func @transform_10(%arg0: i32) -> (i32, i32) {
    %c0_i32 = arith.constant 0 : i32
    %c0_i32_0 = arith.constant 0 : i32
    %c0_i32_1 = arith.constant 0 : i32
    return %c0_i32, %c0_i32_0 : i32, i32
  }
  func.func @transform_11(%arg0: i32) -> (i32, i32) {
    %c0_i32 = arith.constant 0 : i32
    %c0_i32_0 = arith.constant 0 : i32
    %c0_i32_1 = arith.constant 0 : i32
    return %c0_i32, %c0_i32_0 : i32, i32
  }
  func.func @transform_12(%arg0: i32) -> (i32, i32) {
    %c0_i32 = arith.constant 0 : i32
    %c0_i32_0 = arith.constant 0 : i32
    %c0_i32_1 = arith.constant 0 : i32
    return %c0_i32, %c0_i32_0 : i32, i32
  }
  func.func @transform_13(%arg0: i32) -> (i32, i32, i32) {
    %c0_i32 = arith.constant 0 : i32
    %c0_i32_0 = arith.constant 0 : i32
    %c0_i32_1 = arith.constant 0 : i32
    return %arg0, %c0_i32, %c0_i32_0 : i32, i32, i32
  }
}

</mosaic_0001>

<bundles_post_ra>
// kernel: _energy_forward_impl.1
= control target key start
LH: loop header
LB: loop body
LE: loop exit
PB: predicated region body
PF: predicated region fallthrough
CT: control target
= control target key end

     0   :  { %vm332_vm0 = vcmask 1043456   ;;  %vm333_vm1 = vcmask 1044480   ;;  %v4490_v1 = vmov 65535   ;;  %vm265_vm2 = vcmask 203776   ;;  %s4493_s20 = smov 64   ;;  %s4494_s21 = smov 112   ;;  %s5753_s1 = inlined_call_operand.vmem [shape: bf16[25,16], index: 1, kind: input, shape index: {}]   ;;  %s5754_s0 = inlined_call_operand.vmem [shape: bf16[1,338,25], index: 0, kind: input, shape index: {}]   ;;  %s5755_s2 = inlined_call_operand.vmem [shape: f32[1,16], index: 2, kind: input, shape index: {}]   ;;  %s5756_s3 = inlined_call_operand.vmem [shape: bf16[144,32], index: 3, kind: input, shape index: {}]   ;;  %s5757_s4 = inlined_call_operand.vmem [shape: f32[1,32], index: 4, kind: input, shape index: {}]   ;;  %s5758_s5 = inlined_call_operand.vmem [shape: bf16[288,64], index: 5, kind: input, shape index: {}]   ;;  %s5759_s6 = inlined_call_operand.vmem [shape: f32[1,64], index: 6, kind: input, shape index: {}]   ;;  %s5760_s7 = inlined_call_operand.vmem [shape: bf16[576,64], index: 7, kind: input, shape index: {}]   ;;  %s5761_s9 = inlined_call_operand.vmem [shape: bf16[256,64], index: 9, kind: input, shape index: {}]   ;;  %s5762_s8 = inlined_call_operand.vmem [shape: f32[1,64], index: 8, kind: input, shape index: {}]   ;;  %s5763_s11 = inlined_call_operand.vmem [shape: bf16[64,128], index: 11, kind: input, shape index: {}]   ;;  %s5764_s10 = inlined_call_operand.vmem [shape: f32[1,64], index: 10, kind: input, shape index: {}]   ;;  %s5765_s12 = inlined_call_operand.vmem [shape: f32[1,128], index: 12, kind: input, shape index: {}]   ;;  %s5766_s13 = inlined_call_operand.vmem [shape: f32[1,2,128], index: 13, kind: output, shape index: {}]  }
   0x1   :  { %v4133_v0 = vld [vmem:[%s5753_s1 + $0x8] sm:$0x1f]   ;;  %v334_v2 = vsel %vm332_vm0, 4294967295, %v4490_v1  ;;  %v4135_v4 = vld [vmem:[%s5754_s0] sm:$0xff]   ;;  %v4137_v8 = vld [vmem:[%s5754_s0 + $0x10] sm:$0xff]   ;;  %vm46_vm3 = vcmask 130048  }
   0x2   :  { %v335_v3 = vsel %vm333_vm1, %v334_v2, 0  ;;  %v4134_v6 = vld [vmem:[%s5753_s1] sm:$0xff]   ;;  %4045 = vmatprep.mubr.msk.bf16.mxu0 %vm265_vm2, %v4135_v4  ;;  %v4136_v7 = vld [vmem:[%s5754_s0 + $0x8] sm:$0xff]   ;;  %v4138_v9 = vld [vmem:[%s5754_s0 + $0x18] sm:$0xff]   ;;  %v4491_v28 = vmov 0.0   ;;  %vm71_vm4 = vcmask 123904  }
   0x3   :  { %v337_v5 = vand.u32 %v4133_v0, %v335_v3  ;;  %v4139_v10 = vld [vmem:[%s5754_s0 + $0x20] sm:$0xff]   ;;  %v4140_v11 = vld [vmem:[%s5754_s0 + $0x28] sm:$0xff]   ;;  %v4141_v12 = vld [vmem:[%s5754_s0 + $0x30] sm:$0xff]   ;;  %47 = vst.msk [vmem:[#allocation3 + $0x8] sm:$0xff] %vm46_vm3, %v4491_v28  ;;  %vm850_vm5 = vcmask 128000   ;;  %vm857_vm6 = vcmask 130055  }
   0x4   :  { %v4142_v13 = vld [vmem:[%s5754_s0 + $0x38] sm:$0xff]   ;;  %v4143_v14 = vld [vmem:[%s5754_s0 + $0x40] sm:$0xff]   ;;  %v4144_v15 = vld [vmem:[%s5754_s0 + $0x48] sm:$0xff]   ;;  %49 = vst.msk [vmem:[#allocation3 + $0x18] sm:$0xff] %vm46_vm3, %v4491_v28  ;;  %vm859_vm7 = vcmask 126976   ;;  %s4495_s22 = smov 32  }
   0x5   :  { %4041 = vmatprep.subr.bf16.mxu0 %v337_v5  ;;  %v4145_v16 = vld [vmem:[%s5754_s0 + $0x50] sm:$0xff]   ;;  %v4146_v17 = vld [vmem:[%s5754_s0 + $0x58] sm:$0xff]   ;;  %v4147_v18 = vld [vmem:[%s5754_s0 + $0x60] sm:$0xff]   ;;  %45 = vst [vmem:[#allocation3] sm:$0xff] %v4491_v28  ;;  %vm866_vm8 = vcmask 130054   ;;  %vm868_vm9 = vcmask 125952  }
   0x6   :  { %4042 = vmatpush3.bf16.msra.mxu0 %v337_v5  ;;  %v4148_v19 = vld [vmem:[%s5754_s0 + $0x68] sm:$0xff]   ;;  %v4149_v20 = vld [vmem:[%s5754_s0 + $0x70] sm:$0xff]   ;;  %v4150_v21 = vld [vmem:[%s5754_s0 + $0x78] sm:$0xff]   ;;  %48 = vst [vmem:[#allocation3 + $0x10] sm:$0xff] %v4491_v28  ;;  %s4496_s23 = smov 16   ;;  %s4497_s24 = smov 96  }
   0x7   :  { %4043 = vmatprep.subr.bf16.mxu0 %v4134_v6  ;;  %v4151_v22 = vld [vmem:[%s5754_s0 + $0x80] sm:$0xff]   ;;  %v4152_v23 = vld [vmem:[%s5754_s0 + $0x88] sm:$0xff]   ;;  %v4153_v24 = vld [vmem:[%s5754_s0 + $0x90] sm:$0xff]   ;;  %50 = vst [vmem:[#allocation3 + $0x20] sm:$0xff] %v4491_v28  ;;  %s4498_s25 = smov 48   ;;  %vm875_vm10 = vcmask 130053  }
   0x8   :  { %v4154_v25 = vld [vmem:[%s5754_s0 + $0x98] sm:$0xff]   ;;  %v4155_v26 = vld [vmem:[%s5754_s0 + $0xa0] sm:$0xff]   ;;  %v4156_v27 = vld [vmem:[%s5754_s0 + $0xa8] ss:$0 sps:$4 sm:$0x11]   ;;  %51 = vst.msk [vmem:[#allocation3 + $0x28] sm:$0xff] %vm46_vm3, %v4491_v28 }
   0x9   :  { %52 = vst [vmem:[#allocation3 + $0x30] sm:$0xff] %v4491_v28  ;;  %53 = vst.msk [vmem:[#allocation3 + $0x38] sm:$0xff] %vm46_vm3, %v4491_v28  ;;  %v4682_v29 = vld [vmem:[%s5755_s2] ss:$0 sm:$0xff]  ;;  %s4492_s2 = smov 80   ;;  %vm877_vm11 = vcmask 124928  }
   0xa   :  { %4044 = vmatpush3.bf16.msra.mxu0 %v4134_v6  ;;  %54 = vst [vmem:[#allocation3 + $0x40] sm:$0xff] %v4491_v28  ;;  %55 = vst.msk [vmem:[#allocation3 + $0x48] sm:$0xff] %vm46_vm3, %v4491_v28  ;;  %vm884_vm12 = vcmask 130052   ;;  %vm892_vm13 = vcmask 130051   ;;  %vm894_vm14 = vcmask 122880   ;;  %vm1379_vm15 = vcmask 129025  }
   0xb   :  { %56 = vst [vmem:[#allocation3 + $0x50] sm:$0xff] %v4491_v28  ;;  %57 = vst.msk [vmem:[#allocation3 + $0x58] sm:$0xff] %vm46_vm3, %v4491_v28  ;;  %vm903_vm0 = vcmask 261255   ;;  %vm905_vm1 = vcmask 259200  }
   0xc   :  { %58 = vst [vmem:[#allocation3 + $0x60] sm:$0xff] %v4491_v28  ;;  %59 = vst.msk [vmem:[#allocation3 + $0x68] sm:$0xff] %vm46_vm3, %v4491_v28 }
   0xd   :  { %4046 = vmatmul.mubr.msk.bf16.vlgmr.msra.gmra.mxu0 %vm265_vm2, %v4136_v7  ;;  %60 = vst [vmem:[#allocation3 + $0x70] sm:$0xff] %v4491_v28  ;;  %61 = vst.msk [vmem:[#allocation3 + $0x78] sm:$0xff] %vm46_vm3, %v4491_v28 }
   0xe   :  { %4049 = vmatprep.mubr.msk.bf16.mxu0 %vm265_vm2, %v4137_v8  ;;  %62 = vst [vmem:[#allocation3 + $0x80] sm:$0xff] %v4491_v28  ;;  %63 = vst.msk [vmem:[#allocation3 + $0x88] sm:$0xff] %vm46_vm3, %v4491_v28 }
   0xf   :  { %64 = vst [vmem:[#allocation3 + $0x90] sm:$0xff] %v4491_v28  ;;  %65 = vst.msk [vmem:[#allocation3 + $0x98] sm:$0xff] %vm46_vm3, %v4491_v28 }
  0x10   :  { %66 = vst [vmem:[#allocation3 + $0xa0] sm:$0xff] %v4491_v28  ;;  %67 = vst.msk [vmem:[#allocation3 + $0xa8] sm:$0xff] %vm46_vm3, %v4491_v28 }
  0x11   :  { %68 = vst [vmem:[#allocation3 + $0xb0] sm:$0xff] %v4491_v28  ;;  %69 = vst.msk [vmem:[#allocation3 + $0xb8] sm:$0xff] %vm46_vm3, %v4491_v28 }
  0x12   :  { %70 = vst [vmem:[#allocation3 + $0xc0] sm:$0x3] %v4491_v28  ;;  %73 = vst [vmem:[#allocation5] sm:$0xff] %v4491_v28 }
  0x13   :  { %74 = vst [vmem:[#allocation5 + $0x8] sm:$0xff] %v4491_v28  ;;  %77 = vst [vmem:[#allocation5 + $0x18] sm:$0xff] %v4491_v28 }
  0x14   :  { %78 = vst [vmem:[#allocation5 + $0x20] sm:$0xff] %v4491_v28  ;;  %80 = vst [vmem:[#allocation5 + $0x30] sm:$0xff] %v4491_v28 }
  0x15   :  { %4050 = vmatmul.mubr.msk.bf16.gmra.mxu0 %vm265_vm2, %v4138_v9  ;;  %81 = vst [vmem:[#allocation5 + $0x38] sm:$0xff] %v4491_v28  ;;  %83 = vst [vmem:[#allocation5 + $0x48] sm:$0xff] %v4491_v28 }
  0x16   :  { %4053 = vmatprep.mubr.msk.bf16.mxu0 %vm265_vm2, %v4139_v10  ;;  %84 = vst [vmem:[#allocation5 + $0x50] sm:$0xff] %v4491_v28  ;;  %86 = vst [vmem:[#allocation7] sm:$0xff] %v4491_v28 }
  0x17   :  { %87 = vst [vmem:[#allocation7 + $0x8] sm:$0xff] %v4491_v28  ;;  %88 = vst [vmem:[#allocation7 + $0x10] sm:$0xff] %v4491_v28 }
  0x18   :  { %89 = vst [vmem:[#allocation7 + $0x18] sm:$0xff] %v4491_v28  ;;  %72 = vst.msk [vmem:[#allocation3 + $0xc8] sm:$0x3] %vm71_vm4, %v4491_v28 }
  0x1d   :  { %4054 = vmatmul.mubr.msk.bf16.gmra.mxu0 %vm265_vm2, %v4140_v11 }
  0x1e   :  { %4057 = vmatprep.mubr.msk.bf16.mxu0 %vm265_vm2, %v4141_v12 }
  0x25   :  { %4058 = vmatmul.mubr.msk.bf16.gmra.mxu0 %vm265_vm2, %v4142_v13 }
  0x26   :  { %4061 = vmatprep.mubr.msk.bf16.mxu0 %vm265_vm2, %v4143_v14 }
  0x2d   :  { %4062 = vmatmul.mubr.msk.bf16.gmra.mxu0 %vm265_vm2, %v4144_v15 }
  0x2e   :  { %4065 = vmatprep.mubr.msk.bf16.mxu0 %vm265_vm2, %v4145_v16 }
  0x35   :  { %4066 = vmatmul.mubr.msk.bf16.gmra.mxu0 %vm265_vm2, %v4146_v17 }
  0x36   :  { %4069 = vmatprep.mubr.msk.bf16.mxu0 %vm265_vm2, %v4147_v18 }
  0x3d   :  { %4070 = vmatmul.mubr.msk.bf16.gmra.mxu0 %vm265_vm2, %v4148_v19 }
  0x3e   :  { %4073 = vmatprep.mubr.msk.bf16.mxu0 %vm265_vm2, %v4149_v20 }
  0x45   :  { %4074 = vmatmul.mubr.msk.bf16.gmra.mxu0 %vm265_vm2, %v4150_v21 }
  0x46   :  { %4077 = vmatprep.mubr.msk.bf16.mxu0 %vm265_vm2, %v4151_v22 }
  0x4d   :  { %4078 = vmatmul.mubr.msk.bf16.gmra.mxu0 %vm265_vm2, %v4152_v23 }
  0x4e   :  { %4081 = vmatprep.mubr.msk.bf16.mxu0 %vm265_vm2, %v4153_v24 }
  0x55   :  { %4082 = vmatmul.mubr.msk.bf16.gmra.mxu0 %vm265_vm2, %v4154_v25 }
  0x56   :  { %4085 = vmatprep.mubr.msk.bf16.mxu0 %vm265_vm2, %v4155_v26 }
  0x5d   :  { %4086 = vmatmul.mubr.msk.bf16.gmra.mxu0 %vm265_vm2, %v4156_v27  ;;  %vm5782_vm2 = vcmask 389376  }
  0xcd   :  { %v4047_v30 = vpop.f32.mrf.mxu0 }
  0xce   :  { %v4685_v31 = vadd.f32 %v4047_v30, %v4682_v29 }
  0xcf   :  { %v373_v32 = vpop.f32.mrf.mxu0 }
  0xd0   :  { %v549_v33 = vsub.f32 0.0, %v4685_v31  ;;  %v4689_v34 = vadd.f32 %v4682_v29, %v373_v32 }
  0xd1   :  { %v4048_v35 = vpop.f32.mrf.mxu0 }
  0xd2   :  { %v594_v36 = vmul.f32 1.442695, %v549_v33  ;;  %v547_v37 = vsub.f32 0.0, %v4689_v34  ;;  %v4693_v38 = vadd.f32 %v4048_v35, %v4682_v29 }
  0xd3   :  { %v376_v39 = vpop.f32.mrf.mxu0 }
  0xd4   :  { %4240 = vpow2.f32 %v594_v36  ;;  %v590_v40 = vmul.f32 1.442695, %v547_v37  ;;  %v550_v41 = vsub.f32 0.0, %v4693_v38  ;;  %v4697_v42 = vadd.f32 %v4682_v29, %v376_v39 }
  0xd5   :  { %v4051_v43 = vpop.f32.mrf.mxu0 }
  0xd6   :  { %4242 = vpow2.f32 %v590_v40  ;;  %v596_v44 = vmul.f32 1.442695, %v550_v41  ;;  %v548_v45 = vsub.f32 0.0, %v4697_v42  ;;  %v4701_v46 = vadd.f32 %v4051_v43, %v4682_v29 }
  0xd7   :  { %v389_v47 = vpop.f32.mrf.mxu0 }
  0xd8   :  { %4244 = vpow2.f32 %v596_v44  ;;  %v592_v48 = vmul.f32 1.442695, %v548_v45  ;;  %v553_v49 = vsub.f32 0.0, %v4701_v46  ;;  %v4705_v50 = vadd.f32 %v4682_v29, %v389_v47 }
  0xd9   :  { %v4052_v51 = vpop.f32.mrf.mxu0 }
  0xda   :  { %4246 = vpow2.f32 %v592_v48  ;;  %v602_v52 = vmul.f32 1.442695, %v553_v49  ;;  %v551_v53 = vsub.f32 0.0, %v4705_v50  ;;  %v4709_v54 = vadd.f32 %v4052_v51, %v4682_v29 }
  0xdb   :  { %v392_v55 = vpop.f32.mrf.mxu0 }
  0xdc   :  { %4248 = vpow2.f32 %v602_v52  ;;  %v598_v56 = vmul.f32 1.442695, %v551_v53  ;;  %v554_v57 = vsub.f32 0.0, %v4709_v54  ;;  %v4713_v58 = vadd.f32 %v4682_v29, %v392_v55 }
  0xdd   :  { %v4055_v59 = vpop.f32.mrf.mxu0 }
  0xde   :  { %4250 = vpow2.f32 %v598_v56  ;;  %v604_v60 = vmul.f32 1.442695, %v554_v57  ;;  %v552_v61 = vsub.f32 0.0, %v4713_v58  ;;  %v4717_v62 = vadd.f32 %v4055_v59, %v4682_v29 }
  0xdf   :  { %v405_v63 = vpop.f32.mrf.mxu0 }
  0xe0   :  { %4252 = vpow2.f32 %v604_v60  ;;  %v600_v0 = vmul.f32 1.442695, %v552_v61  ;;  %v557_v1 = vsub.f32 0.0, %v4717_v62  ;;  %v4721_v2 = vadd.f32 %v4682_v29, %v405_v63 }
  0xe1   :  { %v4241_v3 = vpop.eup %4240  ;;  %v4056_v4 = vpop.f32.mrf.mxu0 }
  0xe2   :  { %v678_v5 = vadd.f32 1.0, %v4241_v3  ;;  %4254 = vpow2.f32 %v600_v0  ;;  %v610_v6 = vmul.f32 1.442695, %v557_v1  ;;  %v555_v7 = vsub.f32 0.0, %v4721_v2 }
  0xe3   :  { %v4243_v8 = vpop.eup %4242  ;;  %v4725_v9 = vadd.f32 %v4056_v4, %v4682_v29  ;;  %v408_v10 = vpop.f32.mrf.mxu0 }
  0xe4   :  { %4256 = vrcp.f32 %v678_v5  ;;  %v676_v11 = vadd.f32 1.0, %v4243_v8  ;;  %v606_v12 = vmul.f32 1.442695, %v555_v7  ;;  %v4728_v13 = vadd.f32 %v4682_v29, %v408_v10 }
  0xe5   :  { %v4245_v14 = vpop.eup %4244  ;;  %4258 = vpow2.f32 %v610_v6  ;;  %v558_v15 = vsub.f32 0.0, %v4725_v9  ;;  %v4059_v16 = vpop.f32.mrf.mxu0 }
  0xe6   :  { %4260 = vrcp.f32 %v676_v11  ;;  %v679_v17 = vadd.f32 1.0, %v4245_v14  ;;  %v556_v18 = vsub.f32 0.0, %v4728_v13  ;;  %v4733_v19 = vadd.f32 %v4059_v16, %v4682_v29 }
  0xe7   :  { %v4247_v20 = vpop.eup %4246  ;;  %4262 = vpow2.f32 %v606_v12  ;;  %v612_v21 = vmul.f32 1.442695, %v558_v15  ;;  %v421_v22 = vpop.f32.mrf.mxu0 }
  0xe8   :  { %4264 = vrcp.f32 %v679_v17  ;;  %v677_v23 = vadd.f32 1.0, %v4247_v20  ;;  %v608_v24 = vmul.f32 1.442695, %v556_v18  ;;  %v561_v25 = vsub.f32 0.0, %v4733_v19 }
  0xe9   :  { %v4249_v26 = vpop.eup %4248  ;;  %4266 = vpow2.f32 %v612_v21  ;;  %v4737_v27 = vadd.f32 %v4682_v29, %v421_v22  ;;  %v4060_v28 = vpop.f32.mrf.mxu0 }
  0xea   :  { %4268 = vrcp.f32 %v677_v23  ;;  %v682_v30 = vadd.f32 1.0, %v4249_v26  ;;  %v618_v32 = vmul.f32 1.442695, %v561_v25  ;;  %v4740_v33 = vadd.f32 %v4060_v28, %v4682_v29 }
  0xeb   :  { %v4251_v35 = vpop.eup %4250  ;;  %4270 = vpow2.f32 %v608_v24  ;;  %v559_v36 = vsub.f32 0.0, %v4737_v27  ;;  %v424_v37 = vpop.f32.mrf.mxu0 }
  0xec   :  { %4272 = vrcp.f32 %v682_v30  ;;  %v680_v39 = vadd.f32 1.0, %v4251_v35  ;;  %v562_v40 = vsub.f32 0.0, %v4740_v33  ;;  %v4745_v41 = vadd.f32 %v4682_v29, %v424_v37 }
  0xed   :  { %v4253_v43 = vpop.eup %4252  ;;  %4274 = vpow2.f32 %v618_v32  ;;  %v614_v44 = vmul.f32 1.442695, %v559_v36  ;;  %v4063_v45 = vpop.f32.mrf.mxu0 }
  0xee   :  { %4276 = vrcp.f32 %v680_v39  ;;  %v683_v47 = vadd.f32 1.0, %v4253_v43  ;;  %v620_v48 = vmul.f32 1.442695, %v562_v40  ;;  %v560_v49 = vsub.f32 0.0, %v4745_v41 }
  0xef   :  { %v4255_v51 = vpop.eup %4254  ;;  %4278 = vpow2.f32 %v614_v44  ;;  %v4749_v52 = vadd.f32 %v4063_v45, %v4682_v29  ;;  %v437_v53 = vpop.f32.mrf.mxu0 }
  0xf0   :  { %4280 = vrcp.f32 %v683_v47  ;;  %v681_v55 = vadd.f32 1.0, %v4255_v51  ;;  %v616_v56 = vmul.f32 1.442695, %v560_v49  ;;  %v4752_v57 = vadd.f32 %v4682_v29, %v437_v53 }
  0xf1   :  { %v4257_v59 = vpop.eup %4256  ;;  %4282 = vpow2.f32 %v620_v48  ;;  %v565_v60 = vsub.f32 0.0, %v4749_v52  ;;  %v4064_v61 = vpop.f32.mrf.mxu0 }
  0xf2   :  { %v4259_v63 = vpop.eup %4258  ;;  %v764_v0 = vmul.f32 %v4257_v59, %v4685_v31  ;;  %4284 = vrcp.f32 %v681_v55  ;;  %v563_v1 = vsub.f32 0.0, %v4752_v57  ;;  %v4758_v3 = vadd.f32 %v4064_v61, %v4682_v29 }
  0xf3   :  { %v4261_v4 = vpop.eup %4260  ;;  %v686_v5 = vadd.f32 1.0, %v4259_v63  ;;  %4286 = vpow2.f32 %v616_v56  ;;  %v626_v6 = vmul.f32 1.442695, %v565_v60  ;;  %v440_v7 = vpop.f32.mrf.mxu0 }
  0xf4   :  { %v4263_v8 = vpop.eup %4262  ;;  %807 = vst.msk [vmem:[#allocation2 + $0x10] sm:$0xff] %vm46_vm3, %v764_v0  ;;  %v762_v10 = vmul.f32 %v4261_v4, %v4689_v34  ;;  %v622_v11 = vmul.f32 1.442695, %v563_v1  ;;  %v566_v12 = vsub.f32 0.0, %v4758_v3  ;;  %v4764_v31 = vadd.f32 %v4682_v29, %v440_v7 }
  0xf5   :  { %v4265_v14 = vpop.eup %4264  ;;  %4288 = vrcp.f32 %v686_v5  ;;  %v684_v15 = vadd.f32 1.0, %v4263_v8  ;;  %v4067_v16 = vpop.f32.mrf.mxu0 }
  0xf6   :  { %v4267_v17 = vpop.eup %4266  ;;  %805 = vst.msk [vmem:[#allocation2] sm:$0xff] %vm46_vm3, %v762_v10  ;;  %v765_v18 = vmul.f32 %v4265_v14, %v4693_v38  ;;  %4290 = vpow2.f32 %v626_v6  ;;  %v628_v20 = vmul.f32 1.442695, %v566_v12  ;;  %v564_v21 = vsub.f32 0.0, %v4764_v31 }
  0xf7   :  { %v4269_v34 = vpop.eup %4268  ;;  %4292 = vrcp.f32 %v684_v15  ;;  %v687_v22 = vadd.f32 1.0, %v4267_v17  ;;  %v4770_v23 = vadd.f32 %v4067_v16, %v4682_v29  ;;  %v453_v24 = vpop.f32.mrf.mxu0 }
  0xf8   :  { %v4271_v25 = vpop.eup %4270  ;;  %808 = vst.msk [vmem:[#allocation2 + $0x18] sm:$0xff] %vm46_vm3, %v765_v18  ;;  %v763_v26 = vmul.f32 %v4269_v34, %v4697_v42  ;;  %4294 = vpow2.f32 %v622_v11  ;;  %v624_v28 = vmul.f32 1.442695, %v564_v21  ;;  %v4775_v38 = vadd.f32 %v4682_v29, %v453_v24 }
  0xf9   :  { %v4273_v30 = vpop.eup %4272  ;;  %4296 = vrcp.f32 %v687_v22  ;;  %v685_v32 = vadd.f32 1.0, %v4271_v25  ;;  %v569_v35 = vsub.f32 0.0, %v4770_v23  ;;  %v4068_v36 = vpop.f32.mrf.mxu0 }
  0xfa   :  { %v4275_v37 = vpop.eup %4274  ;;  %806 = vst.msk [vmem:[#allocation2 + $0x8] sm:$0xff] %vm46_vm3, %v763_v26  ;;  %v768_v39 = vmul.f32 %v4273_v30, %v4701_v46  ;;  %4298 = vpow2.f32 %v628_v20  ;;  %v567_v40 = vsub.f32 0.0, %v4775_v38  ;;  %v4782_v42 = vadd.f32 %v4068_v36, %v4682_v29 }
  0xfb   :  { %v4277_v43 = vpop.eup %4276  ;;  %4300 = vrcp.f32 %v685_v32  ;;  %v690_v44 = vadd.f32 1.0, %v4275_v37  ;;  %v634_v45 = vmul.f32 1.442695, %v569_v35  ;;  %v456_v47 = vpop.f32.mrf.mxu0 }
  0xfc   :  { %v4279_v48 = vpop.eup %4278  ;;  %811 = vst.msk [vmem:[#allocation2 + $0x30] sm:$0xff] %vm46_vm3, %v768_v39  ;;  %v766_v49 = vmul.f32 %v4277_v43, %v4705_v50  ;;  %4302 = vpow2.f32 %v624_v28  ;;  %v630_v51 = vmul.f32 1.442695, %v567_v40  ;;  %v570_v46 = vsub.f32 0.0, %v4782_v42 }
  0xfd   :  { %v4281_v53 = vpop.eup %4280  ;;  %4304 = vrcp.f32 %v690_v44  ;;  %v688_v55 = vadd.f32 1.0, %v4279_v48  ;;  %v4788_v56 = vadd.f32 %v4682_v29, %v456_v47  ;;  %v4071_v59 = vpop.f32.mrf.mxu0 }
  0xfe   :  { %v4283_v60 = vpop.eup %4282  ;;  %809 = vst.msk [vmem:[#allocation2 + $0x20] sm:$0xff] %vm46_vm3, %v766_v49  ;;  %v769_v61 = vmul.f32 %v4281_v53, %v4709_v54  ;;  %4306 = vpow2.f32 %v634_v45  ;;  %v636_v63 = vmul.f32 1.442695, %v570_v46  ;;  %v4793_v50 = vadd.f32 %v4071_v59, %v4682_v29 }
  0xff   :  { %v4285_v0 = vpop.eup %4284  ;;  %4308 = vrcp.f32 %v688_v55  ;;  %v691_v1 = vadd.f32 1.0, %v4283_v60  ;;  %v568_v4 = vsub.f32 0.0, %v4788_v56  ;;  %v469_v5 = vpop.f32.mrf.mxu0 }
 0x100   :  { %v4287_v6 = vpop.eup %4286  ;;  %812 = vst.msk [vmem:[#allocation2 + $0x38] sm:$0xff] %vm46_vm3, %v769_v61  ;;  %v767_v7 = vmul.f32 %v4285_v0, %v4713_v58  ;;  %4310 = vpow2.f32 %v630_v51  ;;  %v573_v54 = vsub.f32 0.0, %v4793_v50  ;;  %v4800_v8 = vadd.f32 %v4682_v29, %v469_v5 }
 0x101   :  { %v1342_v10 = vld [vmem:[#allocation2 + $0xe] ss:$2 sm:$0x3f]  ;;  %4312 = vrcp.f32 %v691_v1  ;;  %v689_v11 = vadd.f32 1.0, %v4287_v6  ;;  %v632_v12 = vmul.f32 1.442695, %v568_v4  ;;  %v4072_v14 = vpop.f32.mrf.mxu0 }
 0x102   :  { %v4289_v15 = vpop.eup %4288  ;;  %810 = vst.msk [vmem:[#allocation2 + $0x28] sm:$0xff] %vm46_vm3, %v767_v7  ;;  %4314 = vpow2.f32 %v636_v63  ;;  %v642_v16 = vmul.f32 1.442695, %v573_v54  ;;  %v571_v17 = vsub.f32 0.0, %v4800_v8  ;;  %v4805_v58 = vadd.f32 %v4072_v14, %v4682_v29 }
 0x103   :  { %v1165_v18 = vld [vmem:[#allocation2 + $0x1] ss:$2 sm:$0x3f]  ;;  %1343 = vst.msk [vmem:[#allocation3 + $0x8] sm:$0x3f] %vm850_vm5, %v1342_v10  ;;  %v4291_v20 = vpop.eup %4290  ;;  %v772_v21 = vmul.f32 %v4289_v15, %v4717_v62  ;;  %4316 = vrcp.f32 %v689_v11  ;;  %v472_v22 = vpop.f32.mrf.mxu0 }
 0x104   :  { %1167 = vrot.lane.b32.xlu0 %v1165_v18, %s4492_s2  ;;  %v1092_v34 = vld [vmem:[#allocation2] ss:$2 sm:$0x7f]  ;;  %v4293_v24 = vpop.eup %4292  ;;  %v694_v25 = vadd.f32 1.0, %v4291_v20  ;;  %4318 = vpow2.f32 %v632_v12  ;;  %v638_v26 = vmul.f32 1.442695, %v571_v17  ;;  %v4815_v32 = vadd.f32 %v4682_v29, %v472_v22 }
 0x105   :  { %v574_v28 = vsub.f32 0.0, %v4805_v58  ;;  %1094 = vrot.lane.b32.xlu1 %v1092_v34, %s4493_s20  ;;  %v4295_v30 = vpop.eup %4294  ;;  %815 = vst.msk [vmem:[#allocation2 + $0x50] sm:$0xff] %vm46_vm3, %v772_v21  ;;  %v770_v62 = vmul.f32 %v4293_v24, %v4721_v2  ;;  %4320 = vpow2.f32 %v642_v16  ;;  %v4075_v35 = vpop.f32.mrf.mxu0  ;;  %v1285_v36 = vld [vmem:[#allocation2 + $0xd] ss:$2 sm:$0x7f] }
 0x106   :  { %v962_v37 = vld [vmem:[#allocation2 + $0xe] ss:$2 sm:$0x3f]  ;;  %v4297_v39 = vpop.eup %4296  ;;  %4322 = vrcp.f32 %v694_v25  ;;  %v692_v40 = vadd.f32 1.0, %v4295_v30  ;;  %v4818_v44 = vadd.f32 %v4075_v35, %v4682_v29  ;;  %v572_v48 = vsub.f32 0.0, %v4815_v32 }
 0x107   :  { %v644_v43 = vmul.f32 1.442695, %v574_v28  ;;  %v897_v45 = vld [vmem:[#allocation2 + $0xd] ss:$2 sm:$0x7f]  ;;  %v4299_v47 = vpop.eup %4298  ;;  %813 = vst.msk [vmem:[#allocation2 + $0x40] sm:$0xff] %vm46_vm3, %v770_v62  ;;  %v773_v2 = vmul.f32 %v4297_v39, %v4725_v9  ;;  %4324 = vpow2.f32 %v638_v26  ;;  %v485_v51 = vpop.f32.mrf.mxu0 }
 0x108   :  { %1287 = vrot.lane.b32.xlu0 %v1285_v36, %s4494_s21  ;;  %v964_v49 = vrot.slane %v962_v37, 1  ;;  %v4301_v46 = vpop.eup %4300  ;;  %4326 = vrcp.f32 %v692_v40  ;;  %v695_v53 = vadd.f32 1.0, %v4299_v47  ;;  %v577_v55 = vsub.f32 0.0, %v4818_v44  ;;  %v1230_v60 = vld [vmem:[#allocation2 + $0xe] ss:$2 sm:$0x3f] }
 0x109   :  { %v4826_v59 = vadd.f32 %v4682_v29, %v485_v51  ;;  %v4303_v61 = vpop.eup %4302  ;;  %v1344_v63 = vld [vmem:[#allocation2 + $0x28] ss:$2 sm:$0x3f]  ;;  %816 = vst.msk [vmem:[#allocation2 + $0x58] sm:$0xff] %vm46_vm3, %v773_v2  ;;  %v771_v9 = vmul.f32 %v4301_v46, %v4728_v13  ;;  %4328 = vpow2.f32 %v644_v43  ;;  %v640_v0 = vmul.f32 1.442695, %v572_v48  ;;  %v4076_v1 = vpop.f32.mrf.mxu0 }
 0x10a   :  { %965 = vrot.lane.b32.xlu1 %v964_v49, %s4495_s22  ;;  %v899_v4 = vrot.slane %v897_v45, 1  ;;  %v4305_v5 = vpop.eup %4304  ;;  %v1346_v6 = vrot.slane %v1344_v63, 1  ;;  %4330 = vrcp.f32 %v695_v53  ;;  %v693_v7 = vadd.f32 1.0, %v4303_v61  ;;  %v1021_v15 = vld [vmem:[#allocation2 + $0x1] ss:$2 sm:$0x3f] }
 0x10b   :  { %v650_v54 = vmul.f32 1.442695, %v577_v55  ;;  %v4307_v10 = vpop.eup %4306  ;;  %814 = vst.msk [vmem:[#allocation2 + $0x48] sm:$0xff] %vm46_vm3, %v771_v9  ;;  %v776_v11 = vmul.f32 %v4305_v5, %v4733_v19  ;;  %4332 = vpow2.f32 %v640_v0  ;;  %v575_v13 = vsub.f32 0.0, %v4826_v59  ;;  %v488_v14 = vpop.f32.mrf.mxu0 }
 0x10c   :  { %v4835_v12 = vadd.f32 %v4076_v1, %v4682_v29  ;;  %900 = vrot.lane.b32.xlu0 %v899_v4, %s4496_s23  ;;  %v4309_v16 = vpop.eup %4308  ;;  %4334 = vrcp.f32 %v693_v7  ;;  %v698_v17 = vadd.f32 1.0, %v4307_v10  ;;  %v1232_v18 = vrot.slane %v1230_v60, 7  ;;  %1348 = vst.msk [vmem:[#allocation3 + $0x8] sm:$0x80] %vm857_vm6, %v1346_v6 }
 0x10d   :  { %v4839_v20 = vadd.f32 %v4682_v29, %v488_v14  ;;  %1349 = vst.msk [vmem:[#allocation3 + $0x18] sm:$0x1f] %vm859_vm7, %v1346_v6  ;;  %v4311_v19 = vpop.eup %4310  ;;  %v774_v21 = vmul.f32 %v4309_v16, %v4737_v27  ;;  %4336 = vpow2.f32 %v650_v54  ;;  %v646_v34 = vmul.f32 1.442695, %v575_v13  ;;  %v4079_v24 = vpop.f32.mrf.mxu0 }
 0x10e   :  { %819 = vst.msk [vmem:[#allocation2 + $0x70] sm:$0xff] %vm46_vm3, %v776_v11  ;;  %v578_v22 = vsub.f32 0.0, %v4835_v12  ;;  %v4846_v25 = vld [vmem:[#allocation2 + $0x1b] ss:$2 sm:$0x3f]  ;;  %v4313_v26 = vpop.eup %4312  ;;  %4338 = vrcp.f32 %v698_v17  ;;  %v696_v28 = vadd.f32 1.0, %v4311_v19  ;;  %1233 = vrot.lane.b32.xlu1 %v1232_v18, %s4497_s24  ;;  %v4853_v40 = vadd.f32 %v4079_v24, %v4682_v29 }
 0x10f   :  { %v576_v30 = vsub.f32 0.0, %v4839_v20  ;;  %v1023_v62 = vrot.slane %v1021_v15, 7  ;;  %v1100_v35 = vld [vmem:[#allocation2 + $0x1a] ss:$2 sm:$0x7f]  ;;  %v4315_v36 = vpop.eup %4314  ;;  %817 = vst.msk [vmem:[#allocation2 + $0x60] sm:$0xff] %vm46_vm3, %v774_v21  ;;  %v777_v27 = vmul.f32 %v4313_v26, %v4740_v33  ;;  %4340 = vpow2.f32 %v646_v34  ;;  %v501_v43 = vpop.f32.mrf.mxu0 }
 0x110   :  { %v652_v37 = vmul.f32 1.442695, %v578_v22  ;;  %v1030_v39 = vld [vmem:[#allocation2 + $0x1b] ss:$2 sm:$0x3f]  ;;  %v4317_v45 = vpop.eup %4316  ;;  %4342 = vrcp.f32 %v696_v28  ;;  %v699_v47 = vadd.f32 1.0, %v4315_v36  ;;  %v4862_v9 = vadd.f32 %v4682_v29, %v501_v43 }
 0x111   :  { %v648_v2 = vmul.f32 1.442695, %v576_v30  ;;  %1024 = vrot.lane.b32.xlu0 %v1023_v62, %s4498_s25  ;;  %v1174_v48 = vrot.slane %v4846_v25, 1  ;;  %v4319_v49 = vpop.eup %4318  ;;  %820 = vst.msk [vmem:[#allocation2 + $0x78] sm:$0xff] %vm46_vm3, %v777_v27  ;;  %v775_v33 = vmul.f32 %v4317_v45, %v4745_v41  ;;  %v581_v51 = vsub.f32 0.0, %v4853_v40  ;;  %v4080_v53 = vpop.f32.mrf.mxu0 }
 0x112   :  { %4344 = vpow2.f32 %v652_v37  ;;  %v1102_v46 = vrot.slane %v1100_v35, 1  ;;  %v1038_v55 = vld [vmem:[#allocation2 + $0x35] ss:$2 sm:$0x3f]  ;;  %v4321_v60 = vpop.eup %4320  ;;  %v697_v63 = vadd.f32 1.0, %v4319_v49  ;;  %1032 = vrot.lane.b32.xlu1 %v1030_v39, %s4498_s25  ;;  %v4865_v0 = vadd.f32 %v4080_v53, %v4682_v29 }
 0x113   :  { %v1350_v61 = vld [vmem:[#allocation2 + $0x42] ss:$2 sm:$0x3f]  ;;  %4346 = vrcp.f32 %v699_v47  ;;  %v4323_v1 = vpop.eup %4322  ;;  %818 = vst.msk [vmem:[#allocation2 + $0x68] sm:$0xff] %vm46_vm3, %v775_v33  ;;  %v702_v4 = vadd.f32 1.0, %v4321_v60  ;;  %v504_v6 = vpop.f32.mrf.mxu0  ;;  %v579_v10 = vsub.f32 0.0, %v4862_v9 }
 0x114   :  { %v1352_v41 = vrot.slane %v1350_v61, 2  ;;  %4348 = vpow2.f32 %v648_v2  ;;  %v658_v5 = vmul.f32 1.442695, %v581_v51  ;;  %v4325_v7 = vpop.eup %4324  ;;  %v780_v54 = vmul.f32 %v4323_v1, %v4749_v52  ;;  %v972_v13 = vld [vmem:[#allocation2 + $0x28] ss:$2 sm:$0x3f] }
 0x115   :  { %4350 = vrcp.f32 %v697_v63  ;;  %1103 = vrot.lane.b32.xlu0 %v1102_v46, %s4493_s20  ;;  %v582_v11 = vsub.f32 0.0, %v4865_v0  ;;  %v4327_v14 = vpop.eup %4326  ;;  %v700_v15 = vadd.f32 1.0, %v4325_v7  ;;  %v1040_v16 = vrot.slane %v1038_v55, 1  ;;  %v4083_v17 = vpop.f32.mrf.mxu0  ;;  %v1182_v18 = vld [vmem:[#allocation2 + $0x35] ss:$2 sm:$0x3f] }
 0x116   :  { %4352 = vrcp.f32 %v702_v4  ;;  %1354 = vst.msk [vmem:[#allocation3 + $0x18] sm:$0xc0] %vm866_vm8, %v1352_v41  ;;  %v4329_v19 = vpop.eup %4328  ;;  %v778_v52 = vmul.f32 %v4327_v14, %v4752_v57  ;;  %1175 = vrot.lane.b32.xlu1 %v1174_v48, %s4492_s2  ;;  %v654_v21 = vmul.f32 1.442695, %v579_v10  ;;  %v4878_v25 = vadd.f32 %v4682_v29, %v504_v6  ;;  %v1810_v53 = vld [vmem:[#allocation3 + $0x8] sm:$0xff] }
 0x117   :  { %1355 = vst.msk [vmem:[#allocation3 + $0x28] sm:$0xf] %vm868_vm9, %v1352_v41  ;;  %4354 = vpow2.f32 %v658_v5  ;;  %v660_v34 = vmul.f32 1.442695, %v582_v11  ;;  %v4331_v22 = vpop.eup %4330  ;;  %v703_v24 = vadd.f32 1.0, %v4329_v19  ;;  %v4881_v26 = vadd.f32 %v4083_v17, %v4682_v29  ;;  %v517_v28 = vpop.f32.mrf.mxu0 }
 0x118   :  { %823 = vst.msk [vmem:[#allocation2 + $0x90] sm:$0xff] %vm46_vm3, %v780_v54  ;;  %4356 = vrcp.f32 %v700_v15  ;;  %v4333_v30 = vpop.eup %4332  ;;  %821 = vst.msk [vmem:[#allocation2 + $0x80] sm:$0xff] %vm46_vm3, %v778_v52  ;;  %v781_v57 = vmul.f32 %v4331_v22, %v4758_v3  ;;  %v974_v62 = vrot.slane %v972_v13, 2  ;;  %v1184_v35 = vrot.slane %v1182_v18, 2 }
 0x119   :  { %4358 = vpow2.f32 %v654_v21  ;;  %1041 = vrot.lane.b32.xlu0 %v1040_v16, %s4498_s25  ;;  %v4335_v36 = vpop.eup %4334  ;;  %v701_v27 = vadd.f32 1.0, %v4333_v30  ;;  %v580_v37 = vsub.f32 0.0, %v4878_v25  ;;  %v585_v39 = vsub.f32 0.0, %v4881_v26  ;;  %v1292_v43 = vld [vmem:[#allocation2 + $0x27] ss:$2 sm:$0x7f]  ;;  %v4084_v45 = vpop.f32.mrf.mxu0 }
 0x11a   :  { %4360 = vrcp.f32 %v703_v24  ;;  %v4337_v47 = vpop.eup %4336  ;;  %824 = vst.msk [vmem:[#allocation2 + $0x98] sm:$0xff] %vm46_vm3, %v781_v57  ;;  %v779_v2 = vmul.f32 %v4335_v36, %v4764_v31  ;;  %975 = vrot.lane.b32.xlu1 %v974_v62, %s4495_s22  ;;  %v4892_v3 = vadd.f32 %v4682_v29, %v517_v28  ;;  %v4895_v48 = vadd.f32 %v4084_v45, %v4682_v29  ;;  %v1111_v55 = vld [vmem:[#allocation2 + $0x34] ss:$2 sm:$0x7f] }
 0x11b   :  { %4362 = vpow2.f32 %v660_v34  ;;  %v4339_v49 = vpop.eup %4338  ;;  %v706_v33 = vadd.f32 1.0, %v4337_v47  ;;  %v656_v51 = vmul.f32 1.442695, %v580_v37  ;;  %v666_v46 = vmul.f32 1.442695, %v585_v39  ;;  %v520_v60 = vpop.f32.mrf.mxu0 }
 0x11c   :  { %4364 = vrcp.f32 %v701_v27  ;;  %v4341_v61 = vpop.eup %4340  ;;  %822 = vst.msk [vmem:[#allocation2 + $0x88] sm:$0xff] %vm46_vm3, %v779_v2  ;;  %v784_v31 = vmul.f32 %v4339_v49, %v4770_v23  ;;  %v1294_v63 = vrot.slane %v1292_v43, 1  ;;  %v583_v1 = vsub.f32 0.0, %v4892_v3  ;;  %v1238_v54 = vld [vmem:[#allocation2 + $0x28] ss:$2 sm:$0x3f] }
 0x11d   :  { %1185 = vrot.lane.b32.xlu0 %v1184_v35, %s4492_s2  ;;  %v586_v41 = vsub.f32 0.0, %v4895_v48  ;;  %v1812_v4 = vld [vmem:[#allocation3 + $0x18] sm:$0xff]  ;;  %v4343_v5 = vpop.eup %4342  ;;  %4366 = vrcp.f32 %v706_v33  ;;  %v704_v6 = vadd.f32 1.0, %v4341_v61  ;;  %v4903_v10 = vadd.f32 %v4682_v29, %v520_v60  ;;  %v4087_v11 = vpop.f32.mrf.mxu0  ;;  %v1245_v22 = vld [vmem:[#allocation2 + $0x42] ss:$2 sm:$0x3f] }
 0x11e   :  { %v1836_v7 = vpack.c.bf16 %v1812_v4, %v1810_v53  ;;  %827 = vst.msk [vmem:[#allocation2 + $0xb0] sm:$0xff] %vm46_vm3, %v784_v31  ;;  %v782_v23 = vmul.f32 %v4343_v5, %v4775_v38  ;;  %4368 = vpow2.f32 %v656_v51  ;;  %1295 = vrot.lane.b32.xlu1 %v1294_v63, %s4494_s21  ;;  %v662_v14 = vmul.f32 1.442695, %v583_v1  ;;  %v908_v18 = vld [vmem:[#allocation2 + $0x27] ss:$2 sm:$0x7f] }
 0x11f   :  { %v4345_v13 = vpop.eup %4344  ;;  %4370 = vrcp.f32 %v704_v6  ;;  %v584_v17 = vsub.f32 0.0, %v4903_v10  ;;  %v533_v19 = vpop.f32.mrf.mxu0  ;;  %v668_v38 = vmul.f32 1.442695, %v586_v41  ;;  %v1113_v34 = vrot.slane %v1111_v55, 2 }
 0x120   :  { %v4347_v15 = vpop.eup %4346  ;;  %v707_v16 = vadd.f32 1.0, %v4345_v13  ;;  %3815 = vmatprep.mubr.msk.bf16.mxu1 %vm46_vm3, %v1836_v7  ;;  %825 = vst.msk [vmem:[#allocation2 + $0xa0] sm:$0xff] %vm46_vm3, %v782_v23  ;;  %4372 = vpow2.f32 %v666_v46  ;;  %v1302_v37 = vld [vmem:[#allocation2 + $0x41] ss:$2 sm:$0x7f]  ;;  %v4918_v39 = vadd.f32 %v4087_v11, %v4682_v29  ;;  %v4921_v43 = vadd.f32 %v4682_v29, %v533_v19 }
 0x121   :  { %v4349_v52 = vpop.eup %4348  ;;  %v785_v21 = vmul.f32 %v4347_v15, %v4782_v42  ;;  %1240 = vrot.lane.b32.xlu0 %v1238_v54, %s4497_s24  ;;  %v664_v30 = vmul.f32 1.442695, %v584_v17  ;;  %v4088_v57 = vpop.f32.mrf.mxu0  ;;  %v910_v42 = vrot.slane %v908_v18, 2  ;;  %v919_v49 = vld [vmem:[#allocation2 + $0x41] ss:$2 sm:$0x7f] }
 0x122   :  { %v4351_v24 = vpop.eup %4350  ;;  %4374 = vrcp.f32 %v707_v16  ;;  %v705_v28 = vadd.f32 1.0, %v4349_v52  ;;  %1114 = vrot.lane.b32.xlu1 %v1113_v34, %s4493_s20  ;;  %v589_v33 = vsub.f32 0.0, %v4918_v39  ;;  %v587_v51 = vsub.f32 0.0, %v4921_v43  ;;  %v930_v60 = vld [vmem:[#allocation2 + $0x5b] ss:$2 sm:$0x7f] }
 0x123   :  { %v4353_v62 = vpop.eup %4352  ;;  %828 = vst.msk [vmem:[#allocation2 + $0xb8] sm:$0xff] %vm46_vm3, %v785_v21  ;;  %v783_v35 = vmul.f32 %v4351_v24, %v4788_v56  ;;  %4376 = vpow2.f32 %v662_v14  ;;  %v1247_v56 = vrot.slane %v1245_v22, 1  ;;  %v1304_v55 = vrot.slane %v1302_v37, 2  ;;  %v536_v1 = vpop.f32.mrf.mxu0  ;;  %v982_v7 = vld [vmem:[#allocation2 + $0x42] ss:$2 sm:$0x3f] }
 0x124   :  { %v4355_v36 = vpop.eup %4354  ;;  %v788_v27 = vmul.f32 %v4353_v62, %v4793_v50  ;;  %4378 = vrcp.f32 %v705_v28  ;;  %v674_v63 = vmul.f32 1.442695, %v589_v33  ;;  %v921_v5 = vrot.slane %v919_v49, 3  ;;  %v992_v14 = vld [vmem:[#allocation2 + $0x5c] ss:$2 sm:$0x3f] }
 0x125   :  { %v4357_v45 = vpop.eup %4356  ;;  %826 = vst.msk [vmem:[#allocation2 + $0xa8] sm:$0xff] %vm46_vm3, %v783_v35  ;;  %v710_v47 = vadd.f32 1.0, %v4355_v36  ;;  %4380 = vpow2.f32 %v668_v38  ;;  %911 = vrot.lane.b32.xlu0 %v910_v42, %s4496_s23  ;;  %v4937_v11 = vadd.f32 %v4682_v29, %v536_v1  ;;  %v1049_v19 = vld [vmem:[#allocation2 + $0x4f] ss:$2 sm:$0x3f] }
 0x126   :  { %v4359_v2 = vpop.eup %4358  ;;  %831 = vst.msk [vmem:[#allocation2 + $0xd0] sm:$0xff] %vm46_vm3, %v788_v27  ;;  %v786_v50 = vmul.f32 %v4357_v45, %v4800_v8  ;;  %4382 = vpow2.f32 %v664_v30  ;;  %1248 = vrot.lane.b32.xlu1 %v1247_v56, %s4497_s24  ;;  %v670_v8 = vmul.f32 1.442695, %v587_v51  ;;  %v1060_v22 = vld [vmem:[#allocation2 + $0x69] ss:$2 sm:$0x3f] }
 0x127   :  { %v4361_v46 = vpop.eup %4360  ;;  %4384 = vrcp.f32 %v710_v47  ;;  %v708_v53 = vadd.f32 1.0, %v4359_v2  ;;  %v588_v17 = vsub.f32 0.0, %v4937_v11  ;;  %v1051_v62 = vrot.slane %v1049_v19, 2  ;;  %v1122_v42 = vld [vmem:[#allocation2 + $0x4e] ss:$2 sm:$0x7f] }
 0x128   :  { %v4363_v61 = vpop.eup %4362  ;;  %829 = vst.msk [vmem:[#allocation2 + $0xc0] sm:$0xff] %vm46_vm3, %v786_v50  ;;  %v789_v31 = vmul.f32 %v4361_v46, %v4805_v58  ;;  %v932_v58 = vrot.slane %v930_v60, 4  ;;  %v1062_v27 = vrot.slane %v1060_v22, 3  ;;  %v1133_v47 = vld [vmem:[#allocation2 + $0x68] ss:$2 sm:$0x7f] }
 0x129   :  { %v4365_v41 = vpop.eup %4364  ;;  %4386 = vrcp.f32 %v708_v53  ;;  %v711_v4 = vadd.f32 1.0, %v4363_v61  ;;  %1305 = vrot.lane.b32.xlu0 %v1304_v55, %s4494_s21  ;;  %v672_v24 = vmul.f32 1.442695, %v588_v17  ;;  %v4157_v56 = vld [vmem:[%s5756_s3 + $0x38] sm:$0xff]   ;;  %v1124_v2 = vrot.slane %v1122_v42, 3  ;;  %v4158_v61 = vld [vmem:[%s5756_s3 + $0x30] sm:$0xff]  }
 0x12a   :  { %832 = vst.msk [vmem:[#allocation2 + $0xd8] sm:$0xff] %vm46_vm3, %v789_v31  ;;  %v787_v6 = vmul.f32 %v4365_v41, %v4815_v32  ;;  %4388 = vpow2.f32 %v674_v63  ;;  %v4367_v54 = vpop.eup %4366  ;;  %922 = vrot.lane.b32.xlu1 %v921_v5, %s4496_s23  ;;  %v984_v32 = vrot.slane %v982_v7, 3  ;;  %v1192_v49 = vld [vmem:[#allocation2 + $0x4f] ss:$2 sm:$0x3f]  ;;  %v1135_v46 = vrot.slane %v1133_v47, 4 }
 0x12b   :  { %4390 = vrcp.f32 %v711_v4  ;;  %v4369_v13 = vpop.eup %4368  ;;  %v792_v23 = vmul.f32 %v4367_v54, %v4818_v44  ;;  %v994_v44 = vrot.slane %v992_v14, 4  ;;  %v4499_v53 = vmov 0   ;;  %v1202_v60 = vld [vmem:[#allocation2 + $0x69] ss:$2 sm:$0x3f] }
 0x12c   :  { %830 = vst.msk [vmem:[#allocation2 + $0xc8] sm:$0xff] %vm46_vm3, %v787_v6  ;;  %4392 = vpow2.f32 %v670_v8  ;;  %v4371_v15 = vpop.eup %4370  ;;  %v709_v16 = vadd.f32 1.0, %v4369_v13  ;;  %1949 = vmatprep.subr.bf16.mxu1 %v4499_v53  ;;  %v1255_v1 = vld [vmem:[#allocation2 + $0x5c] ss:$2 sm:$0x3f]  ;;  %v1204_v41 = vrot.slane %v1202_v60, 4 }
 0x12d   :  { %933 = vrot.lane.b32.xlu0 %v932_v58, %s4496_s23  ;;  %v4373_v18 = vpop.eup %4372  ;;  %835 = vst.msk [vmem:[#allocation2 + $0xf0] sm:$0xff] %vm46_vm3, %v792_v23  ;;  %v790_v29 = vmul.f32 %v4371_v15, %v4826_v59  ;;  %1950 = vmatpush1.bf16.msra.mxu1 %v4157_v56  ;;  %v1265_v5 = vld [vmem:[#allocation2 + $0x76] ss:$2 sm:$0x3f]  ;;  %v1257_v7 = vrot.slane %v1255_v1, 2 }
 0x12e   :  { %4394 = vrcp.f32 %v709_v16  ;;  %v714_v21 = vadd.f32 1.0, %v4373_v18  ;;  %985 = vrot.lane.b32.xlu1 %v984_v32, %s4495_s22  ;;  %1951 = vmatprep.subr.bf16.mxu1 %v4499_v53  ;;  %v1312_v58 = vld [vmem:[#allocation2 + $0x5b] ss:$2 sm:$0x7f]  ;;  %v1267_v14 = vrot.slane %v1265_v5, 3 }
 0x12f   :  { %v4375_v52 = vpop.eup %4374  ;;  %833 = vst.msk [vmem:[#allocation2 + $0xe0] sm:$0xff] %vm46_vm3, %v790_v29  ;;  %v1322_v16 = vld [vmem:[#allocation2 + $0x75] ss:$2 sm:$0x7f]  ;;  %v1314_v18 = vrot.slane %v1312_v58, 3 }
 0x130   :  { %v4377_v38 = vpop.eup %4376  ;;  %v793_v34 = vmul.f32 %v4375_v52, %v4835_v12  ;;  %4396 = vrcp.f32 %v714_v21  ;;  %v941_v29 = vld [vmem:[#allocation2 + $0x75] ss:$2 sm:$0x7f]  ;;  %v1324_v21 = vrot.slane %v1322_v16, 4 }
 0x131   :  { %v4379_v28 = vpop.eup %4378  ;;  %v1783_v30 = vld [vmem:[#allocation2 + $0xd1] ss:$2 sm:$0x3f]  ;;  %v712_v57 = vadd.f32 1.0, %v4377_v38  ;;  %995 = vrot.lane.b32.xlu0 %v994_v44, %s4495_s22  ;;  %4398 = vpow2.f32 %v672_v24  ;;  %1952 = vmatpush1.bf16.msra.mxu1 %v4158_v61 }
 0x132   :  { %v4381_v59 = vpop.eup %4380  ;;  %836 = vst.msk [vmem:[#allocation2 + $0xf8] sm:$0xff] %vm46_vm3, %v793_v34  ;;  %v791_v35 = vmul.f32 %v4379_v28, %v4839_v20  ;;  %1052 = vrot.lane.b32.xlu1 %v1051_v62, %s4498_s25  ;;  %1953 = vmatprep.subr.bf16.mxu1 %v4499_v53  ;;  %v1002_v38 = vld [vmem:[#allocation2 + $0x76] ss:$2 sm:$0x3f]  ;;  %v943_v34 = vrot.slane %v941_v29, 5 }
 0x133   :  { %1784 = vst.msk [vmem:[#allocation3 + $0x78] sm:$0x3f] %vm850_vm5, %v1783_v30  ;;  %v4383_v36 = vpop.eup %4382  ;;  %4400 = vrcp.f32 %v712_v57  ;;  %v715_v12 = vadd.f32 1.0, %v4381_v59  ;;  %v849_v22 = vld [vmem:[#allocation2 + $0xe] ss:$2 sm:$0x3f] }
 0x134   :  { %v4385_v37 = vpop.eup %4384  ;;  %834 = vst.msk [vmem:[#allocation2 + $0xe8] sm:$0xff] %vm46_vm3, %v791_v35  ;;  %v713_v45 = vadd.f32 1.0, %v4383_v36  ;;  %v1275_v30 = vld [vmem:[#allocation2 + $0x90] ss:$2 sm:$0x3f] }
 0x135   :  { %v796_v20 = vmul.f32 %v4385_v37, %v4853_v40  ;;  %4402 = vrcp.f32 %v715_v12  ;;  %1063 = vrot.lane.b32.xlu0 %v1062_v27, %s4498_s25  ;;  %851 = vst.msk [vmem:[#allocation3 + $0x10] sm:$0x3f] %vm850_vm5, %v849_v22  ;;  %v4162_v57 = vld [vmem:[%s5756_s3 + $0x10] sm:$0xff]   ;;  %v1071_v36 = vld [vmem:[#allocation2 + $0x83] ss:$2 sm:$0x3f] }
 0x136   :  { %v4387_v50 = vpop.eup %4386  ;;  %4404 = vrcp.f32 %v713_v45  ;;  %1125 = vrot.lane.b32.xlu1 %v1124_v2, %s4493_s20  ;;  %v952_v42 = vld [vmem:[#allocation2 + $0x8f] ss:$2 sm:$0x7f]  ;;  %v1082_v37 = vld [vmem:[#allocation2 + $0x9d] ss:$2 sm:$0x3f] }
 0x137   :  { %v4389_v33 = vpop.eup %4388  ;;  %839 = vst.msk [vmem:[#allocation2 + $0x110] sm:$0xff] %vm46_vm3, %v796_v20  ;;  %v794_v51 = vmul.f32 %v4387_v50, %v4862_v9  ;;  %v1194_v9 = vrot.slane %v1192_v49, 3  ;;  %v4163_v12 = vld [vmem:[%s5756_s3 + $0x8] sm:$0xff]   ;;  %v954_v27 = vrot.slane %v952_v42, 6  ;;  %v4164_v20 = vld [vmem:[%s5756_s3] sm:$0xff]   ;;  %v1084_v2 = vrot.slane %v1082_v37, 5 }
 0x138   :  { %v4391_v55 = vpop.eup %4390  ;;  %v718_v40 = vadd.f32 1.0, %v4389_v33  ;;  %v1144_v56 = vld [vmem:[#allocation2 + $0x82] ss:$2 sm:$0x7f] }
 0x139   :  { %v4393_v31 = vpop.eup %4392  ;;  %837 = vst.msk [vmem:[#allocation2 + $0x100] sm:$0xff] %vm46_vm3, %v794_v51  ;;  %v797_v63 = vmul.f32 %v4391_v55, %v4865_v0  ;;  %1136 = vrot.lane.b32.xlu0 %v1135_v46, %s4493_s20  ;;  %v4159_v0 = vld [vmem:[%s5756_s3 + $0x28] sm:$0xff]   ;;  %v1222_v50 = vld [vmem:[#allocation2 + $0x9d] ss:$2 sm:$0x3f]  ;;  %v1146_v33 = vrot.slane %v1144_v56, 5 }
 0x13a   :  { %4406 = vrcp.f32 %v718_v40  ;;  %v716_v8 = vadd.f32 1.0, %v4393_v31  ;;  %1195 = vrot.lane.b32.xlu1 %v1194_v9, %s4492_s2  ;;  %1954 = vmatpush1.bf16.msra.mxu1 %v4159_v0  ;;  %v853_v49 = vld [vmem:[#allocation2 + $0x28] ss:$2 sm:$0x3f]  ;;  %v4165_v55 = vld [vmem:[%s5756_s3 + $0x40] sm:$0xff]  }
 0x13b   :  { %840 = vst.msk [vmem:[#allocation2 + $0x118] sm:$0xff] %vm46_vm3, %v797_v63  ;;  %v4395_v4 = vpop.eup %4394  ;;  %1955 = vmatprep.subr.bf16.mxu1 %v4499_v53  ;;  %v855_v51 = vrot.slane %v853_v49, 1  ;;  %v1212_v46 = vld [vmem:[#allocation2 + $0x83] ss:$2 sm:$0x3f] }
 0x13c   :  { %4408 = vrcp.f32 %v716_v8  ;;  %v795_v6 = vmul.f32 %v4395_v4, %v4878_v25  ;;  %v4160_v25 = vld [vmem:[%s5756_s3 + $0x20] sm:$0xff]   ;;  %v1785_v31 = vld [vmem:[#allocation2 + $0xeb] ss:$2 sm:$0x3f]  ;;  %v1214_v63 = vrot.slane %v1212_v46, 5 }
 0x13d   :  { %1205 = vrot.lane.b32.xlu0 %v1204_v41, %s4492_s2  ;;  %v4397_v54 = vpop.eup %4396  ;;  %v1155_v40 = vld [vmem:[#allocation2 + $0x9c] ss:$2 sm:$0x7f]  ;;  %858 = vst.msk [vmem:[#allocation3 + $0x10] sm:$0x80] %vm857_vm6, %v855_v51  ;;  %v1787_v9 = vrot.slane %v1785_v31, 1 }
 0x13e   :  { %v4399_v13 = vpop.eup %4398  ;;  %838 = vst.msk [vmem:[#allocation2 + $0x108] sm:$0xff] %vm46_vm3, %v795_v6  ;;  %v800_v23 = vmul.f32 %v4397_v54, %v4881_v26  ;;  %1258 = vrot.lane.b32.xlu1 %v1257_v7, %s4497_s24  ;;  %1956 = vmatpush1.bf16.msra.mxu1 %v4160_v25  ;;  %v862_v60 = vld [vmem:[#allocation2 + $0x42] ss:$2 sm:$0x3f]  ;;  %v1157_v4 = vrot.slane %v1155_v40, 6 }
 0x13f   :  { %v717_v32 = vadd.f32 1.0, %v4399_v13  ;;  %1957 = vmatprep.subr.bf16.mxu1 %v4499_v53  ;;  %860 = vst.msk [vmem:[#allocation3 + $0x20] sm:$0x1f] %vm859_vm7, %v855_v51  ;;  %v864_v61 = vrot.slane %v862_v60, 2  ;;  %1790 = vst.msk [vmem:[#allocation3 + $0x88] sm:$0x1f] %vm859_vm7, %v1787_v9 }
 0x140   :  { %v4401_v15 = vpop.eup %4400  ;;  %843 = vst.msk [vmem:[#allocation2 + $0x130] sm:$0xff] %vm46_vm3, %v800_v23  ;;  %v1332_v1 = vld [vmem:[#allocation2 + $0x8f] ss:$2 sm:$0x7f] }
 0x141   :  { %v798_v17 = vmul.f32 %v4401_v15, %v4892_v3  ;;  %1268 = vrot.lane.b32.xlu0 %v1267_v14, %s4497_s24  ;;  %4410 = vrcp.f32 %v717_v32  ;;  %v4161_v3 = vld [vmem:[%s5756_s3 + $0x18] sm:$0xff]   ;;  %867 = vst.msk [vmem:[#allocation3 + $0x20] sm:$0xc0] %vm866_vm8, %v864_v61  ;;  %v1573_v5 = vld [vmem:[#allocation2 + $0xa9] ss:$2 sm:$0x7f] }
 0x142   :  { %v4403_v26 = vpop.eup %4402  ;;  %1315 = vrot.lane.b32.xlu1 %v1314_v18, %s4494_s21  ;;  %1958 = vmatpush1.bf16.msra.mxu1 %v4161_v3  ;;  %869 = vst.msk [vmem:[#allocation3 + $0x30] sm:$0xf] %vm868_vm9, %v864_v61  ;;  %v871_v0 = vld [vmem:[#allocation2 + $0x5c] ss:$2 sm:$0x3f]  ;;  %v1334_v6 = vrot.slane %v1332_v1, 5 }
 0x143   :  { %v4405_v19 = vpop.eup %4404  ;;  %841 = vst.msk [vmem:[#allocation2 + $0x120] sm:$0xff] %vm46_vm3, %v798_v17  ;;  %v801_v52 = vmul.f32 %v4403_v26, %v4895_v48  ;;  %v1012_v48 = vld [vmem:[#allocation2 + $0x90] ss:$2 sm:$0x3f]  ;;  %1959 = vmatprep.subr.bf16.mxu1 %v4499_v53  ;;  %v873_v7 = vrot.slane %v871_v0, 3  ;;  %v1575_v23 = vrot.slane %v1573_v5, 7 }
 0x144   :  { %v799_v44 = vmul.f32 %v4405_v19, %v4903_v10  ;;  %v1004_v10 = vrot.slane %v1002_v38, 5  ;;  %v1014_v59 = vrot.slane %v1012_v48, 6  ;;  %1789 = vst.msk [vmem:[#allocation3 + $0x78] sm:$0x80] %vm857_vm6, %v1787_v9 }
 0x145   :  { %844 = vst.msk [vmem:[#allocation2 + $0x138] sm:$0xff] %vm46_vm3, %v801_v52  ;;  %1325 = vrot.lane.b32.xlu0 %v1324_v21, %s4494_s21  ;;  %v1791_v8 = vld [vmem:[#allocation2 + $0x105] ss:$2 sm:$0x3f] }
 0x146   :  { %842 = vst.msk [vmem:[#allocation2 + $0x128] sm:$0xff] %vm46_vm3, %v799_v44  ;;  %944 = vrot.lane.b32.xlu1 %v943_v34, %s4496_s23  ;;  %1960 = vmatpush1.bf16.msra.mxu1 %v4162_v57  ;;  %v1793_v41 = vrot.slane %v1791_v8, 2  ;;  %v1356_v54 = vld [vmem:[#allocation2 + $0x5c] ss:$2 sm:$0x3f] }
 0x147   :  { %v4407_v24 = vpop.eup %4406  ;;  %1961 = vmatprep.subr.bf16.mxu1 %v4499_v53  ;;  %v1358_v58 = vrot.slane %v1356_v54, 3  ;;  %v1362_v13 = vld [vmem:[#allocation2 + $0x76] ss:$2 sm:$0x3f]  ;;  %876 = vst.msk [vmem:[#allocation3 + $0x30] sm:$0xe0] %vm875_vm10, %v873_v7 }
 0x148   :  { %v804_v28 = vmul.f32 %v4407_v24, %v4918_v39  ;;  %v1277_v39 = vrot.slane %v1275_v30, 4  ;;  %1795 = vst.msk [vmem:[#allocation3 + $0x88] sm:$0xc0] %vm866_vm8, %v1793_v41  ;;  %v1364_v14 = vrot.slane %v1362_v13, 4 }
 0x149   :  { %v4409_v62 = vpop.eup %4408  ;;  %1005 = vrot.lane.b32.xlu0 %v1004_v10, %s4495_s22  ;;  %1796 = vst.msk [vmem:[#allocation3 + $0x98] sm:$0xf] %vm868_vm9, %v1793_v41  ;;  %v1633_v18 = vld [vmem:[#allocation2 + $0xaa] ss:$2 sm:$0x3f] }
 0x14a   :  { %847 = vst.msk [vmem:[#allocation2 + $0x150] sm:$0x3] %vm71_vm4, %v804_v28  ;;  %v802_v35 = vmul.f32 %v4409_v62, %v4921_v43  ;;  %1015 = vrot.lane.b32.xlu1 %v1014_v59, %s4495_s22  ;;  %v1073_v43 = vrot.slane %v1071_v36, 4  ;;  %1962 = vmatpush1.bf16.msra.mxu1 %v4163_v12  ;;  %1367 = vst.msk [vmem:[#allocation3 + $0x48] sm:$0x3] %vm71_vm4, %v1364_v14  ;;  %v1635_v19 = vrot.slane %v1633_v18, 7 }
 0x14b   :  { %1963 = vmatprep.subr.bf16.mxu1 %v4499_v53  ;;  %878 = vst.msk [vmem:[#allocation3 + $0x40] sm:$0x7] %vm877_vm11, %v873_v7  ;;  %1361 = vst.msk [vmem:[#allocation3 + $0x38] sm:$0x7] %vm877_vm11, %v1358_v58 }
 0x14c   :  { %845 = vst.msk [vmem:[#allocation2 + $0x140] sm:$0xff] %vm46_vm3, %v802_v35  ;;  %v1413_v26 = vld [vmem:[#allocation2 + $0xb6] ss:$2 sm:$0x7f] }
 0x14d   :  { %1278 = vrot.lane.b32.xlu0 %v1277_v39, %s4497_s24  ;;  %v1797_v15 = vld [vmem:[#allocation2 + $0x11f] ss:$2 sm:$0x3f]  ;;  %1360 = vst.msk [vmem:[#allocation3 + $0x28] sm:$0xe0] %vm875_vm10, %v1358_v58 }
 0x14e   :  { %v4411_v45 = vpop.eup %4410  ;;  %955 = vrot.lane.b32.xlu1 %v954_v27, %s4496_s23  ;;  %1964 = vmatpush1.bf16.msra.mxu1 %v4164_v20  ;;  %v1799_v16 = vrot.slane %v1797_v15, 3  ;;  %1366 = vst.msk [vmem:[#allocation3 + $0x38] sm:$0xf0] %vm884_vm12, %v1364_v14  ;;  %v1687_v29 = vld [vmem:[#allocation2 + $0xb7] ss:$2 sm:$0x3f] }
 0x14f   :  { %v803_v47 = vmul.f32 %v4411_v45, %v4937_v11  ;;  %v1224_v11 = vrot.slane %v1222_v50, 6  ;;  %1979 = vmatprep.subr.bf16.mxu1 %v4499_v53  ;;  %v1513_v53 = vld [vmem:[#allocation2 + $0xaa] ss:$2 sm:$0x3f]  ;;  %v1689_v52 = vrot.slane %v1687_v29, 6 }
 0x150   :  { %v1515_v25 = vrot.slane %v1513_v53, 6  ;;  %1801 = vst.msk [vmem:[#allocation3 + $0x98] sm:$0xe0] %vm875_vm10, %v1799_v16  ;;  %v1732_v21 = vld [vmem:[#allocation2 + $0xb6] ss:$2 sm:$0x7f] }
 0x151   :  { %1074 = vrot.lane.b32.xlu0 %v1073_v43, %s4498_s25  ;;  %846 = vst.msk [vmem:[#allocation2 + $0x148] sm:$0xff] %vm46_vm3, %v803_v47  ;;  %v1465_v44 = vld [vmem:[#allocation2 + $0xb7] ss:$2 sm:$0x3f]  ;;  %v1734_v38 = vrot.slane %v1732_v21, 7 }
 0x152   :  { %1085 = vrot.lane.b32.xlu1 %v1084_v2, %s4498_s25  ;;  %1980 = vmatpush2.bf16.msra.mxu1 %v4165_v55  ;;  %1802 = vst.msk [vmem:[#allocation3 + $0xa8] sm:$0x7] %vm877_vm11, %v1799_v16  ;;  %v1421_v3 = vld [vmem:[#allocation2 + $0xd0] ss:$2 sm:$0x7f] }
 0x153   :  { %v1803_v32 = vld [vmem:[#allocation2 + $0x139] ss:$2 sm:$0x3f]  ;;  %v1740_v34 = vld [vmem:[#allocation2 + $0xd0] ss:$2 sm:$0x7f] }
 0x154   :  { %v1805_v17 = vrot.slane %v1803_v32, 4  ;;  %v1472_v48 = vld [vmem:[#allocation2 + $0xd1] ss:$2 sm:$0x3f]  ;;  %v1423_v28 = vrot.slane %v1421_v3, 1 }
 0x155   :  { %1147 = vrot.lane.b32.xlu0 %v1146_v33, %s4493_s20  ;;  %v880_v22 = vld [vmem:[#allocation2 + $0x76] ss:$2 sm:$0x3f]  ;;  %v1375_v59 = vld [vmem:[#allocation2 + $0xb7] ss:$2 sm:$0x3f] }
 0x156   :  { %1225 = vrot.lane.b32.xlu1 %v1224_v11, %s4492_s2  ;;  %1807 = vst.msk [vmem:[#allocation3 + $0xa8] sm:$0xf0] %vm884_vm12, %v1805_v17  ;;  %v882_v24 = vrot.slane %v880_v22, 4  ;;  %v888_v10 = vld [vmem:[#allocation2 + $0x90] ss:$2 sm:$0x3f] }
 0x157   :  { %1808 = vst.msk [vmem:[#allocation3 + $0xb8] sm:$0x3] %vm71_vm4, %v1805_v17  ;;  %v890_v30 = vrot.slane %v888_v10, 5  ;;  %v1368_v57 = vld [vmem:[#allocation2 + $0x90] ss:$2 sm:$0x3f] }
 0x158   :  { %885 = vst.msk [vmem:[#allocation3 + $0x40] sm:$0xf0] %vm884_vm12, %v882_v24  ;;  %v1370_v62 = vrot.slane %v1368_v57, 5  ;;  %v1474_v35 = vrot.slane %v1472_v48, 1  ;;  %v1377_v42 = vrot.slane %v1375_v59, 7 }
 0x159   :  { %1215 = vrot.lane.b32.xlu0 %v1214_v63, %s4492_s2  ;;  %886 = vst.msk [vmem:[#allocation3 + $0x50] sm:$0x3] %vm71_vm4, %v882_v24  ;;  %v1778_v39 = vld [vmem:[#allocation2 + $0xb7] ss:$2 sm:$0x3f] }
 0x15a   :  { %1158 = vrot.lane.b32.xlu1 %v1157_v4, %s4493_s20  ;;  %893 = vst.msk [vmem:[#allocation3 + $0x50] sm:$0xf8] %vm892_vm13, %v890_v30  ;;  %v1641_v36 = vld [vmem:[#allocation2 + $0xc4] ss:$2 sm:$0x3f]  ;;  %v1780_v27 = vrot.slane %v1778_v39, 7 }
 0x15b   :  { %895 = vst.msk [vmem:[#allocation3 + $0x60] sm:$0x1] %vm894_vm14, %v890_v30  ;;  %v1522_v12 = vld [vmem:[#allocation2 + $0xc4] ss:$2 sm:$0x3f] }
 0x15c   :  { %1372 = vst.msk [vmem:[#allocation3 + $0x48] sm:$0xf8] %vm892_vm13, %v1370_v62  ;;  %v1382_v37 = vld [vmem:[#allocation2 + $0xd1] ss:$2 sm:$0x3f]  ;;  %v1524_v11 = vrot.slane %v1522_v12, 7 }
 0x15d   :  { %1335 = vrot.lane.b32.xlu0 %v1334_v6, %s4494_s21  ;;  %1373 = vst.msk [vmem:[#allocation3 + $0x58] sm:$0x1] %vm894_vm14, %v1370_v62  ;;  %v1385_v45 = vld [vmem:[#allocation2 + $0xeb] ss:$2 sm:$0x3f]  ;;  %vm5767_vm13 = vcmask 782976  }
 0x15e   :  { %1576 = vrot.lane.b32.xlu1 %v1575_v23, %s4493_s20  ;;  %1380 = vst.msk [vmem:[#allocation3 + $0x70] sm:$0x7e] %vm1379_vm15, %v1377_v42  ;;  %v1392_v43 = vld [vmem:[#allocation2 + $0x105] ss:$2 sm:$0x3f]  ;;  %v1387_v56 = vrot.slane %v1385_v45, 1 }
 0x15f   :  { %1383 = vst.msk [vmem:[#allocation3 + $0x80] sm:$0x3f] %vm850_vm5, %v1382_v37  ;;  %v1582_v47 = vld [vmem:[#allocation2 + $0xc3] ss:$2 sm:$0x7f]  ;;  %v1394_v20 = vrot.slane %v1392_v43, 2 }
 0x160   :  { %1782 = vst.msk [vmem:[#allocation3 + $0x68] sm:$0x7e] %vm1379_vm15, %v1780_v27  ;;  %v1399_v2 = vld [vmem:[#allocation2 + $0x11f] ss:$2 sm:$0x3f]  ;;  %vm5780_vm5 = vcmask 522625  }
 0x161   :  { %1516 = vrot.lane.b32.xlu0 %v1515_v25, %s4498_s25  ;;  %v1401_v50 = vrot.slane %v1399_v2, 3  ;;  %v1406_v49 = vld [vmem:[#allocation2 + $0x139] ss:$2 sm:$0x3f]  ;;  %1389 = vst.msk [vmem:[#allocation3 + $0x80] sm:$0x80] %vm857_vm6, %v1387_v56 }
 0x162   :  { %1415 = vrot.lane.b32.xlu1 %v1413_v26, %s4496_s23  ;;  %v1695_v33 = vld [vmem:[#allocation2 + $0xd1] ss:$2 sm:$0x3f]  ;;  %1390 = vst.msk [vmem:[#allocation3 + $0x90] sm:$0x1f] %vm859_vm7, %v1387_v56  ;;  %v1408_v51 = vrot.slane %v1406_v49, 4 }
 0x163   :  { %1396 = vst.msk [vmem:[#allocation3 + $0x90] sm:$0xc0] %vm866_vm8, %v1394_v20  ;;  %v1697_v40 = vrot.slane %v1695_v33, 7  ;;  %v1702_v60 = vld [vmem:[#allocation2 + $0xeb] ss:$2 sm:$0x3f] }
 0x164   :  { %1397 = vst.msk [vmem:[#allocation3 + $0xa0] sm:$0xf] %vm868_vm9, %v1394_v20  ;;  %v1589_v31 = vld [vmem:[#allocation2 + $0xdd] ss:$2 sm:$0x7f]  ;;  %vm5778_vm6 = vcmask 653824  }
 0x165   :  { %1636 = vrot.lane.b32.xlu0 %v1635_v19, %s4492_s2  ;;  %1403 = vst.msk [vmem:[#allocation3 + $0xa0] sm:$0xe0] %vm875_vm10, %v1401_v50  ;;  %v1530_v9 = vld [vmem:[#allocation2 + $0xde] ss:$2 sm:$0x3f]  ;;  %v1591_v1 = vrot.slane %v1589_v31, 1 }
 0x166   :  { %1690 = vrot.lane.b32.xlu1 %v1689_v52, %s4497_s24  ;;  %1404 = vst.msk [vmem:[#allocation3 + $0xb0] sm:$0x7] %vm877_vm11, %v1401_v50  ;;  %v1647_v8 = vld [vmem:[#allocation2 + $0xde] ss:$2 sm:$0x3f]  ;;  %vm5771_vm7 = vcmask 521600  }
 0x167   :  { %1410 = vst.msk [vmem:[#allocation3 + $0xb0] sm:$0xf0] %vm884_vm12, %v1408_v51  ;;  %v1746_v4 = vld [vmem:[#allocation2 + $0xea] ss:$2 sm:$0x7f]  ;;  %v1649_v5 = vrot.slane %v1647_v8, 1 }
 0x168   :  { %1411 = vst.msk [vmem:[#allocation3 + $0xc0] sm:$0x3] %vm71_vm4, %v1408_v51  ;;  %vm968_vm4 = vcmask 392455   ;;  %v1430_v53 = vld [vmem:[#allocation2 + $0xea] ss:$2 sm:$0x7f] }
 0x169   :  { %1467 = vrot.lane.b32.xlu0 %v1465_v44, %s4495_s22  ;;  %v1748_v6 = vrot.slane %v1746_v4, 1  ;;  %v1537_v7 = vld [vmem:[#allocation2 + $0xf8] ss:$2 sm:$0x3f]  ;;  %vm5777_vm8 = vcmask 784000   ;;  %v1432_v58 = vrot.slane %v1430_v53, 2 }
 0x16a   :  { %1735 = vrot.lane.b32.xlu1 %v1734_v38, %s4494_s21  ;;  %vm5774_vm9 = vcmask 916225   ;;  %v1480_v13 = vld [vmem:[#allocation2 + $0xeb] ss:$2 sm:$0x3f]  ;;  %vm5772_vm10 = vcmask 1047424   ;;  %v1539_v14 = vrot.slane %v1537_v7, 1 }
 0x16b   :  { %vm5770_vm11 = vcmask 654855   ;;  %vm5769_vm12 = vcmask 652800   ;;  %v1598_v15 = vld [vmem:[#allocation2 + $0xf7] ss:$2 sm:$0x7f]  ;;  %v1482_v32 = vrot.slane %v1480_v13, 2 }
 0x16c   :  { %vm5768_vm14 = vcmask 786055   ;;  %v1546_v25 = vld [vmem:[#allocation2 + $0x112] ss:$2 sm:$0x3f]  ;;  %v1600_v18 = vrot.slane %v1598_v15, 2  ;;  %vm5773_vm15 = vcmask 1048455  }
 0x16d   :  { %1742 = vrot.lane.b32.xlu0 %v1740_v34, %s4494_s21  ;;  %v1655_v26 = vld [vmem:[#allocation2 + $0xf8] ss:$2 sm:$0x3f]  ;;  %v1548_v19 = vrot.slane %v1546_v25, 2 }
 0x16e   :  { %1424 = vrot.lane.b32.xlu1 %v1423_v28, %s4496_s23  ;;  %v1607_v52 = vld [vmem:[#allocation2 + $0x111] ss:$2 sm:$0x7f]  ;;  %v1657_v44 = vrot.slane %v1655_v26, 2  ;;  %v1814_v4 = vld [vmem:[#allocation3 + $0x28] sm:$0xff] }
 0x16f   :  { %v1439_v38 = vld [vmem:[#allocation2 + $0x104] ss:$2 sm:$0x7f]  ;;  %v1609_v34 = vrot.slane %v1607_v52, 3 }
 0x170   :  { %v1663_v48 = vld [vmem:[#allocation2 + $0x112] ss:$2 sm:$0x3f]  ;;  %v1441_v24 = vrot.slane %v1439_v38, 3 }
 0x171   :  { %1475 = vrot.lane.b32.xlu0 %v1474_v35, %s4495_s22  ;;  %v1488_v10 = vld [vmem:[#allocation2 + $0x105] ss:$2 sm:$0x3f]  ;;  %v1665_v30 = vrot.slane %v1663_v48, 3 }
 0x172   :  { %1643 = vrot.lane.b32.xlu1 %v1641_v36, %s4492_s2  ;;  %v1708_v57 = vld [vmem:[#allocation2 + $0x105] ss:$2 sm:$0x3f]  ;;  %v1490_v59 = vrot.slane %v1488_v10, 3 }
 0x173   :  { %v1716_v35 = vld [vmem:[#allocation2 + $0x11f] ss:$2 sm:$0x3f]  ;;  %v1710_v39 = vrot.slane %v1708_v57, 1 }
 0x174   :  { %v1754_v36 = vld [vmem:[#allocation2 + $0x104] ss:$2 sm:$0x7f]  ;;  %v1718_v27 = vrot.slane %v1716_v35, 2 }
 0x175   :  { %1584 = vrot.lane.b32.xlu0 %v1582_v47, %s4493_s20  ;;  %v1762_v37 = vld [vmem:[#allocation2 + $0x11e] ss:$2 sm:$0x7f]  ;;  %v1756_v43 = vrot.slane %v1754_v36, 2 }
 0x176   :  { %v1168_v46 = vpop.permute.xlu0 %1167  ;;  %1525 = vrot.lane.b32.xlu1 %v1524_v11, %s4498_s25  ;;  %v1448_v47 = vld [vmem:[#allocation2 + $0x11e] ss:$2 sm:$0x7f]  ;;  %v1764_v20 = vrot.slane %v1762_v37, 3 }
 0x177   :  { %v1095_v55 = vpop.permute.xlu1 %1094  ;;  %v1496_v2 = vld [vmem:[#allocation2 + $0x11f] ss:$2 sm:$0x3f]  ;;  %v1450_v49 = vrot.slane %v1448_v47, 4 }
 0x178   :  { %v1457_v33 = vld [vmem:[#allocation2 + $0x138] ss:$2 sm:$0x7f]  ;;  %v1498_v11 = vrot.slane %v1496_v2, 4  ;;  %v1824_v2 = vld [vmem:[#allocation3 + $0x78] sm:$0xff] }
 0x179   :  { %1698 = vrot.lane.b32.xlu0 %v1697_v40, %s4497_s24  ;;  %v1459_v40 = vrot.slane %v1457_v33, 5  ;;  %v1818_v10 = vld [vmem:[#allocation3 + $0x48] sm:$0xff] }
 0x17a   :  { %v1288_v61 = vpop.permute.xlu0 %1287  ;;  %1704 = vrot.lane.b32.xlu1 %v1702_v60, %s4497_s24  ;;  %v1504_v60 = vld [vmem:[#allocation2 + $0x139] ss:$2 sm:$0x3f] }
 0x17b   :  { %v1506_v53 = vrot.slane %v1504_v60, 5 }
 0x17c   :  { %v966_v63 = vpop.permute.xlu1 %965 }
 0x17d   :  { %1532 = vrot.lane.b32.xlu0 %v1530_v9, %s4498_s25 }
 0x17e   :  { %v901_v41 = vpop.permute.xlu0 %900  ;;  %1592 = vrot.lane.b32.xlu1 %v1591_v1, %s4493_s20 }
 0x17f   :  { %904 = vst.msk [vmem:[#allocation3] sm:$0x80] %vm903_vm0, %v901_v41 }
 0x180   :  { %906 = vst.msk [vmem:[#allocation3 + $0x10] sm:$0x3f] %vm905_vm1, %v901_v41  ;;  %v1234_v0 = vpop.permute.xlu1 %1233  ;;  %v1616_v41 = vld [vmem:[#allocation2 + $0x12b] ss:$2 sm:$0x7f] }
 0x181   :  { %971 = vst.msk [vmem:[#allocation3 + $0x10] sm:$0x1f] %vm5782_vm2, %v966_v63  ;;  %1650 = vrot.lane.b32.xlu0 %v1649_v5, %s4492_s2  ;;  %vm5792_vm2 = vcmask 257152  }
 0x182   :  { %969 = vst.msk [vmem:[#allocation3] sm:$0x80] %vm968_vm4, %v966_v63  ;;  %1749 = vrot.lane.b32.xlu1 %v1748_v6, %s4494_s21  ;;  %v1564_v6 = vld [vmem:[#allocation2 + $0x146] ss:$2 sm:$0x3f] }
 0x183   :  { %v1025_v54 = vpop.permute.xlu0 %1024 }
 0x184   :  { %1028 = vst.msk [vmem:[#allocation3] sm:$0x7e] %vm5780_vm5, %v1025_v54  ;;  %v1033_v23 = vpop.permute.xlu1 %1032  ;;  %vm5788_vm5 = vcmask 917255   ;;  %v1618_v54 = vrot.slane %v1616_v41, 4 }
 0x185   :  { %1098 = vst.msk [vmem:[#allocation3] sm:$0x7f] %vm5778_vm6, %v1095_v55  ;;  %1433 = vrot.lane.b32.xlu0 %v1432_v58, %s4496_s23  ;;  %vm5787_vm6 = vcmask 781952   ;;  %v1671_v58 = vld [vmem:[#allocation2 + $0x12c] ss:$2 sm:$0x3f] }
 0x186   :  { %1036 = vst.msk [vmem:[#allocation3 + $0x10] sm:$0x3f] %vm5771_vm7, %v1033_v23  ;;  %1540 = vrot.lane.b32.xlu1 %v1539_v14, %s4498_s25  ;;  %vm5784_vm7 = vcmask 392454   ;;  %v1566_v23 = vrot.slane %v1564_v6, 4 }
 0x187   :  { %1171 = vst.msk [vmem:[#allocation3] sm:$0x3f] %vm5777_vm8, %v1168_v46  ;;  %v1104_v16 = vpop.permute.xlu0 %1103  ;;  %vm5825_vm8 = vcmask 786054   ;;  %v1555_v46 = vld [vmem:[#allocation2 + $0x12c] ss:$2 sm:$0x3f] }
 0x188   :  { %1237 = vst.msk [vmem:[#allocation3] sm:$0x7e] %vm5774_vm9, %v1234_v0  ;;  %v1176_v17 = vpop.permute.xlu1 %1175  ;;  %vm5786_vm9 = vcmask 520576   ;;  %v1557_v63 = vrot.slane %v1555_v46, 3 }
 0x189   :  { %1291 = vst.msk [vmem:[#allocation3] sm:$0x7f] %vm5772_vm10, %v1288_v61  ;;  %1483 = vrot.lane.b32.xlu0 %v1482_v32, %s4495_s22  ;;  %vm5783_vm10 = vcmask 388352   ;;  %v1816_v61 = vld [vmem:[#allocation3 + $0x38] sm:$0xff] }
 0x18a   :  { %1107 = vst.msk [vmem:[#allocation3] sm:$0x80] %vm5770_vm11, %v1104_v16  ;;  %1601 = vrot.lane.b32.xlu1 %v1600_v18, %s4493_s20  ;;  %vm5781_vm11 = vcmask 258176   ;;  %v1838_v0 = vpack.c.bf16 %v1816_v61, %v1814_v4  ;;  %v1625_v14 = vld [vmem:[#allocation2 + $0x145] ss:$2 sm:$0x7f] }
 0x18b   :  { %1109 = vst.msk [vmem:[#allocation3 + $0x10] sm:$0x3f] %vm5769_vm12, %v1104_v16  ;;  %v1042_v29 = vpop.permute.xlu0 %1041  ;;  %vm5779_vm12 = vcmask 261254   ;;  %v1673_v16 = vrot.slane %v1671_v58, 4 }
 0x18c   :  { %1181 = vst.msk [vmem:[#allocation3 + $0x10] sm:$0x1f] %vm5767_vm13, %v1176_v17  ;;  %v976_v21 = vpop.permute.xlu1 %975  ;;  %vm5775_vm13 = vcmask 915200   ;;  %v1724_v32 = vld [vmem:[#allocation2 + $0x139] ss:$2 sm:$0x3f] }
 0x18d   :  { %1179 = vst.msk [vmem:[#allocation3] sm:$0x80] %vm5768_vm14, %v1176_v17  ;;  %1549 = vrot.lane.b32.xlu0 %v1548_v19, %s4498_s25  ;;  %vm5776_vm14 = vcmask 1046400   ;;  %v1627_v17 = vrot.slane %v1625_v14, 5 }
 0x18e   :  { %1658 = vrot.lane.b32.xlu1 %v1657_v44, %s4492_s2  ;;  %v1679_v18 = vld [vmem:[#allocation2 + $0x146] ss:$2 sm:$0x3f]  ;;  %v1770_v19 = vld [vmem:[#allocation2 + $0x138] ss:$2 sm:$0x7f] }
 0x18f   :  { %v1186_v3 = vpop.permute.xlu0 %1185  ;;  %v1772_v38 = vrot.slane %v1770_v19, 4 }
 0x190   :  { %v1296_v22 = vpop.permute.xlu1 %1295 }
 0x191   :  { %1610 = vrot.lane.b32.xlu0 %v1609_v34, %s4493_s20  ;;  %1299 = vst.msk [vmem:[#allocation3] sm:$0x80] %vm5773_vm15, %v1296_v22  ;;  %vm5827_vm15 = vcmask 523655  }
 0x192   :  { %1442 = vrot.lane.b32.xlu1 %v1441_v24, %s4496_s23  ;;  %v4488_v24 = vld [vmem:[#allocation5] sm:$0xff] }
 0x193   :  { %v1241_v28 = vpop.permute.xlu0 %1240 }
 0x194   :  { %1244 = vst.msk [vmem:[#allocation3 + $0x10] sm:$0x3f] %vm5775_vm13, %v1241_v28  ;;  %v1115_v62 = vpop.permute.xlu1 %1114  ;;  %vm5785_vm13 = vcmask 654854   ;;  %v1820_v28 = vld [vmem:[#allocation3 + $0x58] sm:$0xff] }
 0x195   :  { %1301 = vst.msk [vmem:[#allocation3 + $0x10] sm:$0x3f] %vm5776_vm14, %v1296_v22  ;;  %1666 = vrot.lane.b32.xlu0 %v1665_v30, %s4492_s2  ;;  %vm5826_vm14 = vcmask 651776  }
 0x196   :  { %1491 = vrot.lane.b32.xlu1 %v1490_v59, %s4495_s22 }
 0x197   :  { %v912_v42 = vpop.permute.xlu0 %911 }
 0x198   :  { %915 = vst.msk [vmem:[#allocation3 + $0x10] sm:$0xc0] %vm5779_vm12, %v912_v42  ;;  %v1249_v12 = vpop.permute.xlu1 %1248  ;;  %vm5824_vm12 = vcmask 261253   ;;  %v1809_v9 = vld [vmem:[#allocation3] sm:$0xff] }
 0x199   :  { %917 = vst.msk [vmem:[#allocation3 + $0x20] sm:$0x1f] %vm5781_vm11, %v912_v42  ;;  %1711 = vrot.lane.b32.xlu0 %v1710_v39, %s4497_s24  ;;  %vm5789_vm11 = vcmask 914176   ;;  %v1840_v42 = vpack.c.bf16 %v1820_v28, %v1818_v10  ;;  %v1830_v10 = vld [vmem:[#allocation3 + $0xa8] sm:$0xff]  ;;  %v1832_v28 = vld [vmem:[#allocation3 + $0xb8] sm:$0xff] }
 0x19a   :  { %979 = vst.msk [vmem:[#allocation3 + $0x10] sm:$0xc0] %vm5784_vm7, %v976_v21  ;;  %1719 = vrot.lane.b32.xlu1 %v1718_v27, %s4497_s24  ;;  %vm5791_vm7 = vcmask 1045376  }
 0x19b   :  { %981 = vst.msk [vmem:[#allocation3 + $0x20] sm:$0xf] %vm5783_vm10, %v976_v21  ;;  %vm5790_vm10 = vcmask 1048454   ;;  %v1306_v45 = vpop.permute.xlu0 %1305  ;;  %v1681_v21 = vrot.slane %v1679_v18, 5 }
 0x19c   :  { %1045 = vst.msk [vmem:[#allocation3 + $0x10] sm:$0x80] %vm5827_vm15, %v1042_v29  ;;  %v923_v56 = vpop.permute.xlu1 %922  ;;  %vm1163_vm15 = vcmask 647680  }
 0x19d   :  { %1047 = vst.msk [vmem:[#allocation3 + $0x20] sm:$0x1f] %vm5786_vm9, %v1042_v29  ;;  %1757 = vrot.lane.b32.xlu0 %v1756_v43, %s4494_s21  ;;  %vm5793_vm9 = vcmask 256128   ;;  %v1726_v29 = vrot.slane %v1724_v32, 3 }
 0x19e   :  { %1118 = vst.msk [vmem:[#allocation3 + $0x10] sm:$0xc0] %vm5785_vm13, %v1115_v62  ;;  %vm5794_vm13 = vcmask 261252   ;;  %1765 = vrot.lane.b32.xlu1 %v1764_v20, %s4494_s21 }
 0x19f   :  { %1120 = vst.msk [vmem:[#allocation3 + $0x20] sm:$0x1f] %vm5826_vm14, %v1115_v62  ;;  %v934_v50 = vpop.permute.xlu0 %933  ;;  %vm1161_vm14 = vcmask 654850  }
 0x1a0   :  { %1189 = vst.msk [vmem:[#allocation3 + $0x10] sm:$0xc0] %vm5825_vm8, %v1186_v3  ;;  %v986_v51 = vpop.permute.xlu1 %985  ;;  %vm1283_vm8 = vcmask 911104  }
 0x1a1   :  { %1191 = vst.msk [vmem:[#allocation3 + $0x20] sm:$0xf] %vm5787_vm6, %v1186_v3  ;;  %vm5804_vm6 = vcmask 392453   ;;  %1451 = vrot.lane.b32.xlu0 %v1450_v49, %s4496_s23 }
 0x1a2   :  { %1252 = vst.msk [vmem:[#allocation3 + $0x10] sm:$0x80] %vm5788_vm5, %v1249_v12  ;;  %vm5800_vm5 = vcmask 387328   ;;  %1499 = vrot.lane.b32.xlu1 %v1498_v11, %s4495_s22  ;;  %v1822_v11 = vld [vmem:[#allocation3 + $0x68] sm:$0xff] }
 0x1a3   :  { %1254 = vst.msk [vmem:[#allocation3 + $0x20] sm:$0x1f] %vm5789_vm11, %v1249_v12  ;;  %vm5795_vm11 = vcmask 392452   ;;  %v996_v55 = vpop.permute.xlu0 %995 }
 0x1a4   :  { %926 = vst.msk [vmem:[#allocation3 + $0x20] sm:$0xe0] %vm5824_vm12, %v923_v56  ;;  %v1053_v31 = vpop.permute.xlu1 %1052  ;;  %vm5829_vm12 = vcmask 648704  }
 0x1a5   :  { %928 = vst.msk [vmem:[#allocation3 + $0x30] sm:$0xf] %vm5792_vm2, %v923_v56  ;;  %vm5797_vm2 = vcmask 519552   ;;  %1460 = vrot.lane.b32.xlu0 %v1459_v40, %s4496_s23 }
 0x1a6   :  { %1309 = vst.msk [vmem:[#allocation3 + $0x10] sm:$0xc0] %vm5790_vm10, %v1306_v45  ;;  %vm5796_vm10 = vcmask 386304   ;;  %1558 = vrot.lane.b32.xlu1 %v1557_v63, %s4498_s25 }
 0x1a7   :  { %1311 = vst.msk [vmem:[#allocation3 + $0x20] sm:$0x1f] %vm5791_vm7, %v1306_v45  ;;  %vm5798_vm7 = vcmask 523654   ;;  %v1064_v5 = vpop.permute.xlu0 %1063 }
 0x1a8   :  { %937 = vst.msk [vmem:[#allocation3 + $0x30] sm:$0xf0] %vm5794_vm13, %v934_v50  ;;  %vm5801_vm13 = vcmask 518528   ;;  %v1126_v7 = vpop.permute.xlu1 %1125 }
 0x1a9   :  { %939 = vst.msk [vmem:[#allocation3 + $0x40] sm:$0x7] %vm5793_vm9, %v934_v50  ;;  %vm5799_vm9 = vcmask 523653   ;;  %1507 = vrot.lane.b32.xlu0 %v1506_v53, %s4495_s22 }
 0x1aa   :  { %989 = vst.msk [vmem:[#allocation3 + $0x20] sm:$0xe0] %vm5804_vm6, %v986_v51  ;;  %1619 = vrot.lane.b32.xlu1 %v1618_v54, %s4493_s20  ;;  %vm5811_vm6 = vcmask 913152  }
 0x1ab   :  { %991 = vst.msk [vmem:[#allocation3 + $0x30] sm:$0x7] %vm5800_vm5, %v986_v51  ;;  %vm5807_vm5 = vcmask 780928   ;;  %v1137_v13 = vpop.permute.xlu0 %1136 }
 0x1ac   :  { %999 = vst.msk [vmem:[#allocation3 + $0x30] sm:$0xf0] %vm5795_vm11, %v996_v55  ;;  %vm5802_vm11 = vcmask 654853   ;;  %v1196_v15 = vpop.permute.xlu1 %1195 }
 0x1ad   :  { %1001 = vst.msk [vmem:[#allocation3 + $0x40] sm:$0x3] %vm5796_vm10, %v996_v55  ;;  %v1811_v8 = vld [vmem:[#allocation3 + $0x10] sm:$0xff]  ;;  %vm5803_vm10 = vcmask 650752   ;;  %1567 = vrot.lane.b32.xlu0 %v1566_v23, %s4498_s25  ;;  %v1842_v55 = vpack.c.bf16 %v1824_v2, %v1822_v11  ;;  %v1828_v23 = vld [vmem:[#allocation3 + $0x98] sm:$0xff] }
 0x1ae   :  { %1056 = vst.msk [vmem:[#allocation3 + $0x20] sm:$0xc0] %vm5798_vm7, %v1053_v31  ;;  %v1835_v1 = vpack.c.bf16 %v1811_v8, %v1809_v9  ;;  %vm5805_vm7 = vcmask 649728   ;;  %1674 = vrot.lane.b32.xlu1 %v1673_v16, %s4492_s2 }
 0x1af   :  { %1058 = vst.msk [vmem:[#allocation3 + $0x30] sm:$0xf] %vm5797_vm2, %v1053_v31  ;;  %vm5806_vm2 = vcmask 654852   ;;  %v1206_v25 = vpop.permute.xlu0 %1205 }
 0x1b0   :  { %1067 = vst.msk [vmem:[#allocation3 + $0x30] sm:$0xe0] %vm5799_vm9, %v1064_v5  ;;  %1982 = vmatmul.mubr.bf16.vlgmr.msra.gmra.mxu1 %v1835_v1  ;;  %vm5808_vm9 = vcmask 786053   ;;  %v1259_v26 = vpop.permute.xlu1 %1258 }
 0x1b1   :  { %1069 = vst.msk [vmem:[#allocation3 + $0x40] sm:$0x7] %vm5801_vm13, %v1064_v5  ;;  %3816 = vmatprep.mubr.msk.bf16.mxu1 %vm46_vm3, %v1838_v0  ;;  %vm5810_vm13 = vcmask 786052   ;;  %1628 = vrot.lane.b32.xlu0 %v1627_v17, %s4493_s20 }
 0x1b2   :  { %1129 = vst.msk [vmem:[#allocation3 + $0x20] sm:$0xe0] %vm5802_vm11, %v1126_v7  ;;  %vm5809_vm11 = vcmask 779904   ;;  %1727 = vrot.lane.b32.xlu1 %v1726_v29, %s4497_s24 }
 0x1b3   :  { %1131 = vst.msk [vmem:[#allocation3 + $0x30] sm:$0xf] %vm5803_vm10, %v1126_v7  ;;  %vm5812_vm10 = vcmask 917254   ;;  %v1269_v52 = vpop.permute.xlu0 %1268 }
 0x1b4   :  { %1140 = vst.msk [vmem:[#allocation3 + $0x30] sm:$0xf0] %vm5806_vm2, %v1137_v13  ;;  %vm5813_vm2 = vcmask 912128   ;;  %v1316_v44 = vpop.permute.xlu1 %1315 }
 0x1b5   :  { %1142 = vst.msk [vmem:[#allocation3 + $0x40] sm:$0x7] %vm5805_vm7, %v1137_v13  ;;  %vm5814_vm7 = vcmask 917253   ;;  %1682 = vrot.lane.b32.xlu0 %v1681_v21, %s4492_s2  ;;  %v1826_v13 = vld [vmem:[#allocation3 + $0x88] sm:$0xff] }
 0x1b6   :  { %1199 = vst.msk [vmem:[#allocation3 + $0x20] sm:$0xe0] %vm5808_vm9, %v1196_v15  ;;  %vm5815_vm9 = vcmask 1044352   ;;  %1773 = vrot.lane.b32.xlu1 %v1772_v38, %s4494_s21  ;;  %v1844_v17 = vpack.c.bf16 %v1828_v23, %v1826_v13 }
 0x1b7   :  { %1201 = vst.msk [vmem:[#allocation3 + $0x30] sm:$0x7] %vm5807_vm5, %v1196_v15  ;;  %vm5822_vm5 = vcmask 1048453   ;;  %v1326_v3 = vpop.permute.xlu0 %1325 }
 0x1b8   :  { %1209 = vst.msk [vmem:[#allocation3 + $0x30] sm:$0xf0] %vm5810_vm13, %v1206_v25  ;;  %vm5816_vm13 = vcmask 1043328   ;;  %v945_v34 = vpop.permute.xlu1 %944 }
 0x1b9   :  { %1211 = vst.msk [vmem:[#allocation3 + $0x40] sm:$0x3] %vm5809_vm11, %v1206_v25  ;;  %vm5817_vm11 = vcmask 1048452  }
 0x1ba   :  { %1262 = vst.msk [vmem:[#allocation3 + $0x20] sm:$0xc0] %vm5812_vm10, %v1259_v26  ;;  %vm5820_vm10 = vcmask 255104  }
 0x1bb   :  { %1264 = vst.msk [vmem:[#allocation3 + $0x30] sm:$0xf] %vm5811_vm6, %v1259_v26  ;;  %vm5821_vm6 = vcmask 261251   ;;  %v1006_v48 = vpop.permute.xlu0 %1005 }
 0x1bc   :  { %1272 = vst.msk [vmem:[#allocation3 + $0x30] sm:$0xe0] %vm5814_vm7, %v1269_v52  ;;  %vm5818_vm7 = vcmask 385280   ;;  %v1016_v22 = vpop.permute.xlu1 %1015 }
 0x1bd   :  { %1274 = vst.msk [vmem:[#allocation3 + $0x40] sm:$0x7] %vm5813_vm2, %v1269_v52  ;;  %vm5819_vm2 = vcmask 392451  }
 0x1be   :  { %1319 = vst.msk [vmem:[#allocation3 + $0x20] sm:$0xe0] %vm5822_vm5, %v1316_v44  ;;  %vm1090_vm5 = vcmask 516480  }
 0x1bf   :  { %1321 = vst.msk [vmem:[#allocation3 + $0x30] sm:$0xf] %vm5815_vm9, %v1316_v44  ;;  %vm5823_vm9 = vcmask 261120   ;;  %v1279_v30 = vpop.permute.xlu0 %1278 }
 0x1c0   :  { %1329 = vst.msk [vmem:[#allocation3 + $0x30] sm:$0xf0] %vm5817_vm11, %v1326_v3  ;;  %vm960_vm11 = vcmask 254080   ;;  %v956_v35 = vpop.permute.xlu1 %955 }
 0x1c1   :  { %1331 = vst.msk [vmem:[#allocation3 + $0x40] sm:$0x7] %vm5816_vm13, %v1326_v3  ;;  %vm958_vm13 = vcmask 261250  }
 0x1c2   :  { %948 = vst.msk [vmem:[#allocation3 + $0x40] sm:$0xf8] %vm5821_vm6, %v945_v34  ;;  %vm1088_vm6 = vcmask 523651  }
 0x1c3   :  { %950 = vst.msk [vmem:[#allocation3 + $0x50] sm:$0x3] %vm5820_vm10, %v945_v34  ;;  %vm5831_vm10 = vcmask 517504   ;;  %v1075_v39 = vpop.permute.xlu0 %1074 }
 0x1c4   :  { %1009 = vst.msk [vmem:[#allocation3 + $0x40] sm:$0xf8] %vm5819_vm2, %v1006_v48  ;;  %vm5828_vm2 = vcmask 523652   ;;  %v1086_v36 = vpop.permute.xlu1 %1085 }
 0x1c5   :  { %1011 = vst.msk [vmem:[#allocation3 + $0x50] sm:$0x1] %vm5818_vm7, %v1006_v48  ;;  %v1813_v57 = vld [vmem:[#allocation3 + $0x20] sm:$0xff]  ;;  %vm1018_vm7 = vcmask 392450  }
 0x1c6   :  { %76 = vst.msk [vmem:[#allocation5 + $0x10] sm:$0xff] %vm5823_vm9, %v4488_v24  ;;  %79 = vst.msk [vmem:[#allocation5 + $0x28] sm:$0xff] %vm5823_vm9, %v4488_v24 }
 0x1c7   :  { %82 = vst.msk [vmem:[#allocation5 + $0x40] sm:$0xff] %vm5823_vm9, %v4488_v24  ;;  %85 = vst.msk [vmem:[#allocation5 + $0x58] sm:$0xff] %vm5823_vm9, %v4488_v24  ;;  %v1815_v62 = vld [vmem:[#allocation3 + $0x30] sm:$0xff]  ;;  %vm5830_vm9 = vcmask 654851   ;;  %v1148_v12 = vpop.permute.xlu0 %1147 }
 0x1c8   :  { %v1837_v59 = vpack.c.bf16 %v1815_v62, %v1813_v57  ;;  %959 = vst.msk [vmem:[#allocation3 + $0x50] sm:$0xfc] %vm958_vm13, %v956_v35  ;;  %v1226_v27 = vpop.permute.xlu1 %1225  ;;  %vm1281_vm13 = vcmask 917252  }
 0x1c9   :  { %961 = vst.msk [vmem:[#allocation3 + $0x60] sm:$0x1] %vm960_vm11, %v956_v35  ;;  %vm5832_vm11 = vcmask 778880  }
 0x1ca   :  { %1990 = vmatmul.mubr.bf16.gmra.mxu1 %v1837_v59  ;;  %1019 = vst.msk [vmem:[#allocation3 + $0x50] sm:$0xfc] %vm1018_vm7, %v1016_v22  ;;  %vm1218_vm7 = vcmask 786051   ;;  %v1846_v59 = vpack.c.bf16 %v1832_v28, %v1830_v10 }
 0x1cb   :  { %3817 = vmatprep.mubr.msk.bf16.mxu1 %vm46_vm3, %v1840_v42  ;;  %1078 = vst.msk [vmem:[#allocation3 + $0x40] sm:$0xf0] %vm5828_vm2, %v1075_v39  ;;  %v1216_v37 = vpop.permute.xlu0 %1215  ;;  %vm1228_vm2 = vcmask 786050  }
 0x1cc   :  { %1080 = vst.msk [vmem:[#allocation3 + $0x50] sm:$0x3] %vm5831_vm10, %v1075_v39  ;;  %v1159_v45 = vpop.permute.xlu1 %1158  ;;  %vm1418_vm10 = vcmask 260224  }
 0x1cd   :  { %1089 = vst.msk [vmem:[#allocation3 + $0x50] sm:$0xf8] %vm1088_vm6, %v1086_v36  ;;  %vm1340_vm6 = vcmask 1042304  }
 0x1ce   :  { %1091 = vst.msk [vmem:[#allocation3 + $0x60] sm:$0x1] %vm1090_vm5, %v1086_v36  ;;  %vm1338_vm5 = vcmask 1048451  }
 0x1cf   :  { %1151 = vst.msk [vmem:[#allocation3 + $0x40] sm:$0xf8] %vm5830_vm9, %v1148_v12  ;;  %v1336_v43 = vpop.permute.xlu0 %1335  ;;  %vm1579_vm9 = vcmask 654849  }
 0x1d0   :  { %1153 = vst.msk [vmem:[#allocation3 + $0x50] sm:$0x3] %vm5829_vm12, %v1148_v12  ;;  %v1577_v47 = vpop.permute.xlu1 %1576  ;;  %vm1519_vm12 = vcmask 523650  }
 0x1d1   :  { %1219 = vst.msk [vmem:[#allocation3 + $0x40] sm:$0xf8] %vm1218_vm7, %v1216_v37 }
 0x1d2   :  { %1221 = vst.msk [vmem:[#allocation3 + $0x50] sm:$0x1] %vm5832_vm11, %v1216_v37  ;;  %vm1639_vm11 = vcmask 785025  }
 0x1d3   :  { %1282 = vst.msk [vmem:[#allocation3 + $0x40] sm:$0xf0] %vm1281_vm13, %v1279_v30  ;;  %v1517_v56 = vpop.permute.xlu0 %1516  ;;  %vm5841_vm13 = vcmask 652800  }
 0x1d4   :  { %1284 = vst.msk [vmem:[#allocation3 + $0x50] sm:$0x3] %vm1283_vm8, %v1279_v30  ;;  %v1416_v20 = vpop.permute.xlu1 %1415  ;;  %vm1693_vm8 = vcmask 917250  }
 0x1d5   :  { %1162 = vst.msk [vmem:[#allocation3 + $0x50] sm:$0xfc] %vm1161_vm14, %v1159_v45  ;;  %vm1738_vm14 = vcmask 1048449  }
 0x1d6   :  { %1164 = vst.msk [vmem:[#allocation3 + $0x60] sm:$0x1] %vm1163_vm15, %v1159_v45  ;;  %vm5836_vm15 = vcmask 784000  }
 0x1d7   :  { %1229 = vst.msk [vmem:[#allocation3 + $0x50] sm:$0xfc] %vm1228_vm2, %v1226_v27  ;;  %v1637_v50 = vpop.permute.xlu0 %1636  ;;  %vm1470_vm2 = vcmask 390400  }
 0x1d8   :  { %1339 = vst.msk [vmem:[#allocation3 + $0x40] sm:$0xf8] %vm1338_vm5, %v1336_v43  ;;  %v1691_v46 = vpop.permute.xlu1 %1690  ;;  %vm5842_vm5 = vcmask 786055  }
 0x1d9   :  { %1341 = vst.msk [vmem:[#allocation3 + $0x50] sm:$0x3] %vm1340_vm6, %v1336_v43  ;;  %vm5843_vm6 = vcmask 782976   ;;  %v1834_v43 = vld [vmem:[#allocation3 + $0xc8] sm:$0x3] }
 0x1da   :  { %1520 = vst.msk [vmem:[#allocation3 + $0x60] sm:$0xfc] %vm1519_vm12, %v1517_v56  ;;  %vm5835_vm12 = vcmask 653824  }
 0x1db   :  { %1580 = vst.msk [vmem:[#allocation3 + $0x60] sm:$0xfe] %vm1579_vm9, %v1577_v47  ;;  %v1468_v40 = vpop.permute.xlu0 %1467  ;;  %vm5833_vm9 = vcmask 389376  }
 0x1dc   :  { %1419 = vst.msk [vmem:[#allocation3 + $0x70] sm:$0x7f] %vm1418_vm10, %v1416_v20  ;;  %v1736_v60 = vpop.permute.xlu1 %1735  ;;  %vm5834_vm10 = vcmask 522625   ;;  %v1848_v20 = vpack.c.bf16 %v1834_v43, %v1834_v43 }
 0x1dd   :  { %1640 = vst.msk [vmem:[#allocation3 + $0x60] sm:$0x7e] %vm1639_vm11, %v1637_v50  ;;  %vm5837_vm11 = vcmask 916225  }
 0x1de   :  { %1694 = vst.msk [vmem:[#allocation3 + $0x60] sm:$0xfc] %vm1693_vm8, %v1691_v46  ;;  %vm5844_vm8 = vcmask 915200  }
 0x1df   :  { %v1817_v49 = vld [vmem:[#allocation3 + $0x40] sm:$0xff]  ;;  %1471 = vst.msk [vmem:[#allocation3 + $0x70] sm:$0x3f] %vm1470_vm2, %v1468_v40  ;;  %v1743_v61 = vpop.permute.xlu0 %1742  ;;  %vm5845_vm2 = vcmask 1048455  }
 0x1e0   :  { %v1819_v33 = vld [vmem:[#allocation3 + $0x50] sm:$0xff]  ;;  %1739 = vst.msk [vmem:[#allocation3 + $0x60] sm:$0xfe] %vm1738_vm14, %v1736_v60  ;;  %v1425_v31 = vpop.permute.xlu1 %1424  ;;  %vm5846_vm14 = vcmask 1046400  }
 0x1e1   :  { %v1839_v51 = vpack.c.bf16 %v1819_v33, %v1817_v49  ;;  %1427 = vst.msk [vmem:[#allocation3 + $0x70] sm:$0x80] %vm903_vm0, %v1425_v31  ;;  %vm5838_vm0 = vcmask 1047424   ;;  %v5265_v33 = vld [vmem:[%s5757_s4] ss:$0 sm:$0xff] }
 0x1e2   :  { %1428 = vst.msk [vmem:[#allocation3 + $0x80] sm:$0x3f] %vm905_vm1, %v1425_v31  ;;  %vm5839_vm1 = vcmask 521600  }
 0x1e3   :  { %1998 = vmatmul.mubr.bf16.gmra.mxu1 %v1839_v51  ;;  %v1476_v63 = vpop.permute.xlu0 %1475 }
 0x1e4   :  { %3818 = vmatprep.mubr.msk.bf16.mxu1 %vm46_vm3, %v1842_v55  ;;  %1478 = vst.msk [vmem:[#allocation3 + $0x70] sm:$0x80] %vm968_vm4, %v1476_v63  ;;  %v1644_v9 = vpop.permute.xlu1 %1643  ;;  %vm5840_vm4 = vcmask 654855  }
 0x1e5   :  { %1479 = vst.msk [vmem:[#allocation3 + $0x80] sm:$0x1f] %vm5833_vm9, %v1476_v63  ;;  %vm5847_vm9 = vcmask 261254  }
 0x1e7   :  { %v1585_v8 = vpop.permute.xlu0 %1584  ;;  %v1821_v15 = vld [vmem:[#allocation3 + $0x60] sm:$0xff] }
 0x1e8   :  { %v1526_v1 = vpop.permute.xlu1 %1525 }
 0x1e9   :  { %1528 = vst.msk [vmem:[#allocation3 + $0x70] sm:$0x7e] %vm5834_vm10, %v1526_v1  ;;  %vm5848_vm10 = vcmask 258176  }
 0x1ea   :  { %1587 = vst.msk [vmem:[#allocation3 + $0x70] sm:$0x7f] %vm5835_vm12, %v1585_v8  ;;  %vm5849_vm12 = vcmask 392454  }
 0x1eb   :  { %v1699_v41 = vpop.permute.xlu0 %1698  ;;  %1646 = vst.msk [vmem:[#allocation3 + $0x70] sm:$0x3f] %vm5836_vm15, %v1644_v9  ;;  %vm5850_vm15 = vcmask 388352  }
 0x1ec   :  { %v1705_v4 = vpop.permute.xlu1 %1704  ;;  %1701 = vst.msk [vmem:[#allocation3 + $0x70] sm:$0x7e] %vm5837_vm11, %v1699_v41  ;;  %vm5851_vm11 = vcmask 523655  }
 0x1ed   :  { %1745 = vst.msk [vmem:[#allocation3 + $0x70] sm:$0x7f] %vm5838_vm0, %v1743_v61  ;;  %vm5852_vm0 = vcmask 520576  }
 0x1ef   :  { %v1533_v5 = vpop.permute.xlu0 %1532 }
 0x1f0   :  { %1535 = vst.msk [vmem:[#allocation3 + $0x80] sm:$0x3f] %vm5839_vm1, %v1533_v5  ;;  %v1593_v53 = vpop.permute.xlu1 %1592  ;;  %vm5853_vm1 = vcmask 654854  }
 0x1f1   :  { %1595 = vst.msk [vmem:[#allocation3 + $0x70] sm:$0x80] %vm5840_vm4, %v1593_v53  ;;  %vm5854_vm4 = vcmask 651776  }
 0x1f2   :  { %1596 = vst.msk [vmem:[#allocation3 + $0x80] sm:$0x3f] %vm5841_vm13, %v1593_v53  ;;  %vm5855_vm13 = vcmask 786054  }
 0x1f3   :  { %v1651_v0 = vpop.permute.xlu0 %1650 }
 0x1f4   :  { %1653 = vst.msk [vmem:[#allocation3 + $0x70] sm:$0x80] %vm5842_vm5, %v1651_v0  ;;  %v1750_v6 = vpop.permute.xlu1 %1749  ;;  %vm5856_vm5 = vcmask 781952  }
 0x1f5   :  { %1654 = vst.msk [vmem:[#allocation3 + $0x80] sm:$0x1f] %vm5843_vm6, %v1651_v0  ;;  %vm5857_vm6 = vcmask 261253  }
 0x1f6   :  { %1707 = vst.msk [vmem:[#allocation3 + $0x80] sm:$0x3f] %vm5844_vm8, %v1705_v4  ;;  %vm5858_vm8 = vcmask 257152  }
 0x1f7   :  { %1752 = vst.msk [vmem:[#allocation3 + $0x70] sm:$0x80] %vm5845_vm2, %v1750_v6  ;;  %v1434_v7 = vpop.permute.xlu0 %1433  ;;  %vm5859_vm2 = vcmask 392453  }
 0x1f8   :  { %1753 = vst.msk [vmem:[#allocation3 + $0x80] sm:$0x3f] %vm5846_vm14, %v1750_v6  ;;  %v1541_v54 = vpop.permute.xlu1 %1540  ;;  %vm5860_vm14 = vcmask 387328  }
 0x1f9   :  { %1436 = vst.msk [vmem:[#allocation3 + $0x80] sm:$0xc0] %vm5847_vm9, %v1434_v7  ;;  %vm5861_vm9 = vcmask 523654  }
 0x1fa   :  { %1437 = vst.msk [vmem:[#allocation3 + $0x90] sm:$0x1f] %vm5848_vm10, %v1434_v7  ;;  %vm5862_vm10 = vcmask 519552  }
 0x1fb   :  { %v1484_v58 = vpop.permute.xlu0 %1483 }
 0x1fc   :  { %1486 = vst.msk [vmem:[#allocation3 + $0x80] sm:$0xc0] %vm5849_vm12, %v1484_v58  ;;  %v1602_v14 = vpop.permute.xlu1 %1601  ;;  %vm5863_vm12 = vcmask 654853  }
 0x1fd   :  { %1487 = vst.msk [vmem:[#allocation3 + $0x90] sm:$0xf] %vm5850_vm15, %v1484_v58  ;;  %vm5864_vm15 = vcmask 650752  }
 0x1fe   :  { %1543 = vst.msk [vmem:[#allocation3 + $0x80] sm:$0x80] %vm5851_vm11, %v1541_v54  ;;  %v1823_v16 = vld [vmem:[#allocation3 + $0x70] sm:$0xff]  ;;  %vm5865_vm11 = vcmask 917255  }
 0x1ff   :  { %1544 = vst.msk [vmem:[#allocation3 + $0x90] sm:$0x1f] %vm5852_vm0, %v1541_v54  ;;  %v1841_v32 = vpack.c.bf16 %v1823_v16, %v1821_v15  ;;  %v1550_v25 = vpop.permute.xlu0 %1549  ;;  %vm5866_vm0 = vcmask 914176  }
 0x200   :  { %1604 = vst.msk [vmem:[#allocation3 + $0x80] sm:$0xc0] %vm5853_vm1, %v1602_v14  ;;  %v1659_v18 = vpop.permute.xlu1 %1658  ;;  %vm5867_vm1 = vcmask 786053  }
 0x201   :  { %1605 = vst.msk [vmem:[#allocation3 + $0x90] sm:$0x1f] %vm5854_vm4, %v1602_v14  ;;  %2006 = vmatmul.mubr.bf16.gmra.mxu1 %v1841_v32  ;;  %vm5868_vm4 = vcmask 780928  }
 0x202   :  { %3819 = vmatprep.mubr.msk.bf16.mxu1 %vm46_vm3, %v1844_v17  ;;  %1661 = vst.msk [vmem:[#allocation3 + $0x80] sm:$0xc0] %vm5855_vm13, %v1659_v18  ;;  %vm5869_vm13 = vcmask 917254  }
 0x203   :  { %1662 = vst.msk [vmem:[#allocation3 + $0x90] sm:$0xf] %vm5856_vm5, %v1659_v18  ;;  %v1611_v26 = vpop.permute.xlu0 %1610  ;;  %vm5870_vm5 = vcmask 913152  }
 0x204   :  { %v1443_v29 = vpop.permute.xlu1 %1442 }
 0x205   :  { %1445 = vst.msk [vmem:[#allocation3 + $0x90] sm:$0xe0] %vm5857_vm6, %v1443_v29  ;;  %vm5871_vm6 = vcmask 1048454  }
 0x206   :  { %1446 = vst.msk [vmem:[#allocation3 + $0xa0] sm:$0xf] %vm5858_vm8, %v1443_v29  ;;  %vm5872_vm8 = vcmask 1045376  }
 0x207   :  { %v1667_v19 = vpop.permute.xlu0 %1666 }
 0x208   :  { %v1492_v52 = vpop.permute.xlu1 %1491 }
 0x209   :  { %1494 = vst.msk [vmem:[#allocation3 + $0x90] sm:$0xe0] %vm5859_vm2, %v1492_v52  ;;  %vm5873_vm2 = vcmask 1048453  }
 0x20a   :  { %1495 = vst.msk [vmem:[#allocation3 + $0xa0] sm:$0x7] %vm5860_vm14, %v1492_v52  ;;  %vm5874_vm14 = vcmask 1044352  }
 0x20b   :  { %1552 = vst.msk [vmem:[#allocation3 + $0x90] sm:$0xc0] %vm5861_vm9, %v1550_v25  ;;  %v1712_v21 = vpop.permute.xlu0 %1711  ;;  %vm5875_vm9 = vcmask 261252  }
 0x20c   :  { %1553 = vst.msk [vmem:[#allocation3 + $0xa0] sm:$0xf] %vm5862_vm10, %v1550_v25  ;;  %v1720_v44 = vpop.permute.xlu1 %1719  ;;  %vm5876_vm10 = vcmask 256128  }
 0x20d   :  { %1613 = vst.msk [vmem:[#allocation3 + $0x90] sm:$0xe0] %vm5863_vm12, %v1611_v26  ;;  %vm5877_vm12 = vcmask 386304  }
 0x20e   :  { %1614 = vst.msk [vmem:[#allocation3 + $0xa0] sm:$0xf] %vm5864_vm15, %v1611_v26  ;;  %vm5878_vm15 = vcmask 392452  }
 0x20f   :  { %1714 = vst.msk [vmem:[#allocation3 + $0x80] sm:$0x80] %vm5865_vm11, %v1712_v21  ;;  %v1758_v38 = vpop.permute.xlu0 %1757  ;;  %vm5879_vm11 = vcmask 261251  }
 0x210   :  { %1715 = vst.msk [vmem:[#allocation3 + $0x90] sm:$0x1f] %vm5866_vm0, %v1712_v21  ;;  %v1766_v3 = vpop.permute.xlu1 %1765  ;;  %vm5880_vm0 = vcmask 255104  }
 0x211   :  { %1669 = vst.msk [vmem:[#allocation3 + $0x90] sm:$0xe0] %vm5867_vm1, %v1667_v19  ;;  %vm5881_vm1 = vcmask 523653  }
 0x212   :  { %1670 = vst.msk [vmem:[#allocation3 + $0xa0] sm:$0x7] %vm5868_vm4, %v1667_v19  ;;  %vm5882_vm4 = vcmask 518528  }
 0x213   :  { %1722 = vst.msk [vmem:[#allocation3 + $0x90] sm:$0xc0] %vm5869_vm13, %v1720_v44  ;;  %v1452_v34 = vpop.permute.xlu0 %1451  ;;  %vm5883_vm13 = vcmask 392451  }
 0x214   :  { %1723 = vst.msk [vmem:[#allocation3 + $0xa0] sm:$0xf] %vm5870_vm5, %v1720_v44  ;;  %v1500_v48 = vpop.permute.xlu1 %1499  ;;  %vm5884_vm5 = vcmask 385280  }
 0x215   :  { %1760 = vst.msk [vmem:[#allocation3 + $0x80] sm:$0xc0] %vm5871_vm6, %v1758_v38  ;;  %vm5885_vm6 = vcmask 654852  }
 0x216   :  { %1761 = vst.msk [vmem:[#allocation3 + $0x90] sm:$0x1f] %vm5872_vm8, %v1758_v38  ;;  %vm5886_vm8 = vcmask 649728  }
 0x217   :  { %1768 = vst.msk [vmem:[#allocation3 + $0x90] sm:$0xe0] %vm5873_vm2, %v1766_v3  ;;  %v1461_v22 = vpop.permute.xlu0 %1460  ;;  %vm5887_vm2 = vcmask 523652  }
 0x218   :  { %1769 = vst.msk [vmem:[#allocation3 + $0xa0] sm:$0xf] %vm5874_vm14, %v1766_v3  ;;  %v1559_v30 = vpop.permute.xlu1 %1558  ;;  %vm5888_vm14 = vcmask 517504  }
 0x219   :  { %1454 = vst.msk [vmem:[#allocation3 + $0xa0] sm:$0xf0] %vm5875_vm9, %v1452_v34  ;;  %vm5889_vm9 = vcmask 786052  }
 0x21a   :  { %1455 = vst.msk [vmem:[#allocation3 + $0xb0] sm:$0x7] %vm5876_vm10, %v1452_v34  ;;  %vm5890_vm10 = vcmask 779904  }
 0x21b   :  { %1503 = vst.msk [vmem:[#allocation3 + $0xb0] sm:$0x3] %vm5877_vm12, %v1500_v48  ;;  %v1508_v35 = vpop.permute.xlu0 %1507  ;;  %vm5891_vm12 = vcmask 654851  }
 0x21c   :  { %1502 = vst.msk [vmem:[#allocation3 + $0xa0] sm:$0xf0] %vm5878_vm15, %v1500_v48  ;;  %v1825_v24 = vld [vmem:[#allocation3 + $0x80] sm:$0xff]  ;;  %v1620_v42 = vpop.permute.xlu1 %1619  ;;  %vm5892_vm15 = vcmask 648704  }
 0x21d   :  { %1463 = vst.msk [vmem:[#allocation3 + $0xb0] sm:$0xf8] %vm5879_vm11, %v1461_v22  ;;  %vm5893_vm11 = vcmask 917253  }
 0x21e   :  { %1464 = vst.msk [vmem:[#allocation3 + $0xc0] sm:$0x3] %vm5880_vm0, %v1461_v22  ;;  %v1827_v57 = vld [vmem:[#allocation3 + $0x90] sm:$0xff]  ;;  %vm5894_vm0 = vcmask 912128  }
 0x21f   :  { %1561 = vst.msk [vmem:[#allocation3 + $0xa0] sm:$0xe0] %vm5881_vm1, %v1559_v30  ;;  %v1843_v62 = vpack.c.bf16 %v1827_v57, %v1825_v24  ;;  %v1568_v39 = vpop.permute.xlu0 %1567  ;;  %vm5895_vm1 = vcmask 778880  }
 0x220   :  { %1562 = vst.msk [vmem:[#allocation3 + $0xb0] sm:$0x7] %vm5882_vm4, %v1559_v30  ;;  %v1675_v36 = vpop.permute.xlu1 %1674  ;;  %vm5896_vm4 = vcmask 1048452  }
 0x221   :  { %2014 = vmatmul.mubr.bf16.gmra.mxu1 %v1843_v62  ;;  %1510 = vst.msk [vmem:[#allocation3 + $0xb0] sm:$0xf8] %vm5883_vm13, %v1508_v35  ;;  %vm5897_vm13 = vcmask 1043328  }
 0x222   :  { %1511 = vst.msk [vmem:[#allocation3 + $0xc0] sm:$0x1] %vm5884_vm5, %v1508_v35  ;;  %3820 = vmatprep.mubr.msk.bf16.mxu1 %vm46_vm3, %v1846_v59  ;;  %vm2231_vm5 = vcmask 257024  }
 0x223   :  { %1622 = vst.msk [vmem:[#allocation3 + $0xa0] sm:$0xf0] %vm5885_vm6, %v1620_v42  ;;  %v1629_v12 = vpop.permute.xlu0 %1628  ;;  %vm2322_vm6 = vcmask 256000  }
 0x224   :  { %1623 = vst.msk [vmem:[#allocation3 + $0xb0] sm:$0x7] %vm5886_vm8, %v1620_v42  ;;  %v1728_v27 = vpop.permute.xlu1 %1727  ;;  %vm2134_vm8 = vcmask 261125  }
 0x225   :  { %1570 = vst.msk [vmem:[#allocation3 + $0xb0] sm:$0xf0] %vm5887_vm2, %v1568_v39 }
 0x226   :  { %1571 = vst.msk [vmem:[#allocation3 + $0xc0] sm:$0x3] %vm5888_vm14, %v1568_v39 }
 0x227   :  { %1677 = vst.msk [vmem:[#allocation3 + $0xa0] sm:$0xf0] %vm5889_vm9, %v1675_v36  ;;  %v1683_v37 = vpop.permute.xlu0 %1682  ;;  %vm2238_vm9 = vcmask 261124  }
 0x228   :  { %1678 = vst.msk [vmem:[#allocation3 + $0xb0] sm:$0x3] %vm5890_vm10, %v1675_v36  ;;  %v1774_v45 = vpop.permute.xlu1 %1773  ;;  %vm2328_vm10 = vcmask 260100  }
 0x229   :  { %1631 = vst.msk [vmem:[#allocation3 + $0xb0] sm:$0xf8] %vm5891_vm12, %v1629_v12  ;;  %vm2141_vm12 = vcmask 257025  }
 0x22a   :  { %1632 = vst.msk [vmem:[#allocation3 + $0xc0] sm:$0x3] %vm5892_vm15, %v1629_v12 }
 0x22b   :  { %1730 = vst.msk [vmem:[#allocation3 + $0xa0] sm:$0xe0] %vm5893_vm11, %v1728_v27 }
 0x22c   :  { %1731 = vst.msk [vmem:[#allocation3 + $0xb0] sm:$0x7] %vm5894_vm0, %v1728_v27 }
 0x22d   :  { %1685 = vst.msk [vmem:[#allocation3 + $0xb0] sm:$0xf8] %vm1218_vm7, %v1683_v37 }
 0x22e   :  { %1686 = vst.msk [vmem:[#allocation3 + $0xc0] sm:$0x1] %vm5895_vm1, %v1683_v37 }
 0x22f   :  { %1776 = vst.msk [vmem:[#allocation3 + $0xa0] sm:$0xf0] %vm5896_vm4, %v1774_v45 }
 0x230   :  { %1777 = vst.msk [vmem:[#allocation3 + $0xb0] sm:$0x7] %vm5897_vm13, %v1774_v45 }
 0x235   :  { %v1833_v50 = vld [vmem:[#allocation3 + $0xc0] sm:$0x3] }
 0x236   :  { %v1829_v47 = vld [vmem:[#allocation3 + $0xa0] sm:$0xff]  ;;  %v1847_v49 = vpack.c.bf16 %v1833_v50, %v1833_v50  ;;  %v4167_v50 = vld [vmem:[%s5758_s5 + $0x80] sm:$0xff]  }
 0x237   :  { %v1831_v56 = vld [vmem:[#allocation3 + $0xb0] sm:$0xff] }
 0x238   :  { %v1845_v2 = vpack.c.bf16 %v1831_v56, %v1829_v47  ;;  %v4166_v56 = vld [vmem:[%s5758_s5 + $0x88] sm:$0xff]  }
 0x239   :  { %4089 = vmatprep.subr.bf16.mxu0 %v4166_v56 }
 0x23a   :  { %2022 = vmatmul.mubr.bf16.gmra.mxu1 %v1845_v2  ;;  %4090 = vmatpush3.bf16.msra.mxu0 %v4166_v56 }
 0x23b   :  { %3821 = vmatprep.mubr.msk.bf16.mxu1 %vm46_vm3, %v1848_v20  ;;  %vm5898_vm3 = vcmask 261120   ;;  %4091 = vmatprep.subr.bf16.mxu0 %v4167_v50 }
 0x23c   :  { %vm5899_vm7 = vmmov %vm5898_vm3 }
 0x23d   :  { %vm5900_vm2 = vmmov %vm5898_vm3 }
 0x23e   :  { %vm5901_vm14 = vmmov %vm5900_vm2  ;;  %4092 = vmatpush3.bf16.msra.mxu0 %v4167_v50 }
 0x23f   :  { %vm5902_vm15 = vmmov %vm5900_vm2 }
 0x240   :  { %vm5903_vm11 = vmmov %vm5900_vm2 }
 0x241   :  { %vm5904_vm0 = vmmov %vm5900_vm2 }
 0x242   :  { %2030 = vmatmul.mubr.bf16.gmra.mxu1 %v1847_v49  ;;  %vm5905_vm1 = vmmov %vm5904_vm0 }
 0x243   :  { %vm5906_vm4 = vmmov %vm5904_vm0 }
 0x244   :  { %vm5907_vm13 = vmmov %vm5904_vm0 }
 0x270   :  { %v1983_v51 = vpop.f32.mrf.mxu1 }
 0x271   :  { %v1984_v11 = vadd.f32 %v5265_v33, %v1983_v51 }
 0x272   :  { %v1985_v46 = vpop.f32.mrf.mxu1 }
 0x273   :  { %v2037_v55 = vsub.f32 0.0, %v1984_v11 }
 0x274   :  { %v1986_v40 = vpop.f32.mrf.mxu1 }
 0x275   :  { %v2050_v60 = vmul.f32 1.442695, %v2037_v55  ;;  %v1987_v61 = vadd.f32 %v5265_v33, %v1986_v40 }
 0x276   :  { %v1988_v31 = vpop.f32.mrf.mxu1 }
 0x277   :  { %4412 = vpow2.f32 %v2050_v60  ;;  %v2038_v63 = vsub.f32 0.0, %v1987_v61 }
 0x279   :  { %v2052_v9 = vmul.f32 1.442695, %v2038_v63  ;;  %v4168_v63 = vld [vmem:[%s5758_s5 + $0x78] sm:$0xff]  }
 0x27a   :  { %3933 = vmatprep.subr.bf16.mxu1 %v4168_v63 }
 0x27b   :  { %4414 = vpow2.f32 %v2052_v9  ;;  %v4169_v9 = vld [vmem:[%s5758_s5 + $0x38] sm:$0xff]  }
 0x27c   :  { %3934 = vmatpush3.bf16.msra.mxu1 %v4169_v9 }
 0x284   :  { %v4413_v8 = vpop.eup %4412 }
 0x285   :  { %v2076_v1 = vadd.f32 1.0, %v4413_v8  ;;  %v4170_v8 = vld [vmem:[%s5758_s5 + $0x70] sm:$0xff]  }
 0x286   :  { %3935 = vmatprep.subr.bf16.mxu1 %v4170_v8 }
 0x287   :  { %4416 = vrcp.f32 %v2076_v1 }
 0x288   :  { %v4415_v41 = vpop.eup %4414 }
 0x289   :  { %v2077_v4 = vadd.f32 1.0, %v4415_v41 }
 0x28a   :  { %v1991_v5 = vpop.f32.mrf.mxu1 }
 0x28b   :  { %4418 = vrcp.f32 %v2077_v4  ;;  %v1992_v53 = vadd.f32 %v5265_v33, %v1991_v5 }
 0x28c   :  { %v1993_v0 = vpop.f32.mrf.mxu1 }
 0x28d   :  { %v2039_v6 = vsub.f32 0.0, %v1992_v53 }
 0x28e   :  { %v1994_v7 = vpop.f32.mrf.mxu1 }
 0x28f   :  { %v2054_v54 = vmul.f32 1.442695, %v2039_v6  ;;  %v1995_v58 = vadd.f32 %v5265_v33, %v1994_v7 }
 0x290   :  { %v1996_v13 = vpop.f32.mrf.mxu1 }
 0x291   :  { %4420 = vpow2.f32 %v2054_v54  ;;  %v2040_v23 = vsub.f32 0.0, %v1995_v58 }
 0x293   :  { %v2056_v14 = vmul.f32 1.442695, %v2040_v23 }
 0x294   :  { %v4417_v15 = vpop.eup %4416 }
 0x295   :  { %v2102_v16 = vmul.f32 %v4417_v15, %v1984_v11  ;;  %4422 = vpow2.f32 %v2056_v14  ;;  %v4172_v14 = vld [vmem:[%s5758_s5 + $0x68] sm:$0xff]  }
 0x296   :  { %v4173_v15 = vld [vmem:[%s5758_s5 + $0x28] sm:$0xff]  }
 0x297   :  { %2115 = vst.msk [vmem:[#allocation4] sm:$0xff] %vm5898_vm3, %v2102_v16  ;;  %vm5908_vm3 = vmmov %vm5904_vm0 }
 0x298   :  { %v4419_v32 = vpop.eup %4418 }
 0x299   :  { %v2103_v25 = vmul.f32 %v4419_v32, %v1987_v61 }
 0x29b   :  { %2116 = vst.msk [vmem:[#allocation4 + $0x8] sm:$0xff] %vm5899_vm7, %v2103_v25  ;;  %vm2254_vm7 = vcmask 518400  }
 0x29e   :  { %v4421_v17 = vpop.eup %4420  ;;  %v2249_v18 = vld [vmem:[#allocation4 + $0x1] ss:$2 sm:$0x7]  ;;  %v2230_v19 = vld [vmem:[#allocation4] ss:$2 sm:$0xf] }
 0x29f   :  { %v2197_v26 = vld [vmem:[#allocation4 + $0x1] ss:$2 sm:$0x7]  ;;  %v2078_v29 = vadd.f32 1.0, %v4421_v17  ;;  %2251 = vrot.lane.b32.xlu0 %v2249_v18, %s4495_s22  ;;  %2232 = vst.msk [vmem:[#allocation5 + $0x8] sm:$0xf] %vm2231_vm5, %v2230_v19 }
 0x2a0   :  { %v2199_v52 = vrot.slane %v2197_v26, 7  ;;  %v4174_v17 = vld [vmem:[%s5758_s5 + $0x60] sm:$0xff]  }
 0x2a1   :  { %4424 = vrcp.f32 %v2078_v29  ;;  %v4175_v18 = vld [vmem:[%s5758_s5 + $0x20] sm:$0xff]  }
 0x2a2   :  { %v4423_v21 = vpop.eup %4422  ;;  %v2321_v44 = vld [vmem:[#allocation4 + $0x8] ss:$2 sm:$0x7]  ;;  %v2300_v3 = vld [vmem:[#allocation4 + $0x7] ss:$2 sm:$0xf] }
 0x2a3   :  { %v1999_v38 = vpop.f32.mrf.mxu1  ;;  %2323 = vst.msk [vmem:[#allocation5 + $0x10] sm:$0x7] %vm2322_vm6, %v2321_v44  ;;  %v2079_v34 = vadd.f32 1.0, %v4423_v21  ;;  %2302 = vrot.lane.b32.xlu1 %v2300_v3, %s4497_s24  ;;  %2200 = vrot.lane.b32.xlu0 %v2199_v52, %s4497_s24  ;;  %v2277_v22 = vld [vmem:[#allocation4 + $0x8] ss:$2 sm:$0x7] }
 0x2a4   :  { %v5277_v48 = vadd.f32 %v5265_v33, %v1999_v38  ;;  %v2150_v10 = vld [vmem:[#allocation4 + $0x7] ss:$2 sm:$0xf]  ;;  %v2279_v30 = vrot.slane %v2277_v22, 7 }
 0x2a5   :  { %v2001_v24 = vpop.f32.mrf.mxu1  ;;  %4426 = vrcp.f32 %v2079_v34  ;;  %v2152_v57 = vrot.slane %v2150_v10, 4  ;;  %v2174_v59 = vld [vmem:[#allocation4 + $0x8] ss:$2 sm:$0x7]  ;;  %v4176_v34 = vld [vmem:[%s5758_s5 + $0x58] sm:$0xff]  }
 0x2a6   :  { %v2041_v28 = vsub.f32 0.0, %v5277_v48  ;;  %v2130_v35 = vld [vmem:[#allocation4 + $0x8] ss:$2 sm:$0x7]  ;;  %v2176_v37 = vrot.slane %v2174_v59, 4 }
 0x2a7   :  { %v2002_v62 = vpop.f32.mrf.mxu1  ;;  %2280 = vrot.lane.b32.xlu0 %v2279_v30, %s4493_s20  ;;  %2153 = vrot.lane.b32.xlu1 %v2152_v57, %s4495_s22  ;;  %v2132_v36 = vrot.slane %v2130_v35, 3  ;;  %v4179_v59 = vld [vmem:[%s5758_s5 + $0x10] sm:$0xff]  }
 0x2a8   :  { %v2058_v42 = vmul.f32 1.442695, %v2041_v28  ;;  %v5283_v39 = vadd.f32 %v5265_v33, %v2002_v62  ;;  %v4178_v62 = vld [vmem:[%s5758_s5 + $0x50] sm:$0xff]  }
 0x2a9   :  { %v2004_v12 = vpop.f32.mrf.mxu1  ;;  %2135 = vst.msk [vmem:[#allocation5] sm:$0xe0] %vm2134_vm8, %v2132_v36 }
 0x2aa   :  { %4428 = vpow2.f32 %v2058_v42  ;;  %v2042_v27 = vsub.f32 0.0, %v5283_v39 }
 0x2ab   :  { %2177 = vrot.lane.b32.xlu1 %v2176_v37, %s4493_s20 }
 0x2ac   :  { %v2060_v45 = vmul.f32 1.442695, %v2042_v27  ;;  %v4180_v27 = vld [vmem:[%s5758_s5 + $0x48] sm:$0xff]  }
 0x2ae   :  { %4430 = vpow2.f32 %v2060_v45  ;;  %v4425_v43 = vpop.eup %4424 }
 0x2af   :  { %v2104_v47 = vmul.f32 %v4425_v43, %v1992_v53  ;;  %v4171_v53 = vld [vmem:[%s5758_s5 + $0x30] sm:$0xff]   ;;  %v4181_v43 = vld [vmem:[%s5758_s5 + $0x8] sm:$0xff]  }
 0x2b0   :  { %3936 = vmatpush3.bf16.msra.mxu1 %v4171_v53 }
 0x2b1   :  { %2117 = vst.msk [vmem:[#allocation4 + $0x10] sm:$0xff] %vm5900_vm2, %v2104_v47  ;;  %3937 = vmatprep.subr.bf16.mxu1 %v4172_v14  ;;  %v4182_v47 = vld [vmem:[%s5758_s5 + $0x40] sm:$0xff]   ;;  %vm2203_vm2 = vcmask 1044225  }
 0x2b2   :  { %v4427_v20 = vpop.eup %4426 }
 0x2b3   :  { %v2105_v2 = vmul.f32 %v4427_v20, %v1995_v58 }
 0x2b4   :  { %3938 = vmatpush3.bf16.msra.mxu1 %v4173_v15 }
 0x2b5   :  { %2118 = vst.msk [vmem:[#allocation4 + $0x18] sm:$0xff] %vm5901_vm14, %v2105_v2  ;;  %3939 = vmatprep.subr.bf16.mxu1 %v4174_v17  ;;  %vm2156_vm14 = vcmask 523524  }
 0x2b7   :  { %v4429_v49 = vpop.eup %4428 }
 0x2b8   :  { %v2080_v51 = vadd.f32 1.0, %v4429_v49  ;;  %v2256_v11 = vld [vmem:[#allocation4 + $0xf] ss:$2 sm:$0x7]  ;;  %3940 = vmatpush3.bf16.msra.mxu1 %v4175_v18  ;;  %v4183_v49 = vld [vmem:[%s5758_s5] sm:$0xff]  }
 0x2b9   :  { %v2206_v46 = vld [vmem:[#allocation4 + $0xf] ss:$2 sm:$0x7]  ;;  %v2258_v55 = vrot.slane %v2256_v11, 4  ;;  %3941 = vmatprep.subr.bf16.mxu1 %v4176_v34 }
 0x2ba   :  { %4432 = vrcp.f32 %v2080_v51  ;;  %v2234_v40 = vld [vmem:[#allocation4 + $0xe] ss:$2 sm:$0xf]  ;;  %v2208_v5 = vrot.slane %v2206_v46, 3 }
 0x2bb   :  { %v4431_v60 = vpop.eup %4430  ;;  %v2236_v61 = vrot.slane %v2234_v40, 4  ;;  %2259 = vrot.lane.b32.xlu1 %v2258_v55, %s4495_s22 }
 0x2bc   :  { %v2081_v31 = vadd.f32 1.0, %v4431_v60  ;;  %v2324_v1 = vld [vmem:[#allocation4 + $0x16] ss:$2 sm:$0x7] }
 0x2bd   :  { %v2159_v41 = vld [vmem:[#allocation4 + $0x15] ss:$2 sm:$0xf]  ;;  %2239 = vst.msk [vmem:[#allocation5 + $0x8] sm:$0xf0] %vm2238_vm9, %v2236_v61  ;;  %v2326_v4 = vrot.slane %v2324_v1, 4 }
 0x2be   :  { %4434 = vrcp.f32 %v2081_v31  ;;  %2161 = vrot.lane.b32.xlu0 %v2159_v41, %s4495_s22  ;;  %v2182_v0 = vld [vmem:[#allocation4 + $0x16] ss:$2 sm:$0x7]  ;;  %v2307_v7 = vld [vmem:[#allocation4 + $0x15] ss:$2 sm:$0xf] }
 0x2bf   :  { %v2285_v6 = vld [vmem:[#allocation4 + $0x16] ss:$2 sm:$0x7]  ;;  %2209 = vrot.lane.b32.xlu1 %v2208_v5, %s4497_s24  ;;  %2329 = vst.msk [vmem:[#allocation5 + $0x10] sm:$0x70] %vm2328_vm10, %v2326_v4  ;;  %v2309_v13 = vrot.slane %v2307_v7, 4 }
 0x2c0   :  { %v2287_v54 = vrot.slane %v2285_v6, 3  ;;  %v2137_v58 = vld [vmem:[#allocation4 + $0x16] ss:$2 sm:$0x7] }
 0x2c1   :  { %v2139_v23 = vrot.slane %v2137_v58, 7  ;;  %v2007_v25 = vpop.f32.mrf.mxu1 }
 0x2c2   :  { %2184 = vrot.lane.b32.xlu0 %v2182_v0, %s4493_s20  ;;  %v5334_v26 = vadd.f32 %v5265_v33, %v2007_v25 }
 0x2c3   :  { %2142 = vst.msk [vmem:[#allocation5 + $0x18] sm:$0xe] %vm2141_vm12, %v2139_v23  ;;  %2288 = vrot.lane.b32.xlu1 %v2287_v54, %s4493_s20  ;;  %v2009_v19 = vpop.f32.mrf.mxu1 }
 0x2c4   :  { %v2043_v21 = vsub.f32 0.0, %v5334_v26 }
 0x2c5   :  { %v2010_v44 = vpop.f32.mrf.mxu1 }
 0x2c6   :  { %2310 = vrot.lane.b32.xlu0 %v2309_v13, %s4497_s24  ;;  %v2062_v38 = vmul.f32 1.442695, %v2043_v21  ;;  %v5340_v3 = vadd.f32 %v5265_v33, %v2010_v44  ;;  %v2520_v55 = vld [vmem:[#allocation5 + $0x10] sm:$0xff] }
 0x2c7   :  { %v4433_v16 = vpop.eup %4432  ;;  %v2012_v22 = vpop.f32.mrf.mxu1 }
 0x2c8   :  { %v2106_v32 = vmul.f32 %v4433_v16, %v5277_v48  ;;  %v4177_v48 = vld [vmem:[%s5758_s5 + $0x18] sm:$0xff]   ;;  %4436 = vpow2.f32 %v2062_v38  ;;  %v2044_v24 = vsub.f32 0.0, %v5340_v3 }
 0x2c9   :  { %3942 = vmatpush3.bf16.msra.mxu1 %v4177_v48 }
 0x2ca   :  { %2119 = vst.msk [vmem:[#allocation4 + $0x20] sm:$0xff] %vm5902_vm15, %v2106_v32  ;;  %v2064_v30 = vmul.f32 1.442695, %v2044_v24  ;;  %3943 = vmatprep.subr.bf16.mxu1 %v4178_v62  ;;  %vm2283_vm15 = vcmask 781825  }
 0x2cb   :  { %v4435_v29 = vpop.eup %4434 }
 0x2cc   :  { %v2107_v52 = vmul.f32 %v4435_v29, %v5283_v39  ;;  %4438 = vpow2.f32 %v2064_v30 }
 0x2cd   :  { %3944 = vmatpush3.bf16.msra.mxu1 %v4179_v59 }
 0x2ce   :  { %2120 = vst.msk [vmem:[#allocation4 + $0x28] sm:$0xff] %vm5903_vm11, %v2107_v52  ;;  %3945 = vmatprep.subr.bf16.mxu1 %v4180_v27  ;;  %vm2305_vm11 = vcmask 1044224  }
 0x2d1   :  { %v2264_v10 = vld [vmem:[#allocation4 + $0x1d] ss:$2 sm:$0x7]  ;;  %v2241_v57 = vld [vmem:[#allocation4 + $0x1c] ss:$2 sm:$0xf]  ;;  %3946 = vmatpush3.bf16.msra.mxu1 %v4181_v43 }
 0x2d2   :  { %v2215_v28 = vld [vmem:[#allocation4 + $0x1d] ss:$2 sm:$0x7]  ;;  %2266 = vrot.lane.b32.xlu0 %v2264_v10, %s4495_s22  ;;  %2242 = vst.msk [vmem:[#allocation5 + $0x20] sm:$0xf] %vm2231_vm5, %v2241_v57  ;;  %3947 = vmatprep.subr.bf16.mxu1 %v4182_v47 }
 0x2d3   :  { %v2217_v35 = vrot.slane %v2215_v28, 7 }
 0x2d5   :  { %v2330_v42 = vld [vmem:[#allocation4 + $0x24] ss:$2 sm:$0x7]  ;;  %v2315_v39 = vld [vmem:[#allocation4 + $0x23] ss:$2 sm:$0xf]  ;;  %v4437_v46 = vpop.eup %4436  ;;  %3948 = vmatpush3.bf16.msra.mxu1 %v4183_v49 }
 0x2d6   :  { %2331 = vst.msk [vmem:[#allocation5 + $0x28] sm:$0x7] %vm2322_vm6, %v2330_v42  ;;  %2317 = vrot.lane.b32.xlu1 %v2315_v39, %s4497_s24  ;;  %2218 = vrot.lane.b32.xlu0 %v2217_v35, %s4497_s24  ;;  %v2293_v36 = vld [vmem:[#allocation4 + $0x24] ss:$2 sm:$0x7]  ;;  %v2082_v61 = vadd.f32 1.0, %v4437_v46 }
 0x2d7   :  { %v2167_v12 = vld [vmem:[#allocation4 + $0x23] ss:$2 sm:$0xf]  ;;  %v2295_v37 = vrot.slane %v2293_v36, 7 }
 0x2d8   :  { %v2169_v45 = vrot.slane %v2167_v12, 4  ;;  %v2270_v56 = vld [vmem:[#allocation4 + $0x2b] ss:$2 sm:$0x7]  ;;  %4440 = vrcp.f32 %v2082_v61 }
 0x2d9   :  { %v2189_v20 = vld [vmem:[#allocation4 + $0x24] ss:$2 sm:$0x7]  ;;  %v2272_v51 = vrot.slane %v2270_v56, 4  ;;  %v4439_v9 = vpop.eup %4438 }
 0x2da   :  { %2296 = vrot.lane.b32.xlu0 %v2295_v37, %s4493_s20  ;;  %2170 = vrot.lane.b32.xlu1 %v2169_v45, %s4495_s22  ;;  %v2144_v2 = vld [vmem:[#allocation4 + $0x24] ss:$2 sm:$0x7]  ;;  %v2191_v11 = vrot.slane %v2189_v20, 4  ;;  %v2083_v8 = vadd.f32 1.0, %v4439_v9 }
 0x2db   :  { %v2146_v50 = vrot.slane %v2144_v2, 3  ;;  %v2223_v60 = vld [vmem:[#allocation4 + $0x2b] ss:$2 sm:$0x7] }
 0x2dc   :  { %v2225_v63 = vrot.slane %v2223_v60, 3  ;;  %4442 = vrcp.f32 %v2083_v8 }
 0x2dd   :  { %v2523_v40 = vld [vmem:[#allocation5 + $0x28] sm:$0xff]  ;;  %2148 = vst.msk [vmem:[#allocation5 + $0x18] sm:$0xe0] %vm2134_vm8, %v2146_v50 }
 0x2de   :  { %2273 = vrot.lane.b32.xlu0 %v2272_v51, %s4495_s22  ;;  %2192 = vrot.lane.b32.xlu1 %v2191_v11, %s4493_s20  ;;  %v2532_v31 = vpack.c.bf16 %v2523_v40, %v2520_v55 }
 0x2e0   :  { %4093 = vmatprep.mubr.msk.bf16.mxu0 %vm5904_vm0, %v2532_v31  ;;  %vm2180_vm0 = vcmask 784900  }
 0x2e1   :  { %v2015_v1 = vpop.f32.mrf.mxu1 }
 0x2e2   :  { %2226 = vrot.lane.b32.xlu1 %v2225_v63, %s4497_s24  ;;  %v5380_v41 = vadd.f32 %v5265_v33, %v2015_v1 }
 0x2e3   :  { %v2017_v4 = vpop.f32.mrf.mxu1 }
 0x2e4   :  { %v2045_v5 = vsub.f32 0.0, %v5380_v41 }
 0x2e5   :  { %v2018_v53 = vpop.f32.mrf.mxu1  ;;  %v4441_v58 = vpop.eup %4440 }
 0x2e6   :  { %v2066_v0 = vmul.f32 1.442695, %v2045_v5  ;;  %v5384_v6 = vadd.f32 %v5265_v33, %v2018_v53  ;;  %v2108_v13 = vmul.f32 %v4441_v58, %v5334_v26 }
 0x2e7   :  { %v2020_v7 = vpop.f32.mrf.mxu1 }
 0x2e8   :  { %4444 = vpow2.f32 %v2066_v0  ;;  %v2046_v54 = vsub.f32 0.0, %v5384_v6  ;;  %2121 = vst.msk [vmem:[#allocation4 + $0x30] sm:$0xff] %vm5905_vm1, %v2108_v13 }
 0x2e9   :  { %v4443_v14 = vpop.eup %4442 }
 0x2ea   :  { %v2068_v23 = vmul.f32 1.442695, %v2046_v54  ;;  %v2109_v15 = vmul.f32 %v4443_v14, %v5340_v3 }
 0x2ec   :  { %4446 = vpow2.f32 %v2068_v23  ;;  %2122 = vst.msk [vmem:[#allocation4 + $0x38] sm:$0xff] %vm5906_vm4, %v2109_v15  ;;  %vm2262_vm4 = vcmask 522500  }
 0x2ef   :  { %v2443_v16 = vld [vmem:[#allocation4 + $0x32] ss:$2 sm:$0x7]  ;;  %v2244_v25 = vld [vmem:[#allocation4 + $0x2a] ss:$2 sm:$0xf] }
 0x2f0   :  { %v2394_v32 = vld [vmem:[#allocation4 + $0x32] ss:$2 sm:$0x7]  ;;  %2445 = vrot.lane.b32.xlu0 %v2443_v16, %s4495_s22  ;;  %v2246_v18 = vrot.slane %v2244_v25, 4 }
 0x2f1   :  { %v2426_v29 = vld [vmem:[#allocation4 + $0x31] ss:$2 sm:$0xf]  ;;  %v2396_v52 = vrot.slane %v2394_v32, 7 }
 0x2f2   :  { %2427 = vst.msk [vmem:[#allocation5 + $0x38] sm:$0xf] %vm2231_vm5, %v2426_v29 }
 0x2f3   :  { %v2509_v26 = vld [vmem:[#allocation4 + $0x39] ss:$2 sm:$0x7]  ;;  %v2490_v21 = vld [vmem:[#allocation4 + $0x38] ss:$2 sm:$0xf] }
 0x2f4   :  { %2248 = vst.msk [vmem:[#allocation5 + $0x20] sm:$0xf0] %vm2238_vm9, %v2246_v18  ;;  %2492 = vrot.lane.b32.xlu1 %v2490_v21, %s4497_s24  ;;  %2397 = vrot.lane.b32.xlu0 %v2396_v52, %s4497_s24  ;;  %v2351_v44 = vld [vmem:[#allocation4 + $0x38] ss:$2 sm:$0xf] }
 0x2f5   :  { %v4445_v17 = vpop.eup %4444  ;;  %2510 = vst.msk [vmem:[#allocation5 + $0x40] sm:$0x7] %vm2322_vm6, %v2509_v26  ;;  %v2469_v38 = vld [vmem:[#allocation4 + $0x39] ss:$2 sm:$0x7]  ;;  %v2353_v24 = vrot.slane %v2351_v44, 4 }
 0x2f6   :  { %v2084_v19 = vadd.f32 1.0, %v4445_v17  ;;  %v2471_v10 = vrot.slane %v2469_v38, 7  ;;  %v2333_v28 = vld [vmem:[#allocation4 + $0x39] ss:$2 sm:$0x7] }
 0x2f7   :  { %v2373_v57 = vld [vmem:[#allocation4 + $0x39] ss:$2 sm:$0x7]  ;;  %v2335_v62 = vrot.slane %v2333_v28, 3 }
 0x2f8   :  { %4448 = vrcp.f32 %v2084_v19  ;;  %2354 = vrot.lane.b32.xlu1 %v2353_v24, %s4495_s22  ;;  %2472 = vrot.lane.b32.xlu0 %v2471_v10, %s4493_s20  ;;  %v2375_v36 = vrot.slane %v2373_v57, 4 }
 0x2f9   :  { %v4447_v3 = vpop.eup %4446  ;;  %2337 = vst.msk [vmem:[#allocation5 + $0x30] sm:$0xe0] %vm2134_vm8, %v2335_v62 }
 0x2fa   :  { %v2023_v34 = vpop.f32.mrf.mxu1  ;;  %v2085_v48 = vadd.f32 1.0, %v4447_v3 }
 0x2fb   :  { %v5398_v22 = vadd.f32 %v5265_v33, %v2023_v34 }
 0x2fc   :  { %v2025_v30 = vpop.f32.mrf.mxu1  ;;  %4450 = vrcp.f32 %v2085_v48  ;;  %2376 = vrot.lane.b32.xlu1 %v2375_v36, %s4493_s20 }
 0x2fd   :  { %v2047_v59 = vsub.f32 0.0, %v5398_v22 }
 0x2fe   :  { %v2026_v35 = vpop.f32.mrf.mxu1 }
 0x2ff   :  { %v2070_v42 = vmul.f32 1.442695, %v2047_v59  ;;  %v5405_v39 = vadd.f32 %v5265_v33, %v2026_v35 }
 0x300   :  { %v2028_v12 = vpop.f32.mrf.mxu1 }
 0x301   :  { %4452 = vpow2.f32 %v2070_v42  ;;  %v2048_v27 = vsub.f32 0.0, %v5405_v39 }
 0x302   :  { %v2031_v37 = vpop.f32.mrf.mxu1 }
 0x303   :  { %v2072_v45 = vmul.f32 1.442695, %v2048_v27  ;;  %v5410_v43 = vadd.f32 %v5265_v33, %v2031_v37 }
 0x304   :  { %v2033_v47 = vpop.f32.mrf.mxu1 }
 0x305   :  { %4454 = vpow2.f32 %v2072_v45  ;;  %v2049_v56 = vsub.f32 0.0, %v5410_v43  ;;  %v4449_v20 = vpop.eup %4448 }
 0x306   :  { %v2034_v2 = vpop.f32.mrf.mxu1  ;;  %v2110_v50 = vmul.f32 %v4449_v20, %v5380_v41 }
 0x307   :  { %v2074_v49 = vmul.f32 1.442695, %v2049_v56 }
 0x308   :  { %v2035_v51 = vpop.f32.mrf.mxu1  ;;  %2123 = vst.msk [vmem:[#allocation4 + $0x40] sm:$0xff] %vm5907_vm13, %v2110_v50  ;;  %vm2164_vm13 = vcmask 519424  }
 0x309   :  { %4456 = vpow2.f32 %v2074_v49  ;;  %v4451_v11 = vpop.eup %4450 }
 0x30a   :  { %v2111_v46 = vmul.f32 %v4451_v11, %v5384_v6 }
 0x30c   :  { %2124 = vst.msk [vmem:[#allocation4 + $0x48] sm:$0xff] %vm5908_vm3, %v2111_v46  ;;  %vm2212_vm3 = vcmask 1048325  }
 0x30e   :  { %v4453_v33 = vpop.eup %4452 }
 0x30f   :  { %v2086_v55 = vadd.f32 1.0, %v4453_v33  ;;  %v2449_v60 = vld [vmem:[#allocation4 + $0x40] ss:$2 sm:$0x7] }
 0x310   :  { %v2451_v61 = vrot.slane %v2449_v60, 4  ;;  %v2429_v31 = vld [vmem:[#allocation4 + $0x3f] ss:$2 sm:$0xf] }
 0x311   :  { %v2252_v40 = vpop.permute.xlu0 %2251  ;;  %4458 = vrcp.f32 %v2086_v55  ;;  %v2402_v9 = vld [vmem:[#allocation4 + $0x40] ss:$2 sm:$0x7]  ;;  %v2431_v8 = vrot.slane %v2429_v31, 4 }
 0x312   :  { %2255 = vst.msk [vmem:[#allocation5 + $0x8] sm:$0x7] %vm2254_vm7, %v2252_v40  ;;  %v4455_v63 = vpop.eup %4454  ;;  %2452 = vrot.lane.b32.xlu1 %v2451_v61, %s4495_s22  ;;  %v2404_v6 = vrot.slane %v2402_v9, 3 }
 0x313   :  { %v2087_v1 = vadd.f32 1.0, %v4455_v63  ;;  %v2511_v5 = vld [vmem:[#allocation4 + $0x47] ss:$2 sm:$0x7]  ;;  %2433 = vst.msk [vmem:[#allocation5 + $0x38] sm:$0xf0] %vm2238_vm9, %v2431_v8 }
 0x314   :  { %v2359_v53 = vld [vmem:[#allocation4 + $0x46] ss:$2 sm:$0xf]  ;;  %v2513_v0 = vrot.slane %v2511_v5, 4 }
 0x315   :  { %v2303_v41 = vpop.permute.xlu1 %2302  ;;  %v2201_v4 = vpop.permute.xlu0 %2200  ;;  %4460 = vrcp.f32 %v2087_v1  ;;  %2361 = vrot.lane.b32.xlu0 %v2359_v53, %s4495_s22  ;;  %v2380_v54 = vld [vmem:[#allocation4 + $0x47] ss:$2 sm:$0x7]  ;;  %v2496_v16 = vld [vmem:[#allocation4 + $0x46] ss:$2 sm:$0xf] }
 0x316   :  { %2204 = vst.msk [vmem:[#allocation5] sm:$0xe] %vm2203_vm2, %v2201_v4  ;;  %v4457_v7 = vpop.eup %4456  ;;  %v2476_v58 = vld [vmem:[#allocation4 + $0x47] ss:$2 sm:$0x7]  ;;  %2405 = vrot.lane.b32.xlu1 %v2404_v6, %s4497_s24  ;;  %v2498_v18 = vrot.slane %v2496_v16, 4 }
 0x317   :  { %2515 = vst.msk [vmem:[#allocation5 + $0x40] sm:$0x70] %vm2328_vm10, %v2513_v0  ;;  %v2088_v13 = vadd.f32 1.0, %v4457_v7  ;;  %v2339_v15 = vld [vmem:[#allocation4 + $0x47] ss:$2 sm:$0x7]  ;;  %vm5909_vm10 = vmmov %vm5905_vm1 }
 0x318   :  { %v2341_v32 = vrot.slane %v2339_v15, 7  ;;  %v2478_v25 = vrot.slane %v2476_v58, 3 }
 0x319   :  { %v2154_v23 = vpop.permute.xlu1 %2153  ;;  %v2281_v14 = vpop.permute.xlu0 %2280  ;;  %4462 = vrcp.f32 %v2088_v13  ;;  %2382 = vrot.lane.b32.xlu0 %v2380_v54, %s4493_s20 }
 0x31a   :  { %2157 = vst.msk [vmem:[#allocation5] sm:$0xf0] %vm2156_vm14, %v2154_v23  ;;  %2479 = vrot.lane.b32.xlu1 %v2478_v25, %s4493_s20 }
 0x31b   :  { %2284 = vst.msk [vmem:[#allocation5 + $0x8] sm:$0xe] %vm2283_vm15, %v2281_v14 }
 0x31c   :  { %2306 = vst.msk [vmem:[#allocation5 + $0x8] sm:$0xf] %vm2305_vm11, %v2303_v41 }
 0x31d   :  { %2343 = vst.msk [vmem:[#allocation5 + $0x48] sm:$0xe] %vm2141_vm12, %v2341_v32  ;;  %v2178_v17 = vpop.permute.xlu1 %2177  ;;  %2499 = vrot.lane.b32.xlu0 %v2498_v18, %s4497_s24  ;;  %vm2127_vm12 = vcmask 254976  }
 0x31e   :  { %2181 = vst.msk [vmem:[#allocation5] sm:$0x70] %vm2180_vm0, %v2178_v17  ;;  %v4459_v29 = vpop.eup %4458  ;;  %v2526_v56 = vld [vmem:[#allocation5 + $0x40] sm:$0xff] }
 0x31f   :  { %v2112_v19 = vmul.f32 %v4459_v29, %v5398_v22  ;;  %v5477_v17 = vld [vmem:[#allocation7] sm:$0xff] }
 0x321   :  { %2125 = vst.msk [vmem:[#allocation4 + $0x50] sm:$0xff] %vm5909_vm10, %v2112_v19  ;;  %vm2313_vm10 = vcmask 1048324  }
 0x322   :  { %v4461_v52 = vpop.eup %4460 }
 0x323   :  { %v2113_v26 = vmul.f32 %v4461_v52, %v5405_v39 }
 0x325   :  { %2126 = vst.msk [vmem:[#allocation4 + $0x58] sm:$0xff] %vm5905_vm1, %v2113_v26 }
 0x326   :  { %v4463_v21 = vpop.eup %4462 }
 0x327   :  { %v2114_v44 = vmul.f32 %v4463_v21, %v5410_v43 }
 0x328   :  { %v2456_v38 = vld [vmem:[#allocation4 + $0x4e] ss:$2 sm:$0x7]  ;;  %v2435_v3 = vld [vmem:[#allocation4 + $0x4d] ss:$2 sm:$0xf] }
 0x329   :  { %2128 = vst.msk [vmem:[#allocation4 + $0x60] sm:$0x3] %vm2127_vm12, %v2114_v44  ;;  %2458 = vrot.lane.b32.xlu0 %v2456_v38, %s4495_s22  ;;  %v2410_v47 = vld [vmem:[#allocation4 + $0x4e] ss:$2 sm:$0x7]  ;;  %vm2830_vm12 = vcmask 1043970  }
 0x32a   :  { %2436 = vst.msk [vmem:[#allocation5 + $0x50] sm:$0xf] %vm2231_vm5, %v2435_v3  ;;  %vm2187_vm5 = vcmask 780800   ;;  %v2412_v51 = vrot.slane %v2410_v47, 7 }
 0x32c   :  { %v2516_v48 = vld [vmem:[#allocation4 + $0x55] ss:$2 sm:$0x7]  ;;  %v2503_v22 = vld [vmem:[#allocation4 + $0x54] ss:$2 sm:$0xf] }
 0x32d   :  { %v2260_v34 = vpop.permute.xlu1 %2259  ;;  %2517 = vst.msk [vmem:[#allocation5 + $0x58] sm:$0x7] %vm2322_vm6, %v2516_v48  ;;  %2505 = vrot.lane.b32.xlu1 %v2503_v22, %s4497_s24  ;;  %v2483_v24 = vld [vmem:[#allocation4 + $0x55] ss:$2 sm:$0x7]  ;;  %vm2291_vm6 = vcmask 785925  }
 0x32e   :  { %2263 = vst.msk [vmem:[#allocation5 + $0x8] sm:$0x70] %vm2262_vm4, %v2260_v34  ;;  %v2366_v28 = vld [vmem:[#allocation4 + $0x54] ss:$2 sm:$0xf]  ;;  %v2485_v30 = vrot.slane %v2483_v24, 7 }
 0x32f   :  { %v2368_v62 = vrot.slane %v2366_v28, 4  ;;  %v2345_v59 = vld [vmem:[#allocation4 + $0x55] ss:$2 sm:$0x7] }
 0x330   :  { %v2162_v10 = vpop.permute.xlu0 %2161  ;;  %2486 = vrot.lane.b32.xlu0 %v2485_v30, %s4493_s20  ;;  %v2462_v35 = vld [vmem:[#allocation4 + $0x5c] ss:$2 sm:$0x7]  ;;  %v2386_v42 = vld [vmem:[#allocation4 + $0x55] ss:$2 sm:$0x7] }
 0x331   :  { %2165 = vst.msk [vmem:[#allocation5 + $0x18] sm:$0xf] %vm2164_vm13, %v2162_v10  ;;  %v2210_v57 = vpop.permute.xlu1 %2209  ;;  %2369 = vrot.lane.b32.xlu1 %v2368_v62, %s4495_s22  ;;  %v2464_v39 = vrot.slane %v2462_v35, 4  ;;  %v2347_v12 = vrot.slane %v2345_v59, 3  ;;  %v2388_v43 = vrot.slane %v2386_v42, 4 }
 0x332   :  { %2213 = vst.msk [vmem:[#allocation5] sm:$0xe0] %vm2212_vm3, %v2210_v57  ;;  %v2438_v27 = vld [vmem:[#allocation4 + $0x5b] ss:$2 sm:$0xf] }
 0x333   :  { %v2440_v37 = vrot.slane %v2438_v27, 4  ;;  %2349 = vst.msk [vmem:[#allocation5 + $0x48] sm:$0xe0] %vm2134_vm8, %v2347_v12  ;;  %v2418_v2 = vld [vmem:[#allocation4 + $0x5c] ss:$2 sm:$0x7] }
 0x334   :  { %v2185_v36 = vpop.permute.xlu0 %2184  ;;  %2465 = vrot.lane.b32.xlu0 %v2464_v39, %s4495_s22  ;;  %v2529_v20 = vld [vmem:[#allocation5 + $0x58] sm:$0xff]  ;;  %v2420_v11 = vrot.slane %v2418_v2, 3  ;;  %vm90_vm8 = vcmask 523264   ;;  %v5493_v57 = vld [vmem:[%s5759_s6] ss:$0 sm:$0xff] }
 0x335   :  { %2188 = vst.msk [vmem:[#allocation5 + $0x18] sm:$0x7] %vm2187_vm5, %v2185_v36  ;;  %v2289_v45 = vpop.permute.xlu1 %2288  ;;  %2389 = vrot.lane.b32.xlu1 %v2388_v43, %s4493_s20  ;;  %v2535_v50 = vpack.c.bf16 %v2529_v20, %v2526_v56 }
 0x336   :  { %2292 = vst.msk [vmem:[#allocation5 + $0x8] sm:$0xe0] %vm2291_vm6, %v2289_v45 }
 0x337   :  { %2442 = vst.msk [vmem:[#allocation5 + $0x50] sm:$0xf0] %vm2238_vm9, %v2440_v37  ;;  %4094 = vmatmul.mubr.msk.bf16.vlgmr.msra.gmra.mxu0 %vm5905_vm1, %v2535_v50  ;;  %vm2821_vm9 = vcmask 516096  }
 0x338   :  { %v2311_v49 = vpop.permute.xlu0 %2310  ;;  %2413 = vrot.lane.b32.xlu0 %v2412_v51, %s4497_s24  ;;  %91 = vst.msk [vmem:[#allocation7 + $0x20] sm:$0xff] %vm90_vm8, %v5477_v17 }
 0x339   :  { %2314 = vst.msk [vmem:[#allocation5 + $0x8] sm:$0xf0] %vm2313_vm10, %v2311_v49  ;;  %2421 = vrot.lane.b32.xlu1 %v2420_v11, %s4497_s24  ;;  %v2518_v41 = vld [vmem:[#allocation5] sm:$0xff] }
 0x340   :  { %v2519_v9 = vld [vmem:[#allocation5 + $0x8] sm:$0xff] }
 0x344   :  { %v2267_v46 = vpop.permute.xlu0 %2266 }
 0x345   :  { %2269 = vst.msk [vmem:[#allocation5 + $0x20] sm:$0x7] %vm2254_vm7, %v2267_v46 }
 0x348   :  { %v2318_v33 = vpop.permute.xlu1 %2317  ;;  %v2219_v55 = vpop.permute.xlu0 %2218 }
 0x349   :  { %2221 = vst.msk [vmem:[#allocation5 + $0x18] sm:$0xe] %vm2203_vm2, %v2219_v55 }
 0x34c   :  { %v2171_v40 = vpop.permute.xlu1 %2170  ;;  %v2297_v60 = vpop.permute.xlu0 %2296 }
 0x34d   :  { %2173 = vst.msk [vmem:[#allocation5 + $0x18] sm:$0xf0] %vm2156_vm14, %v2171_v40 }
 0x34e   :  { %2299 = vst.msk [vmem:[#allocation5 + $0x20] sm:$0xe] %vm2283_vm15, %v2297_v60  ;;  %v4184_v60 = vld [vmem:[%s5760_s7 + $0x78] sm:$0xff]  }
 0x34f   :  { %2320 = vst.msk [vmem:[#allocation5 + $0x20] sm:$0xf] %vm2305_vm11, %v2318_v33  ;;  %3965 = vmatprep.subr.bf16.mxu1 %v4184_v60 }
 0x350   :  { %v2193_v61 = vpop.permute.xlu1 %2192  ;;  %v2274_v31 = vpop.permute.xlu0 %2273 }
 0x351   :  { %2195 = vst.msk [vmem:[#allocation5 + $0x18] sm:$0x70] %vm2180_vm0, %v2193_v61  ;;  %v4185_v61 = vld [vmem:[%s5760_s7 + $0x38] sm:$0xff]  }
 0x352   :  { %2276 = vst.msk [vmem:[#allocation5 + $0x20] sm:$0x70] %vm2262_vm4, %v2274_v31  ;;  %v4186_v31 = vld [vmem:[%s5760_s7 + $0x70] sm:$0xff]  }
 0x354   :  { %v2227_v63 = vpop.permute.xlu1 %2226 }
 0x355   :  { %2229 = vst.msk [vmem:[#allocation5 + $0x18] sm:$0xe0] %vm2212_vm3, %v2227_v63 }
 0x359   :  { %v2522_v8 = vld [vmem:[#allocation5 + $0x20] sm:$0xff] }
 0x35a   :  { %v2531_v1 = vpack.c.bf16 %v2522_v8, %v2519_v9 }
 0x35c   :  { %2725 = vmatprep.mubr.bf16.mxu1 %v2531_v1  ;;  %v2521_v4 = vld [vmem:[#allocation5 + $0x18] sm:$0xff] }
 0x35d   :  { %v2530_v5 = vpack.c.bf16 %v2521_v4, %v2518_v41 }
 0x35f   :  { %2726 = vmatmul.mubr.bf16.vlgmr.msra.gmra.mxu1 %v2530_v5 }
 0x360   :  { %3966 = vmatpush3.bf16.msra.mxu1 %v4185_v61 }
 0x361   :  { %3967 = vmatprep.subr.bf16.mxu1 %v4186_v31  ;;  %v4206_v31 = vld [vmem:[%s5760_s7 + $0x40] sm:$0xff]  }
 0x362   :  { %v2446_v53 = vpop.permute.xlu0 %2445 }
 0x363   :  { %2448 = vst.msk [vmem:[#allocation5 + $0x38] sm:$0x7] %vm2254_vm7, %v2446_v53 }
 0x366   :  { %v2493_v0 = vpop.permute.xlu1 %2492  ;;  %v2398_v6 = vpop.permute.xlu0 %2397 }
 0x367   :  { %2400 = vst.msk [vmem:[#allocation5 + $0x30] sm:$0xe] %vm2203_vm2, %v2398_v6  ;;  %v4187_v6 = vld [vmem:[%s5760_s7 + $0x30] sm:$0xff]  }
 0x368   :  { %3968 = vmatpush3.bf16.msra.mxu1 %v4187_v6  ;;  %v4211_v6 = vld [vmem:[%s5760_s7 + $0x90] sm:$0xff]  }
 0x36a   :  { %v2355_v7 = vpop.permute.xlu1 %2354  ;;  %v2473_v54 = vpop.permute.xlu0 %2472 }
 0x36b   :  { %2357 = vst.msk [vmem:[#allocation5 + $0x30] sm:$0xf0] %vm2156_vm14, %v2355_v7  ;;  %v4188_v7 = vld [vmem:[%s5760_s7 + $0x68] sm:$0xff]  }
 0x36c   :  { %2475 = vst.msk [vmem:[#allocation5 + $0x38] sm:$0xe] %vm2283_vm15, %v2473_v54  ;;  %3969 = vmatprep.subr.bf16.mxu1 %v4188_v7 }
 0x36d   :  { %2495 = vst.msk [vmem:[#allocation5 + $0x38] sm:$0xf] %vm2305_vm11, %v2493_v0 }
 0x36e   :  { %v2377_v58 = vpop.permute.xlu1 %2376 }
 0x36f   :  { %2379 = vst.msk [vmem:[#allocation5 + $0x30] sm:$0x70] %vm2180_vm0, %v2377_v58 }
 0x384   :  { %v2453_v13 = vpop.permute.xlu1 %2452 }
 0x385   :  { %2455 = vst.msk [vmem:[#allocation5 + $0x38] sm:$0x70] %vm2262_vm4, %v2453_v13 }
 0x387   :  { %v2362_v23 = vpop.permute.xlu0 %2361 }
 0x388   :  { %2364 = vst.msk [vmem:[#allocation5 + $0x48] sm:$0xf] %vm2164_vm13, %v2362_v23  ;;  %v2406_v14 = vpop.permute.xlu1 %2405  ;;  %vm2953_vm13 = vcmask 1046020  }
 0x389   :  { %2408 = vst.msk [vmem:[#allocation5 + $0x30] sm:$0xe0] %vm2212_vm3, %v2406_v14 }
 0x38b   :  { %v2383_v15 = vpop.permute.xlu0 %2382 }
 0x38c   :  { %2385 = vst.msk [vmem:[#allocation5 + $0x48] sm:$0x7] %vm2187_vm5, %v2383_v15  ;;  %v2480_v16 = vpop.permute.xlu1 %2479  ;;  %v4189_v15 = vld [vmem:[%s5760_s7 + $0x28] sm:$0xff]  }
 0x38d   :  { %2482 = vst.msk [vmem:[#allocation5 + $0x38] sm:$0xe0] %vm2291_vm6, %v2480_v16  ;;  %v4190_v16 = vld [vmem:[%s5760_s7 + $0x60] sm:$0xff]   ;;  %3970 = vmatpush3.bf16.msra.mxu1 %v4189_v15 }
 0x38e   :  { %3971 = vmatprep.subr.bf16.mxu1 %v4190_v16 }
 0x38f   :  { %v2500_v32 = vpop.permute.xlu0 %2499 }
 0x390   :  { %2502 = vst.msk [vmem:[#allocation5 + $0x38] sm:$0xf0] %vm2313_vm10, %v2500_v32  ;;  %v2524_v48 = vld [vmem:[#allocation5 + $0x30] sm:$0xff]  ;;  %v4191_v32 = vld [vmem:[%s5760_s7 + $0xf8] sm:$0xff]  }
 0x391   :  { %3987 = vmatprep.subr.bf16.mxu0 %v4191_v32 }
 0x397   :  { %v2525_v38 = vld [vmem:[#allocation5 + $0x38] sm:$0xff] }
 0x39b   :  { %v2459_v25 = vpop.permute.xlu0 %2458 }
 0x39c   :  { %2461 = vst.msk [vmem:[#allocation5 + $0x50] sm:$0x7] %vm2254_vm7, %v2459_v25  ;;  %vm2836_vm7 = vcmask 519170   ;;  %v4192_v25 = vld [vmem:[%s5760_s7 + $0x20] sm:$0xff]  }
 0x39d   :  { %3972 = vmatpush3.bf16.msra.mxu1 %v4192_v25 }
 0x39f   :  { %v2506_v18 = vpop.permute.xlu1 %2505 }
 0x3a2   :  { %v2487_v29 = vpop.permute.xlu0 %2486 }
 0x3a3   :  { %2489 = vst.msk [vmem:[#allocation5 + $0x50] sm:$0xe] %vm2283_vm15, %v2487_v29  ;;  %v2370_v19 = vpop.permute.xlu1 %2369  ;;  %vm2939_vm15 = vcmask 521220  }
 0x3a4   :  { %2508 = vst.msk [vmem:[#allocation5 + $0x50] sm:$0xf] %vm2305_vm11, %v2506_v18  ;;  %v4193_v18 = vld [vmem:[%s5760_s7 + $0xb8] sm:$0xff]   ;;  %vm2844_vm11 = vcmask 1040896  }
 0x3a5   :  { %2372 = vst.msk [vmem:[#allocation5 + $0x48] sm:$0xf0] %vm2156_vm14, %v2370_v19  ;;  %3988 = vmatpush3.bf16.msra.mxu0 %v4193_v18  ;;  %vm2918_vm14 = vcmask 523270   ;;  %v4214_v18 = vld [vmem:[%s5760_s7 + $0x88] sm:$0xff]  }
 0x3a6   :  { %v2466_v52 = vpop.permute.xlu0 %2465 }
 0x3a7   :  { %2468 = vst.msk [vmem:[#allocation5 + $0x50] sm:$0x70] %vm2262_vm4, %v2466_v52  ;;  %v2390_v26 = vpop.permute.xlu1 %2389  ;;  %vm2912_vm4 = vcmask 1048070  }
 0x3a8   :  { %2392 = vst.msk [vmem:[#allocation5 + $0x48] sm:$0x70] %vm2180_vm0, %v2390_v26  ;;  %vm2867_vm0 = vcmask 1041920  }
 0x3aa   :  { %v2414_v21 = vpop.permute.xlu0 %2413 }
 0x3ab   :  { %2416 = vst.msk [vmem:[#allocation5 + $0x48] sm:$0xe] %vm2203_vm2, %v2414_v21  ;;  %v2422_v44 = vpop.permute.xlu1 %2421  ;;  %vm2854_vm2 = vcmask 517120  }
 0x3ac   :  { %2424 = vst.msk [vmem:[#allocation5 + $0x48] sm:$0xe0] %vm2212_vm3, %v2422_v44  ;;  %vm4500_vm3 = vmmov 0  }
 0x3ae   :  { %v2528_v3 = vld [vmem:[#allocation5 + $0x50] sm:$0xff] }
 0x3af   :  { %v2534_v34 = vpack.c.bf16 %v2528_v3, %v2525_v38 }
 0x3b1   :  { %2733 = vmatprep.mubr.bf16.mxu1 %v2534_v34 }
 0x3b3   :  { %v2527_v22 = vld [vmem:[#allocation5 + $0x48] sm:$0xff] }
 0x3b4   :  { %v2533_v24 = vpack.c.bf16 %v2527_v22, %v2524_v48 }
 0x3b6   :  { %2734 = vmatmul.mubr.bf16.gmra.mxu1 %v2533_v24 }
 0x3f7   :  { %v5488_v10 = vpop.f32.mrf.mxu0 }
 0x3f9   :  { %v2776_v30 = vpop.f32.mrf.mxu0 }
 0x3fb   :  { %v5496_v39 = vpop.f32.mrf.mxu0 }
 0x3fd   :  { %v2779_v43 = vpop.f32.mrf.mxu0 }
 0x41f   :  { %v3949_v28 = vpop.f32.mrf.mxu1 }
 0x421   :  { %v3950_v62 = vpop.f32.mrf.mxu1 }
 0x422   :  { %v3951_v59 = vadd.f32 %v3950_v62, %v3949_v28 }
 0x423   :  { %v3952_v35 = vpop.f32.mrf.mxu1 }
 0x424   :  { %v2728_v42 = vadd.f32 %v3951_v59, %v5493_v57 }
 0x425   :  { %v3953_v36 = vpop.f32.mrf.mxu1 }
 0x426   :  { %v2777_v12 = vadd.f32 %v2776_v30, %v2728_v42  ;;  %v3954_v27 = vadd.f32 %v3953_v36, %v3952_v35 }
 0x428   :  { %v2791_v37 = vsub.f32 0.0, %v2777_v12  ;;  %v2731_v45 = vadd.f32 %v3954_v27, %v5493_v57 }
 0x42a   :  { %v2795_v47 = vmul.f32 1.442695, %v2791_v37  ;;  %v2780_v56 = vadd.f32 %v2779_v43, %v2731_v45  ;;  %v4197_v45 = vld [vmem:[%s5760_s7 + $0xb0] sm:$0xff]  }
 0x42c   :  { %4464 = vpow2.f32 %v2795_v47  ;;  %v2792_v20 = vsub.f32 0.0, %v2780_v56 }
 0x42e   :  { %v2797_v2 = vmul.f32 1.442695, %v2792_v20  ;;  %v4199_v20 = vld [vmem:[%s5760_s7 + $0xe8] sm:$0xff]  }
 0x430   :  { %4466 = vpow2.f32 %v2797_v2  ;;  %v4200_v2 = vld [vmem:[%s5760_s7 + $0x10] sm:$0xff]  }
 0x439   :  { %v4465_v50 = vpop.eup %4464 }
 0x43a   :  { %v2803_v49 = vadd.f32 1.0, %v4465_v50  ;;  %v4201_v50 = vld [vmem:[%s5760_s7 + $0xa8] sm:$0xff]  }
 0x43c   :  { %4468 = vrcp.f32 %v2803_v49 }
 0x43d   :  { %v4467_v51 = vpop.eup %4466 }
 0x43e   :  { %v2804_v11 = vadd.f32 1.0, %v4467_v51 }
 0x440   :  { %4470 = vrcp.f32 %v2804_v11  ;;  %v4202_v11 = vld [vmem:[%s5760_s7 + $0x48] sm:$0xff]  }
 0x449   :  { %v4469_v46 = vpop.eup %4468 }
 0x44a   :  { %v2811_v33 = vmul.f32 %v4469_v46, %v2777_v12  ;;  %v4203_v46 = vld [vmem:[%s5760_s7 + $0xe0] sm:$0xff]  }
 0x44c   :  { %2815 = vst.msk [vmem:[#allocation6] sm:$0xff] %vm90_vm8, %v2811_v33  ;;  %v4204_v33 = vld [vmem:[%s5760_s7 + $0x8] sm:$0xff]  }
 0x44d   :  { %v4471_v55 = vpop.eup %4470 }
 0x44e   :  { %v2812_v40 = vmul.f32 %v4471_v55, %v2780_v56  ;;  %v4198_v56 = vld [vmem:[%s5760_s7 + $0x50] sm:$0xff]   ;;  %v4205_v55 = vld [vmem:[%s5760_s7 + $0xa0] sm:$0xff]  }
 0x450   :  { %2816 = vst.msk [vmem:[#allocation6 + $0x8] sm:$0xff] %vm90_vm8, %v2812_v40 }
 0x453   :  { %v2839_v63 = vld [vmem:[#allocation6 + $0x1] ss:$2 sm:$0x1]  ;;  %v2824_v9 = vld [vmem:[#allocation6 + $0x4] ss:$2 sm:$0x3] }
 0x454   :  { %2841 = vrot.lane.b32.xlu0 %v2839_v63, %s4493_s20  ;;  %v2881_v8 = vld [vmem:[#allocation6 + $0x4] ss:$2 sm:$0x3]  ;;  %v2832_v1 = vld [vmem:[#allocation6 + $0x5] ss:$2 sm:$0x3] }
 0x455   :  { %v2834_v41 = vrot.slane %v2832_v1, 6  ;;  %v2876_v4 = vld [vmem:[#allocation6 + $0x5] ss:$2 sm:$0x1]  ;;  %v2826_v0 = vrot.slane %v2824_v9, 6  ;;  %v4207_v63 = vld [vmem:[%s5760_s7 + $0xd8] sm:$0xff]  }
 0x456   :  { %2877 = vst.msk [vmem:[#allocation7 + $0x19] sm:$0x1] %vm2821_vm9, %v2876_v4  ;;  %v2820_v14 = vld [vmem:[#allocation6 + $0x5] ss:$2 sm:$0x1]  ;;  %v4208_v9 = vld [vmem:[%s5760_s7] sm:$0xff]  }
 0x457   :  { %v2847_v5 = vld [vmem:[#allocation6 + $0x9] ss:$2 sm:$0x1]  ;;  %v2888_v53 = vld [vmem:[#allocation6 + $0xc] ss:$2 sm:$0x3] }
 0x458   :  { %2849 = vrot.lane.b32.xlu1 %v2847_v5, %s4493_s20  ;;  %2883 = vrot.lane.b32.xlu0 %v2881_v8, %s4493_s20  ;;  %2837 = vst.msk [vmem:[#allocation7 + $0x8] sm:$0xc] %vm2836_vm7, %v2834_v41  ;;  %v2890_v54 = vrot.slane %v2888_v53, 6  ;;  %v2897_v58 = vld [vmem:[#allocation6 + $0xd] ss:$2 sm:$0x3] }
 0x459   :  { %v2899_v13 = vrot.slane %v2897_v58, 6  ;;  %v2879_v23 = vld [vmem:[#allocation6 + $0xd] ss:$2 sm:$0x1]  ;;  %2822 = vst.msk [vmem:[#allocation7 + $0x3] sm:$0x1] %vm2821_vm9, %v2820_v14 }
 0x45a   :  { %2880 = vst.msk [vmem:[#allocation7 + $0x1b] sm:$0x1] %vm2821_vm9, %v2879_v23  ;;  %v2853_v29 = vld [vmem:[#allocation6] ss:$2 sm:$0x3]  ;;  %v4209_v8 = vld [vmem:[%s5760_s7 + $0x98] sm:$0xff]  }
 0x45b   :  { %2901 = vst.msk [vmem:[#allocation7 + $0x20] sm:$0xc] %vm2836_vm7, %v2899_v13  ;;  %v2895_v19 = vld [vmem:[#allocation6 + $0x5] ss:$2 sm:$0x3]  ;;  %v4213_v58 = vld [vmem:[%s5760_s7 + $0xc8] sm:$0xff]  }
 0x45c   :  { %2891 = vrot.lane.b32.xlu1 %v2890_v54, %s4493_s20  ;;  %2827 = vrot.lane.b32.xlu0 %v2826_v0, %s4493_s20  ;;  %2855 = vst.msk [vmem:[#allocation7 + $0x10] sm:$0x3] %vm2854_vm2, %v2853_v29  ;;  %2896 = vst.msk [vmem:[#allocation7 + $0x20] sm:$0x3] %vm2854_vm2, %v2895_v19  ;;  %v4210_v0 = vld [vmem:[%s5760_s7 + $0xd0] sm:$0xff]  }
 0x45d   :  { %v2857_v52 = vld [vmem:[#allocation6 + $0x8] ss:$2 sm:$0x3]  ;;  %v2862_v1 = vld [vmem:[#allocation6 + $0x1] ss:$2 sm:$0x3] }
 0x45e   :  { %v2859_v26 = vrot.slane %v2857_v52, 6  ;;  %v2869_v5 = vld [vmem:[#allocation6 + $0x9] ss:$2 sm:$0x3] }
 0x45f   :  { %v2871_v23 = vrot.slane %v2869_v5, 6 }
 0x460   :  { %2861 = vst.msk [vmem:[#allocation7 + $0x10] sm:$0xc] %vm2836_vm7, %v2859_v26 }
 0x476   :  { %v3955_v21 = vpop.f32.mrf.mxu1 }
 0x478   :  { %v3956_v44 = vpop.f32.mrf.mxu1 }
 0x479   :  { %v3957_v38 = vadd.f32 %v3956_v44, %v3955_v21  ;;  %v4216_v44 = vld [vmem:[%s5760_s7 + $0xc0] sm:$0xff]  }
 0x47a   :  { %v3958_v3 = vpop.f32.mrf.mxu1 }
 0x47b   :  { %v2736_v34 = vadd.f32 %v3957_v38, %v5493_v57 }
 0x47c   :  { %v3959_v48 = vpop.f32.mrf.mxu1 }
 0x47d   :  { %v2785_v22 = vadd.f32 %v5488_v10, %v2736_v34  ;;  %v3960_v24 = vadd.f32 %v3959_v48, %v3958_v3  ;;  %v4194_v10 = vld [vmem:[%s5760_s7 + $0x58] sm:$0xff]  }
 0x47e   :  { %3973 = vmatprep.subr.bf16.mxu1 %v4194_v10 }
 0x47f   :  { %v2793_v28 = vsub.f32 0.0, %v2785_v22  ;;  %v2739_v30 = vadd.f32 %v3960_v24, %v5493_v57  ;;  %v4195_v57 = vld [vmem:[%s5760_s7 + $0xf0] sm:$0xff]  }
 0x480   :  { %3989 = vmatprep.subr.bf16.mxu0 %v4195_v57 }
 0x481   :  { %v2799_v62 = vmul.f32 1.442695, %v2793_v28  ;;  %v2788_v59 = vadd.f32 %v5496_v39, %v2739_v30  ;;  %v4196_v39 = vld [vmem:[%s5760_s7 + $0x18] sm:$0xff]   ;;  %3990 = vmatpush3.bf16.msra.mxu0 %v4197_v45 }
 0x482   :  { %3974 = vmatpush3.bf16.msra.mxu1 %v4196_v39  ;;  %3991 = vmatprep.subr.bf16.mxu0 %v4199_v20  ;;  %v4212_v20 = vld [vmem:[%s5760_s7 + $0x118] sm:$0xff]  }
 0x483   :  { %4472 = vpow2.f32 %v2799_v62  ;;  %v2794_v35 = vsub.f32 0.0, %v2788_v59  ;;  %3975 = vmatprep.subr.bf16.mxu1 %v4198_v56 }
 0x485   :  { %v2801_v42 = vmul.f32 1.442695, %v2794_v35  ;;  %3992 = vmatpush3.bf16.msra.mxu0 %v4201_v50 }
 0x486   :  { %3976 = vmatpush3.bf16.msra.mxu1 %v4200_v2  ;;  %3993 = vmatprep.subr.bf16.mxu0 %v4203_v46  ;;  %v4218_v46 = vld [vmem:[%s5760_s7 + $0x108] sm:$0xff]  }
 0x487   :  { %4474 = vpow2.f32 %v2801_v42  ;;  %3977 = vmatprep.subr.bf16.mxu1 %v4202_v11 }
 0x489   :  { %3994 = vmatpush3.bf16.msra.mxu0 %v4205_v55 }
 0x48a   :  { %3978 = vmatpush3.bf16.msra.mxu1 %v4204_v33  ;;  %3995 = vmatprep.subr.bf16.mxu0 %v4207_v63  ;;  %v4221_v63 = vld [vmem:[%s5761_s9 + $0x38] sm:$0xff]  }
 0x48b   :  { %3979 = vmatprep.subr.bf16.mxu1 %v4206_v31  ;;  %v4220_v31 = vld [vmem:[%s5761_s9 + $0x78] sm:$0xff]  }
 0x48d   :  { %3996 = vmatpush3.bf16.msra.mxu0 %v4209_v8  ;;  %v4223_v8 = vld [vmem:[%s5761_s9 + $0x30] sm:$0xff]  }
 0x48e   :  { %3980 = vmatpush3.bf16.msra.mxu1 %v4208_v9  ;;  %3997 = vmatprep.subr.bf16.mxu0 %v4210_v0  ;;  %v4222_v9 = vld [vmem:[%s5761_s9 + $0x70] sm:$0xff]  }
 0x48f   :  { %4097 = vmatprep.subr.bf16.mxu1 %v5477_v17 }
 0x490   :  { %v4473_v36 = vpop.eup %4472 }
 0x491   :  { %v2805_v12 = vadd.f32 1.0, %v4473_v36  ;;  %3998 = vmatpush3.bf16.msra.mxu0 %v4211_v6 }
 0x492   :  { %3999 = vmatprep.subr.bf16.mxu0 %v4213_v58 }
 0x493   :  { %4476 = vrcp.f32 %v2805_v12 }
 0x494   :  { %v4475_v27 = vpop.eup %4474 }
 0x495   :  { %v2806_v37 = vadd.f32 1.0, %v4475_v27  ;;  %4000 = vmatpush3.bf16.msra.mxu0 %v4214_v18 }
 0x496   :  { %4001 = vmatprep.subr.bf16.mxu0 %v4216_v44 }
 0x497   :  { %4478 = vrcp.f32 %v2806_v37 }
 0x4a0   :  { %v4477_v43 = vpop.eup %4476 }
 0x4a1   :  { %v2813_v47 = vmul.f32 %v4477_v43, %v2785_v22  ;;  %v4217_v22 = vld [vmem:[%s5760_s7 + $0x80] sm:$0xff]  }
 0x4a2   :  { %4002 = vmatpush3.bf16.msra.mxu0 %v4217_v22  ;;  %v4227_v22 = vld [vmem:[%s5761_s9 + $0x20] sm:$0xff]  }
 0x4a3   :  { %2817 = vst.msk [vmem:[#allocation6 + $0x10] sm:$0xff] %vm90_vm8, %v2813_v47  ;;  %4014 = vmatprep.subr.bf16.mxu0 %v4220_v31  ;;  %v4236_v31 = vld [vmem:[%s5763_s11 + $0x18] sm:$0xff]  }
 0x4a4   :  { %v4479_v49 = vpop.eup %4478 }
 0x4a5   :  { %v2814_v51 = vmul.f32 %v4479_v49, %v2788_v59  ;;  %v4215_v49 = vld [vmem:[%s5760_s7 + $0x110] sm:$0xff]  }
 0x4a7   :  { %2818 = vst.msk [vmem:[#allocation6 + $0x18] sm:$0xff] %vm90_vm8, %v2814_v51 }
 0x4aa   :  { %v2921_v40 = vld [vmem:[#allocation6 + $0x11] ss:$2 sm:$0x1]  ;;  %v2906_v60 = vld [vmem:[#allocation6 + $0x14] ss:$2 sm:$0x3] }
 0x4ab   :  { %2923 = vrot.lane.b32.xlu0 %v2921_v40, %s4493_s20  ;;  %v2908_v61 = vrot.slane %v2906_v60, 2  ;;  %v2903_v41 = vld [vmem:[#allocation6 + $0x15] ss:$2 sm:$0x1] }
 0x4ac   :  { %v2967_v4 = vld [vmem:[#allocation6 + $0x14] ss:$2 sm:$0x3]  ;;  %2904 = vst.msk [vmem:[#allocation7 + $0x7] sm:$0x1] %vm2821_vm9, %v2903_v41  ;;  %v4225_v41 = vld [vmem:[%s5761_s9 + $0x28] sm:$0xff]  }
 0x4ad   :  { %2909 = vrot.lane.b32.xlu1 %v2908_v61, %s4493_s20  ;;  %v2947_v7 = vld [vmem:[#allocation6 + $0x11] ss:$2 sm:$0x3]  ;;  %v2914_v54 = vld [vmem:[#allocation6 + $0x15] ss:$2 sm:$0x3] }
 0x4ae   :  { %v2928_v53 = vld [vmem:[#allocation6 + $0x19] ss:$2 sm:$0x1]  ;;  %v2969_v13 = vrot.slane %v2967_v4, 4  ;;  %v2916_v14 = vrot.slane %v2914_v54, 2  ;;  %v2949_v38 = vrot.slane %v2947_v7, 4 }
 0x4af   :  { %2864 = vrot.lane.b32.xlu0 %v2862_v1, %s4493_s20  ;;  %v2987_v15 = vld [vmem:[#allocation6 + $0x1d] ss:$2 sm:$0x3]  ;;  %v2975_v16 = vld [vmem:[#allocation6 + $0x1c] ss:$2 sm:$0x3] }
 0x4b0   :  { %v2989_v32 = vrot.slane %v2987_v15, 2  ;;  %v2962_v25 = vld [vmem:[#allocation6 + $0x15] ss:$2 sm:$0x1]  ;;  %2919 = vst.msk [vmem:[#allocation7 + $0x8] sm:$0xc0] %vm2918_vm14, %v2916_v14 }
 0x4b1   :  { %2930 = vrot.lane.b32.xlu1 %v2928_v53, %s4493_s20  ;;  %2963 = vst.msk [vmem:[#allocation7 + $0x1d] sm:$0x1] %vm2821_vm9, %v2962_v25  ;;  %v2935_v29 = vld [vmem:[#allocation6 + $0x10] ss:$2 sm:$0x3]  ;;  %v2977_v48 = vrot.slane %v2975_v16, 2 }
 0x4b2   :  { %v2982_v19 = vld [vmem:[#allocation6 + $0x15] ss:$2 sm:$0x3]  ;;  %2991 = vst.msk [vmem:[#allocation7 + $0x20] sm:$0xc0] %vm2918_vm14, %v2989_v32  ;;  %v2937_v52 = vrot.slane %v2935_v29, 4 }
 0x4b3   :  { %2970 = vrot.lane.b32.xlu0 %v2969_v13, %s4493_s20  ;;  %v2984_v26 = vrot.slane %v2982_v19, 4  ;;  %v2965_v21 = vld [vmem:[#allocation6 + $0x1d] ss:$2 sm:$0x1]  ;;  %v4219_v40 = vld [vmem:[%s5760_s7 + $0x100] sm:$0xff]  }
 0x4b4   :  { %2966 = vst.msk [vmem:[#allocation7 + $0x1f] sm:$0x1] %vm2821_vm9, %v2965_v21  ;;  %v2942_v3 = vld [vmem:[#allocation6 + $0x18] ss:$2 sm:$0x3]  ;;  %v4226_v4 = vld [vmem:[%s5761_s9 + $0x60] sm:$0xff]  }
 0x4b5   :  { %2872 = vrot.lane.b32.xlu1 %v2871_v23, %s4493_s20  ;;  %2940 = vst.msk [vmem:[#allocation7 + $0x10] sm:$0x30] %vm2939_vm15, %v2937_v52  ;;  %2986 = vst.msk [vmem:[#allocation7 + $0x20] sm:$0x30] %vm2939_vm15, %v2984_v26  ;;  %v2944_v34 = vrot.slane %v2942_v3, 2  ;;  %v4224_v1 = vld [vmem:[%s5761_s9 + $0x68] sm:$0xff]  }
 0x4b6   :  { %v2955_v24 = vld [vmem:[#allocation6 + $0x19] ss:$2 sm:$0x3]  ;;  %v3843_v54 = vld [vmem:[%s5762_s8] ss:$0 sm:$0xff] }
 0x4b7   :  { %2950 = vrot.lane.b32.xlu0 %v2949_v38, %s4493_s20  ;;  %2946 = vst.msk [vmem:[#allocation7 + $0x10] sm:$0xc0] %vm2918_vm14, %v2944_v34  ;;  %v2957_v28 = vrot.slane %v2955_v24, 2  ;;  %v4501_v3 = vmov 1983009808  }
 0x4b8   :  { %v3429_v34 = vunpack.c.l.s4 %v4501_v3 }
 0x4b9   :  { %2978 = vrot.lane.b32.xlu1 %v2977_v48, %s4493_s20  ;;  %v3431_v48 = vlaneseq }
 0x4ba   :  { %v3430_v24 = vunpack.c.0.s8 %v3429_v34 }
 0x4bc   :  { %v2996_v60 = vld [vmem:[#allocation7 + $0x20] sm:$0xff] }
 0x4bd   :  { %2958 = vrot.lane.b32.xlu1 %v2957_v28, %s4493_s20  ;;  %v3001_v61 = vpack.c.bf16 %v2996_v60, %v2996_v60  ;;  %v3432_v28 = vshrl.u32 %v3431_v48, 7 }
 0x4c6   :  { %v2842_v30 = vpop.permute.xlu0 %2841 }
 0x4c7   :  { %2845 = vst.msk [vmem:[#allocation7 + $0x9] sm:$0x1] %vm2844_vm11, %v2842_v30  ;;  %v4228_v30 = vld [vmem:[%s5761_s9 + $0x58] sm:$0xff]  }
 0x4ca   :  { %v2850_v62 = vpop.permute.xlu1 %2849  ;;  %v2884_v59 = vpop.permute.xlu0 %2883 }
 0x4cb   :  { %2852 = vst.msk [vmem:[#allocation7 + $0xb] sm:$0x1] %vm2844_vm11, %v2850_v62  ;;  %v4229_v62 = vld [vmem:[%s5761_s9 + $0x18] sm:$0xff]  }
 0x4cc   :  { %2886 = vst.msk [vmem:[#allocation7 + $0x18] sm:$0x3] %vm2867_vm0, %v2884_v59  ;;  %v3433_v59 = vsub.s32 %v3430_v24, %v3432_v28 }
 0x4ce   :  { %v2892_v35 = vpop.permute.xlu1 %2891  ;;  %v2828_v42 = vpop.permute.xlu0 %2827 }
 0x4cf   :  { %2894 = vst.msk [vmem:[#allocation7 + $0x18] sm:$0xc] %vm2830_vm12, %v2892_v35  ;;  %2831 = vst.msk [vmem:[#allocation7] sm:$0xc] %vm2830_vm12, %v2828_v42  ;;  %v4230_v42 = vld [vmem:[%s5761_s9 + $0x50] sm:$0xff]  }
 0x51d   :  { %v2924_v36 = vpop.permute.xlu0 %2923 }
 0x51e   :  { %2926 = vst.msk [vmem:[#allocation7 + $0xd] sm:$0x1] %vm2844_vm11, %v2924_v36  ;;  %v4231_v36 = vld [vmem:[%s5761_s9 + $0x10] sm:$0xff]  }
 0x51f   :  { %v2910_v12 = vpop.permute.xlu1 %2909 }
 0x520   :  { %2913 = vst.msk [vmem:[#allocation7] sm:$0xc0] %vm2912_vm4, %v2910_v12 }
 0x521   :  { %v2865_v27 = vpop.permute.xlu0 %2864 }
 0x522   :  { %2868 = vst.msk [vmem:[#allocation7 + $0x10] sm:$0x3] %vm2867_vm0, %v2865_v27  ;;  %v4232_v27 = vld [vmem:[%s5761_s9 + $0x48] sm:$0xff]  }
 0x523   :  { %v2931_v37 = vpop.permute.xlu1 %2930 }
 0x524   :  { %2933 = vst.msk [vmem:[#allocation7 + $0xf] sm:$0x1] %vm2844_vm11, %v2931_v37 }
 0x525   :  { %v2971_v10 = vpop.permute.xlu0 %2970 }
 0x526   :  { %2973 = vst.msk [vmem:[#allocation7 + $0x18] sm:$0x30] %vm2953_vm13, %v2971_v10 }
 0x527   :  { %v2873_v57 = vpop.permute.xlu1 %2872  ;;  %v2992_v45 = vld [vmem:[#allocation7] sm:$0xff] }
 0x528   :  { %2875 = vst.msk [vmem:[#allocation7 + $0x10] sm:$0xc] %vm2830_vm12, %v2873_v57  ;;  %v2997_v2 = vpack.c.bf16 %v2992_v45, %v2992_v45  ;;  %v4233_v57 = vld [vmem:[%s5761_s9 + $0x8] sm:$0xff]  }
 0x529   :  { %v2951_v39 = vpop.permute.xlu0 %2950 }
 0x52a   :  { %2954 = vst.msk [vmem:[#allocation7 + $0x10] sm:$0x30] %vm2953_vm13, %v2951_v39 }
 0x52b   :  { %v2979_v43 = vpop.permute.xlu1 %2978  ;;  %v2993_v47 = vld [vmem:[#allocation7 + $0x8] sm:$0xff] }
 0x52c   :  { %2981 = vst.msk [vmem:[#allocation7 + $0x18] sm:$0xc0] %vm2912_vm4, %v2979_v43  ;;  %v2998_v56 = vpack.c.bf16 %v2993_v47, %v2993_v47  ;;  %v4234_v47 = vld [vmem:[%s5761_s9 + $0x40] sm:$0xff]  }
 0x52e   :  { %3332 = vmatprep.mubr.bf16.mxu1 %v2998_v56 }
 0x52f   :  { %v2959_v50 = vpop.permute.xlu1 %2958  ;;  %3333 = vmatmul.mubr.bf16.vlgmr.msra.gmra.mxu1 %v2997_v2  ;;  %v4235_v2 = vld [vmem:[%s5761_s9] sm:$0xff]  }
 0x530   :  { %2961 = vst.msk [vmem:[#allocation7 + $0x10] sm:$0xc0] %vm2912_vm4, %v2959_v50  ;;  %4098 = vmatpush3.bf16.msra.mxu1 %v4212_v20  ;;  %4105 = vmatprep.mubr.msk.bf16.mxu1 %vm4500_vm3, %v5477_v17 }
 0x531   :  { %4099 = vmatprep.subr.bf16.mxu1 %v5477_v17 }
 0x533   :  { %v2995_v51 = vld [vmem:[#allocation7 + $0x18] sm:$0xff] }
 0x534   :  { %4100 = vmatpush3.bf16.msra.mxu1 %v4215_v49  ;;  %v3000_v11 = vpack.c.bf16 %v2995_v51, %v2995_v51 }
 0x535   :  { %4101 = vmatprep.subr.bf16.mxu1 %v5477_v17 }
 0x536   :  { %3372 = vmatprep.mubr.bf16.mxu0 %v3000_v11 }
 0x537   :  { %v2994_v33 = vld [vmem:[#allocation7 + $0x10] sm:$0xff] }
 0x538   :  { %4102 = vmatpush3.bf16.msra.mxu1 %v4218_v46  ;;  %v2999_v55 = vpack.c.bf16 %v2994_v33, %v2994_v33 }
 0x539   :  { %4103 = vmatprep.subr.bf16.mxu1 %v5477_v17 }
 0x53a   :  { %3373 = vmatmul.mubr.bf16.vlgmr.msra.gmra.mxu0 %v2999_v55 }
 0x53b   :  { %4015 = vmatpush3.bf16.msra.mxu0 %v4221_v63  ;;  %v4237_v63 = vld [vmem:[%s5763_s11 + $0x10] sm:$0xff]  }
 0x53c   :  { %4104 = vmatpush3.bf16.msra.mxu1 %v4219_v40  ;;  %4016 = vmatprep.subr.bf16.mxu0 %v4222_v9  ;;  %v4238_v9 = vld [vmem:[%s5763_s11 + $0x8] sm:$0xff]  }
 0x53d   :  { %4109 = vmatprep.subr.bf16.mxu1 %v5477_v17 }
 0x53f   :  { %4106 = vmatmul.mubr.msk.bf16.vlgmr.msra.gmra.mxu1 %vm90_vm8, %v3001_v61  ;;  %4017 = vmatpush3.bf16.msra.mxu0 %v4223_v8  ;;  %v4239_v8 = vld [vmem:[%s5763_s11] sm:$0xff]  }
 0x540   :  { %4117 = vmatprep.mubr.msk.bf16.mxu1 %vm4500_vm3, %v5477_v17  ;;  %4018 = vmatprep.subr.bf16.mxu0 %v4224_v1 }
 0x541   :  { %4110 = vmatpush3.bf16.msra.mxu1 %v4236_v31 }
 0x542   :  { %4111 = vmatprep.subr.bf16.mxu1 %v5477_v17 }
 0x543   :  { %4019 = vmatpush3.bf16.msra.mxu0 %v4225_v41  ;;  %v3886_v41 = vld [vmem:[%s5764_s10] ss:$0 sm:$0xff] }
 0x544   :  { %4020 = vmatprep.subr.bf16.mxu0 %v4226_v4 }
 0x545   :  { %4112 = vmatpush3.bf16.msra.mxu1 %v4237_v63 }
 0x546   :  { %4113 = vmatprep.subr.bf16.mxu1 %v5477_v17 }
 0x547   :  { %4021 = vmatpush3.bf16.msra.mxu0 %v4227_v22 }
 0x548   :  { %4022 = vmatprep.subr.bf16.mxu0 %v4228_v30 }
 0x549   :  { %4114 = vmatpush3.bf16.msra.mxu1 %v4238_v9 }
 0x54a   :  { %4115 = vmatprep.subr.bf16.mxu1 %v5477_v17 }
 0x54b   :  { %4023 = vmatpush3.bf16.msra.mxu0 %v4229_v62 }
 0x54c   :  { %4024 = vmatprep.subr.bf16.mxu0 %v4230_v42 }
 0x54d   :  { %4116 = vmatpush3.bf16.msra.mxu1 %v4239_v8 }
 0x54f   :  { %4025 = vmatpush3.bf16.msra.mxu0 %v4231_v36 }
 0x550   :  { %4026 = vmatprep.subr.bf16.mxu0 %v4232_v27 }
 0x553   :  { %4027 = vmatpush3.bf16.msra.mxu0 %v4233_v57 }
 0x554   :  { %4028 = vmatprep.subr.bf16.mxu0 %v4234_v47 }
 0x557   :  { %4029 = vmatpush3.bf16.msra.mxu0 %v4235_v2 }
 0x5ef   :  { %v3981_v5 = vpop.f32.mrf.mxu1 }
 0x5f1   :  { %v3982_v53 = vpop.f32.mrf.mxu1 }
 0x5f2   :  { %v3983_v7 = vadd.f32 %v3982_v53, %v3981_v5 }
 0x5f3   :  { %v3984_v0 = vpop.f32.mrf.mxu1 }
 0x5f4   :  { %v3335_v23 = vadd.f32 %v3983_v7, %v3843_v54 }
 0x5f5   :  { %v3985_v6 = vpop.f32.mrf.mxu1 }
 0x5fa   :  { %v4003_v58 = vpop.f32.mrf.mxu0 }
 0x5fc   :  { %v4004_v13 = vpop.f32.mrf.mxu0 }
 0x5fd   :  { %v4005_v14 = vadd.f32 %v4004_v13, %v4003_v58 }
 0x5fe   :  { %v4006_v15 = vpop.f32.mrf.mxu0 }
 0x5ff   :  { %v3375_v16 = vadd.f32 %v4005_v14, %v3335_v23  ;;  %v3414_v32 = vpop.f32.mrf.mxu1  ;;  %v3903_v15 = vld [vmem:[%s5765_s12] ss:$0 sm:$0xff] }
 0x600   :  { %v4007_v25 = vpop.f32.mrf.mxu0 }
 0x601   :  { %v3415_v18 = vadd.f32 %v3414_v32, %v3375_v16  ;;  %v4107_v29 = vpop.f32.mrf.mxu1 }
 0x603   :  { %v3420_v19 = vsub.f32 0.0, %v3415_v18  ;;  %v3417_v52 = vpop.f32.mrf.mxu1 }
 0x605   :  { %v3421_v26 = vmul.f32 1.442695, %v3420_v19  ;;  %v4108_v21 = vpop.f32.mrf.mxu1 }
 0x607   :  { %4480 = vpow2.f32 %v3421_v26 }
 0x614   :  { %v4481_v44 = vpop.eup %4480 }
 0x615   :  { %v3423_v38 = vadd.f32 1.0, %v4481_v44 }
 0x617   :  { %4482 = vrcp.f32 %v3423_v38 }
 0x624   :  { %v4483_v35 = vpop.eup %4482 }
 0x625   :  { %v3425_v12 = vmul.f32 %v4483_v35, %v3415_v18 }
 0x627   :  { %v3434_v37 = vrot.slane %v3425_v12, %v3433_v59  ;;  %v3450_v10 = vcombine.high %v3425_v12, %v3425_v12  ;;  %3426 = vst.msk [vmem:[#allocation8] sm:$0x1] %vm2821_vm9, %v3425_v12 }
 0x629   :  { %v3441_v39 = vcombine.high %v3434_v37, %v3434_v37  ;;  %v3457_v45 = vrot.slane %v3450_v10, %v3433_v59  ;;  %v3881_v43 = vrot.slane %v3434_v37, 9 }
 0x62b   :  { %3443 = vst.msk [vmem:[#allocation8 + $0x2] sm:$0x1] %vm2821_vm9, %v3441_v39  ;;  %3459 = vst.msk [vmem:[#allocation8 + $0x1] sm:$0x1] %vm2821_vm9, %v3457_v45  ;;  %3437 = vrot.lane.b32.xlu0 %v3881_v43, %s4493_s20  ;;  %v3882_v56 = vrot.slane %v3441_v39, 9  ;;  %v3466_v20 = vcombine.high %v3457_v45, %v3457_v45  ;;  %v3883_v50 = vrot.slane %v3457_v45, 9 }
 0x62d   :  { %3446 = vrot.lane.b32.xlu1 %v3882_v56, %s4493_s20  ;;  %3468 = vst.msk [vmem:[#allocation8 + $0x3] sm:$0x1] %vm2821_vm9, %v3466_v20  ;;  %v3884_v49 = vrot.slane %v3466_v20, 9 }
 0x62f   :  { %3462 = vrot.lane.b32.xlu0 %v3883_v50, %s4493_s20 }
 0x631   :  { %3471 = vrot.lane.b32.xlu1 %v3884_v49, %s4493_s20 }
 0x69d   :  { %v3438_v51 = vpop.permute.xlu0 %3437 }
 0x69e   :  { %3440 = vst.msk [vmem:[#allocation8] sm:$0x1] %vm2844_vm11, %v3438_v51 }
 0x69f   :  { %v3447_v11 = vpop.permute.xlu1 %3446 }
 0x6a0   :  { %3449 = vst.msk [vmem:[#allocation8 + $0x2] sm:$0x1] %vm2844_vm11, %v3447_v11 }
 0x6a1   :  { %v3463_v46 = vpop.permute.xlu0 %3462 }
 0x6a2   :  { %3465 = vst.msk [vmem:[#allocation8 + $0x1] sm:$0x1] %vm2844_vm11, %v3463_v46 }
 0x6a3   :  { %v3472_v33 = vpop.permute.xlu1 %3471 }
 0x6a4   :  { %3474 = vst.msk [vmem:[#allocation8 + $0x3] sm:$0x1] %vm2844_vm11, %v3472_v33 }
 0x6ab   :  { %v3885_v55 = vld.sshfl [vmem:[#allocation8] sm:$0x33 pattern:$0x76325410] }
 0x6ac   :  { %v3484_v40 = vcombine.high %v3885_v55, %v3885_v55  ;;  %v3487_v61 = vpack.c.bf16 %v3885_v55, %v3885_v55 }
 0x6ae   :  { %v3488_v60 = vpack.c.bf16 %v3484_v40, %v3484_v40 }
 0x6b0   :  { %3656 = vmatprep.mubr.bf16.mxu0 %v3488_v60 }
 0x6b1   :  { %3657 = vmatmul.mubr.bf16.vlgmr.msra.gmra.mxu0 %v3487_v61 }
 0x771   :  { %v4030_v1 = vpop.f32.mrf.mxu0 }
 0x773   :  { %v4031_v4 = vpop.f32.mrf.mxu0 }
 0x774   :  { %v4032_v5 = vadd.f32 %v4031_v4, %v4030_v1 }
 0x775   :  { %v4033_v53 = vpop.f32.mrf.mxu0 }
 0x776   :  { %v3659_v0 = vadd.f32 %v4032_v5, %v3886_v41 }
 0x777   :  { %v4034_v6 = vpop.f32.mrf.mxu0 }
 0x778   :  { %v3664_v7 = vsub.f32 0.0, %v3659_v0 }
 0x77a   :  { %v3665_v54 = vmul.f32 1.442695, %v3664_v7 }
 0x77c   :  { %4484 = vpow2.f32 %v3665_v54 }
 0x789   :  { %v4485_v58 = vpop.eup %4484 }
 0x78a   :  { %v3667_v13 = vadd.f32 1.0, %v4485_v58 }
 0x78c   :  { %4486 = vrcp.f32 %v3667_v13 }
 0x799   :  { %v4487_v23 = vpop.eup %4486 }
 0x79a   :  { %v3669_v14 = vmul.f32 %v4487_v23, %v3659_v0 }
 0x79c   :  { %v3670_v17 = vpack.c.bf16 %v3669_v14, %v3669_v14 }
 0x79e   :  { %4118 = vmatmul.mubr.msk.bf16.vlgmr.msra.gmra.mxu1 %vm90_vm8, %v3670_v17 }
 0x85e   :  { %v3747_v16 = vpop.f32.mrf.mxu1 }
 0x85f   :  { %v3748_v32 = vadd.f32 %v3903_v15, %v3747_v16 }
 0x860   :  { %v4119_v25 = vpop.f32.mrf.mxu1 }
 0x861   :  { %3753 = vst [vmem:[%s5766_s13] sm:$0x3] %v3748_v32 }
 0x862   :  { %v3750_v18 = vpop.f32.mrf.mxu1 }
 0x864   :  { %v4120_v29 = vpop.f32.mrf.mxu1 }

</bundles_post_ra>
